<compile_context>
chip_gen: v6e
topology: v6e:2x2x1
jax: 0.10.0
libtpu: 0.0.40
codegen_flags: <defaults>
</compile_context>

<pallas_src>
import math
from functools import partial

import jax
import jax.numpy as jnp
from jax.experimental import pallas as pl
from jax.experimental.pallas import tpu as pltpu

_SQRT2 = math.sqrt(2.0)
_INV_SQRT2 = 1.0 / math.sqrt(2.0)
_LANES = 128


def _round_up(x, m):
    return ((x + m - 1) // m) * m


def _pick_row_tile(H, W, target_rows=1024):
    """Largest divisor TH of H with TH*W <= max(target_rows, W): bounds matmul M / acc VMEM."""
    best = 1
    for th in range(1, H + 1):
        if H % th == 0 and th * W <= max(target_rows, W):
            best = th
    return best


def _resnet_block_kernel(*refs, H, W, Cin_p, Cout_p, TH, has_skip_conv):
    """Fused ResnetBlock forward for one batch element.

    Inputs (bf16 unless noted):
      x_ref (H+2, W+2, Cin_p)  spatially pre-padded (zero halo) on the host
      s1 (Cin_p, 1) f32   d1 (1, Cout_p) f32   b1 (1, Cout_p) f32
      s2 (Cout_p, 1) f32  d2 (1, Cout_p) f32   b2 (1, Cout_p) f32
      w1 (9, Cin_p, Cout_p)   w2 (9, Cout_p, Cout_p)   [wskip (Cin_p, Cout_p)]
    Output: o_ref (H, W, Cout_p) out_dtype (default bf16)
    Scratch: hpad (H+2, W+2, Cout_p) bf16 (zero-halo slab for the conv1 output).
    """
    if has_skip_conv:
        (x_ref, s1_ref, d1_ref, b1_ref, s2_ref, d2_ref, b2_ref,
         w1_ref, w2_ref, wskip_ref, o_ref, hpad_ref) = refs
    else:
        (x_ref, s1_ref, d1_ref, b1_ref, s2_ref, d2_ref, b2_ref,
         w1_ref, w2_ref, o_ref, hpad_ref) = refs
        wskip_ref = None

    # Zero ONLY the 1-element halo border of the conv1-output slab; the interior is fully
    # overwritten below.  Re-done every grid step (O(H+W) stores, not O(H*W)) so it is safe even
    # when the batch grid axis is split across TensorCores (each core has its own scratch).
    hpad_ref[0:1, :, :] = jnp.zeros((1, W + 2, Cout_p), jnp.bfloat16)
    hpad_ref[H + 1:H + 2, :, :] = jnp.zeros((1, W + 2, Cout_p), jnp.bfloat16)
    hpad_ref[:, 0:1, :] = jnp.zeros((H + 2, 1, Cout_p), jnp.bfloat16)
    hpad_ref[:, W + 1:W + 2, :] = jnp.zeros((H + 2, 1, Cout_p), jnp.bfloat16)

    n_row_blocks = H // TH

    def styled_conv(src_ref, w_taps, demod, bias, cin_p, emit):
        """Modulated 3x3 conv + demod + bias + FusedLeakyReLU.

        Per row block: 9 accumulating MXU matmuls (one per tap) -> no big im2col concat buffer;
        the 3 dx-shifted windows are built once and reused across dy (3 relayouts, not 9).
        """
        def row_block(r0):
            win = src_ref[pl.ds(r0, TH + 2), :, :]                        # (TH+2, W+2, cin_p)
            shifted = [win[:, dx:dx + W, :] for dx in range(3)]           # 3 dx-shifted windows
            acc = None
            for dy in range(3):
                for dx in range(3):
                    tap = shifted[dx][dy:dy + TH].reshape(TH * W, cin_p)  # (TH*W, cin_p)
                    part = jnp.dot(tap, w_taps[3 * dy + dx],
                                   preferred_element_type=jnp.float32)    # MXU, f32 accumulate
                    acc = part if acc is None else acc + part
            out = acc * demod + bias
            out = jnp.where(out >= 0.0, out, 0.2 * out) * _SQRT2          # FusedLeakyReLU
            emit(r0, out)

        if n_row_blocks <= 4:
            for rb in range(n_row_blocks):                                # small count: unroll
                row_block(rb * TH)
        else:
            def body(rb, carry):                                          # long loops: fori_loop
                row_block(pl.multiple_of(rb * TH, TH))                    # bounds live ranges
                return carry
            jax.lax.fori_loop(0, n_row_blocks, body, 0)

    # ---- conv1: modulate the (small) weight, not the activation slab. ----
    w1m = (w1_ref[...].astype(jnp.float32) * s1_ref[...]).astype(jnp.bfloat16)  # (9,Cin_p,Cout_p)

    def emit_h(r0, out):
        hpad_ref[pl.ds(r0 + 1, TH), 1:W + 1, :] = (
            out.reshape(TH, W, Cout_p).astype(jnp.bfloat16))

    styled_conv(x_ref, w1m, d1_ref[...], b1_ref[...], Cin_p, emit_h)

    # ---- conv2 + skip + (skip + res)/sqrt(2), fused epilogue. ----
    w2m = (w2_ref[...].astype(jnp.float32) * s2_ref[...]).astype(jnp.bfloat16)  # (9,Cout_p,Cout_p)

    def emit_o(r0, res):
        xrows = x_ref[pl.ds(r0 + 1, TH), 1:W + 1, :].reshape(TH * W, Cin_p)
        if has_skip_conv:
            skip = jnp.dot(xrows, wskip_ref[...],
                           preferred_element_type=jnp.float32)            # EqualConv2d 1x1 skip
        else:
            skip = xrows.astype(jnp.float32)                              # identity skip
        o_ref[pl.ds(r0, TH), :, :] = (
            ((skip + res) * _INV_SQRT2).reshape(TH, W, Cout_p).astype(o_ref.dtype))

    styled_conv(hpad_ref, w2m, d2_ref[...], b2_ref[...], Cout_p, emit_o)


def resolution_preserving_resnet_block(x_nchw, style, params, *,
                                       out_dtype=jnp.bfloat16, nhwc_padded_out=False):
    """Forward pass of ResolutionPreservingResnetBlock.

    x: (B, Cin, H, W) f32, style: (B, styledim).  Returns NCHW (module parity) unless
    `nhwc_padded_out=True`, which returns the raw (B, H, W, Cout_p) kernel output and skips the
    extra XLA slice+transpose HBM passes (preferred when the consumer can read NHWC directly).
    """
    B, Cin, H, W = x_nchw.shape
    Cout = params["conv1"]["conv_w"].shape[0]
    styledim = style.shape[1]
    Cin_p = _round_up(Cin, _LANES)
    Cout_p = _round_up(Cout, _LANES)
    TH = _pick_row_tile(H, W)

    # NCHW -> NHWC.  The spatial (+1 per side) zero halo and lane-dense channel padding are folded
    # into ONE host pad, so the kernel needs no in-kernel x halo slab / copy.
    x_nhwc = jnp.transpose(x_nchw.astype(jnp.float32), (0, 2, 3, 1))
    x_p = jnp.pad(x_nhwc, ((0, 0), (1, 1), (1, 1), (0, Cin_p - Cin))).astype(jnp.bfloat16)

    def prep(p, cic, cic_p):
        cw = p["conv_w"].astype(jnp.float32)                               # (Cout, cic, 3, 3)
        conv_scale = 1.0 / math.sqrt(cic * 9)
        lin_scale = 1.0 / math.sqrt(styledim)
        # EqualLinear style modulation (tiny -> stays in XLA glue).
        s = style.astype(jnp.float32) @ (p["mod_w"].astype(jnp.float32).T * lin_scale) + p["mod_b"]
        w_scaled = conv_scale * cw
        # demod = rsqrt(sum_{cin,kh,kw} (s*w)^2 + eps) via a (B,cic)x(cic,Cout) matmul
        # (no (B,Cout,cic,3,3) intermediate).
        wsq = jnp.transpose(jnp.sum(w_scaled * w_scaled, axis=(2, 3)), (1, 0))   # (cic, Cout)
        demod = jax.lax.rsqrt((s * s) @ wsq + 1e-8)                              # (B, Cout)
        # Tap-major weight (9, cic, Cout), channel-padded, bf16.
        w9 = jnp.transpose(w_scaled, (2, 3, 1, 0)).reshape(9, cic, Cout)
        w9 = jnp.pad(w9, ((0, 0), (0, cic_p - cic), (0, Cout_p - Cout))).astype(jnp.bfloat16)
        # NOTE: the (B, cic_p, 1) style tile pads to (cic_p, 128) f32 lanes in VMEM; kept
        # sublane-major so the in-kernel weight modulation broadcasts without a relayout.
        s_p = jnp.pad(s, ((0, 0), (0, cic_p - cic)))[:, :, None]                 # (B, cic_p, 1)
        d_p = jnp.pad(demod, ((0, 0), (0, Cout_p - Cout)))[:, None, :]           # (B, 1, Cout_p)
        b_p = jnp.pad(p["act_bias"].astype(jnp.float32), (0, Cout_p - Cout))[None, :]
        return w9, s_p, d_p, b_p

    w1, s1, d1, b1 = prep(params["conv1"], Cin, Cin_p)
    w2, s2, d2, b2 = prep(params["conv2"], Cout, Cout_p)

    has_skip_conv = "skip_w" in params
    inputs = [x_p, s1, d1, b1, s2, d2, b2, w1, w2]
    # NOTE: w1/w2/wskip/b1/b2 are grid-invariant; single-buffering them (pipeline_mode=
    # pl.Buffered(1)) would halve their VMEM footprint once verified on the target jax version.
    in_specs = [
        pl.BlockSpec((None, H + 2, W + 2, Cin_p), lambda b: (b, 0, 0, 0)),
        pl.BlockSpec((None, Cin_p, 1), lambda b: (b, 0, 0)),
        pl.BlockSpec((None, 1, Cout_p), lambda b: (b, 0, 0)),
        pl.BlockSpec((1, Cout_p), lambda b: (0, 0)),
        pl.BlockSpec((None, Cout_p, 1), lambda b: (b, 0, 0)),
        pl.BlockSpec((None, 1, Cout_p), lambda b: (b, 0, 0)),
        pl.BlockSpec((1, Cout_p), lambda b: (0, 0)),
        pl.BlockSpec((9, Cin_p, Cout_p), lambda b: (0, 0, 0)),
        pl.BlockSpec((9, Cout_p, Cout_p), lambda b: (0, 0, 0)),
    ]
    if has_skip_conv:
        # EqualConv2d 1x1, no bias: (Cin, Cout) matmul weight (scaled by 1/sqrt(Cin)).
        wsk = jnp.transpose(params["skip_w"][:, :, 0, 0].astype(jnp.float32), (1, 0)) / math.sqrt(Cin)
        wsk = jnp.pad(wsk, ((0, Cin_p - Cin), (0, Cout_p - Cout))).astype(jnp.bfloat16)
        inputs.append(wsk)
        in_specs.append(pl.BlockSpec((Cin_p, Cout_p), lambda b: (0, 0)))

    kern = partial(_resnet_block_kernel, H=H, W=W, Cin_p=Cin_p, Cout_p=Cout_p,
                   TH=TH, has_skip_conv=has_skip_conv)

    # VMEM budget derived from slabs + double-buffered blocks + in-kernel transients.
    out_bytes = jnp.dtype(out_dtype).itemsize
    est = 0
    est += 2 * (H + 2) * (W + 2) * Cin_p * 2                 # x block (double-buffered, bf16)
    est += 2 * H * W * Cout_p * out_bytes                    # out block (double-buffered)
    est += 2 * (9 * Cin_p * Cout_p + 9 * Cout_p * Cout_p + Cin_p * Cout_p) * 2   # weights
    est += (H + 2) * (W + 2) * Cout_p * 2                    # hpad scratch
    est += (9 * Cin_p * Cout_p + 9 * Cout_p * Cout_p) * 6    # modulated-weight f32+bf16 transients
    est += 4 * (TH + 2) * W * max(Cin_p, Cout_p) * 2         # shifted windows / tap transients
    est += 4 * TH * W * Cout_p * 4                           # f32 acc / epilogue transients
    est += 2 * 1024 * 1024                                   # small vectors + slack
    vmem_limit = min(max(est, 16 * 1024 * 1024), 100 * 1024 * 1024)

    # TODO(synk): for v7x (64 MiB VMEM, 2 TCs) add a second parallel grid axis over row blocks with
    # a 2-row halo re-fetch instead of whole-image-per-step slabs; not needed at v5e/v6e sizes.
    out_p = pl.pallas_call(
        kern,
        out_shape=jax.ShapeDtypeStruct((B, H, W, Cout_p), out_dtype),
        grid=(B,),
        in_specs=in_specs,
        out_specs=pl.BlockSpec((None, H, W, Cout_p), lambda b: (b, 0, 0, 0)),
        scratch_shapes=[
            pltpu.VMEM((H + 2, W + 2, Cout_p), jnp.bfloat16),   # zero-halo conv1-output slab
        ],
        compiler_params=pltpu.CompilerParams(
            dimension_semantics=("parallel",),          # batch axis -> megacore split on v7x
            vmem_limit_bytes=vmem_limit,
        ),
    )(*inputs)

    if nhwc_padded_out:
        return out_p                                    # (B, H, W, Cout_p), channels padded
    # Module-parity path: drop channel padding, back to NCHW (two extra XLA passes over the output).
    return jnp.transpose(out_p[..., :Cout], (0, 3, 1, 2))


def init_params(key, inch, outch, styledim):
    """Deterministic synthetic parameters with the same shapes/init as the PyTorch module."""
    ks = jax.random.split(key, 5)
    params = {
        "conv1": {  # StyledConv(inch -> outch)
            "conv_w": jax.random.normal(ks[0], (outch, inch, 3, 3), jnp.float32),
            "mod_w": jax.random.normal(ks[1], (inch, styledim), jnp.float32),
            "mod_b": jnp.ones((inch,), jnp.float32),          # EqualLinear bias_init=1
            "act_bias": jnp.zeros((outch,), jnp.float32),     # FusedLeakyReLU.bias
        },
        "conv2": {  # StyledConv(outch -> outch)
            "conv_w": jax.random.normal(ks[2], (outch, outch, 3, 3), jnp.float32),
            "mod_w": jax.random.normal(ks[3], (outch, styledim), jnp.float32),
            "mod_b": jnp.ones((outch,), jnp.float32),
            "act_bias": jnp.zeros((outch,), jnp.float32),
        },
    }
    if inch != outch:
        params["skip_w"] = jax.random.normal(ks[4], (outch, inch, 1, 1), jnp.float32)
    return params


if __name__ == "__main__":
    # TODO(synk): NoiseInjection is omitted -- its weight initializes to 0, so the noise term
    # is exactly zero at init; skipped to keep the script deterministic.
    B, inch, outch, styledim, H, W = 2, 4, 8, 8, 16, 16
    key = jax.random.PRNGKey(0)
    kx, kst, kp = jax.random.split(key, 3)
    x = jax.random.normal(kx, (B, inch, H, W), jnp.float32)
    style = jax.random.normal(kst, (B, styledim), jnp.float32)
    params = init_params(kp, inch, outch, styledim)

    out = resolution_preserving_resnet_block(x, style, params)
    jax.block_until_ready(out)
    assert out.shape == (B, outch, H, W) and out.dtype == jnp.bfloat16
    print("KERNEL_OK")
</pallas_src>

<mosaic_0001>
module attributes {stable_mosaic.version = 11 : i64} {
  func.func @_resnet_block_kernel(%arg0: i32, %arg1: memref<1x18x18x128xbf16, #tpu.memory_space<vmem>>, %arg2: memref<1x128x1xf32, #tpu.memory_space<vmem>>, %arg3: memref<1x1x128xf32, #tpu.memory_space<vmem>>, %arg4: memref<1x128xf32, #tpu.memory_space<vmem>>, %arg5: memref<1x128x1xf32, #tpu.memory_space<vmem>>, %arg6: memref<1x1x128xf32, #tpu.memory_space<vmem>>, %arg7: memref<1x128xf32, #tpu.memory_space<vmem>>, %arg8: memref<9x128x128xbf16, #tpu.memory_space<vmem>>, %arg9: memref<9x128x128xbf16, #tpu.memory_space<vmem>>, %arg10: memref<128x128xbf16, #tpu.memory_space<vmem>>, %arg11: memref<1x16x16x128xbf16, #tpu.memory_space<vmem>>, %arg12: memref<18x18x128xbf16, #tpu.memory_space<vmem>>) attributes {dimension_semantics = [#tpu.dimension_semantics<parallel>], iteration_bounds = array<i64: 2>, scalar_prefetch = 0 : i64, scratch_operands = 1 : i64, tpu.core_type = #tpu.core_type<tc>, window_params = [{transform_indices = @transform_0, window_bounds = array<i64: 1, 18, 18, 128>}, {transform_indices = @transform_1, window_bounds = array<i64: 1, 128, 1>}, {transform_indices = @transform_2, window_bounds = array<i64: 1, 1, 128>}, {pipeline_mode = #tpu.pipeline_mode<synchronous>, transform_indices = @transform_3, window_bounds = array<i64: 1, 128>}, {transform_indices = @transform_4, window_bounds = array<i64: 1, 128, 1>}, {transform_indices = @transform_5, window_bounds = array<i64: 1, 1, 128>}, {pipeline_mode = #tpu.pipeline_mode<synchronous>, transform_indices = @transform_6, window_bounds = array<i64: 1, 128>}, {pipeline_mode = #tpu.pipeline_mode<synchronous>, transform_indices = @transform_7, window_bounds = array<i64: 9, 128, 128>}, {pipeline_mode = #tpu.pipeline_mode<synchronous>, transform_indices = @transform_8, window_bounds = array<i64: 9, 128, 128>}, {pipeline_mode = #tpu.pipeline_mode<synchronous>, transform_indices = @transform_9, window_bounds = array<i64: 128, 128>}, {transform_indices = @transform_10, window_bounds = array<i64: 1, 16, 16, 128>}]} {
    %cst = arith.constant 0.000000e+00 : bf16
    %0 = vector.broadcast %cst : bf16 to vector<1x18x128xbf16>
    %c0 = arith.constant 0 : index
    %c0_0 = arith.constant 0 : index
    %c0_1 = arith.constant 0 : index
    %1 = vector.load %arg12[%c0, %c0_0, %c0_1] : memref<18x18x128xbf16, #tpu.memory_space<vmem>>, vector<1x18x128xbf16>
    tpu.vector_store %arg12[%c0, %c0_0, %c0_1], %0 {strides = array<i32>} : memref<18x18x128xbf16, #tpu.memory_space<vmem>>, vector<1x18x128xbf16>,
    %cst_2 = arith.constant 0.000000e+00 : bf16
    %2 = vector.broadcast %cst_2 : bf16 to vector<1x18x128xbf16>
    %c17 = arith.constant 17 : index
    %c0_3 = arith.constant 0 : index
    %c0_4 = arith.constant 0 : index
    %3 = vector.load %arg12[%c17, %c0_3, %c0_4] : memref<18x18x128xbf16, #tpu.memory_space<vmem>>, vector<1x18x128xbf16>
    tpu.vector_store %arg12[%c17, %c0_3, %c0_4], %2 {strides = array<i32>} : memref<18x18x128xbf16, #tpu.memory_space<vmem>>, vector<1x18x128xbf16>,
    %cst_5 = arith.constant 0.000000e+00 : bf16
    %4 = vector.broadcast %cst_5 : bf16 to vector<18x1x128xbf16>
    %c0_6 = arith.constant 0 : index
    %c0_7 = arith.constant 0 : index
    %c0_8 = arith.constant 0 : index
    %5 = vector.load %arg12[%c0_6, %c0_7, %c0_8] : memref<18x18x128xbf16, #tpu.memory_space<vmem>>, vector<18x1x128xbf16>
    tpu.vector_store %arg12[%c0_6, %c0_7, %c0_8], %4 {strides = array<i32>} : memref<18x18x128xbf16, #tpu.memory_space<vmem>>, vector<18x1x128xbf16>,
    %cst_9 = arith.constant 0.000000e+00 : bf16
    %6 = vector.broadcast %cst_9 : bf16 to vector<18x1x128xbf16>
    %c0_10 = arith.constant 0 : index
    %c17_11 = arith.constant 17 : index
    %c0_12 = arith.constant 0 : index
    %7 = vector.load %arg12[%c0_10, %c17_11, %c0_12] : memref<18x18x128xbf16, #tpu.memory_space<vmem>>, vector<18x1x128xbf16>
    tpu.vector_store %arg12[%c0_10, %c17_11, %c0_12], %6 {strides = array<i32>} : memref<18x18x128xbf16, #tpu.memory_space<vmem>>, vector<18x1x128xbf16>,
    %c0_13 = arith.constant 0 : index
    %c0_14 = arith.constant 0 : index
    %c0_15 = arith.constant 0 : index
    %8 = vector.load %arg8[%c0_13, %c0_14, %c0_15] : memref<9x128x128xbf16, #tpu.memory_space<vmem>>, vector<9x128x128xbf16>
    %9 = arith.extf %8 : vector<9x128x128xbf16> to vector<9x128x128xf32>
    %c0_16 = arith.constant 0 : index
    %c0_17 = arith.constant 0 : index
    %c0_18 = arith.constant 0 : index
    %10 = vector.load %arg2[%c0_16, %c0_17, %c0_18] : memref<1x128x1xf32, #tpu.memory_space<vmem>>, vector<1x128x1xf32>
    %11 = vector.shape_cast %10 : vector<1x128x1xf32> to vector<128x1xf32>
    %12 = vector.shape_cast %11 : vector<128x1xf32> to vector<1x128x1xf32>
    %13 = vector.broadcast %12 : vector<1x128x1xf32> to vector<9x128x128xf32>
    %14 = arith.mulf %9, %13 : vector<9x128x128xf32>
    %15 = arith.truncf %14 : vector<9x128x128xf32> to vector<9x128x128xbf16>
    %c0_19 = arith.constant 0 : index
    %c0_20 = arith.constant 0 : index
    %c0_21 = arith.constant 0 : index
    %16 = vector.load %arg3[%c0_19, %c0_20, %c0_21] : memref<1x1x128xf32, #tpu.memory_space<vmem>>, vector<1x1x128xf32>
    %17 = vector.shape_cast %16 : vector<1x1x128xf32> to vector<1x128xf32>
    %c0_22 = arith.constant 0 : index
    %c0_23 = arith.constant 0 : index
    %18 = vector.load %arg4[%c0_22, %c0_23] : memref<1x128xf32, #tpu.memory_space<vmem>>, vector<1x128xf32>
    %c0_24 = arith.constant 0 : index
    %c0_25 = arith.constant 0 : index
    %c0_26 = arith.constant 0 : index
    %c0_27 = arith.constant 0 : index
    %19 = vector.load %arg1[%c0_24, %c0_25, %c0_26, %c0_27] : memref<1x18x18x128xbf16, #tpu.memory_space<vmem>>, vector<1x18x18x128xbf16>
    %20 = vector.shape_cast %19 : vector<1x18x18x128xbf16> to vector<18x18x128xbf16>
    %21 = vector.extract_strided_slice %20 {offsets = [0, 0, 0], sizes = [18, 16, 128], strides = [1, 1, 1]} : vector<18x18x128xbf16> to vector<18x16x128xbf16>
    %22 = vector.extract_strided_slice %20 {offsets = [0, 1, 0], sizes = [18, 16, 128], strides = [1, 1, 1]} : vector<18x18x128xbf16> to vector<18x16x128xbf16>
    %23 = vector.extract_strided_slice %20 {offsets = [0, 2, 0], sizes = [18, 16, 128], strides = [1, 1, 1]} : vector<18x18x128xbf16> to vector<18x16x128xbf16>
    %24 = vector.extract_strided_slice %21 {offsets = [0, 0, 0], sizes = [16, 16, 128], strides = [1, 1, 1]} : vector<18x16x128xbf16> to vector<16x16x128xbf16>
    %25 = vector.shape_cast %24 : vector<16x16x128xbf16> to vector<256x128xbf16>
    %26 = vector.extract_strided_slice %15 {offsets = [0, 0, 0], sizes = [1, 128, 128], strides = [1, 1, 1]} : vector<9x128x128xbf16> to vector<1x128x128xbf16>
    %27 = vector.shape_cast %26 : vector<1x128x128xbf16> to vector<128x128xbf16>
    %cst_28 = arith.constant dense<0.000000e+00> : vector<256x128xf32>
    %28 = tpu.matmul %25, %27, %cst_28 {dimension_numbers = #tpu.dot_dimension_numbers<[1], [0], [0], [1], [0, 0, 1, 1], [], []>} : vector<256x128xbf16>, vector<128x128xbf16>, vector<256x128xf32> -> vector<256x128xf32>
    %29 = vector.extract_strided_slice %22 {offsets = [0, 0, 0], sizes = [16, 16, 128], strides = [1, 1, 1]} : vector<18x16x128xbf16> to vector<16x16x128xbf16>
    %30 = vector.shape_cast %29 : vector<16x16x128xbf16> to vector<256x128xbf16>
    %31 = vector.extract_strided_slice %15 {offsets = [1, 0, 0], sizes = [1, 128, 128], strides = [1, 1, 1]} : vector<9x128x128xbf16> to vector<1x128x128xbf16>
    %32 = vector.shape_cast %31 : vector<1x128x128xbf16> to vector<128x128xbf16>
    %cst_29 = arith.constant dense<0.000000e+00> : vector<256x128xf32>
    %33 = tpu.matmul %30, %32, %cst_29 {dimension_numbers = #tpu.dot_dimension_numbers<[1], [0], [0], [1], [0, 0, 1, 1], [], []>} : vector<256x128xbf16>, vector<128x128xbf16>, vector<256x128xf32> -> vector<256x128xf32>
    %34 = arith.addf %28, %33 : vector<256x128xf32>
    %35 = vector.extract_strided_slice %23 {offsets = [0, 0, 0], sizes = [16, 16, 128], strides = [1, 1, 1]} : vector<18x16x128xbf16> to vector<16x16x128xbf16>
    %36 = vector.shape_cast %35 : vector<16x16x128xbf16> to vector<256x128xbf16>
    %37 = vector.extract_strided_slice %15 {offsets = [2, 0, 0], sizes = [1, 128, 128], strides = [1, 1, 1]} : vector<9x128x128xbf16> to vector<1x128x128xbf16>
    %38 = vector.shape_cast %37 : vector<1x128x128xbf16> to vector<128x128xbf16>
    %cst_30 = arith.constant dense<0.000000e+00> : vector<256x128xf32>
    %39 = tpu.matmul %36, %38, %cst_30 {dimension_numbers = #tpu.dot_dimension_numbers<[1], [0], [0], [1], [0, 0, 1, 1], [], []>} : vector<256x128xbf16>, vector<128x128xbf16>, vector<256x128xf32> -> vector<256x128xf32>
    %40 = arith.addf %34, %39 : vector<256x128xf32>
    %41 = vector.extract_strided_slice %21 {offsets = [1, 0, 0], sizes = [16, 16, 128], strides = [1, 1, 1]} : vector<18x16x128xbf16> to vector<16x16x128xbf16>
    %42 = vector.shape_cast %41 : vector<16x16x128xbf16> to vector<256x128xbf16>
    %43 = vector.extract_strided_slice %15 {offsets = [3, 0, 0], sizes = [1, 128, 128], strides = [1, 1, 1]} : vector<9x128x128xbf16> to vector<1x128x128xbf16>
    %44 = vector.shape_cast %43 : vector<1x128x128xbf16> to vector<128x128xbf16>
    %cst_31 = arith.constant dense<0.000000e+00> : vector<256x128xf32>
    %45 = tpu.matmul %42, %44, %cst_31 {dimension_numbers = #tpu.dot_dimension_numbers<[1], [0], [0], [1], [0, 0, 1, 1], [], []>} : vector<256x128xbf16>, vector<128x128xbf16>, vector<256x128xf32> -> vector<256x128xf32>
    %46 = arith.addf %40, %45 : vector<256x128xf32>
    %47 = vector.extract_strided_slice %22 {offsets = [1, 0, 0], sizes = [16, 16, 128], strides = [1, 1, 1]} : vector<18x16x128xbf16> to vector<16x16x128xbf16>
    %48 = vector.shape_cast %47 : vector<16x16x128xbf16> to vector<256x128xbf16>
    %49 = vector.extract_strided_slice %15 {offsets = [4, 0, 0], sizes = [1, 128, 128], strides = [1, 1, 1]} : vector<9x128x128xbf16> to vector<1x128x128xbf16>
    %50 = vector.shape_cast %49 : vector<1x128x128xbf16> to vector<128x128xbf16>
    %cst_32 = arith.constant dense<0.000000e+00> : vector<256x128xf32>
    %51 = tpu.matmul %48, %50, %cst_32 {dimension_numbers = #tpu.dot_dimension_numbers<[1], [0], [0], [1], [0, 0, 1, 1], [], []>} : vector<256x128xbf16>, vector<128x128xbf16>, vector<256x128xf32> -> vector<256x128xf32>
    %52 = arith.addf %46, %51 : vector<256x128xf32>
    %53 = vector.extract_strided_slice %23 {offsets = [1, 0, 0], sizes = [16, 16, 128], strides = [1, 1, 1]} : vector<18x16x128xbf16> to vector<16x16x128xbf16>
    %54 = vector.shape_cast %53 : vector<16x16x128xbf16> to vector<256x128xbf16>
    %55 = vector.extract_strided_slice %15 {offsets = [5, 0, 0], sizes = [1, 128, 128], strides = [1, 1, 1]} : vector<9x128x128xbf16> to vector<1x128x128xbf16>
    %56 = vector.shape_cast %55 : vector<1x128x128xbf16> to vector<128x128xbf16>
    %cst_33 = arith.constant dense<0.000000e+00> : vector<256x128xf32>
    %57 = tpu.matmul %54, %56, %cst_33 {dimension_numbers = #tpu.dot_dimension_numbers<[1], [0], [0], [1], [0, 0, 1, 1], [], []>} : vector<256x128xbf16>, vector<128x128xbf16>, vector<256x128xf32> -> vector<256x128xf32>
    %58 = arith.addf %52, %57 : vector<256x128xf32>
    %59 = vector.extract_strided_slice %21 {offsets = [2, 0, 0], sizes = [16, 16, 128], strides = [1, 1, 1]} : vector<18x16x128xbf16> to vector<16x16x128xbf16>
    %60 = vector.shape_cast %59 : vector<16x16x128xbf16> to vector<256x128xbf16>
    %61 = vector.extract_strided_slice %15 {offsets = [6, 0, 0], sizes = [1, 128, 128], strides = [1, 1, 1]} : vector<9x128x128xbf16> to vector<1x128x128xbf16>
    %62 = vector.shape_cast %61 : vector<1x128x128xbf16> to vector<128x128xbf16>
    %cst_34 = arith.constant dense<0.000000e+00> : vector<256x128xf32>
    %63 = tpu.matmul %60, %62, %cst_34 {dimension_numbers = #tpu.dot_dimension_numbers<[1], [0], [0], [1], [0, 0, 1, 1], [], []>} : vector<256x128xbf16>, vector<128x128xbf16>, vector<256x128xf32> -> vector<256x128xf32>
    %64 = arith.addf %58, %63 : vector<256x128xf32>
    %65 = vector.extract_strided_slice %22 {offsets = [2, 0, 0], sizes = [16, 16, 128], strides = [1, 1, 1]} : vector<18x16x128xbf16> to vector<16x16x128xbf16>
    %66 = vector.shape_cast %65 : vector<16x16x128xbf16> to vector<256x128xbf16>
    %67 = vector.extract_strided_slice %15 {offsets = [7, 0, 0], sizes = [1, 128, 128], strides = [1, 1, 1]} : vector<9x128x128xbf16> to vector<1x128x128xbf16>
    %68 = vector.shape_cast %67 : vector<1x128x128xbf16> to vector<128x128xbf16>
    %cst_35 = arith.constant dense<0.000000e+00> : vector<256x128xf32>
    %69 = tpu.matmul %66, %68, %cst_35 {dimension_numbers = #tpu.dot_dimension_numbers<[1], [0], [0], [1], [0, 0, 1, 1], [], []>} : vector<256x128xbf16>, vector<128x128xbf16>, vector<256x128xf32> -> vector<256x128xf32>
    %70 = arith.addf %64, %69 : vector<256x128xf32>
    %71 = vector.extract_strided_slice %23 {offsets = [2, 0, 0], sizes = [16, 16, 128], strides = [1, 1, 1]} : vector<18x16x128xbf16> to vector<16x16x128xbf16>
    %72 = vector.shape_cast %71 : vector<16x16x128xbf16> to vector<256x128xbf16>
    %73 = vector.extract_strided_slice %15 {offsets = [8, 0, 0], sizes = [1, 128, 128], strides = [1, 1, 1]} : vector<9x128x128xbf16> to vector<1x128x128xbf16>
    %74 = vector.shape_cast %73 : vector<1x128x128xbf16> to vector<128x128xbf16>
    %cst_36 = arith.constant dense<0.000000e+00> : vector<256x128xf32>
    %75 = tpu.matmul %72, %74, %cst_36 {dimension_numbers = #tpu.dot_dimension_numbers<[1], [0], [0], [1], [0, 0, 1, 1], [], []>} : vector<256x128xbf16>, vector<128x128xbf16>, vector<256x128xf32> -> vector<256x128xf32>
    %76 = arith.addf %70, %75 : vector<256x128xf32>
    %77 = vector.broadcast %17 : vector<1x128xf32> to vector<256x128xf32>
    %78 = arith.mulf %76, %77 : vector<256x128xf32>
    %79 = vector.broadcast %18 : vector<1x128xf32> to vector<256x128xf32>
    %80 = arith.addf %78, %79 : vector<256x128xf32>
    %cst_37 = arith.constant 0.000000e+00 : f32
    %81 = vector.broadcast %cst_37 : f32 to vector<256x128xf32>
    %82 = arith.cmpf oge, %80, %81 : vector<256x128xf32>
    %cst_38 = arith.constant 2.000000e-01 : f32
    %83 = vector.broadcast %cst_38 : f32 to vector<256x128xf32>
    %84 = arith.mulf %83, %80 : vector<256x128xf32>
    %85 = arith.select %82, %80, %84 : vector<256x128xi1>, vector<256x128xf32>
    %cst_39 = arith.constant 1.41421354 : f32
    %86 = vector.broadcast %cst_39 : f32 to vector<256x128xf32>
    %87 = arith.mulf %85, %86 : vector<256x128xf32>
    %88 = vector.shape_cast %87 : vector<256x128xf32> to vector<16x16x128xf32>
    %89 = arith.truncf %88 : vector<16x16x128xf32> to vector<16x16x128xbf16>
    %c1 = arith.constant 1 : index
    %c1_40 = arith.constant 1 : index
    %c0_41 = arith.constant 0 : index
    %90 = vector.load %arg12[%c1, %c1_40, %c0_41] : memref<18x18x128xbf16, #tpu.memory_space<vmem>>, vector<16x16x128xbf16>
    tpu.vector_store %arg12[%c1, %c1_40, %c0_41], %89 {strides = array<i32>} : memref<18x18x128xbf16, #tpu.memory_space<vmem>>, vector<16x16x128xbf16>,
    %c0_42 = arith.constant 0 : index
    %c0_43 = arith.constant 0 : index
    %c0_44 = arith.constant 0 : index
    %91 = vector.load %arg9[%c0_42, %c0_43, %c0_44] : memref<9x128x128xbf16, #tpu.memory_space<vmem>>, vector<9x128x128xbf16>
    %92 = arith.extf %91 : vector<9x128x128xbf16> to vector<9x128x128xf32>
    %c0_45 = arith.constant 0 : index
    %c0_46 = arith.constant 0 : index
    %c0_47 = arith.constant 0 : index
    %93 = vector.load %arg5[%c0_45, %c0_46, %c0_47] : memref<1x128x1xf32, #tpu.memory_space<vmem>>, vector<1x128x1xf32>
    %94 = vector.shape_cast %93 : vector<1x128x1xf32> to vector<128x1xf32>
    %95 = vector.shape_cast %94 : vector<128x1xf32> to vector<1x128x1xf32>
    %96 = vector.broadcast %95 : vector<1x128x1xf32> to vector<9x128x128xf32>
    %97 = arith.mulf %92, %96 : vector<9x128x128xf32>
    %98 = arith.truncf %97 : vector<9x128x128xf32> to vector<9x128x128xbf16>
    %c0_48 = arith.constant 0 : index
    %c0_49 = arith.constant 0 : index
    %c0_50 = arith.constant 0 : index
    %99 = vector.load %arg6[%c0_48, %c0_49, %c0_50] : memref<1x1x128xf32, #tpu.memory_space<vmem>>, vector<1x1x128xf32>
    %100 = vector.shape_cast %99 : vector<1x1x128xf32> to vector<1x128xf32>
    %c0_51 = arith.constant 0 : index
    %c0_52 = arith.constant 0 : index
    %101 = vector.load %arg7[%c0_51, %c0_52] : memref<1x128xf32, #tpu.memory_space<vmem>>, vector<1x128xf32>
    %c0_53 = arith.constant 0 : index
    %c0_54 = arith.constant 0 : index
    %c0_55 = arith.constant 0 : index
    %102 = vector.load %arg12[%c0_53, %c0_54, %c0_55] : memref<18x18x128xbf16, #tpu.memory_space<vmem>>, vector<18x18x128xbf16>
    %103 = vector.extract_strided_slice %102 {offsets = [0, 0, 0], sizes = [18, 16, 128], strides = [1, 1, 1]} : vector<18x18x128xbf16> to vector<18x16x128xbf16>
    %104 = vector.extract_strided_slice %102 {offsets = [0, 1, 0], sizes = [18, 16, 128], strides = [1, 1, 1]} : vector<18x18x128xbf16> to vector<18x16x128xbf16>
    %105 = vector.extract_strided_slice %102 {offsets = [0, 2, 0], sizes = [18, 16, 128], strides = [1, 1, 1]} : vector<18x18x128xbf16> to vector<18x16x128xbf16>
    %106 = vector.extract_strided_slice %103 {offsets = [0, 0, 0], sizes = [16, 16, 128], strides = [1, 1, 1]} : vector<18x16x128xbf16> to vector<16x16x128xbf16>
    %107 = vector.shape_cast %106 : vector<16x16x128xbf16> to vector<256x128xbf16>
    %108 = vector.extract_strided_slice %98 {offsets = [0, 0, 0], sizes = [1, 128, 128], strides = [1, 1, 1]} : vector<9x128x128xbf16> to vector<1x128x128xbf16>
    %109 = vector.shape_cast %108 : vector<1x128x128xbf16> to vector<128x128xbf16>
    %cst_56 = arith.constant dense<0.000000e+00> : vector<256x128xf32>
    %110 = tpu.matmul %107, %109, %cst_56 {dimension_numbers = #tpu.dot_dimension_numbers<[1], [0], [0], [1], [0, 0, 1, 1], [], []>} : vector<256x128xbf16>, vector<128x128xbf16>, vector<256x128xf32> -> vector<256x128xf32>
    %111 = vector.extract_strided_slice %104 {offsets = [0, 0, 0], sizes = [16, 16, 128], strides = [1, 1, 1]} : vector<18x16x128xbf16> to vector<16x16x128xbf16>
    %112 = vector.shape_cast %111 : vector<16x16x128xbf16> to vector<256x128xbf16>
    %113 = vector.extract_strided_slice %98 {offsets = [1, 0, 0], sizes = [1, 128, 128], strides = [1, 1, 1]} : vector<9x128x128xbf16> to vector<1x128x128xbf16>
    %114 = vector.shape_cast %113 : vector<1x128x128xbf16> to vector<128x128xbf16>
    %cst_57 = arith.constant dense<0.000000e+00> : vector<256x128xf32>
    %115 = tpu.matmul %112, %114, %cst_57 {dimension_numbers = #tpu.dot_dimension_numbers<[1], [0], [0], [1], [0, 0, 1, 1], [], []>} : vector<256x128xbf16>, vector<128x128xbf16>, vector<256x128xf32> -> vector<256x128xf32>
    %116 = arith.addf %110, %115 : vector<256x128xf32>
    %117 = vector.extract_strided_slice %105 {offsets = [0, 0, 0], sizes = [16, 16, 128], strides = [1, 1, 1]} : vector<18x16x128xbf16> to vector<16x16x128xbf16>
    %118 = vector.shape_cast %117 : vector<16x16x128xbf16> to vector<256x128xbf16>
    %119 = vector.extract_strided_slice %98 {offsets = [2, 0, 0], sizes = [1, 128, 128], strides = [1, 1, 1]} : vector<9x128x128xbf16> to vector<1x128x128xbf16>
    %120 = vector.shape_cast %119 : vector<1x128x128xbf16> to vector<128x128xbf16>
    %cst_58 = arith.constant dense<0.000000e+00> : vector<256x128xf32>
    %121 = tpu.matmul %118, %120, %cst_58 {dimension_numbers = #tpu.dot_dimension_numbers<[1], [0], [0], [1], [0, 0, 1, 1], [], []>} : vector<256x128xbf16>, vector<128x128xbf16>, vector<256x128xf32> -> vector<256x128xf32>
    %122 = arith.addf %116, %121 : vector<256x128xf32>
    %123 = vector.extract_strided_slice %103 {offsets = [1, 0, 0], sizes = [16, 16, 128], strides = [1, 1, 1]} : vector<18x16x128xbf16> to vector<16x16x128xbf16>
    %124 = vector.shape_cast %123 : vector<16x16x128xbf16> to vector<256x128xbf16>
    %125 = vector.extract_strided_slice %98 {offsets = [3, 0, 0], sizes = [1, 128, 128], strides = [1, 1, 1]} : vector<9x128x128xbf16> to vector<1x128x128xbf16>
    %126 = vector.shape_cast %125 : vector<1x128x128xbf16> to vector<128x128xbf16>
    %cst_59 = arith.constant dense<0.000000e+00> : vector<256x128xf32>
    %127 = tpu.matmul %124, %126, %cst_59 {dimension_numbers = #tpu.dot_dimension_numbers<[1], [0], [0], [1], [0, 0, 1, 1], [], []>} : vector<256x128xbf16>, vector<128x128xbf16>, vector<256x128xf32> -> vector<256x128xf32>
    %128 = arith.addf %122, %127 : vector<256x128xf32>
    %129 = vector.extract_strided_slice %104 {offsets = [1, 0, 0], sizes = [16, 16, 128], strides = [1, 1, 1]} : vector<18x16x128xbf16> to vector<16x16x128xbf16>
    %130 = vector.shape_cast %129 : vector<16x16x128xbf16> to vector<256x128xbf16>
    %131 = vector.extract_strided_slice %98 {offsets = [4, 0, 0], sizes = [1, 128, 128], strides = [1, 1, 1]} : vector<9x128x128xbf16> to vector<1x128x128xbf16>
    %132 = vector.shape_cast %131 : vector<1x128x128xbf16> to vector<128x128xbf16>
    %cst_60 = arith.constant dense<0.000000e+00> : vector<256x128xf32>
    %133 = tpu.matmul %130, %132, %cst_60 {dimension_numbers = #tpu.dot_dimension_numbers<[1], [0], [0], [1], [0, 0, 1, 1], [], []>} : vector<256x128xbf16>, vector<128x128xbf16>, vector<256x128xf32> -> vector<256x128xf32>
    %134 = arith.addf %128, %133 : vector<256x128xf32>
    %135 = vector.extract_strided_slice %105 {offsets = [1, 0, 0], sizes = [16, 16, 128], strides = [1, 1, 1]} : vector<18x16x128xbf16> to vector<16x16x128xbf16>
    %136 = vector.shape_cast %135 : vector<16x16x128xbf16> to vector<256x128xbf16>
    %137 = vector.extract_strided_slice %98 {offsets = [5, 0, 0], sizes = [1, 128, 128], strides = [1, 1, 1]} : vector<9x128x128xbf16> to vector<1x128x128xbf16>
    %138 = vector.shape_cast %137 : vector<1x128x128xbf16> to vector<128x128xbf16>
    %cst_61 = arith.constant dense<0.000000e+00> : vector<256x128xf32>
    %139 = tpu.matmul %136, %138, %cst_61 {dimension_numbers = #tpu.dot_dimension_numbers<[1], [0], [0], [1], [0, 0, 1, 1], [], []>} : vector<256x128xbf16>, vector<128x128xbf16>, vector<256x128xf32> -> vector<256x128xf32>
    %140 = arith.addf %134, %139 : vector<256x128xf32>
    %141 = vector.extract_strided_slice %103 {offsets = [2, 0, 0], sizes = [16, 16, 128], strides = [1, 1, 1]} : vector<18x16x128xbf16> to vector<16x16x128xbf16>
    %142 = vector.shape_cast %141 : vector<16x16x128xbf16> to vector<256x128xbf16>
    %143 = vector.extract_strided_slice %98 {offsets = [6, 0, 0], sizes = [1, 128, 128], strides = [1, 1, 1]} : vector<9x128x128xbf16> to vector<1x128x128xbf16>
    %144 = vector.shape_cast %143 : vector<1x128x128xbf16> to vector<128x128xbf16>
    %cst_62 = arith.constant dense<0.000000e+00> : vector<256x128xf32>
    %145 = tpu.matmul %142, %144, %cst_62 {dimension_numbers = #tpu.dot_dimension_numbers<[1], [0], [0], [1], [0, 0, 1, 1], [], []>} : vector<256x128xbf16>, vector<128x128xbf16>, vector<256x128xf32> -> vector<256x128xf32>
    %146 = arith.addf %140, %145 : vector<256x128xf32>
    %147 = vector.extract_strided_slice %104 {offsets = [2, 0, 0], sizes = [16, 16, 128], strides = [1, 1, 1]} : vector<18x16x128xbf16> to vector<16x16x128xbf16>
    %148 = vector.shape_cast %147 : vector<16x16x128xbf16> to vector<256x128xbf16>
    %149 = vector.extract_strided_slice %98 {offsets = [7, 0, 0], sizes = [1, 128, 128], strides = [1, 1, 1]} : vector<9x128x128xbf16> to vector<1x128x128xbf16>
    %150 = vector.shape_cast %149 : vector<1x128x128xbf16> to vector<128x128xbf16>
    %cst_63 = arith.constant dense<0.000000e+00> : vector<256x128xf32>
    %151 = tpu.matmul %148, %150, %cst_63 {dimension_numbers = #tpu.dot_dimension_numbers<[1], [0], [0], [1], [0, 0, 1, 1], [], []>} : vector<256x128xbf16>, vector<128x128xbf16>, vector<256x128xf32> -> vector<256x128xf32>
    %152 = arith.addf %146, %151 : vector<256x128xf32>
    %153 = vector.extract_strided_slice %105 {offsets = [2, 0, 0], sizes = [16, 16, 128], strides = [1, 1, 1]} : vector<18x16x128xbf16> to vector<16x16x128xbf16>
    %154 = vector.shape_cast %153 : vector<16x16x128xbf16> to vector<256x128xbf16>
    %155 = vector.extract_strided_slice %98 {offsets = [8, 0, 0], sizes = [1, 128, 128], strides = [1, 1, 1]} : vector<9x128x128xbf16> to vector<1x128x128xbf16>
    %156 = vector.shape_cast %155 : vector<1x128x128xbf16> to vector<128x128xbf16>
    %cst_64 = arith.constant dense<0.000000e+00> : vector<256x128xf32>
    %157 = tpu.matmul %154, %156, %cst_64 {dimension_numbers = #tpu.dot_dimension_numbers<[1], [0], [0], [1], [0, 0, 1, 1], [], []>} : vector<256x128xbf16>, vector<128x128xbf16>, vector<256x128xf32> -> vector<256x128xf32>
    %158 = arith.addf %152, %157 : vector<256x128xf32>
    %159 = vector.broadcast %100 : vector<1x128xf32> to vector<256x128xf32>
    %160 = arith.mulf %158, %159 : vector<256x128xf32>
    %161 = vector.broadcast %101 : vector<1x128xf32> to vector<256x128xf32>
    %162 = arith.addf %160, %161 : vector<256x128xf32>
    %cst_65 = arith.constant 0.000000e+00 : f32
    %163 = vector.broadcast %cst_65 : f32 to vector<256x128xf32>
    %164 = arith.cmpf oge, %162, %163 : vector<256x128xf32>
    %cst_66 = arith.constant 2.000000e-01 : f32
    %165 = vector.broadcast %cst_66 : f32 to vector<256x128xf32>
    %166 = arith.mulf %165, %162 : vector<256x128xf32>
    %167 = arith.select %164, %162, %166 : vector<256x128xi1>, vector<256x128xf32>
    %cst_67 = arith.constant 1.41421354 : f32
    %168 = vector.broadcast %cst_67 : f32 to vector<256x128xf32>
    %169 = arith.mulf %167, %168 : vector<256x128xf32>
    %c0_68 = arith.constant 0 : index
    %c1_69 = arith.constant 1 : index
    %c1_70 = arith.constant 1 : index
    %c0_71 = arith.constant 0 : index
    %170 = vector.load %arg1[%c0_68, %c1_69, %c1_70, %c0_71] : memref<1x18x18x128xbf16, #tpu.memory_space<vmem>>, vector<1x16x16x128xbf16>
    %171 = vector.shape_cast %170 : vector<1x16x16x128xbf16> to vector<16x16x128xbf16>
    %172 = vector.shape_cast %171 : vector<16x16x128xbf16> to vector<256x128xbf16>
    %c0_72 = arith.constant 0 : index
    %c0_73 = arith.constant 0 : index
    %173 = vector.load %arg10[%c0_72, %c0_73] : memref<128x128xbf16, #tpu.memory_space<vmem>>, vector<128x128xbf16>
    %cst_74 = arith.constant dense<0.000000e+00> : vector<256x128xf32>
    %174 = tpu.matmul %172, %173, %cst_74 {dimension_numbers = #tpu.dot_dimension_numbers<[1], [0], [0], [1], [0, 0, 1, 1], [], []>} : vector<256x128xbf16>, vector<128x128xbf16>, vector<256x128xf32> -> vector<256x128xf32>
    %175 = arith.addf %174, %169 : vector<256x128xf32>
    %cst_75 = arith.constant 0.707106769 : f32
    %176 = vector.broadcast %cst_75 : f32 to vector<256x128xf32>
    %177 = arith.mulf %175, %176 : vector<256x128xf32>
    %178 = vector.shape_cast %177 : vector<256x128xf32> to vector<16x16x128xf32>
    %179 = arith.truncf %178 : vector<16x16x128xf32> to vector<16x16x128xbf16>
    %c0_76 = arith.constant 0 : index
    %c0_77 = arith.constant 0 : index
    %c0_78 = arith.constant 0 : index
    %c0_79 = arith.constant 0 : index
    %180 = vector.load %arg11[%c0_76, %c0_77, %c0_78, %c0_79] : memref<1x16x16x128xbf16, #tpu.memory_space<vmem>>, vector<1x16x16x128xbf16>
    %181 = vector.shape_cast %180 : vector<1x16x16x128xbf16> to vector<16x16x128xbf16>
    %182 = vector.shape_cast %179 : vector<16x16x128xbf16> to vector<1x16x16x128xbf16>
    tpu.vector_store %arg11[%c0_76, %c0_77, %c0_78, %c0_79], %182 {strides = array<i32>} : memref<1x16x16x128xbf16, #tpu.memory_space<vmem>>, vector<1x16x16x128xbf16>,
    return
  }
  func.func @transform_0(%arg0: i32) -> (i32, i32, i32, i32) {
    %c0_i32 = arith.constant 0 : i32
    %c0_i32_0 = arith.constant 0 : i32
    %c0_i32_1 = arith.constant 0 : i32
    %c0_i32_2 = arith.constant 0 : i32
    return %arg0, %c0_i32, %c0_i32_0, %c0_i32_1 : i32, i32, i32, i32
  }
  func.func @transform_1(%arg0: i32) -> (i32, i32, i32) {
    %c0_i32 = arith.constant 0 : i32
    %c0_i32_0 = arith.constant 0 : i32
    %c0_i32_1 = arith.constant 0 : i32
    return %arg0, %c0_i32, %c0_i32_0 : i32, i32, i32
  }
  func.func @transform_2(%arg0: i32) -> (i32, i32, i32) {
    %c0_i32 = arith.constant 0 : i32
    %c0_i32_0 = arith.constant 0 : i32
    %c0_i32_1 = arith.constant 0 : i32
    return %arg0, %c0_i32, %c0_i32_0 : i32, i32, i32
  }
  func.func @transform_3(%arg0: i32) -> (i32, i32) {
    %c0_i32 = arith.constant 0 : i32
    %c0_i32_0 = arith.constant 0 : i32
    %c0_i32_1 = arith.constant 0 : i32
    return %c0_i32, %c0_i32_0 : i32, i32
  }
  func.func @transform_4(%arg0: i32) -> (i32, i32, i32) {
    %c0_i32 = arith.constant 0 : i32
    %c0_i32_0 = arith.constant 0 : i32
    %c0_i32_1 = arith.constant 0 : i32
    return %arg0, %c0_i32, %c0_i32_0 : i32, i32, i32
  }
  func.func @transform_5(%arg0: i32) -> (i32, i32, i32) {
    %c0_i32 = arith.constant 0 : i32
    %c0_i32_0 = arith.constant 0 : i32
    %c0_i32_1 = arith.constant 0 : i32
    return %arg0, %c0_i32, %c0_i32_0 : i32, i32, i32
  }
  func.func @transform_6(%arg0: i32) -> (i32, i32) {
    %c0_i32 = arith.constant 0 : i32
    %c0_i32_0 = arith.constant 0 : i32
    %c0_i32_1 = arith.constant 0 : i32
    return %c0_i32, %c0_i32_0 : i32, i32
  }
  func.func @transform_7(%arg0: i32) -> (i32, i32, i32) {
    %c0_i32 = arith.constant 0 : i32
    %c0_i32_0 = arith.constant 0 : i32
    %c0_i32_1 = arith.constant 0 : i32
    %c0_i32_2 = arith.constant 0 : i32
    return %c0_i32, %c0_i32_0, %c0_i32_1 : i32, i32, i32
  }
  func.func @transform_8(%arg0: i32) -> (i32, i32, i32) {
    %c0_i32 = arith.constant 0 : i32
    %c0_i32_0 = arith.constant 0 : i32
    %c0_i32_1 = arith.constant 0 : i32
    %c0_i32_2 = arith.constant 0 : i32
    return %c0_i32, %c0_i32_0, %c0_i32_1 : i32, i32, i32
  }
  func.func @transform_9(%arg0: i32) -> (i32, i32) {
    %c0_i32 = arith.constant 0 : i32
    %c0_i32_0 = arith.constant 0 : i32
    %c0_i32_1 = arith.constant 0 : i32
    return %c0_i32, %c0_i32_0 : i32, i32
  }
  func.func @transform_10(%arg0: i32) -> (i32, i32, i32, i32) {
    %c0_i32 = arith.constant 0 : i32
    %c0_i32_0 = arith.constant 0 : i32
    %c0_i32_1 = arith.constant 0 : i32
    %c0_i32_2 = arith.constant 0 : i32
    return %arg0, %c0_i32, %c0_i32_0, %c0_i32_1 : i32, i32, i32, i32
  }
}

</mosaic_0001>

<bundles_post_ra>
// kernel: tpu_custom_call.1
= control target key start
LH: loop header
LB: loop body
LE: loop exit
PB: predicated region body
PF: predicated region fallthrough
CT: control target
= control target key end

     0   :  { %15 = vsyncpa [#allocation4], 0  ;;  %s16819_s0 = inlined_call_operand.vmem [shape: bf16[2,18,18,128], index: 0, kind: input, shape index: {}]   ;;  %s16820_s1 = inlined_call_operand.vmem [shape: f32[2,128,1], index: 1, kind: input, shape index: {}]   ;;  %s16821_s2 = inlined_call_operand.vmem [shape: f32[2,1,128], index: 2, kind: input, shape index: {}]   ;;  %s16822_s3 = inlined_call_operand.vmem [shape: f32[1,128], index: 3, kind: input, shape index: {}]   ;;  %s16823_s4 = inlined_call_operand.vmem [shape: f32[2,128,1], index: 4, kind: input, shape index: {}]   ;;  %s16824_s5 = inlined_call_operand.vmem [shape: f32[2,1,128], index: 5, kind: input, shape index: {}]   ;;  %s16825_s6 = inlined_call_operand.vmem [shape: f32[1,128], index: 6, kind: input, shape index: {}]   ;;  %s16826_s7 = inlined_call_operand.vmem [shape: bf16[9,128,128], index: 7, kind: input, shape index: {}]   ;;  %s16827_s8 = inlined_call_operand.vmem [shape: bf16[9,128,128], index: 8, kind: input, shape index: {}]   ;;  %s16828_s9 = inlined_call_operand.vmem [shape: bf16[128,128], index: 9, kind: input, shape index: {}]   ;;  %s16829_s10 = inlined_call_operand.hbm [shape: bf16[2,16,16,128], index: 10, kind: output, shape index: {}]  }
   0x1   :  { %17 = vsyncpa [#allocation4 + $0x1], 0  ;;  %s11660_s13 = smov 0   ;;  %s11662_s14 = smov 0  }
   0x2   :  { %s11664_s15 = smov 0   ;;  %s11666_s16 = smov 0  }
   0x3 LB: > { %s11681_s17 = sadd.s32 4294967295, %s11599_s16   ;;  %s8840_s18 = sadd.s32 4294967294, %s11599_s16   ;;  %s11599_s16 = sphi %s11666_s16, %s17917_s16   ;;  %s11595_s15 = sphi %s11664_s15, %s17916_s15   ;;  %s11591_s14 = sphi %s11662_s14, %s17915_s14   ;;  %s11587_s13 = sphi %s11660_s13, %s17914_s13  }
   0x4   : > { %s11685_s19 = sadd.s32 1, %s11599_s16   ;;  %s265_s20 = sadd.s32 1, %s11595_s15 }
   0x5   : > { %s262_s21 = ssub.s32 %s11599_s16, %s11685_s19  ;;  %p275_p0 = scmp.ne.s32.totalorder %s11595_s15, %s11591_s14 }
   0x6   : > { %p263_p1 = scmp.eq.s32.totalorder %s262_s21, 0  ;;  %p276_p2 = scmp.eq.s32.totalorder %s11681_s17, 1 }
   0x7   : > { %p281_p3 = scmp.ne.s32.totalorder %s11591_s14, %s11587_s13  ;;  %p282_p4 = scmp.eq.s32.totalorder %s8840_s18, 1 }
   0x8   : > { %s11696_s22 = scalar_select %p263_p1, %s11595_s15, %s265_s20  }
   0x9   : > { %p11698_p5 = por %p276_p2, %p275_p0  ;;  %p11702_p6 = por %p282_p4, %p281_p3 }
   0xa   : > { %p8843_p7 = scmp.ge.s32.totalorder %s11599_s16, 1  ;;  %p351_p8 = scmp.lt.s32.totalorder %s11599_s16, 3 }
   0xc   : > { %p352_p9 = pnand %p8843_p7, %p351_p8 }
   0xe   : > { %355 = sbr.rel (%p352_p9) target bundleno = 1330 (0x532), region = 60 }
  0x13   : > { %v11601_v0 = vmov 0   ;;  %p405_p10 = scmp.lt.s32.totalorder %s11681_s17, 1  ;;  %vm435_vm0 = vsmask.f32 256  ;;  %vm491_vm1 = vsmask.f32 7938 }
  0x14   : > { %11447 = vset.pattern.permute.xlu1 %v11601_v0  ;;  %427 = vst [vmem:[#allocation2] sm:$0xf] %v11601_v0  ;;  %428 = vst [vmem:[#allocation2 + $0x4] sm:$0xf] %v11601_v0  ;;  %11446 = vset.pattern.permute.xlu0 %v11601_v0  ;;  %vm434_vm2 = vcmask 1040384   ;;  %v17125_v1 = vmov 0 }
  0x15   : > { %429 = vst [vmem:[#allocation2 + $0x8] sm:$0x1] %v11601_v0  ;;  %431 = vst [vmem:[#allocation2 + $0xcc] sm:$0xf] %v11601_v0  ;;  %s11710_s25 = scalar_select %p405_p10, %s11681_s17, 1  ;;  %v17128_v2 = vmov 0 }
  0x16   : > { %432 = vst [vmem:[#allocation2 + $0xd0] sm:$0xf] %v11601_v0  ;;  %433 = vst [vmem:[#allocation2 + $0xd4] sm:$0x1] %v11601_v0  ;;  %vm1203_vm5 = vsmask.f32 3328 }
  0x17   : > { %s9139_s26 = sshll.u32 %s11710_s25, 7  ;;  %vm11714_vm3 = vmand %vm434_vm2, %vm435_vm0  ;;  %s11403_s30 = smul.u32 216, %s11710_s25  ;;  %vm1204_vm6 = vsmask.f32 7440  ;;  %v17133_v58 = vmov 0  ;;  %v11793_v63 = vld [vmem:[%s16826_s7 + $0x78] sm:$0xff]  }
  0x18   : > { %v17126_v1 = vsel %vm11714_vm3, 4294967295, %v17125_v1  ;;  %s11723_s29 = scalar_lea.vmem %s16820_s1, %s9139_s26  ;;  %vm11726_vm4 = vmand %vm434_vm2, %vm491_vm1  ;;  %s11777_s27 = scalar_lea.vmem %s16823_s4, %s9139_s26  ;;  %17136 = vst [vmem:[#allocation11_spill] sm:$0xff] %v11793_v63  ;;  %vm2088_vm8 = vcmask 1042432   ;;  %vm2089_vm9 = vcmask 1046532   ;;  %vm4333_vm11 = vcmask 1043456  }
  0x19   : > { %17127 = vst [vmem:[#allocation6_spill] sm:$0xff] %v17126_v1  ;;  %v17129_v2 = vsel %vm11726_vm4, 4294967295, %v17128_v2  ;;  %v849_v3 = vld [vmem:[%s11723_s29 + $0x70] sm:$0xff]  ;;  %v847_v4 = vld [vmem:[%s11723_s29 + $0x60] sm:$0xff]  ;;  %v850_v12 = vld [vmem:[%s11723_s29 + $0x78] sm:$0xff]  ;;  %s11755_s18 = scalar_lea.vmem %s16819_s0, %s11403_s30  ;;  %s425_s20 = scalar_lea.vmem %s16824_s5, %s11710_s25 }
  0x1a   : > { %17130 = vst [vmem:[#allocation7_spill] sm:$0xff] %v17129_v2  ;;  %923 = vperm.xlu0 %11446, %v849_v3   ;;  %913 = vperm.xlu1 %11447, %v847_v4   ;;  %v848_v14 = vld [vmem:[%s11723_s29 + $0x68] sm:$0xff]  ;;  %v846_v15 = vld [vmem:[%s11723_s29 + $0x58] sm:$0xff]  ;;  %v845_v16 = vld [vmem:[%s11723_s29 + $0x50] sm:$0xff]  ;;  %vm4010_vm14 = vsmask.f32 4368 }
  0x1b   : > { %v437_v5 = vld [vmem:[#allocation2] sm:$0x1]  ;;  %v844_v17 = vld [vmem:[%s11723_s29 + $0x48] sm:$0xff]  ;;  %v842_v19 = vld [vmem:[%s11723_s29 + $0x38] sm:$0xff] }
  0x1c   : > { %v488_v6 = vld [vmem:[#allocation2 + $0xcc] sm:$0x1]  ;;  %v493_v7 = vld [vmem:[#allocation2 + $0x8] sm:$0x1]  ;;  %v438_v8 = vsel %vm11714_vm3, 0, %v437_v5  ;;  %v843_v18 = vld [vmem:[%s11723_s29 + $0x40] sm:$0xff] }
  0x1d   : > { %v489_v9 = vsel %vm11714_vm3, 0, %v488_v6  ;;  %v494_v10 = vsel %vm11726_vm4, 0, %v493_v7  ;;  %v544_v11 = vld [vmem:[#allocation2 + $0xd4] sm:$0x1]  ;;  %439 = vst [vmem:[#allocation2] sm:$0x1] %v438_v8  ;;  %vm11786_vm7 = vmor %vm1203_vm5, %vm1204_vm6 }
  0x1e   : > { %490 = vst [vmem:[#allocation2 + $0xcc] sm:$0x1] %v489_v9  ;;  %495 = vst [vmem:[#allocation2 + $0x8] sm:$0x1] %v494_v10  ;;  %v545_v13 = vsel %vm11726_vm4, 0, %v544_v11  ;;  %928 = vperm.xlu0 %11446, %v850_v12   ;;  %918 = vperm.xlu1 %11447, %v848_v14   ;;  %v841_v20 = vld [vmem:[%s11723_s29 + $0x30] sm:$0xff] }
  0x1f   : > { %546 = vst [vmem:[#allocation2 + $0xd4] sm:$0x1] %v545_v13  ;;  %v840_v21 = vld [vmem:[%s11723_s29 + $0x28] sm:$0xff]  ;;  %v839_v22 = vld [vmem:[%s11723_s29 + $0x20] sm:$0xff]  ;;  %v838_v23 = vld [vmem:[%s11723_s29 + $0x18] sm:$0xff]  ;;  %v17134_v58 = vsel %vm11786_vm7, 4294967295, %v17133_v58 }
  0x20   : > { %v837_v24 = vld [vmem:[%s11723_s29 + $0x10] sm:$0xff]  ;;  %v11759_v25 = vld [vmem:[%s11755_s18] sm:$0xf]  ;;  %v11762_v26 = vld [vmem:[%s11755_s18 + $0x4] sm:$0xf]  ;;  %17135 = vst [vmem:[#allocation10_spill] sm:$0xff] %v17134_v58 }
  0x21   : > { %17131 = vst [vmem:[#allocation8_spill] sm:$0xff] %v11759_v25  ;;  %17132 = vst [vmem:[#allocation9_spill] sm:$0xff] %v11762_v26  ;;  %v1173_v27 = vld [vmem:[%s11755_s18 + $0x60] sm:$0xf]  ;;  %v1207_v28 = vshrl.u32 %v11759_v25, 16  ;;  %v1210_v29 = vshll.u32 %v11759_v25, 16 }
  0x22   : > { %908 = vperm.xlu1 %11447, %v846_v15   ;;  %903 = vperm.xlu0 %11446, %v845_v16   ;;  %v1216_v30 = vshll.u32 %v11762_v26, 16  ;;  %v1220_v31 = vshrl.u32 %v11762_v26, 16  ;;  %v1174_v32 = vld [vmem:[%s11755_s18 + $0x64] sm:$0xf]  ;;  %v836_v33 = vld [vmem:[%s11723_s29 + $0x8] sm:$0xff]  ;;  %v1399_v35 = vshrl.u32 %v1173_v27, 16  ;;  %vm12342_vm10 = vmor %vm2088_vm8, %vm2089_vm9 }
  0x23   : > { %v835_v34 = vld [vmem:[%s11723_s29] sm:$0xff]  ;;  %v1402_v36 = vshll.u32 %v1173_v27, 16  ;;  %v1408_v37 = vshll.u32 %v1174_v32, 16  ;;  %v1412_v38 = vshrl.u32 %v1174_v32, 16  ;;  %v1209_v39 = vrot.slane %v1207_v28, 4  ;;  %v4750_v51 = vld [vmem:[%s11777_s27 + $0x78] sm:$0xff]  ;;  %s14380_s29 = scalar_lea.vmem %s16821_s2, %s11710_s25  ;;  %vm14455_vm5 = vmand %vm4333_vm11, %vm491_vm1 }
  0x24   : > { %v1212_v40 = vrot.slane %v1210_v29, 5  ;;  %v1218_v41 = vrot.slane %v1216_v30, 5  ;;  %v1222_v42 = vrot.slane %v1220_v31, 4  ;;  %v11780_v43 = vld [vmem:[%s11755_s18 + $0x8] sm:$0x1]  ;;  %v1401_v45 = vrot.slane %v1399_v35, 4  ;;  %vm14464_vm1 = vmor %vm435_vm0, %vm4010_vm14 }
  0x25   : > { %v1175_v44 = vld [vmem:[%s11755_s18 + $0x68] sm:$0x1]  ;;  %v1404_v46 = vrot.slane %v1402_v36, 5  ;;  %v1226_v49 = vshll.u32 %v11780_v43, 16  ;;  %v1410_v50 = vrot.slane %v1408_v37, 5  ;;  %v4749_v52 = vld [vmem:[%s11777_s27 + $0x70] sm:$0xff] }
  0x26   : > { %898 = vperm.xlu1 %11447, %v844_v17   ;;  %893 = vperm.xlu0 %11446, %v843_v18   ;;  %v1213_v47 = vor.u32 %v1212_v40, %v1209_v39  ;;  %v1223_v48 = vor.u32 %v1222_v42, %v1218_v41  ;;  %v1414_v54 = vrot.slane %v1412_v38, 4  ;;  %v1418_v55 = vshll.u32 %v1175_v44, 16  ;;  %v4748_v3 = vld [vmem:[%s11777_s27 + $0x68] sm:$0xff]  ;;  %v4747_v4 = vld [vmem:[%s11777_s27 + $0x60] sm:$0xff]  ;;  %v11802_v5 = vld [vmem:[%s16826_s7 + $0x38] sm:$0xff]   ;;  %s11602_s25 = smov [#allocation3]  }
  0x27   : > { %v1405_v53 = vor.u32 %v1404_v46, %v1401_v45  ;;  %v1228_v59 = vrot.slane %v1226_v49, 5  ;;  %17137 = vst [vmem:[#allocation12_spill] sm:$0xff] %v11802_v5  ;;  %v11811_v9 = vld [vmem:[%s16826_s7 + $0xb8] sm:$0xff]   ;;  %v11826_v13 = vld [vmem:[%s16826_s7 + $0x70] sm:$0xff]   ;;  %v11860_v31 = vld [vmem:[%s16826_s7 + $0x68] sm:$0xff]   ;;  %s11543_s21 = sshll.u32 %s11602_s25, 4  ;;  %s11544_s21 = int_to_ptr.vmem [resolvable:$false] %s11543_s21 }
  0x28   : > { %v1214_v56 = vrot.slane %v1213_v47, 4  ;;  %v1224_v57 = vrot.slane %v1223_v48, 4  ;;  %v1415_v61 = vor.u32 %v1414_v54, %v1410_v50  ;;  %v1420_v62 = vrot.slane %v1418_v55, 5  ;;  %17138 = vst [vmem:[#allocation13_spill] sm:$0xff] %v11811_v9  ;;  %v11816_v11 = vld [vmem:[%s16826_s7 + $0xf8] sm:$0xff]   ;;  %17141 = vst [vmem:[#allocation16_spill] sm:$0xff] %v11826_v13 }
  0x29   : > { %v1406_v60 = vrot.slane %v1405_v53, 4  ;;  %17139 = vst [vmem:[#allocation14_spill] sm:$0xff] %v11816_v11  ;;  %v11821_v12 = vld [vmem:[%s16826_s7 + $0x138] sm:$0xff]   ;;  %v11836_v17 = vld [vmem:[%s16826_s7 + $0x30] sm:$0xff]   ;;  %17146 = vst [vmem:[#allocation21_spill] sm:$0xff] %v11860_v31 }
  0x2a   : > { %888 = vperm.xlu1 %11447, %v842_v19   ;;  %883 = vperm.xlu0 %11446, %v841_v20   ;;  %v1219_v0 = vsel %vm11786_vm7, %v1214_v56, %v1218_v41  ;;  %v1229_v6 = vsel %vm11786_vm7, %v1224_v57, %v1228_v59  ;;  %v1416_v8 = vrot.slane %v1415_v61, 4  ;;  %17140 = vst [vmem:[#allocation15_spill] sm:$0xff] %v11821_v12  ;;  %17143 = vst [vmem:[#allocation18_spill] sm:$0xff] %v11836_v17  ;;  %v11841_v18 = vld [vmem:[%s16826_s7 + $0xb0] sm:$0xff]   ;;  %v4746_v19 = vld [vmem:[%s11777_s27 + $0x58] sm:$0xff] }
  0x2b   : > { %v1411_v7 = vsel %vm11786_vm7, %v1406_v60, %v1410_v50  ;;  %v8850_v10 = vcombine.low %v1219_v0, %v1229_v6  ;;  %17144 = vst [vmem:[#allocation19_spill] sm:$0xff] %v11841_v18  ;;  %v4745_v20 = vld [vmem:[%s11777_s27 + $0x50] sm:$0xff]  ;;  %v11865_v32 = vld [vmem:[%s16826_s7 + $0x60] sm:$0xff]   ;;  %v4744_v40 = vld [vmem:[%s11777_s27 + $0x48] sm:$0xff] }
  0x2c   : > { %v1421_v14 = vsel %vm11786_vm7, %v1416_v8, %v1420_v62  ;;  %v11852_v27 = vld [vmem:[%s16826_s7 + $0xf0] sm:$0xff]   ;;  %17147 = vst [vmem:[#allocation22_spill] sm:$0xff] %v11865_v32  ;;  %v11888_v42 = vld [vmem:[%s16826_s7 + $0x28] sm:$0xff]   ;;  %v4743_v48 = vld [vmem:[%s11777_s27 + $0x40] sm:$0xff] }
  0x2d   : > { %v11831_v16 = vcombine.low %v1411_v7, %v1421_v14  ;;  %10491 = vmatprep.mubr.bf16.mxu0 %v8850_v10  ;;  %17145 = vst [vmem:[#allocation20_spill] sm:$0xff] %v11852_v27  ;;  %v11877_v35 = vld [vmem:[%s16826_s7 + $0x50] sm:$0xff]   ;;  %17150 = vst [vmem:[#allocation25_spill] sm:$0xff] %v11888_v42  ;;  %v11893_v44 = vld [vmem:[%s16826_s7 + $0xa8] sm:$0xff]  }
  0x2e   : > { %878 = vperm.xlu1 %11447, %v840_v21   ;;  %873 = vperm.xlu0 %11446, %v839_v22   ;;  %17149 = vst [vmem:[#allocation24_spill] sm:$0xff] %v11877_v35  ;;  %17151 = vst [vmem:[#allocation26_spill] sm:$0xff] %v11893_v44  ;;  %v11910_v53 = vld [vmem:[%s16826_s7 + $0xa0] sm:$0xff]   ;;  %v11920_v60 = vld [vmem:[%s16826_s7 + $0x18] sm:$0xff]  }
  0x2f   : > { %17142 = vst [vmem:[#allocation17_spill] sm:$0xff] %v11831_v16  ;;  %10507 = vmatprep.mubr.bf16.mxu1 %v11831_v16  ;;  %17153 = vst [vmem:[#allocation28_spill] sm:$0xff] %v11910_v53  ;;  %v11925_v61 = vld [vmem:[%s16826_s7 + $0x98] sm:$0xff]   ;;  %v11931_v0 = vld [vmem:[%s16826_s7 + $0x48] sm:$0xff]  }
  0x30   : > { %17154 = vst [vmem:[#allocation29_spill] sm:$0xff] %v11920_v60  ;;  %17155 = vst [vmem:[#allocation30_spill] sm:$0xff] %v11925_v61  ;;  %v11939_v7 = vld [vmem:[%s16826_s7 + $0x10] sm:$0xff]   ;;  %v4742_v8 = vld [vmem:[%s11777_s27 + $0x38] sm:$0xff] }
  0x31   : > { %17156 = vst [vmem:[#allocation31_spill] sm:$0xff] %v11931_v0  ;;  %17157 = vst [vmem:[#allocation32_spill] sm:$0xff] %v11939_v7  ;;  %v11943_v10 = vld [vmem:[%s11755_s18 + $0xc] sm:$0xf]  ;;  %v11946_v14 = vld [vmem:[%s11755_s18 + $0x10] sm:$0xf] }
  0x32   : > { %868 = vperm.xlu1 %11447, %v838_v23   ;;  %863 = vperm.xlu0 %11446, %v837_v24   ;;  %v4741_v46 = vld [vmem:[%s11777_s27 + $0x30] sm:$0xff]  ;;  %v11965_v56 = vld [vmem:[%s16826_s7 + $0x8] sm:$0xff]   ;;  %v1231_v23 = vshrl.u32 %v11943_v10, 16  ;;  %v1234_v62 = vshll.u32 %v11943_v10, 16  ;;  %v1240_v59 = vshll.u32 %v11946_v14, 16  ;;  %v4739_v54 = vld [vmem:[%s11777_s27 + $0x20] sm:$0xff] }
  0x33   : > { %v11960_v57 = vld [vmem:[%s16826_s7 + $0x90] sm:$0xff]   ;;  %17159 = vst [vmem:[#allocation34_spill] sm:$0xff] %v11965_v56  ;;  %v4740_v6 = vld [vmem:[%s11777_s27 + $0x28] sm:$0xff]  ;;  %v12010_v55 = vld [vmem:[%s16826_s7 + $0x40] sm:$0xff]  }
  0x34   : > { %17158 = vst [vmem:[#allocation33_spill] sm:$0xff] %v11960_v57  ;;  %v11979_v24 = vld [vmem:[%s16826_s7 + $0x130] sm:$0xff]   ;;  %v1176_v50 = vld [vmem:[%s11755_s18 + $0x6c] sm:$0xf]  ;;  %17164 = vst [vmem:[#allocation39_spill] sm:$0xff] %v12010_v55  ;;  %v1236_v41 = vrot.slane %v1234_v62, 5 }
  0x35   : > { %17161 = vst [vmem:[#allocation36_spill] sm:$0xff] %v11979_v24  ;;  %v1177_v49 = vld [vmem:[%s11755_s18 + $0x70] sm:$0xf]  ;;  %v12022_v47 = vld [vmem:[%s16826_s7 + $0xe0] sm:$0xff]   ;;  %v12024_v39 = vrot.slane %v1240_v59, 5  ;;  %v1423_v45 = vshrl.u32 %v1176_v50, 16 }
  0x36   : > { %858 = vperm.xlu1 %11447, %v836_v33   ;;  %853 = vperm.xlu0 %11446, %v835_v34   ;;  %v11872_v34 = vld [vmem:[%s16826_s7 + $0x58] sm:$0xff]   ;;  %17165 = vst [vmem:[#allocation40_spill] sm:$0xff] %v12022_v47  ;;  %v1432_v36 = vshll.u32 %v1177_v49, 16  ;;  %v4737_v22 = vld [vmem:[%s11777_s27 + $0x10] sm:$0xff]  ;;  %v12053_v28 = vld [vmem:[%s16826_s7] sm:$0xff]  }
  0x37   : > { %17148 = vst [vmem:[#allocation23_spill] sm:$0xff] %v11872_v34  ;;  %v12027_v37 = vld [vmem:[%s11755_s18 + $0x1c] sm:$0xf]  ;;  %17167 = vst [vmem:[#allocation42_spill] sm:$0xff] %v12053_v28  ;;  %v1178_v59 = vld [vmem:[%s11755_s18 + $0x74] sm:$0x1] }
  0x38   : > { %v4738_v33 = vld [vmem:[%s11777_s27 + $0x18] sm:$0xff]  ;;  %v12055_v15 = vrot.slane %v1432_v36, 5  ;;  %v1442_v12 = vshll.u32 %v1178_v59, 16  ;;  %v12155_v47 = vld [vmem:[%s11755_s18 + $0x90] sm:$0xf] }
  0x39   : > { %v12082_v55 = vld [vmem:[%s16826_s7 + $0xd8] sm:$0xff]   ;;  %v1184_v60 = vld [vmem:[%s11755_s18 + $0x8c] sm:$0x1] }
  0x3a   : > { %4828 = vperm.xlu1 %11447, %v4750_v51   ;;  %4823 = vperm.xlu0 %11446, %v4749_v52   ;;  %v11905_v52 = vld [vmem:[%s16826_s7 + $0x20] sm:$0xff]   ;;  %v12030_v51 = vld [vmem:[%s11755_s18 + $0x14] sm:$0x1]  ;;  %17169 = vst [vmem:[#allocation44_spill] sm:$0xff] %v12082_v55  ;;  %v12107_v57 = vrot.slane %v1442_v12, 5  ;;  %v17220_v58 = vld [vmem:[#allocation18_spill] sm:$0xff] }
  0x3b   : > { %17152 = vst [vmem:[#allocation27_spill] sm:$0xff] %v11905_v52  ;;  %v1164_v44 = vld [vmem:[%s11755_s18 + $0x3c] sm:$0xf] }
  0x3c   : > { %v1327_v17 = vshrl.u32 %v1164_v44, 16  ;;  %v1330_v9 = vshll.u32 %v1164_v44, 16 }
  0x3e   : > { %4818 = vperm.xlu1 %11447, %v4748_v3   ;;  %4813 = vperm.xlu0 %11446, %v4747_v4   ;;  %v12013_v4 = vld [vmem:[%s11755_s18 + $0x18] sm:$0xf]  ;;  %v1426_v3 = vshll.u32 %v1176_v50, 16  ;;  %v12045_v50 = vld [vmem:[%s16826_s7 + $0x120] sm:$0xff]  }
  0x3f   : > { %v1255_v21 = vshrl.u32 %v12013_v4, 16  ;;  %17166 = vst [vmem:[#allocation41_spill] sm:$0xff] %v12045_v50 }
  0x40   : > { %v1428_v29 = vrot.slane %v1426_v3, 5 }
  0x41   : > { %v1257_v1 = vrot.slane %v1255_v21, 4  ;;  %v1180_v21 = vld [vmem:[%s11755_s18 + $0x7c] sm:$0xf] }
  0x42   : > { %4808 = vperm.xlu1 %11447, %v4746_v19   ;;  %4803 = vperm.xlu0 %11446, %v4745_v20   ;;  %v11988_v20 = vld [vmem:[%s16826_s7 + $0xe8] sm:$0xff]  }
  0x43   : > { %17162 = vst [vmem:[#allocation37_spill] sm:$0xff] %v11988_v20  ;;  %v11993_v19 = vld [vmem:[%s16826_s7 + $0x128] sm:$0xff]   ;;  %v1490_v20 = vshll.u32 %v1184_v60, 16 }
  0x44   : > { %17163 = vst [vmem:[#allocation38_spill] sm:$0xff] %v11993_v19 }
  0x46   : > { %4798 = vperm.xlu1 %11447, %v4744_v40   ;;  %4793 = vperm.xlu0 %11446, %v4743_v48   ;;  %v11974_v48 = vld [vmem:[%s16826_s7 + $0x88] sm:$0xff]   ;;  %v1244_v40 = vshrl.u32 %v11946_v14, 16 }
  0x47   : > { %17160 = vst [vmem:[#allocation35_spill] sm:$0xff] %v11974_v48  ;;  %v12095_v48 = vld [vmem:[%s11755_s18 + $0x28] sm:$0xf] }
  0x48   : > { %v1246_v38 = vrot.slane %v1244_v40, 4  ;;  %v1250_v40 = vshll.u32 %v12030_v51, 16  ;;  %v1288_v12 = vshll.u32 %v12095_v48, 16 }
  0x4a   : > { %4788 = vperm.xlu1 %11447, %v4742_v8   ;;  %4783 = vperm.xlu0 %11446, %v4741_v46   ;;  %v1233_v46 = vrot.slane %v1231_v23, 4  ;;  %v1436_v8 = vshrl.u32 %v1177_v49, 16  ;;  %v1258_v23 = vshll.u32 %v12013_v4, 16  ;;  %v1247_v62 = vor.u32 %v1246_v38, %v12024_v39  ;;  %v12060_v38 = vld [vmem:[%s16826_s7 + $0x80] sm:$0xff]  }
  0x4b   : > { %v1425_v49 = vrot.slane %v1423_v45, 4  ;;  %17168 = vst [vmem:[#allocation43_spill] sm:$0xff] %v12060_v38  ;;  %v12068_v45 = vld [vmem:[%s11755_s18 + $0x20] sm:$0x1]  ;;  %v1252_v0 = vrot.slane %v1250_v40, 5  ;;  %v12152_v35 = vrot.slane %v1288_v12, 5 }
  0x4c   : > { %v1237_v30 = vor.u32 %v1236_v41, %v1233_v46  ;;  %v1438_v2 = vrot.slane %v1436_v8, 4  ;;  %v4736_v41 = vld [vmem:[%s11777_s27 + $0x8] sm:$0xff]  ;;  %v4735_v46 = vld [vmem:[%s11777_s27] sm:$0xff]  ;;  %v1260_v16 = vrot.slane %v1258_v23, 5  ;;  %v1179_v8 = vld [vmem:[%s11755_s18 + $0x78] sm:$0xf] }
  0x4d   : > { %v1274_v40 = vshll.u32 %v12068_v45, 16  ;;  %v1450_v23 = vshll.u32 %v1179_v8, 16  ;;  %s402_s27 = sand.u32 1, %s11591_s14  }
  0x4e   : > { %4778 = vperm.xlu1 %11447, %v4740_v6   ;;  %4773 = vperm.xlu0 %11446, %v4739_v54   ;;  %v1264_v54 = vshll.u32 %v12027_v37, 16  ;;  %v1268_v6 = vshrl.u32 %v12027_v37, 16  ;;  %v1238_v56 = vrot.slane %v1237_v30, 4  ;;  %v1261_v30 = vor.u32 %v1260_v16, %v1257_v1  ;;  %v1182_v1 = vld [vmem:[%s11755_s18 + $0x84] sm:$0xf]  ;;  %s16617_s26 = sshll.u32 %s402_s27, 7 }
  0x4f   : > { %v1452_v61 = vrot.slane %v1450_v23, 5  ;;  %v1183_v16 = vld [vmem:[%s11755_s18 + $0x88] sm:$0xf]  ;;  %v1474_v23 = vshll.u32 %v1182_v1, 16  ;;  %s16637_s28 = scalar_lea.vmem [#allocation3], %s16617_s26  ;;  %s11545_s26 = scalar_lea.vmem %s11544_s21, 4096 }
  0x50   : > { %v12070_v36 = vrot.slane %v1264_v54, 5  ;;  %v1270_v3 = vrot.slane %v1268_v6, 4  ;;  %v1429_v54 = vor.u32 %v1428_v29, %v1425_v49  ;;  %v1439_v6 = vor.u32 %v1438_v2, %v12055_v15  ;;  %v12089_v2 = vld [vmem:[%s11755_s18 + $0x24] sm:$0xf]  ;;  %s8736_s30 = sshll.u32 %s16637_s28, 4  ;;  %s16774_s30 = int_to_ptr.vmem [resolvable:$true] %s8736_s30 }
  0x51   : > { %v1456_v29 = vshll.u32 %v1180_v21, 16  ;;  %v1460_v49 = vshrl.u32 %v1180_v21, 16  ;;  %v1243_v59 = vsel %vm11786_vm7, %v1238_v56, %v12024_v39  ;;  %v12109_v7 = vrot.slane %v1261_v30, 4  ;;  %p11546_p0 = scmp.lt.s32.totalorder %s16774_s30, %s11544_s21 }
  0x52   : > { %4768 = vperm.xlu1 %11447, %v4738_v33   ;;  %4763 = vperm.xlu0 %11446, %v4737_v22   ;;  %v1248_v22 = vrot.slane %v1247_v62, 4  ;;  %v1447_v33 = vshrl.u32 %v1179_v8, 16  ;;  %v1271_v62 = vor.u32 %v1270_v3, %v12070_v36  ;;  %v12103_v21 = vrot.slane %v1429_v54, 4 }
  0x53   : > { %v12105_v28 = vrot.slane %v1439_v6, 4  ;;  %v12111_v39 = vrot.slane %v1274_v40, 5  ;;  %v12116_v8 = vrot.slane %v1456_v29, 5  ;;  %v1292_v54 = vshrl.u32 %v12095_v48, 16 }
  0x54   : > { %v1253_v3 = vsel %vm11786_vm7, %v1248_v22, %v1252_v0  ;;  %v1449_v56 = vrot.slane %v1447_v33, 4  ;;  %v12114_v38 = vrot.slane %v1271_v62, 4  ;;  %v1279_v0 = vshrl.u32 %v12089_v2, 16  ;;  %v12147_v62 = vld [vmem:[%s11755_s18 + $0x30] sm:$0xf] }
  0x55   : > { %v1282_v22 = vshll.u32 %v12089_v2, 16  ;;  %v1471_v33 = vshrl.u32 %v1182_v1, 16  ;;  %v1480_v6 = vshll.u32 %v1183_v16, 16  ;;  %v1484_v30 = vshrl.u32 %v1183_v16, 16  ;;  %17171 = vst [vmem:[#allocation46_spill] sm:$0xff] %v12147_v62 }
  0x56   : > { %4758 = vperm.xlu1 %11447, %v4736_v41   ;;  %4753 = vperm.xlu0 %11446, %v4735_v46   ;;  %v1181_v46 = vld [vmem:[%s11755_s18 + $0x80] sm:$0x1]  ;;  %v1462_v41 = vrot.slane %v1460_v49, 4  ;;  %v12122_v40 = vcombine.low %v1243_v59, %v1253_v3  ;;  %v1453_v59 = vor.u32 %v1452_v61, %v1449_v56  ;;  %v12144_v3 = vld [vmem:[%s11755_s18 + $0x2c] sm:$0x1]  ;;  %v1294_v50 = vrot.slane %v1292_v54, 4 }
  0x57   : > { %v1466_v55 = vshll.u32 %v1181_v46, 16  ;;  %v12150_v46 = vld [vmem:[%s11755_s18 + $0x34] sm:$0xf]  ;;  %v1284_v29 = vrot.slane %v1282_v22, 5  ;;  %v1473_v49 = vrot.slane %v1471_v33, 4  ;;  %v1476_v61 = vrot.slane %v1474_v23, 5 }
  0x58   : > { %17170 = vst [vmem:[#allocation45_spill] sm:$0xff] %v12122_v40  ;;  %v1463_v1 = vor.u32 %v1462_v41, %v12116_v8  ;;  %17172 = vst [vmem:[#allocation47_spill] sm:$0xff] %v12150_v46  ;;  %v1281_v40 = vrot.slane %v1279_v0, 4  ;;  %v12157_v56 = vrot.slane %v1480_v6, 5  ;;  %v12160_v41 = vld [vmem:[%s11755_s18 + $0x94] sm:$0xf]  ;;  %v1295_v32 = vor.u32 %v1294_v50, %v12152_v35 }
  0x59   : > { %v12141_v16 = vrot.slane %v1466_v55, 5  ;;  %v1486_v55 = vrot.slane %v1484_v30, 4  ;;  %v1303_v34 = vshrl.u32 %v12147_v62, 16  ;;  %v1306_v19 = vshll.u32 %v12147_v62, 16 }
  0x5a   : > { %v1312_v0 = vshll.u32 %v12150_v46, 16  ;;  %v1316_v22 = vshrl.u32 %v12150_v46, 16  ;;  %v12167_v12 = vrot.slane %v1453_v59, 4  ;;  %v12169_v54 = vrot.slane %v1463_v1, 4 }
  0x5b   : > { %v1495_v33 = vshrl.u32 %v12155_v47, 16  ;;  %v1498_v23 = vshll.u32 %v12155_v47, 16  ;;  %v1285_v6 = vor.u32 %v1284_v29, %v1281_v40  ;;  %v1298_v30 = vshll.u32 %v12144_v3, 16  ;;  %v1165_v40 = vld [vmem:[%s11755_s18 + $0x40] sm:$0xf] }
  0x5c   : > { %v1504_v53 = vshll.u32 %v12160_v41, 16  ;;  %v1508_v52 = vshrl.u32 %v12160_v41, 16  ;;  %v1477_v59 = vor.u32 %v1476_v61, %v1473_v49  ;;  %v1487_v1 = vor.u32 %v1486_v55, %v12157_v56  ;;  %v1163_v29 = vld [vmem:[%s11755_s18 + $0x38] sm:$0x1] }
  0x5d   : > { %v1305_v42 = vrot.slane %v1303_v34, 4  ;;  %v1308_v31 = vrot.slane %v1306_v19, 5  ;;  %v12179_v24 = vrot.slane %v1312_v0, 5  ;;  %v1318_v11 = vrot.slane %v1316_v22, 4  ;;  %v12186_v34 = vld [vmem:[%s11755_s18 + $0x98] sm:$0x1] }
  0x5e   : > { %v1497_v27 = vrot.slane %v1495_v33, 4  ;;  %v1500_v18 = vrot.slane %v1498_v23, 5  ;;  %v1286_v5 = vrot.slane %v1285_v6, 4  ;;  %v1300_v13 = vrot.slane %v1298_v30, 5 }
  0x5f   : > { %v12183_v63 = vrot.slane %v1504_v53, 5  ;;  %v1510_v50 = vrot.slane %v1508_v52, 4  ;;  %v1296_v49 = vrot.slane %v1295_v32, 4  ;;  %v1492_v61 = vrot.slane %v1490_v20, 5  ;;  %v12208_v53 = vld [vmem:[%s11755_s18 + $0x9c] sm:$0xf] }
  0x60   : > { %v1336_v60 = vshll.u32 %v1165_v40, 16  ;;  %v1340_v19 = vshrl.u32 %v1165_v40, 16  ;;  %v1478_v55 = vrot.slane %v1477_v59, 4  ;;  %v1309_v0 = vor.u32 %v1308_v31, %v1305_v42  ;;  %v12216_v40 = vld [vmem:[%s11755_s18 + $0xa0] sm:$0xf] }
  0x61   : > { %v1319_v22 = vor.u32 %v1318_v11, %v12179_v24  ;;  %v1322_v33 = vshll.u32 %v1163_v29, 16  ;;  %v1488_v23 = vrot.slane %v1487_v1, 4  ;;  %v1501_v44 = vor.u32 %v1500_v18, %v1497_v27  ;;  %v1166_v11 = vld [vmem:[%s11755_s18 + $0x44] sm:$0x1] }
  0x62   : > { %v1329_v6 = vrot.slane %v1327_v17, 4  ;;  %v1332_v30 = vrot.slane %v1330_v9, 5  ;;  %v1459_v32 = vsel %vm11786_vm7, %v12167_v12, %v12116_v8  ;;  %v1469_v52 = vsel %vm11786_vm7, %v12169_v54, %v12141_v16 }
  0x63   : > { %v1511_v31 = vor.u32 %v1510_v50, %v12183_v63  ;;  %v1514_v42 = vshll.u32 %v12186_v34, 16  ;;  %v1291_v9 = vsel %vm11786_vm7, %v1286_v5, %v12152_v35  ;;  %v1301_v17 = vsel %vm11786_vm7, %v1296_v49, %v1300_v13 }
  0x64   : > { %v12205_v18 = vrot.slane %v1336_v60, 5  ;;  %v1342_v27 = vrot.slane %v1340_v19, 4  ;;  %v1483_v20 = vsel %vm11786_vm7, %v1478_v55, %v12157_v56  ;;  %v1310_v8 = vrot.slane %v1309_v0, 4  ;;  %v12257_v0 = vld [vmem:[%s11755_s18 + $0xa4] sm:$0x1] }
  0x65   : > { %v1320_v16 = vrot.slane %v1319_v22, 4  ;;  %v1324_v12 = vrot.slane %v1322_v33, 5  ;;  %v1493_v54 = vsel %vm11786_vm7, %v1488_v23, %v1492_v61  ;;  %v1502_v59 = vrot.slane %v1501_v44, 4 }
  0x66   : > { %v1333_v5 = vor.u32 %v1332_v30, %v1329_v6  ;;  %v1346_v13 = vshll.u32 %v1166_v11, 16  ;;  %v1512_v35 = vrot.slane %v1511_v31, 4  ;;  %v1516_v1 = vrot.slane %v1514_v42, 5  ;;  %v12270_v6 = vld [vmem:[%s11755_s18 + $0xa8] sm:$0xf] }
  0x67   : > { %v1519_v29 = vshrl.u32 %v12208_v53, 16  ;;  %v1522_v56 = vshll.u32 %v12208_v53, 16  ;;  %v17173_v50 = vsel %vm11786_vm7, %v12105_v28, %v12107_v57  ;;  %v17174_v49 = vsel %vm11786_vm7, %v12103_v21, %v12055_v15  ;;  %v12276_v31 = vld [vmem:[%s11755_s18 + $0xac] sm:$0xf] }
  0x68   : > { %v12230_v61 = vcombine.low %v17174_v49, %v17173_v50  ;;  %v17176_v60 = vsel %vm11786_vm7, %v12114_v38, %v12111_v39  ;;  %v17177_v19 = vsel %vm11786_vm7, %v12109_v7, %v12070_v36  ;;  %v12244_v28 = vcombine.low %v1459_v32, %v1469_v52  ;;  %v1167_v7 = vld [vmem:[%s11755_s18 + $0x48] sm:$0xf]  ;;  %v1168_v36 = vld [vmem:[%s11755_s18 + $0x4c] sm:$0xf] }
  0x69   : > { %v12242_v55 = vcombine.low %v17177_v19, %v17176_v60  ;;  %v1343_v57 = vor.u32 %v1342_v27, %v12205_v18  ;;  %v12247_v15 = vcombine.low %v1291_v9, %v1301_v17  ;;  %v12249_v21 = vcombine.low %v1483_v20, %v1493_v54 }
  0x6a   : > { %17175 = vst [vmem:[#allocation48_spill] sm:$0xff] %v12230_v61  ;;  %17179 = vst [vmem:[#allocation50_spill] sm:$0xff] %v12244_v28  ;;  %v1315_v38 = vsel %vm11786_vm7, %v1310_v8, %v12179_v24  ;;  %v1325_v39 = vsel %vm11786_vm7, %v1320_v16, %v1324_v12  ;;  %v1507_v22 = vsel %vm11786_vm7, %v1502_v59, %v12183_v63  ;;  %v12264_v33 = vrot.slane %v1333_v5, 4  ;;  %v1196_v28 = vld [vmem:[%s11755_s18 + $0xbc] sm:$0x1] }
  0x6b   : > { %17178 = vst [vmem:[#allocation49_spill] sm:$0xff] %v12242_v55  ;;  %17180 = vst [vmem:[#allocation51_spill] sm:$0xff] %v12247_v15  ;;  %v12266_v23 = vrot.slane %v1346_v13, 5  ;;  %v1528_v44 = vshll.u32 %v12216_v40, 16  ;;  %v1517_v24 = vsel %vm11786_vm7, %v1512_v35, %v1516_v1  ;;  %v1521_v30 = vrot.slane %v1519_v29, 4 }
  0x6c   : > { %17181 = vst [vmem:[#allocation52_spill] sm:$0xff] %v12249_v21  ;;  %v1524_v32 = vrot.slane %v1522_v56, 5  ;;  %v1532_v52 = vshrl.u32 %v12216_v40, 16  ;;  %v1344_v42 = vrot.slane %v1343_v57, 4  ;;  %v1538_v63 = vshll.u32 %v12257_v0, 16 }
  0x6d   : > { %v1351_v11 = vshrl.u32 %v1167_v7, 16  ;;  %v1354_v9 = vshll.u32 %v1167_v7, 16  ;;  %v1360_v17 = vshll.u32 %v1168_v36, 16  ;;  %v1364_v27 = vshrl.u32 %v1168_v36, 16  ;;  %v1170_v29 = vld [vmem:[%s11755_s18 + $0x54] sm:$0xf] }
  0x6e   : > { %v1543_v20 = vshrl.u32 %v12270_v6, 16  ;;  %v1546_v8 = vshll.u32 %v12270_v6, 16  ;;  %v12281_v16 = vcombine.low %v1315_v38, %v1325_v39  ;;  %v12283_v12 = vrot.slane %v1528_v44, 5  ;;  %v1171_v56 = vld [vmem:[%s11755_s18 + $0x58] sm:$0xf] }
  0x6f   : > { %v1552_v54 = vshll.u32 %v12276_v31, 16  ;;  %v1556_v59 = vshrl.u32 %v12276_v31, 16  ;;  %v12287_v5 = vcombine.low %v1507_v22, %v1517_v24  ;;  %v1339_v13 = vsel %vm11786_vm7, %v12264_v33, %v12205_v18  ;;  %v1194_v57 = vld [vmem:[%s11755_s18 + $0xb4] sm:$0xf]  ;;  %v1195_v18 = vld [vmem:[%s11755_s18 + $0xb8] sm:$0xf] }
  0x70   : > { %17182 = vst [vmem:[#allocation53_spill] sm:$0xff] %v12281_v16  ;;  %v1525_v35 = vor.u32 %v1524_v32, %v1521_v30  ;;  %v1534_v1 = vrot.slane %v1532_v52, 4  ;;  %v1349_v50 = vsel %vm11786_vm7, %v1344_v42, %v12266_v23  ;;  %v12298_v49 = vrot.slane %v1538_v63, 5  ;;  %v1169_v22 = vld [vmem:[%s11755_s18 + $0x50] sm:$0x1] }
  0x71   : > { %17183 = vst [vmem:[#allocation54_spill] sm:$0xff] %v12287_v5  ;;  %v1353_v60 = vrot.slane %v1351_v11, 4  ;;  %v1356_v19 = vrot.slane %v1354_v9, 5  ;;  %v12301_v38 = vrot.slane %v1360_v17, 5  ;;  %v1366_v39 = vrot.slane %v1364_v27, 4 }
  0x72   : > { %v1545_v7 = vrot.slane %v1543_v20, 4  ;;  %v1548_v36 = vrot.slane %v1546_v8, 5  ;;  %v12305_v33 = vrot.slane %v1552_v54, 5  ;;  %v1558_v44 = vrot.slane %v1556_v59, 4  ;;  %v12308_v32 = vld [vmem:[%s11755_s18 + $0xb0] sm:$0x1] }
  0x73   : > { %v1375_v24 = vshrl.u32 %v1170_v29, 16  ;;  %v1378_v30 = vshll.u32 %v1170_v29, 16  ;;  %v1384_v23 = vshll.u32 %v1171_v56, 16  ;;  %v1388_v52 = vshrl.u32 %v1171_v56, 16  ;;  %v1172_v56 = vld [vmem:[%s11755_s18 + $0x5c] sm:$0x1] }
  0x74   : > { %v1567_v42 = vshrl.u32 %v1194_v57, 16  ;;  %v1570_v63 = vshll.u32 %v1194_v57, 16  ;;  %v1535_v11 = vor.u32 %v1534_v1, %v12283_v12  ;;  %v1357_v9 = vor.u32 %v1356_v19, %v1353_v60 }
  0x75   : > { %v1576_v17 = vshll.u32 %v1195_v18, 16  ;;  %v1580_v27 = vshrl.u32 %v1195_v18, 16  ;;  %v1526_v20 = vrot.slane %v1525_v35, 4  ;;  %v1367_v8 = vor.u32 %v1366_v39, %v12301_v38 }
  0x76   : > { %v1370_v54 = vshll.u32 %v1169_v22, 16  ;;  %v1549_v59 = vor.u32 %v1548_v36, %v1545_v7  ;;  %v1559_v29 = vor.u32 %v1558_v44, %v12305_v33  ;;  %v1562_v5 = vshll.u32 %v12308_v32, 16 }
  0x77   : > { %v1377_v16 = vrot.slane %v1375_v24, 4  ;;  %v1380_v21 = vrot.slane %v1378_v30, 5  ;;  %v12315_v15 = vrot.slane %v1384_v23, 5  ;;  %v1390_v57 = vrot.slane %v1388_v52, 4 }
  0x78   : > { %v1569_v1 = vrot.slane %v1567_v42, 4  ;;  %v1572_v60 = vrot.slane %v1570_v63, 5  ;;  %v1536_v19 = vrot.slane %v1535_v11, 4  ;;  %v1358_v18 = vrot.slane %v1357_v9, 4 }
  0x79   : > { %v1578_v35 = vrot.slane %v1576_v17, 5  ;;  %v1582_v55 = vrot.slane %v1580_v27, 4  ;;  %v12318_v39 = vcombine.low %v1339_v13, %v1349_v50  ;;  %v1368_v7 = vrot.slane %v1367_v8, 4 }
  0x7a   : > { %v1372_v36 = vrot.slane %v1370_v54, 5  ;;  %v1550_v22 = vrot.slane %v1549_v59, 4  ;;  %v1531_v44 = vsel %vm11786_vm7, %v1526_v20, %v12283_v12  ;;  %v1564_v24 = vrot.slane %v1562_v5, 5 }
  0x7b   : > { %17184 = vst [vmem:[#allocation55_spill] sm:$0xff] %v12318_v39  ;;  %v1381_v30 = vor.u32 %v1380_v21, %v1377_v16  ;;  %v1394_v23 = vshll.u32 %v1172_v56, 16  ;;  %v1560_v52 = vrot.slane %v1559_v29, 4  ;;  %v1391_v42 = vor.u32 %v1390_v57, %v12315_v15  ;;  %v17294_v39 = vld [vmem:[#allocation44_spill] sm:$0xff] }
  0x7c   : > { %v1573_v63 = vor.u32 %v1572_v60, %v1569_v1  ;;  %v1586_v11 = vshll.u32 %v1196_v28, 16  ;;  %v1541_v13 = vsel %vm11786_vm7, %v1536_v19, %v12298_v49  ;;  %v1363_v50 = vsel %vm11786_vm7, %v1358_v18, %v12301_v38 }
  0x7d   : > { %v1583_v9 = vor.u32 %v1582_v55, %v1578_v35  ;;  %v2093_v17 = vrot.slane %v11762_v26, 5  ;;  %v1373_v21 = vsel %vm11786_vm7, %v1368_v7, %v1372_v36  ;;  %v1555_v16 = vsel %vm11786_vm7, %v1550_v22, %v12305_v33 }
  0x7e   : > { %v2100_v28 = vrot.slane %v11946_v14, 5  ;;  %v2107_v12 = vrot.slane %v12027_v37, 5  ;;  %v1382_v5 = vrot.slane %v1381_v30, 4  ;;  %v1396_v49 = vrot.slane %v1394_v23, 5 }
  0x7f   : > { %v1565_v55 = vsel %vm11786_vm7, %v1560_v52, %v1564_v24  ;;  %v1392_v38 = vrot.slane %v1391_v42, 4  ;;  %v1574_v27 = vrot.slane %v1573_v63, 4  ;;  %v1588_v20 = vrot.slane %v1586_v11, 5 }
  0x80   : > { %v1584_v8 = vrot.slane %v1583_v9, 4  ;;  %v8882_v54 = vrot.slane %v11759_v25, 9  ;;  %v2095_v59 = vrot.slane %v2093_v17, 4  ;;  %v8883_v33 = vrot.slane %v11943_v10, 9 }
  0x81   : > { %v17185_v29 = vmov 0  ;;  %v2102_v56 = vrot.slane %v2100_v28, 4  ;;  %v8884_v57 = vrot.slane %v12013_v4, 9  ;;  %v2109_v1 = vrot.slane %v2107_v12, 4 }
  0x82   : > { %v17186_v29 = vsel %vm12342_vm10, 4294967295, %v17185_v29  ;;  %v2110_v60 = vrot.slane %v12068_v45, 5  ;;  %v12348_v19 = vcombine.low %v1531_v44, %v1541_v13  ;;  %v12350_v18 = vcombine.low %v1363_v50, %v1373_v21  ;;  %v12390_v50 = vld [vmem:[%s16826_s7 + $0x118] sm:$0xff]  }
  0x83   : > { %17187 = vst [vmem:[#allocation56_spill] sm:$0xff] %v17186_v29  ;;  %v12352_v7 = vcombine.low %v1555_v16, %v1565_v55  ;;  %v2114_v36 = vrot.slane %v12095_v48, 5  ;;  %v1387_v22 = vsel %vm11786_vm7, %v1382_v5, %v12315_v15  ;;  %v1397_v24 = vsel %vm11786_vm7, %v1392_v38, %v1396_v49  ;;  %v12420_v55 = vld [vmem:[%s16826_s7 + $0xd0] sm:$0xff]  }
  0x84   : > { %17188 = vst [vmem:[#allocation57_spill] sm:$0xff] %v12348_v19  ;;  %17189 = vst [vmem:[#allocation58_spill] sm:$0xff] %v12350_v18  ;;  %v1579_v30 = vsel %vm11786_vm7, %v1574_v27, %v1578_v35  ;;  %v1589_v44 = vsel %vm11786_vm7, %v1584_v8, %v1588_v20  ;;  %v12368_v23 = vsel %vm12342_vm10, %v8882_v54, %v2093_v17  ;;  %v17192_v52 = vrot.slane %v11780_v43, 5  ;;  %v17207_v54 = vld [vmem:[#allocation11_spill] sm:$0xff] }
  0x85   : > { %17190 = vst [vmem:[#allocation59_spill] sm:$0xff] %v12352_v7  ;;  %17191 = vst [vmem:[#allocation60_spill] sm:$0xff] %v12368_v23  ;;  %v2101_v42 = vsel %vm12342_vm10, %v8883_v33, %v2100_v28  ;;  %v17194_v35 = vrot.slane %v12030_v51, 5  ;;  %v2108_v11 = vsel %vm12342_vm10, %v8884_v57, %v2107_v12  ;;  %v2111_v13 = vsel %vm12342_vm10, %v2109_v1, %v2110_v60  ;;  %v12456_v33 = vld [vmem:[%s16826_s7 + $0xc0] sm:$0xff]   ;;  %v12475_v60 = vld [vmem:[%s16826_s7 + $0x178] sm:$0xff]  }
  0x86   : > { %v12374_v15 = vsel %vm12342_vm10, %v2095_v59, %v17192_v52  ;;  %v8885_v43 = vrot.slane %v12089_v2, 9  ;;  %v12392_v9 = vcombine.low %v1387_v22, %v1397_v24  ;;  %v12396_v51 = vcombine.low %v11943_v10, %v11946_v14  ;;  %v12451_v59 = vld [vmem:[%s16826_s7 + $0x108] sm:$0xff]   ;;  %v12470_v1 = vld [vmem:[%s16826_s7 + $0x100] sm:$0xff]   ;;  %v17216_v57 = vld [vmem:[#allocation13_spill] sm:$0xff] }
  0x87   : > { %17193 = vst [vmem:[#allocation61_spill] sm:$0xff] %v12374_v15  ;;  %v2104_v63 = vsel %vm12342_vm10, %v2102_v56, %v17194_v35  ;;  %v2116_v17 = vrot.slane %v2114_v36, 4  ;;  %v2117_v21 = vrot.slane %v12144_v3, 5  ;;  %v12399_v16 = vcombine.low %v1579_v30, %v1589_v44  ;;  %v17214_v52 = vld [vmem:[#allocation12_spill] sm:$0xff]  ;;  %v17244_v15 = vld [vmem:[#allocation22_spill] sm:$0xff] }
  0x88   : > { %17195 = vst [vmem:[#allocation62_spill] sm:$0xff] %v12392_v9  ;;  %17196 = vst [vmem:[#allocation63_spill] sm:$0xff] %v12396_v51  ;;  %v12405_v12 = vcombine.low %v12013_v4, %v12027_v37  ;;  %v12409_v5 = vcombine.low %v12089_v2, %v12095_v48  ;;  %v12411_v49 = vcombine.low %v2101_v42, %v2104_v63  ;;  %v12429_v4 = vld [vmem:[%s16826_s7 + $0x110] sm:$0xff]   ;;  %v12434_v48 = vld [vmem:[%s16826_s7 + $0xc8] sm:$0xff]   ;;  %v8894_v38 = vrot.slane %v12155_v47, 9 }
  0x89   : > { %17197 = vst [vmem:[#allocation64_spill] sm:$0xff] %v12399_v16  ;;  %v12413_v10 = vcombine.low %v2108_v11, %v2111_v13  ;;  %v12424_v37 = vsel %vm12342_vm10, %v8885_v43, %v2114_v36  ;;  %v12438_v2 = vcombine.low %v12155_v47, %v12160_v41  ;;  %v2177_v27 = vrot.slane %v12160_v41, 5  ;;  %v12480_v36 = vld [vmem:[%s16826_s7 + $0x1b8] sm:$0xff]   ;;  %v17209_v13 = vld [vmem:[#allocation16_spill] sm:$0xff]  ;;  %v17233_v51 = vld [vmem:[#allocation21_spill] sm:$0xff] }
  0x8a   : > { %17198 = vst [vmem:[#allocation65_spill] sm:$0xff] %v12405_v12  ;;  %17199 = vst [vmem:[#allocation66_spill] sm:$0xff] %v12409_v5  ;;  %v12444_v20 = vsel %vm12342_vm10, %v2116_v17, %v2117_v21  ;;  %v12460_v47 = vcombine.low %v12208_v53, %v12216_v40  ;;  %v2180_v30 = vrot.slane %v12186_v34, 5  ;;  %v9396_v21 = vunpack.c.l.bf16 %v12475_v60 }
  0x8b   : > { %17200 = vst [vmem:[#allocation67_spill] sm:$0xff] %v12411_v49  ;;  %17201 = vst [vmem:[#allocation68_spill] sm:$0xff] %v12413_v10  ;;  %v12484_v22 = vsel %vm12342_vm10, %v8894_v38, %v2177_v27  ;;  %v2179_v24 = vrot.slane %v2177_v27, 4  ;;  %v9428_v38 = vunpack.c.l.bf16 %v12480_v36  ;;  %v17208_v28 = vunpack.c.l.bf16 %v17207_v54 }
  0x8c   : > { %17202 = vst [vmem:[#allocation69_spill] sm:$0xff] %v12424_v37  ;;  %17203 = vst [vmem:[#allocation70_spill] sm:$0xff] %v12438_v2  ;;  %v17210_v11 = vunpack.c.l.bf16 %v17209_v13  ;;  %v12515_v34 = vcombine.low %v12270_v6, %v12276_v31  ;;  %v17212_v63 = vunpack.c.h.bf16 %v17207_v54  ;;  %v17213_v42 = vunpack.c.h.bf16 %v17209_v13  ;;  %v17223_v2 = vld [vmem:[#allocation19_spill] sm:$0xff] }
  0x8d   : > { %17204 = vst [vmem:[#allocation71_spill] sm:$0xff] %v12444_v20  ;;  %17205 = vst [vmem:[#allocation72_spill] sm:$0xff] %v12460_v47  ;;  %v12511_v17 = vsel %vm12342_vm10, %v2179_v24, %v2180_v30  ;;  %v17215_v44 = vunpack.c.l.bf16 %v17214_v52  ;;  %v17217_v24 = vunpack.c.l.bf16 %v17216_v57  ;;  %v17218_v3 = vunpack.c.h.bf16 %v17214_v52 }
  0x8e   : > { %17211 = vst [vmem:[#allocation11_spill] sm:$0xff] %v12515_v34  ;;  %v17219_v54 = vunpack.c.h.bf16 %v17216_v57  ;;  %v17221_v13 = vunpack.c.l.bf16 %v17220_v58  ;;  %v17222_v34 = vunpack.c.h.bf16 %v17220_v58  ;;  %v17226_v57 = vld [vmem:[#allocation20_spill] sm:$0xff]  ;;  %v17228_v58 = vld [vmem:[#allocation14_spill] sm:$0xff]  ;;  %v17234_v62 = vunpack.c.l.bf16 %v17233_v51 }
  0x8f   : > { %v17245_v23 = vunpack.c.l.bf16 %v17244_v15 }
  0x95   : > { %v12462_v41 = vpop.permute.xlu0 %923  ;;  %v12464_v56 = vpop.permute.xlu1 %913 }
  0x96   : > { %17206 = vst [vmem:[#allocation73_spill] sm:$0xff] %v12462_v41  ;;  %v961_v45 = vmul.f32 %v17208_v28, %v12462_v41  ;;  %v959_v43 = vmul.f32 %v17210_v11, %v12464_v56  ;;  %v945_v11 = vmul.f32 %v17215_v44, %v12462_v41  ;;  %v977_v30 = vmul.f32 %v17217_v24, %v12462_v41 }
  0x97   : > { %v17224_v24 = vunpack.c.l.bf16 %v17223_v2 }
  0x99   : > { %v12499_v27 = vpop.permute.xlu0 %928  ;;  %v12501_v8 = vpop.permute.xlu1 %918  ;;  %v975_v5 = vmul.f32 %v17224_v24, %v12464_v56 }
  0x9a   : > { %v962_v35 = vmul.f32 %v17212_v63, %v12499_v27  ;;  %v960_v28 = vmul.f32 %v17213_v42, %v12501_v8  ;;  %v946_v14 = vmul.f32 %v17218_v3, %v12499_v27  ;;  %v978_v63 = vmul.f32 %v17219_v54, %v12499_v27 }
  0x9b   : > { %v943_v42 = vmul.f32 %v17221_v13, %v12464_v56  ;;  %v944_v44 = vmul.f32 %v17222_v34, %v12501_v8  ;;  %v17225_v3 = vunpack.c.h.bf16 %v17223_v2  ;;  %v17227_v54 = vunpack.c.l.bf16 %v17226_v57 }
  0x9c   : > { %v1090_v47 = vpack.c.bf16 %v962_v35, %v961_v45  ;;  %v17229_v34 = vunpack.c.h.bf16 %v17228_v58  ;;  %v17231_v35 = vld [vmem:[#allocation36_spill] sm:$0xff]  ;;  %v12563_v2 = vmul.f32 %v9396_v21, %v12462_v41  ;;  %v12575_v21 = vpack.c.bf16 %v946_v14, %v945_v11 }
  0x9d   : > { %v976_v52 = vmul.f32 %v17225_v3, %v12501_v8  ;;  %v991_v10 = vmul.f32 %v17227_v54, %v12464_v56  ;;  %v12550_v12 = vpop.permute.xlu1 %908  ;;  %v12552_v13 = vpop.permute.xlu0 %903  ;;  %v17232_v24 = vunpack.c.l.bf16 %v17231_v35  ;;  %v12566_v3 = vmul.f32 %v9428_v38, %v12462_v41 }
  0x9e   : > { %v12557_v45 = vmul.f32 %v17229_v34, %v12499_v27  ;;  %10475 = vmatprep.subr.bf16.mxu0 %v1090_v47  ;;  %11387 = vmatprep.subr.bf16.mxu1 %v1090_v47  ;;  %v1089_v54 = vpack.c.bf16 %v960_v28, %v959_v43  ;;  %v957_v46 = vmul.f32 %v17234_v62, %v12552_v13  ;;  %v17235_v34 = vunpack.c.h.bf16 %v17233_v51 }
  0x9f   : > { %v1007_v49 = vmul.f32 %v17232_v24, %v12464_v56  ;;  %10476 = vmatpush3.bf16.msra.mxu0 %v1090_v47  ;;  %11395 = vmatpush3.bf16.msra.mxu1 %v1090_v47  ;;  %v12577_v24 = vpack.c.bf16 %v978_v63, %v977_v30  ;;  %v12579_v38 = vpack.c.bf16 %v944_v44, %v943_v42  ;;  %v17236_v62 = vunpack.c.h.bf16 %v17226_v57  ;;  %v17238_v63 = vld [vmem:[#allocation25_spill] sm:$0xff] }
  0xa0   : > { %17230 = vst [vmem:[#allocation16_spill] sm:$0xff] %v12557_v45  ;;  %v958_v45 = vmul.f32 %v17235_v34, %v12550_v12  ;;  %10477 = vmatprep.subr.bf16.mxu0 %v1089_v54  ;;  %11388 = vmatprep.subr.bf16.mxu1 %v1089_v54  ;;  %v12582_v28 = vpack.c.bf16 %v976_v52, %v975_v5  ;;  %v17237_v34 = vunpack.c.h.bf16 %v17231_v35  ;;  %v17239_v42 = vunpack.c.l.bf16 %v17238_v63  ;;  %v17241_v57 = vld [vmem:[#allocation37_spill] sm:$0xff] }
  0xa1   : > { %v992_v51 = vmul.f32 %v17236_v62, %v12501_v8  ;;  %v12591_v11 = vpop.permute.xlu1 %898  ;;  %v12593_v30 = vpop.permute.xlu0 %893  ;;  %v17240_v5 = vunpack.c.h.bf16 %v17238_v63  ;;  %v17242_v62 = vunpack.c.l.bf16 %v17241_v57  ;;  %v17243_v35 = vunpack.c.h.bf16 %v17241_v57  ;;  %v17247_v63 = vld [vmem:[#allocation26_spill] sm:$0xff] }
  0xa2   : > { %v1008_v47 = vmul.f32 %v17237_v34, %v12501_v8  ;;  %v941_v44 = vmul.f32 %v17239_v42, %v12552_v13  ;;  %v1088_v14 = vpack.c.bf16 %v958_v45, %v957_v46  ;;  %v955_v26 = vmul.f32 %v17245_v23, %v12593_v30  ;;  %v17250_v46 = vld [vmem:[#allocation27_spill] sm:$0xff] }
  0xa3   : > { %v942_v52 = vmul.f32 %v17240_v5, %v12550_v12  ;;  %v989_v43 = vmul.f32 %v17242_v62, %v12552_v13  ;;  %v990_v34 = vmul.f32 %v17243_v35, %v12550_v12  ;;  %v17246_v42 = vunpack.c.h.bf16 %v17244_v15  ;;  %10478 = vmatpush3.bf16.msra.mxu0 %v1089_v54  ;;  %11396 = vmatpush3.bf16.msra.mxu1 %v1089_v54  ;;  %v17254_v54 = vld [vmem:[#allocation28_spill] sm:$0xff] }
  0xa4   : > { %v17248_v5 = vunpack.c.l.bf16 %v17247_v63  ;;  %v17249_v62 = vunpack.c.h.bf16 %v17247_v63  ;;  %v17251_v45 = vunpack.c.l.bf16 %v17250_v46  ;;  %v12622_v20 = vpack.c.bf16 %v992_v51, %v991_v10  ;;  %10479 = vmatprep.subr.bf16.mxu0 %v1088_v14  ;;  %11389 = vmatprep.subr.bf16.mxu1 %v1088_v14 }
  0xa5   : > { %v956_v25 = vmul.f32 %v17246_v42, %v12591_v11  ;;  %v17253_v15 = vunpack.c.h.bf16 %v17250_v46  ;;  %v12631_v63 = vpack.c.bf16 %v1008_v47, %v1007_v49  ;;  %v12634_v16 = vpop.permute.xlu1 %888  ;;  %v12636_v10 = vpop.permute.xlu0 %883  ;;  %v17257_v51 = vunpack.c.h.bf16 %v17254_v54  ;;  %v17259_v46 = vld [vmem:[#allocation38_spill] sm:$0xff] }
  0xa6   : > { %v973_v37 = vmul.f32 %v17248_v5, %v12552_v13  ;;  %v974_v57 = vmul.f32 %v17249_v62, %v12550_v12  ;;  %v939_v35 = vmul.f32 %v17251_v45, %v12593_v30  ;;  %17252 = vst [vmem:[#allocation12_spill] sm:$0xff] %v12622_v20  ;;  %v17255_v5 = vunpack.c.l.bf16 %v17254_v54  ;;  %v17262_v62 = vld [vmem:[#allocation23_spill] sm:$0xff] }
  0xa7   : > { %v940_v42 = vmul.f32 %v17253_v15, %v12591_v11  ;;  %17256 = vst [vmem:[#allocation13_spill] sm:$0xff] %v12631_v63  ;;  %v972_v45 = vmul.f32 %v17257_v51, %v12591_v11  ;;  %v12641_v23 = vpack.c.bf16 %v990_v34, %v989_v43  ;;  %v17260_v15 = vunpack.c.l.bf16 %v17259_v46  ;;  %10480 = vmatpush3.bf16.msra.mxu0 %v1088_v14  ;;  %v17265_v43 = vld [vmem:[#allocation29_spill] sm:$0xff] }
  0xa8   : > { %v971_v58 = vmul.f32 %v17255_v5, %v12593_v30  ;;  %v17261_v49 = vunpack.c.h.bf16 %v17259_v46  ;;  %v1087_v5 = vpack.c.bf16 %v956_v25, %v955_v26  ;;  %v17263_v63 = vunpack.c.l.bf16 %v17262_v62  ;;  %11397 = vmatpush3.bf16.msra.mxu1 %v1088_v14  ;;  %v17271_v14 = vld [vmem:[#allocation40_spill] sm:$0xff] }
  0xa9   : > { %17258 = vst [vmem:[#allocation18_spill] sm:$0xff] %v12641_v23  ;;  %v1005_v20 = vmul.f32 %v17260_v15, %v12552_v13  ;;  %v17264_v7 = vunpack.c.h.bf16 %v17262_v62  ;;  %v12655_v51 = vpack.c.bf16 %v942_v52, %v941_v44  ;;  %v17266_v34 = vunpack.c.l.bf16 %v17265_v43 }
  0xaa   : > { %v1006_v47 = vmul.f32 %v17261_v49, %v12550_v12  ;;  %v953_v9 = vmul.f32 %v17263_v63, %v12636_v10  ;;  %v17267_v46 = vunpack.c.h.bf16 %v17265_v43  ;;  %10481 = vmatprep.subr.bf16.mxu0 %v1087_v5  ;;  %11390 = vmatprep.subr.bf16.mxu1 %v1087_v5  ;;  %v12666_v62 = vpack.c.bf16 %v974_v57, %v973_v37  ;;  %v12677_v43 = vpop.permute.xlu1 %878 }
  0xab   : > { %v954_v54 = vmul.f32 %v17264_v7, %v12634_v16  ;;  %v937_v15 = vmul.f32 %v17266_v34, %v12636_v10  ;;  %v12668_v7 = vpack.c.bf16 %v940_v42, %v939_v35  ;;  %v17272_v44 = vunpack.c.l.bf16 %v17271_v14  ;;  %v17276_v35 = vld [vmem:[#allocation41_spill] sm:$0xff]  ;;  %10482 = vmatpush3.bf16.msra.mxu0 %v1087_v5 }
  0xac   : > { %v938_v25 = vmul.f32 %v17267_v46, %v12634_v16  ;;  %v12663_v26 = vpack.c.bf16 %v1006_v47, %v1005_v20  ;;  %17269 = vst [vmem:[#allocation20_spill] sm:$0xff] %v12666_v62  ;;  %v17273_v49 = vrot.slane %v12216_v40, 5  ;;  %v12679_v20 = vpop.permute.xlu0 %873  ;;  %v12681_v47 = vpack.c.bf16 %v972_v45, %v971_v58  ;;  %11398 = vmatpush3.bf16.msra.mxu1 %v1087_v5 }
  0xad   : > { %17270 = vst [vmem:[#allocation36_spill] sm:$0xff] %v12668_v7  ;;  %v987_v52 = vmul.f32 %v17272_v44, %v12593_v30  ;;  %v17275_v37 = vunpack.c.h.bf16 %v17271_v14  ;;  %v17277_v42 = vunpack.c.l.bf16 %v17276_v35  ;;  %v17278_v44 = vunpack.c.h.bf16 %v17276_v35  ;;  %v17282_v14 = vld [vmem:[#allocation30_spill] sm:$0xff] }
  0xae   : > { %17268 = vst [vmem:[#allocation19_spill] sm:$0xff] %v12663_v26  ;;  %v12675_v34 = vrot.slane %v17273_v49, 4  ;;  %17274 = vst [vmem:[#allocation21_spill] sm:$0xff] %v12681_v47  ;;  %v1086_v49 = vpack.c.bf16 %v954_v54, %v953_v9  ;;  %v17279_v26 = vld [vmem:[#allocation24_spill] sm:$0xff]  ;;  %v17285_v35 = vunpack.c.h.bf16 %v17282_v14 }
  0xaf   : > { %v988_v57 = vmul.f32 %v17275_v37, %v12591_v11  ;;  %v1003_v46 = vmul.f32 %v17277_v42, %v12593_v30  ;;  %v1004_v63 = vmul.f32 %v17278_v44, %v12591_v11  ;;  %v17280_v23 = vunpack.c.l.bf16 %v17279_v26 }
  0xb0   : > { %v17281_v58 = vunpack.c.h.bf16 %v17279_v26  ;;  %v17283_v37 = vunpack.c.l.bf16 %v17282_v14  ;;  %v12701_v42 = vpack.c.bf16 %v938_v25, %v937_v15  ;;  %v970_v9 = vmul.f32 %v17285_v35, %v12634_v16  ;;  %10483 = vmatprep.subr.bf16.mxu0 %v1086_v49  ;;  %11391 = vmatprep.subr.bf16.mxu1 %v1086_v49  ;;  %v17287_v26 = vld [vmem:[#allocation32_spill] sm:$0xff]  ;;  %v12718_v14 = vpop.permute.xlu1 %868 }
  0xb1   : > { %v951_v18 = vmul.f32 %v17280_v23, %v12679_v20  ;;  %v12706_v54 = vpack.c.bf16 %v988_v57, %v987_v52  ;;  %v17288_v44 = vunpack.c.l.bf16 %v17287_v26  ;;  %v12715_v15 = vpack.c.bf16 %v1004_v63, %v1003_v46  ;;  %v12720_v52 = vpop.permute.xlu0 %863  ;;  %v17291_v57 = vld [vmem:[#allocation33_spill] sm:$0xff]  ;;  %10484 = vmatpush3.bf16.msra.mxu0 %v1086_v49  ;;  %11399 = vmatpush3.bf16.msra.mxu1 %v1086_v49 }
  0xb2   : > { %v952_v45 = vmul.f32 %v17281_v58, %v12677_v43  ;;  %v969_v19 = vmul.f32 %v17283_v37, %v12636_v10  ;;  %17284 = vst [vmem:[#allocation25_spill] sm:$0xff] %v12701_v42  ;;  %v17289_v37 = vunpack.c.h.bf16 %v17287_v26  ;;  %v17292_v35 = vunpack.c.l.bf16 %v17291_v57 }
  0xb3   : > { %17286 = vst [vmem:[#allocation37_spill] sm:$0xff] %v12706_v54  ;;  %v935_v58 = vmul.f32 %v17288_v44, %v12679_v20  ;;  %17290 = vst [vmem:[#allocation22_spill] sm:$0xff] %v12715_v15  ;;  %v17293_v54 = vunpack.c.h.bf16 %v17291_v57  ;;  %v17295_v26 = vunpack.c.l.bf16 %v17294_v39  ;;  %v17296_v63 = vunpack.c.h.bf16 %v17294_v39  ;;  %v17297_v15 = vld [vmem:[#allocation31_spill] sm:$0xff] }
  0xb4   : > { %v936_v5 = vmul.f32 %v17289_v37, %v12677_v43  ;;  %v967_v23 = vmul.f32 %v17292_v35, %v12679_v20  ;;  %v1085_v25 = vpack.c.bf16 %v952_v45, %v951_v18  ;;  %v17298_v41 = vunpack.c.l.bf16 %v17297_v15 }
  0xb5   : > { %v968_v44 = vmul.f32 %v17293_v54, %v12677_v43  ;;  %v985_v37 = vmul.f32 %v17295_v26, %v12636_v10  ;;  %v986_v46 = vmul.f32 %v17296_v63, %v12634_v16  ;;  %v17299_v35 = vunpack.c.h.bf16 %v17297_v15  ;;  %v17301_v26 = vld [vmem:[#allocation34_spill] sm:$0xff] }
  0xb6   : > { %v949_v42 = vmul.f32 %v17298_v41, %v12720_v52  ;;  %v17300_v54 = vunpack.c.l.bf16 %v12390_v50  ;;  %v17302_v7 = vunpack.c.l.bf16 %v17301_v26  ;;  %v17303_v18 = vunpack.c.h.bf16 %v17301_v26  ;;  %10485 = vmatprep.subr.bf16.mxu0 %v1085_v25  ;;  %11392 = vmatprep.subr.bf16.mxu1 %v1085_v25  ;;  %v12768_v26 = vpop.permute.xlu0 %853 }
  0xb7   : > { %v950_v47 = vmul.f32 %v17299_v35, %v12718_v14  ;;  %v12749_v63 = vpack.c.bf16 %v986_v46, %v985_v37  ;;  %v17305_v41 = vrot.slane %v12276_v31, 5  ;;  %v12753_v35 = vpack.c.bf16 %v970_v9, %v969_v19  ;;  %v12764_v37 = vld [vmem:[%s16826_s7 + $0x170] sm:$0xff]   ;;  %v12766_v46 = vpop.permute.xlu1 %858  ;;  %v17310_v19 = vld [vmem:[#allocation35_spill] sm:$0xff]  ;;  %10486 = vmatpush3.bf16.msra.mxu0 %v1085_v25  ;;  %11400 = vmatpush3.bf16.msra.mxu1 %v1085_v25 }
  0xb8   : > { %v1001_v57 = vmul.f32 %v17300_v54, %v12636_v10  ;;  %v933_v39 = vmul.f32 %v17302_v7, %v12720_v52  ;;  %v934_v45 = vmul.f32 %v17303_v18, %v12718_v14  ;;  %v12755_v54 = vpack.c.bf16 %v936_v5, %v935_v58 }
  0xb9   : > { %17304 = vst [vmem:[#allocation26_spill] sm:$0xff] %v12749_v63  ;;  %v2193_v15 = vrot.slane %v17305_v41, 4  ;;  %17306 = vst [vmem:[#allocation27_spill] sm:$0xff] %v12753_v35  ;;  %v17308_v49 = vunpack.c.h.bf16 %v12390_v50  ;;  %v2194_v7 = vrot.slane %v12308_v32, 5  ;;  %v12770_v18 = vpack.c.bf16 %v968_v44, %v967_v23  ;;  %v17314_v23 = vld [vmem:[#allocation39_spill] sm:$0xff] }
  0xba   : > { %17307 = vst [vmem:[#allocation28_spill] sm:$0xff] %v12755_v54  ;;  %v17311_v9 = vunpack.c.l.bf16 %v17310_v19  ;;  %v17312_v50 = vunpack.c.l.bf16 %v12420_v55  ;;  %v17313_v32 = vunpack.c.h.bf16 %v12420_v55  ;;  %v1084_v63 = vpack.c.bf16 %v950_v47, %v949_v42 }
  0xbb   : > { %v1002_v62 = vmul.f32 %v17308_v49, %v12634_v16  ;;  %17309 = vst [vmem:[#allocation38_spill] sm:$0xff] %v12770_v18  ;;  %v12784_v49 = vld [vmem:[%s16826_s7 + $0x1b0] sm:$0xff]   ;;  %v17315_v44 = vunpack.c.l.bf16 %v17314_v23  ;;  %v12795_v55 = vpack.c.bf16 %v934_v45, %v933_v39  ;;  %v17319_v47 = vunpack.c.l.bf16 %v12429_v4 }
  0xbc   : > { %v965_v58 = vmul.f32 %v17311_v9, %v12720_v52  ;;  %v983_v5 = vmul.f32 %v17312_v50, %v12679_v20  ;;  %v984_v41 = vmul.f32 %v17313_v32, %v12677_v43  ;;  %v17316_v9 = vunpack.c.h.bf16 %v17314_v23  ;;  %10487 = vmatprep.subr.bf16.mxu0 %v1084_v63  ;;  %11393 = vmatprep.subr.bf16.mxu1 %v1084_v63 }
  0xbd   : > { %v947_v18 = vmul.f32 %v17315_v44, %v12768_v26  ;;  %v17317_v50 = vunpack.c.h.bf16 %v17310_v19  ;;  %v12797_v32 = vpack.c.bf16 %v1002_v62, %v1001_v57  ;;  %v999_v42 = vmul.f32 %v17319_v47, %v12679_v20  ;;  %v9906_v62 = vld [vmem:[%s16826_s7 + $0x168] sm:$0xff]   ;;  %10488 = vmatpush3.bf16.msra.mxu0 %v1084_v63  ;;  %11401 = vmatpush3.bf16.msra.mxu1 %v1084_v63 }
  0xbe   : > { %v948_v54 = vmul.f32 %v17316_v9, %v12766_v46  ;;  %v9392_v44 = vunpack.c.l.bf16 %v12764_v37  ;;  %v12803_v9 = vpack.c.bf16 %v984_v41, %v983_v5  ;;  %v9393_v19 = vunpack.c.h.bf16 %v12764_v37 }
  0xbf   : > { %v966_v35 = vmul.f32 %v17317_v50, %v12718_v14  ;;  %17318 = vst [vmem:[#allocation23_spill] sm:$0xff] %v12797_v32  ;;  %v9424_v50 = vunpack.c.l.bf16 %v12784_v49  ;;  %v17321_v25 = vunpack.c.h.bf16 %v12429_v4  ;;  %v17322_v39 = vunpack.c.l.bf16 %v12434_v48 }
  0xc0   : > { %v1083_v23 = vpack.c.bf16 %v948_v54, %v947_v18  ;;  %17320 = vst [vmem:[#allocation29_spill] sm:$0xff] %v12803_v9  ;;  %v17323_v54 = vunpack.c.h.bf16 %v12434_v48  ;;  %v9425_v37 = vunpack.c.h.bf16 %v12784_v49  ;;  %v17324_v5 = vunpack.c.l.bf16 %v12451_v59 }
  0xc1   : > { %v1000_v57 = vmul.f32 %v17321_v25, %v12677_v43  ;;  %v981_v45 = vmul.f32 %v17322_v39, %v12720_v52  ;;  %v17325_v47 = vunpack.c.h.bf16 %v12451_v59  ;;  %v17326_v4 = vunpack.c.l.bf16 %v12456_v33 }
  0xc2   : > { %v982_v18 = vmul.f32 %v17323_v54, %v12718_v14  ;;  %v997_v41 = vmul.f32 %v17324_v5, %v12720_v52  ;;  %v17327_v39 = vunpack.c.h.bf16 %v12456_v33  ;;  %v17328_v54 = vunpack.c.l.bf16 %v12470_v1  ;;  %10489 = vmatprep.subr.bf16.mxu0 %v1083_v23  ;;  %11394 = vmatprep.subr.bf16.mxu1 %v1083_v23 }
  0xc3   : > { %v998_v9 = vmul.f32 %v17325_v47, %v12718_v14  ;;  %v979_v25 = vmul.f32 %v17326_v4, %v12768_v26  ;;  %v12832_v48 = vpack.c.bf16 %v1000_v57, %v999_v42  ;;  %v9388_v59 = vunpack.c.l.bf16 %v9906_v62  ;;  %v9914_v42 = vld [vmem:[%s16826_s7 + $0x1a8] sm:$0xff]   ;;  %10490 = vmatpush3.bf16.msra.mxu0 %v1083_v23  ;;  %11402 = vmatpush3.bf16.msra.mxu1 %v1083_v23 }
  0xc4   : > { %v980_v32 = vmul.f32 %v17327_v39, %v12766_v46  ;;  %v12834_v49 = vpack.c.bf16 %v982_v18, %v981_v45  ;;  %v995_v5 = vmul.f32 %v17328_v54, %v12768_v26  ;;  %v17329_v33 = vunpack.c.h.bf16 %v12470_v1  ;;  %10523 = vmatprep.subr.bf16.mxu1 %v12575_v21  ;;  %10571 = vmatprep.subr.bf16.mxu0 %v12577_v24 }
  0xc5   : > { %v12839_v47 = vpack.c.bf16 %v998_v9, %v997_v41  ;;  %v9389_v63 = vunpack.c.h.bf16 %v9906_v62  ;;  %v17330_v57 = vunpack.c.h.bf16 %v12475_v60  ;;  %v17331_v18 = vunpack.c.h.bf16 %v12480_v36 }
  0xc6   : > { %v12841_v4 = vpack.c.bf16 %v980_v32, %v979_v25  ;;  %v996_v39 = vmul.f32 %v17329_v33, %v12766_v46  ;;  %v12857_v32 = vcombine.low %v12484_v22, %v12511_v17  ;;  %v17333_v1 = vrot.slane %v12216_v40, 5  ;;  %10508 = vmatmul.mubr.bf16.vlgmr.msra.gmra.mxu1 %v12230_v61 }
  0xc7   : > { %v1026_v45 = vmul.f32 %v17330_v57, %v12499_v27  ;;  %v1042_v9 = vmul.f32 %v17331_v18, %v12499_v27  ;;  %v17334_v62 = vrot.slane %v12208_v53, 9  ;;  %v17335_v60 = vrot.slane %v12257_v0, 5  ;;  %v17343_v18 = vld [vmem:[#allocation45_spill] sm:$0xff]  ;;  %10524 = vmatpush3.bf16.msra.mxu1 %v12575_v21 }
  0xc8   : > { %17332 = vst [vmem:[#allocation40_spill] sm:$0xff] %v12857_v32  ;;  %v12865_v25 = vpack.c.bf16 %v996_v39, %v995_v5  ;;  %v17336_v54 = vrot.slane %v12276_v31, 5  ;;  %v17337_v22 = vrot.slane %v12270_v6, 9  ;;  %v2195_v53 = vsel %vm12342_vm10, %v2193_v15, %v2194_v7  ;;  %v9905_v6 = vld [vmem:[%s16826_s7 + $0x160] sm:$0xff]   ;;  %v17339_v15 = vld [vmem:[#allocation42_spill] sm:$0xff]  ;;  %10492 = vmatmul.mubr.bf16.vlgmr.msra.gmra.mxu0 %v17343_v18  ;;  %10525 = vmatprep.subr.bf16.mxu1 %v12579_v38 }
  0xc9   : > { %v2185_v41 = vsel %vm12342_vm10, %v17334_v62, %v17333_v1  ;;  %v2188_v36 = vsel %vm12342_vm10, %v12675_v34, %v17335_v60  ;;  %v12881_v17 = vpack.c.bf16 %v1026_v45, %v12563_v2  ;;  %v12884_v0 = vpack.c.bf16 %v1042_v9, %v12566_v3  ;;  %10572 = vmatpush3.bf16.msra.mxu0 %v12577_v24 }
  0xca   : > { %v2192_v40 = vsel %vm12342_vm10, %v17337_v22, %v17336_v54  ;;  %v12886_v5 = vcombine.low %v2185_v41, %v2188_v36  ;;  %v9420_v34 = vunpack.c.l.bf16 %v9914_v42  ;;  %v12893_v31 = vpack.c.bf16 %v966_v35, %v965_v58  ;;  %v9913_v58 = vld [vmem:[%s16826_s7 + $0x1a0] sm:$0xff]   ;;  %10573 = vmatprep.subr.bf16.mxu0 %v12582_v28 }
  0xcb   : > { %v17340_v2 = vunpack.c.l.bf16 %v17339_v15  ;;  %v12900_v3 = vcombine.low %v2192_v40, %v2195_v53  ;;  %v9421_v23 = vunpack.c.h.bf16 %v9914_v42  ;;  %v17342_v33 = vunpack.c.h.bf16 %v17339_v15  ;;  %v17344_v42 = vld [vmem:[#allocation43_spill] sm:$0xff]  ;;  %v17346_v40 = vld [vmem:[#allocation49_spill] sm:$0xff]  ;;  %10526 = vmatpush3.bf16.msra.mxu1 %v12579_v38 }
  0xcc   : > { %17338 = vst [vmem:[#allocation41_spill] sm:$0xff] %v12886_v5  ;;  %v1023_v57 = vmul.f32 %v9392_v44, %v12464_v56  ;;  %v1024_v45 = vmul.f32 %v9393_v19, %v12501_v8  ;;  %v1039_v35 = vmul.f32 %v9424_v50, %v12464_v56  ;;  %v17345_v9 = vunpack.c.l.bf16 %v17344_v42  ;;  %v9904_v50 = vld [vmem:[%s16826_s7 + $0x158] sm:$0xff]   ;;  %10495 = vmatprep.mubr.bf16.mxu0 %v17346_v40 }
  0xcd   : > { %v12898_v7 = vmul.f32 %v17340_v2, %v12768_v26  ;;  %17341 = vst [vmem:[#allocation24_spill] sm:$0xff] %v12900_v3  ;;  %v12905_v39 = vmul.f32 %v17342_v33, %v12766_v46  ;;  %v1040_v62 = vmul.f32 %v9425_v37, %v12501_v8  ;;  %v1021_v44 = vmul.f32 %v9388_v59, %v12552_v13  ;;  %v9912_v37 = vld [vmem:[%s16826_s7 + $0x198] sm:$0xff]   ;;  %v9903_v2 = vld [vmem:[%s16826_s7 + $0x150] sm:$0xff]  }
  0xce   : > { %v12918_v1 = vmul.f32 %v17345_v9, %v12768_v26  ;;  %v9384_v19 = vunpack.c.l.bf16 %v9905_v6  ;;  %v12927_v41 = vpack.c.bf16 %v1024_v45, %v1023_v57  ;;  %v1022_v60 = vmul.f32 %v9389_v63, %v12550_v12  ;;  %v17347_v63 = vld [vmem:[#allocation50_spill] sm:$0xff]  ;;  %10574 = vmatpush3.bf16.msra.mxu0 %v12582_v28  ;;  %10527 = vmatprep.subr.bf16.mxu1 %v12655_v51 }
  0xcf   : > { %v1037_v36 = vmul.f32 %v9420_v34, %v12552_v13  ;;  %v9385_v54 = vunpack.c.h.bf16 %v9905_v6  ;;  %v12936_v59 = vpack.c.bf16 %v1040_v62, %v1039_v35  ;;  %v1038_v21 = vmul.f32 %v9421_v23, %v12550_v12  ;;  %10511 = vmatprep.mubr.bf16.mxu1 %v17347_v63  ;;  %v9911_v35 = vld [vmem:[%s16826_s7 + $0x190] sm:$0xff]   ;;  %10528 = vmatpush3.bf16.msra.mxu1 %v12655_v51 }
  0xd0   : > { %v1019_v24 = vmul.f32 %v9384_v19, %v12593_v30  ;;  %v9416_v22 = vunpack.c.l.bf16 %v9913_v58  ;;  %v12942_v53 = vpack.c.bf16 %v1022_v60, %v1021_v44  ;;  %v9417_v6 = vunpack.c.h.bf16 %v9913_v58  ;;  %v9902_v19 = vld [vmem:[%s16826_s7 + $0x148] sm:$0xff]  }
  0xd1   : > { %v1020_v34 = vmul.f32 %v9385_v54, %v12591_v11  ;;  %v9380_v15 = vunpack.c.l.bf16 %v9904_v50  ;;  %v12948_v33 = vpack.c.bf16 %v1038_v21, %v1037_v36  ;;  %v9381_v57 = vunpack.c.h.bf16 %v9904_v50  ;;  %v17349_v50 = vld [vmem:[#allocation20_spill] sm:$0xff] }
  0xd2   : > { %v1035_v23 = vmul.f32 %v9416_v22, %v12593_v30  ;;  %v9412_v45 = vunpack.c.l.bf16 %v9912_v37  ;;  %v1036_v9 = vmul.f32 %v9417_v6, %v12591_v11  ;;  %v9413_v44 = vunpack.c.h.bf16 %v9912_v37  ;;  %10575 = vmatprep.subr.bf16.mxu0 %v17349_v50  ;;  %v9910_v22 = vld [vmem:[%s16826_s7 + $0x188] sm:$0xff]  }
  0xd3   : > { %v12956_v58 = vpack.c.bf16 %v1020_v34, %v1019_v24  ;;  %v1017_v62 = vmul.f32 %v9380_v15, %v12636_v10  ;;  %v1018_v60 = vmul.f32 %v9381_v57, %v12634_v16  ;;  %v9376_v28 = vunpack.c.l.bf16 %v9903_v2  ;;  %v17351_v34 = vld [vmem:[#allocation51_spill] sm:$0xff]  ;;  %v17352_v6 = vld [vmem:[#allocation52_spill] sm:$0xff]  ;;  %10576 = vmatpush3.bf16.msra.mxu0 %v17349_v50 }
  0xd4   : > { %v1033_v38 = vmul.f32 %v9412_v45, %v12636_v10  ;;  %v9377_v36 = vunpack.c.h.bf16 %v9903_v2  ;;  %v12967_v54 = vpack.c.bf16 %v1036_v9, %v1035_v23  ;;  %v1034_v21 = vmul.f32 %v9413_v44, %v12634_v16  ;;  %10496 = vmatmul.mubr.bf16.gmra.mxu0 %v17351_v34  ;;  %10512 = vmatmul.mubr.bf16.gmra.mxu1 %v17352_v6  ;;  %v9901_v45 = vld [vmem:[%s16826_s7 + $0x140] sm:$0xff]  }
  0xd5   : > { %17348 = vst [vmem:[#allocation30_spill] sm:$0xff] %v12956_v58  ;;  %v9408_v24 = vunpack.c.l.bf16 %v9911_v35  ;;  %v9409_v37 = vunpack.c.h.bf16 %v9911_v35  ;;  %v12975_v15 = vpack.c.bf16 %v1018_v60, %v1017_v62  ;;  %v1015_v57 = vmul.f32 %v9376_v28, %v12679_v20  ;;  %v9909_v60 = vld [vmem:[%s16826_s7 + $0x180] sm:$0xff]   ;;  %v17355_v28 = vld [vmem:[#allocation36_spill] sm:$0xff] }
  0xd6   : > { %17350 = vst [vmem:[#allocation32_spill] sm:$0xff] %v12967_v54  ;;  %v1016_v2 = vmul.f32 %v9377_v36, %v12677_v43  ;;  %v9372_v23 = vunpack.c.l.bf16 %v9902_v19  ;;  %v12984_v35 = vpack.c.bf16 %v1034_v21, %v1033_v38  ;;  %v9373_v44 = vunpack.c.h.bf16 %v9902_v19  ;;  %10529 = vmatprep.subr.bf16.mxu1 %v17355_v28  ;;  %v17356_v36 = vld [vmem:[#allocation21_spill] sm:$0xff]  ;;  %v9924_v21 = vld [vmem:[%s16826_s7 + $0x1f8] sm:$0xff]  }
  0xd7   : > { %17353 = vst [vmem:[#allocation33_spill] sm:$0xff] %v12975_v15  ;;  %v1031_v9 = vmul.f32 %v9408_v24, %v12679_v20  ;;  %v1032_v62 = vmul.f32 %v9409_v37, %v12677_v43  ;;  %10577 = vmatprep.subr.bf16.mxu0 %v17356_v36  ;;  %v9404_v50 = vunpack.c.l.bf16 %v9910_v22  ;;  %v9405_v38 = vunpack.c.h.bf16 %v9910_v22  ;;  %v17358_v24 = vld [vmem:[#allocation53_spill] sm:$0xff]  ;;  %v17359_v19 = vld [vmem:[#allocation54_spill] sm:$0xff]  ;;  %10530 = vmatpush3.bf16.msra.mxu1 %v17355_v28 }
  0xd8   : > { %17354 = vst [vmem:[#allocation44_spill] sm:$0xff] %v12984_v35  ;;  %v12993_v6 = vpack.c.bf16 %v1016_v2, %v1015_v57  ;;  %v1013_v51 = vmul.f32 %v9372_v23, %v12720_v52  ;;  %10499 = vmatprep.mubr.bf16.mxu0 %v17358_v24  ;;  %10515 = vmatprep.mubr.bf16.mxu1 %v17359_v19  ;;  %v9368_v61 = vunpack.c.l.bf16 %v9901_v45  ;;  %v9369_v35 = vunpack.c.h.bf16 %v9901_v45 }
  0xd9   : > { %v13001_v37 = vpack.c.bf16 %v1032_v62, %v1031_v9  ;;  %v1014_v63 = vmul.f32 %v9373_v44, %v12718_v14  ;;  %v1029_v57 = vmul.f32 %v9404_v50, %v12720_v52  ;;  %v1030_v2 = vmul.f32 %v9405_v38, %v12718_v14  ;;  %10578 = vmatpush3.bf16.msra.mxu0 %v17356_v36  ;;  %v9923_v50 = vld [vmem:[%s16826_s7 + $0x1f0] sm:$0xff]   ;;  %v17363_v38 = vld [vmem:[#allocation27_spill] sm:$0xff] }
  0xda   : > { %17357 = vst [vmem:[#allocation31_spill] sm:$0xff] %v12993_v6  ;;  %v9400_v23 = vunpack.c.l.bf16 %v9909_v60  ;;  %v9401_v22 = vunpack.c.h.bf16 %v9909_v60  ;;  %v9932_v6 = vld [vmem:[%s16826_s7 + $0x238] sm:$0xff]   ;;  %v1011_v62 = vmul.f32 %v9368_v61, %v12768_v26  ;;  %v1012_v45 = vmul.f32 %v9369_v35, %v12766_v46  ;;  %v17362_v60 = vld [vmem:[#allocation25_spill] sm:$0xff]  ;;  %10579 = vmatprep.subr.bf16.mxu0 %v17363_v38 }
  0xdb   : > { %17360 = vst [vmem:[#allocation34_spill] sm:$0xff] %v13001_v37  ;;  %v13011_v9 = vpack.c.bf16 %v1014_v63, %v1013_v51  ;;  %v9460_v44 = vunpack.c.l.bf16 %v9924_v21  ;;  %10531 = vmatprep.subr.bf16.mxu1 %v17362_v60  ;;  %v13020_v19 = vpack.c.bf16 %v1030_v2, %v1029_v57  ;;  %v9461_v36 = vunpack.c.h.bf16 %v9924_v21  ;;  %v9931_v61 = vld [vmem:[%s16826_s7 + $0x230] sm:$0xff]   ;;  %v9922_v57 = vld [vmem:[%s16826_s7 + $0x1e8] sm:$0xff]   ;;  %v17367_v2 = vld [vmem:[#allocation55_spill] sm:$0xff] }
  0xdc   : > { %v1027_v28 = vmul.f32 %v9400_v23, %v12768_v26  ;;  %v1028_v63 = vmul.f32 %v9401_v22, %v12766_v46  ;;  %v13027_v35 = vpack.c.bf16 %v1012_v45, %v1011_v62  ;;  %v17366_v51 = vld [vmem:[#allocation73_spill] sm:$0xff]  ;;  %v9492_v37 = vunpack.c.l.bf16 %v9932_v6  ;;  %10500 = vmatmul.mubr.bf16.gmra.mxu0 %v17367_v2  ;;  %10532 = vmatpush3.bf16.msra.mxu1 %v17362_v60 }
  0xdd   : > { %17361 = vst [vmem:[#allocation35_spill] sm:$0xff] %v13011_v9  ;;  %17364 = vst [vmem:[#allocation39_spill] sm:$0xff] %v13020_v19  ;;  %v1057_v9 = vmul.f32 %v9460_v44, %v17366_v51  ;;  %v9493_v15 = vunpack.c.h.bf16 %v9932_v6  ;;  %v17368_v23 = vld [vmem:[#allocation57_spill] sm:$0xff]  ;;  %v1058_v21 = vmul.f32 %v9461_v36, %v12499_v27  ;;  %v9456_v19 = vunpack.c.l.bf16 %v9923_v50  ;;  %10580 = vmatpush3.bf16.msra.mxu0 %v17363_v38 }
  0xde   : > { %17365 = vst [vmem:[#allocation42_spill] sm:$0xff] %v13027_v35  ;;  %10516 = vmatmul.mubr.bf16.gmra.mxu1 %v17368_v23  ;;  %v13035_v22 = vpack.c.bf16 %v1028_v63, %v1027_v28  ;;  %v9457_v54 = vunpack.c.h.bf16 %v9923_v50  ;;  %v1073_v6 = vmul.f32 %v9492_v37, %v17366_v51  ;;  %v9488_v45 = vunpack.c.l.bf16 %v9931_v61  ;;  %v9930_v23 = vld [vmem:[%s16826_s7 + $0x228] sm:$0xff]   ;;  %v17371_v63 = vld [vmem:[#allocation38_spill] sm:$0xff] }
  0xdf   : > { %v1074_v62 = vmul.f32 %v9493_v15, %v12499_v27  ;;  %v9489_v44 = vunpack.c.h.bf16 %v9931_v61  ;;  %v17370_v28 = vld [vmem:[#allocation28_spill] sm:$0xff]  ;;  %10581 = vmatprep.subr.bf16.mxu0 %v17371_v63  ;;  %v17372_v50 = vunpack.c.h.bf16 %v17344_v42  ;;  %v13050_v36 = vpack.c.bf16 %v1058_v21, %v1057_v9  ;;  %v9921_v15 = vld [vmem:[%s16826_s7 + $0x1e0] sm:$0xff]   ;;  %v17374_v61 = vld [vmem:[#allocation58_spill] sm:$0xff] }
  0xe0   : > { %17369 = vst [vmem:[#allocation45_spill] sm:$0xff] %v13035_v22  ;;  %10533 = vmatprep.subr.bf16.mxu1 %v17370_v28  ;;  %v1055_v37 = vmul.f32 %v9456_v19, %v12464_v56  ;;  %v9452_v38 = vunpack.c.l.bf16 %v9922_v57  ;;  %10503 = vmatprep.mubr.bf16.mxu0 %v17374_v61  ;;  %v17375_v22 = vld [vmem:[#allocation59_spill] sm:$0xff]  ;;  %v1056_v2 = vmul.f32 %v9457_v54, %v12501_v8  ;;  %v9485_v58 = vunpack.c.h.bf16 %v9930_v23 }
  0xe1   : > { %v964_v60 = vmul.f32 %v17372_v50, %v12766_v46  ;;  %17373 = vst [vmem:[#allocation43_spill] sm:$0xff] %v13050_v36  ;;  %10519 = vmatprep.mubr.bf16.mxu1 %v17375_v22  ;;  %v13058_v35 = vpack.c.bf16 %v1074_v62, %v1073_v6  ;;  %v1071_v42 = vmul.f32 %v9488_v45, %v12464_v56  ;;  %v9453_v50 = vunpack.c.h.bf16 %v9922_v57  ;;  %v9929_v19 = vld [vmem:[%s16826_s7 + $0x220] sm:$0xff]  }
  0xe2   : > { %v1072_v9 = vmul.f32 %v9489_v44, %v12501_v8  ;;  %v1053_v21 = vmul.f32 %v9452_v38, %v12552_v13  ;;  %v9484_v36 = vunpack.c.l.bf16 %v9930_v23  ;;  %10534 = vmatpush3.bf16.msra.mxu1 %v17370_v28  ;;  %10582 = vmatpush3.bf16.msra.mxu0 %v17371_v63  ;;  %v13069_v6 = vpack.c.bf16 %v1056_v2, %v1055_v37  ;;  %v17379_v37 = vld [vmem:[#allocation62_spill] sm:$0xff]  ;;  %v17380_v38 = vld [vmem:[#allocation64_spill] sm:$0xff] }
  0xe3   : > { %v1054_v54 = vmul.f32 %v9453_v50, %v12550_v12  ;;  %v9448_v56 = vunpack.c.l.bf16 %v9921_v15  ;;  %v9449_v57 = vunpack.c.h.bf16 %v9921_v15  ;;  %10535 = vmatprep.subr.bf16.mxu1 %v12795_v55  ;;  %10583 = vmatprep.subr.bf16.mxu0 %v12893_v31  ;;  %v1070_v23 = vmul.f32 %v9485_v58, %v12550_v12  ;;  %v17381_v12 = vld [vmem:[#allocation15_spill] sm:$0xff] }
  0xe4   : > { %17376 = vst [vmem:[#allocation49_spill] sm:$0xff] %v13069_v6  ;;  %v13074_v8 = vpack.c.bf16 %v1072_v9, %v1071_v42  ;;  %v1069_v62 = vmul.f32 %v9484_v36, %v12552_v13  ;;  %v9480_v45 = vunpack.c.l.bf16 %v9929_v19  ;;  %v9481_v63 = vunpack.c.h.bf16 %v9929_v19  ;;  %10504 = vmatmul.mubr.bf16.gmra.mxu0 %v17379_v37  ;;  %v11492_v42 = vld [vmem:[%s11755_s18 + $0x38] sm:$0x1]  ;;  %v13097_v9 = vld [vmem:[%s11755_s18 + $0x3c] sm:$0xf] }
  0xe5   : > { %v13078_v44 = vpack.c.bf16 %v1054_v54, %v1053_v21  ;;  %v1051_v2 = vmul.f32 %v9448_v56, %v12593_v30  ;;  %v1052_v28 = vmul.f32 %v9449_v57, %v12591_v11  ;;  %v1075_v15 = vpack.c.bf16 %v12905_v39, %v12898_v7  ;;  %v9920_v19 = vld [vmem:[%s16826_s7 + $0x1d8] sm:$0xff]   ;;  %v17388_v57 = vld [vmem:[#allocation71_spill] sm:$0xff] }
  0xe6   : > { %17377 = vst [vmem:[#allocation20_spill] sm:$0xff] %v13074_v8  ;;  %10520 = vmatmul.mubr.bf16.gmra.mxu1 %v17380_v38  ;;  %v1091_v13 = vpack.c.bf16 %v964_v60, %v12918_v1  ;;  %v17382_v58 = vunpack.c.h.bf16 %v17381_v12  ;;  %v2124_v50 = vrot.slane %v11492_v42, 5  ;;  %10584 = vmatpush3.bf16.msra.mxu0 %v12893_v31  ;;  %v13100_v39 = vpack.c.bf16 %v1070_v23, %v1069_v62  ;;  %v9928_v60 = vld [vmem:[%s16826_s7 + $0x218] sm:$0xff]   ;;  %v17389_v62 = vld [vmem:[#allocation69_spill] sm:$0xff] }
  0xe7   : > { %17378 = vst [vmem:[#allocation51_spill] sm:$0xff] %v13078_v44  ;;  %10536 = vmatpush3.bf16.msra.mxu1 %v12795_v55  ;;  %v13102_v1 = vpack.c.bf16 %v1052_v28, %v1051_v2  ;;  %v17385_v55 = vld [vmem:[#allocation14_spill] sm:$0xff]  ;;  %v17387_v54 = vunpack.c.l.bf16 %v17381_v12  ;;  %v13116_v23 = vcombine.low %v17389_v62, %v17388_v57  ;;  %v13119_v2 = vld [vmem:[%s11755_s18 + $0x40] sm:$0xf]  ;;  %v17390_v28 = vld [vmem:[#allocation8_spill] sm:$0xff]  ;;  %v1068_v62 = vmul.f32 %v9481_v63, %v12591_v11 }
  0xe8   : > { %v1010_v36 = vmul.f32 %v17382_v58, %v12499_v27  ;;  %17383 = vst [vmem:[#allocation36_spill] sm:$0xff] %v13100_v39  ;;  %v1067_v27 = vmul.f32 %v9480_v45, %v12593_v30  ;;  %10537 = vmatprep.subr.bf16.mxu1 %v1075_v15  ;;  %10585 = vmatprep.subr.bf16.mxu0 %v1091_v13  ;;  %v17386_v21 = vunpack.c.l.bf16 %v17385_v55  ;;  %v9919_v45 = vld [vmem:[%s16826_s7 + $0x1d0] sm:$0xff]   ;;  %v17393_v55 = vld [vmem:[#allocation60_spill] sm:$0xff]  ;;  %v9444_v7 = vunpack.c.l.bf16 %v9920_v19 }
  0xe9   : > { %17384 = vst [vmem:[#allocation21_spill] sm:$0xff] %v13102_v1  ;;  %v1009_v56 = vmul.f32 %v17387_v54, %v17366_v51  ;;  %v17391_v58 = vld [vmem:[#allocation9_spill] sm:$0xff]  ;;  %v9445_v30 = vunpack.c.h.bf16 %v9920_v19  ;;  %v17398_v1 = vld [vmem:[#allocation16_spill] sm:$0xff]  ;;  %v9476_v8 = vunpack.c.l.bf16 %v9928_v60  ;;  %v9477_v6 = vunpack.c.h.bf16 %v9928_v60 }
  0xea   : > { %v993_v31 = vmul.f32 %v17386_v21, %v17366_v51  ;;  %v17392_v42 = vcombine.low %v17390_v28, %v17391_v58  ;;  %v17394_v21 = vld [vmem:[#allocation61_spill] sm:$0xff]  ;;  %v17396_v51 = vld [vmem:[#allocation47_spill] sm:$0xff]  ;;  %10586 = vmatpush3.bf16.msra.mxu0 %v1091_v13  ;;  %v13138_v58 = vpack.c.bf16 %v1068_v62, %v1067_v27  ;;  %v9440_v63 = vunpack.c.l.bf16 %v9919_v45  ;;  %v9918_v27 = vld [vmem:[%s16826_s7 + $0x1c8] sm:$0xff]  }
  0xeb   : > { %v17395_v12 = vcombine.low %v17393_v55, %v17394_v21  ;;  %v17397_v54 = vrot.slane %v17396_v51, 5  ;;  %v1114_v44 = vpack.c.bf16 %v1010_v36, %v1009_v56  ;;  %v9927_v28 = vld [vmem:[%s16826_s7 + $0x210] sm:$0xff]   ;;  %10538 = vmatpush3.bf16.msra.mxu1 %v1075_v15  ;;  %v1050_v11 = vmul.f32 %v9445_v30, %v12634_v16  ;;  %v17400_v36 = vld [vmem:[#allocation46_spill] sm:$0xff]  ;;  %v17402_v51 = vld [vmem:[#allocation63_spill] sm:$0xff] }
  0xec   : > { %10539 = vmatprep.mubr.bf16.mxu1 %v17392_v42  ;;  %v1106_v39 = vpack.c.bf16 %v17398_v1, %v993_v31  ;;  %v1049_v42 = vmul.f32 %v9444_v7, %v12636_v10  ;;  %v17401_v1 = vrot.slane %v17400_v36, 9  ;;  %v13149_v31 = vld [vmem:[%s11755_s18 + $0x44] sm:$0x1]  ;;  %v1065_v13 = vmul.f32 %v9476_v8, %v12636_v10  ;;  %v17406_v36 = vld [vmem:[#allocation13_spill] sm:$0xff] }
  0xed   : > { %10587 = vmatprep.mubr.bf16.mxu0 %v17395_v12  ;;  %v2123_v57 = vrot.slane %v17397_v54, 4  ;;  %10667 = vmatprep.subr.bf16.mxu0 %v1114_v44  ;;  %v17399_v19 = vmov %v17397_v54  ;;  %v1066_v7 = vmul.f32 %v9477_v6, %v12634_v16  ;;  %v9441_v30 = vunpack.c.h.bf16 %v9919_v45  ;;  %v9926_v12 = vld [vmem:[%s16826_s7 + $0x208] sm:$0xff]   ;;  %v17403_v10 = vld [vmem:[#allocation67_spill] sm:$0xff] }
  0xee   : > { %10619 = vmatprep.subr.bf16.mxu1 %v1106_v39  ;;  %v2122_v60 = vsel %vm12342_vm10, %v17401_v1, %v17399_v19  ;;  %v13157_v56 = vpack.c.bf16 %v1050_v11, %v1049_v42  ;;  %v1047_v55 = vmul.f32 %v9440_v63, %v12679_v20  ;;  %v9472_v21 = vunpack.c.l.bf16 %v9927_v28  ;;  %10540 = vmatmul.mubr.bf16.vlgmr.msra.gmra.mxu1 %v17402_v51  ;;  %v9917_v62 = vld [vmem:[%s16826_s7 + $0x1c0] sm:$0xff]   ;;  %v13175_v42 = vld [vmem:[%s11755_s18 + $0x4c] sm:$0xf] }
  0xef   : > { %10588 = vmatmul.mubr.bf16.vlgmr.msra.gmra.mxu0 %v17403_v10  ;;  %v2125_v16 = vsel %vm12342_vm10, %v2123_v57, %v2124_v50  ;;  %v17404_v6 = vrot.slane %v13119_v2, 5  ;;  %v13169_v54 = vpack.c.bf16 %v1066_v7, %v1065_v13  ;;  %v9473_v45 = vunpack.c.h.bf16 %v9927_v28  ;;  %10620 = vmatpush3.bf16.msra.mxu1 %v1106_v39  ;;  %v17405_v19 = vld [vmem:[#allocation12_spill] sm:$0xff]  ;;  %v17407_v39 = vld [vmem:[#allocation65_spill] sm:$0xff] }
  0xf0   : > { %10668 = vmatpush3.bf16.msra.mxu0 %v1114_v44  ;;  %v2135_v11 = vrot.slane %v13175_v42, 5  ;;  %v1048_v63 = vmul.f32 %v9441_v30, %v12677_v43  ;;  %v1063_v50 = vmul.f32 %v9472_v21, %v12679_v20  ;;  %v9436_v57 = vunpack.c.l.bf16 %v9918_v27  ;;  %10621 = vmatprep.subr.bf16.mxu1 %v17405_v19  ;;  %v9925_v44 = vld [vmem:[%s16826_s7 + $0x200] sm:$0xff]  }
  0xf1   : > { %v2130_v8 = vrot.slane %v17404_v6, 4  ;;  %10669 = vmatprep.subr.bf16.mxu0 %v17406_v36  ;;  %v1064_v28 = vmul.f32 %v9473_v45, %v12677_v43  ;;  %v9437_v1 = vunpack.c.h.bf16 %v9918_v27  ;;  %v9468_v13 = vunpack.c.l.bf16 %v9926_v12  ;;  %10543 = vmatprep.mubr.bf16.mxu1 %v17407_v39  ;;  %v17408_v6 = vld [vmem:[#allocation68_spill] sm:$0xff] }
  0xf2   : > { %v9469_v7 = vunpack.c.h.bf16 %v9926_v12  ;;  %10591 = vmatprep.mubr.bf16.mxu0 %v17408_v6  ;;  %v13188_v30 = vpack.c.bf16 %v1048_v63, %v1047_v55  ;;  %v1045_v20 = vmul.f32 %v9436_v57, %v12720_v52  ;;  %v9432_v21 = vunpack.c.l.bf16 %v9917_v62 }
  0xf3   : > { %v9433_v15 = vunpack.c.h.bf16 %v9917_v62  ;;  %v13191_v43 = vpack.c.bf16 %v1064_v28, %v1063_v50  ;;  %v1046_v27 = vmul.f32 %v9437_v1, %v12718_v14  ;;  %v1061_v12 = vmul.f32 %v9468_v13, %v12720_v52  ;;  %10622 = vmatpush3.bf16.msra.mxu1 %v17405_v19  ;;  %v17410_v62 = vld [vmem:[#allocation18_spill] sm:$0xff]  ;;  %v17411_v50 = vld [vmem:[#allocation19_spill] sm:$0xff]  ;;  %v11497_v28 = vld [vmem:[%s11755_s18 + $0x30] sm:$0xf] }
  0xf4   : > { %17409 = vst [vmem:[#allocation53_spill] sm:$0xff] %v13188_v30  ;;  %v1062_v45 = vmul.f32 %v9469_v7, %v12718_v14  ;;  %10670 = vmatpush3.bf16.msra.mxu0 %v17406_v36  ;;  %v1043_v55 = vmul.f32 %v9432_v21, %v12768_v26  ;;  %v9464_v57 = vunpack.c.l.bf16 %v9925_v44  ;;  %v9465_v30 = vunpack.c.h.bf16 %v9925_v44  ;;  %10623 = vmatprep.subr.bf16.mxu1 %v17410_v62  ;;  %v11498_v52 = vld [vmem:[%s11755_s18 + $0x34] sm:$0xf]  ;;  %v17415_v44 = vld [vmem:[#allocation66_spill] sm:$0xff]  ;;  %v11499_v21 = vld [vmem:[%s11755_s18 + $0x48] sm:$0xf] }
  0xf5   : > { %v1044_v63 = vmul.f32 %v9433_v15, %v12766_v46  ;;  %10671 = vmatprep.subr.bf16.mxu0 %v17411_v50  ;;  %v13204_v1 = vcombine.low %v11497_v28, %v11498_v52  ;;  %v13206_v14 = vpack.c.bf16 %v1046_v27, %v1045_v20  ;;  %v13210_v36 = vcombine.low %v2122_v60, %v2125_v16  ;;  %v11500_v20 = vld [vmem:[%s11755_s18 + $0x50] sm:$0x1] }
  0xf6   : > { %v13208_v19 = vpack.c.bf16 %v1062_v45, %v1061_v12  ;;  %v1059_v13 = vmul.f32 %v9464_v57, %v12768_v26  ;;  %v1060_v7 = vmul.f32 %v9465_v30, %v12766_v46  ;;  %10544 = vmatmul.mubr.bf16.gmra.mxu1 %v17415_v44  ;;  %v8888_v28 = vrot.slane %v11499_v21, 9  ;;  %v11501_v12 = vld [vmem:[%s11755_s18 + $0x58] sm:$0xf] }
  0xf7   : > { %17412 = vst [vmem:[#allocation25_spill] sm:$0xff] %v13206_v14  ;;  %v13212_v15 = vpack.c.bf16 %v1044_v63, %v1043_v55  ;;  %10592 = vmatmul.mubr.bf16.gmra.mxu0 %v13116_v23  ;;  %v2137_v52 = vrot.slane %v2135_v11, 4  ;;  %v2138_v27 = vrot.slane %v11500_v20, 5  ;;  %10624 = vmatpush3.bf16.msra.mxu1 %v17410_v62  ;;  %v17416_v60 = vrot.slane %v13119_v2, 5  ;;  %v17420_v63 = vld [vmem:[#allocation37_spill] sm:$0xff]  ;;  %v17421_v57 = vld [vmem:[#allocation22_spill] sm:$0xff] }
  0xf8   : > { %17413 = vst [vmem:[#allocation27_spill] sm:$0xff] %v13208_v19  ;;  %10672 = vmatpush3.bf16.msra.mxu0 %v17411_v50  ;;  %v17417_v26 = vrot.slane %v13097_v9, 9  ;;  %v17418_v16 = vrot.slane %v13149_v31, 5  ;;  %v2142_v45 = vrot.slane %v11501_v12, 5  ;;  %v13233_v55 = vpack.c.bf16 %v1060_v7, %v1059_v13  ;;  %10625 = vmatprep.subr.bf16.mxu1 %v17420_v63  ;;  %v11502_v13 = vld [vmem:[%s11755_s18 + $0x64] sm:$0xf] }
  0xf9   : > { %17414 = vst [vmem:[#allocation73_spill] sm:$0xff] %v13212_v15  ;;  %10673 = vmatprep.subr.bf16.mxu0 %v17421_v57  ;;  %10547 = vmatprep.mubr.bf16.mxu1 %v13204_v1  ;;  %v13241_v31 = vcombine.low %v13097_v9, %v13119_v2  ;;  %v2139_v50 = vsel %vm12342_vm10, %v2137_v52, %v2138_v27  ;;  %v2149_v7 = vrot.slane %v11502_v13, 5  ;;  %v11503_v20 = vld [vmem:[%s11755_s18 + $0x54] sm:$0xf]  ;;  %v11504_v2 = vld [vmem:[%s11755_s18 + $0x5c] sm:$0x1] }
  0xfa   : > { %v2129_v46 = vsel %vm12342_vm10, %v17417_v26, %v17416_v60  ;;  %v2132_v30 = vsel %vm12342_vm10, %v2130_v8, %v17418_v16  ;;  %17419 = vst [vmem:[#allocation28_spill] sm:$0xff] %v13233_v55  ;;  %10595 = vmatprep.mubr.bf16.mxu0 %v13210_v36  ;;  %v2136_v8 = vsel %vm12342_vm10, %v8888_v28, %v2135_v11  ;;  %v8889_v60 = vrot.slane %v11503_v20, 9  ;;  %v17423_v11 = vld [vmem:[#allocation23_spill] sm:$0xff]  ;;  %v11508_v55 = vld [vmem:[%s11755_s18 + $0x7c] sm:$0xf] }
  0xfb   : > { %v13243_v62 = vcombine.low %v2129_v46, %v2132_v30  ;;  %10626 = vmatpush3.bf16.msra.mxu1 %v17420_v63  ;;  %v2144_v9 = vrot.slane %v2142_v45, 4  ;;  %v2145_v26 = vrot.slane %v11504_v2, 5  ;;  %v17422_v46 = vld [vmem:[#allocation26_spill] sm:$0xff]  ;;  %v13257_v28 = vcombine.low %v11499_v21, %v13175_v42  ;;  %v11505_v27 = vld [vmem:[%s11755_s18 + $0x60] sm:$0xf]  ;;  %v17424_v2 = vld [vmem:[#allocation29_spill] sm:$0xff] }
  0xfc   : > { %10674 = vmatpush3.bf16.msra.mxu0 %v17421_v57  ;;  %10627 = vmatprep.subr.bf16.mxu1 %v17422_v46  ;;  %v13259_v52 = vcombine.low %v2136_v8, %v2139_v50  ;;  %v8890_v16 = vrot.slane %v11505_v27, 9  ;;  %v2151_v30 = vrot.slane %v2149_v7, 4  ;;  %v11506_v63 = vld [vmem:[%s11755_s18 + $0x68] sm:$0x1]  ;;  %v2143_v42 = vsel %vm12342_vm10, %v8889_v60, %v2142_v45  ;;  %v11507_v8 = vld [vmem:[%s11755_s18 + $0x70] sm:$0xf] }
  0xfd   : > { %10675 = vmatprep.subr.bf16.mxu0 %v17423_v11  ;;  %v2152_v57 = vrot.slane %v11506_v63, 5  ;;  %v2146_v21 = vsel %vm12342_vm10, %v2144_v9, %v2145_v26  ;;  %v2156_v50 = vrot.slane %v11507_v8, 5  ;;  %v2163_v63 = vrot.slane %v11508_v55, 5  ;;  %v11509_v26 = vld [vmem:[%s11755_s18 + $0x6c] sm:$0xf] }
  0xfe   : > { %10548 = vmatmul.mubr.bf16.gmra.mxu1 %v13241_v31  ;;  %v13279_v45 = vcombine.low %v2143_v42, %v2146_v21  ;;  %v2150_v60 = vsel %vm12342_vm10, %v8890_v16, %v2149_v7  ;;  %v11510_v19 = vld [vmem:[%s11755_s18 + $0x74] sm:$0x1]  ;;  %v11512_v16 = vld [vmem:[%s11755_s18 + $0x80] sm:$0x1]  ;;  %v11513_v21 = vld [vmem:[%s11755_s18 + $0x88] sm:$0xf] }
  0xff   : > { %10596 = vmatmul.mubr.bf16.gmra.mxu0 %v13243_v62  ;;  %10628 = vmatpush3.bf16.msra.mxu1 %v17422_v46  ;;  %v13277_v46 = vcombine.low %v11503_v20, %v11501_v12  ;;  %v2153_v9 = vsel %vm12342_vm10, %v2151_v30, %v2152_v57  ;;  %v2158_v15 = vrot.slane %v2156_v50, 4  ;;  %v2159_v14 = vrot.slane %v11510_v19, 5  ;;  %v11511_v12 = vld [vmem:[%s11755_s18 + $0x78] sm:$0xf] }
 0x100   : > { %10676 = vmatpush3.bf16.msra.mxu0 %v17423_v11  ;;  %10629 = vmatprep.subr.bf16.mxu1 %v17424_v2  ;;  %v8891_v11 = vrot.slane %v11509_v26, 9  ;;  %v8892_v20 = vrot.slane %v11511_v12, 9  ;;  %v2165_v7 = vrot.slane %v2163_v63, 4  ;;  %v2166_v42 = vrot.slane %v11512_v16, 5 }
 0x101   : > { %10677 = vmatprep.subr.bf16.mxu0 %v12832_v48  ;;  %10551 = vmatprep.mubr.bf16.mxu1 %v13257_v28  ;;  %v13293_v30 = vcombine.low %v11505_v27, %v11502_v13  ;;  %v13295_v57 = vcombine.low %v2150_v60, %v2153_v9  ;;  %v2160_v19 = vsel %vm12342_vm10, %v2158_v15, %v2159_v14  ;;  %v2170_v13 = vrot.slane %v11513_v21, 5  ;;  %v11515_v9 = vld [vmem:[%s11755_s18 + $0x8c] sm:$0x1] }
 0x102   : > { %10599 = vmatprep.mubr.bf16.mxu0 %v13259_v52  ;;  %v2164_v27 = vsel %vm12342_vm10, %v8892_v20, %v2163_v63  ;;  %v13318_v15 = vcombine.low %v11511_v12, %v11508_v55  ;;  %v11516_v12 = vld [vmem:[%s11755_s18 + $0xb8] sm:$0xf] }
 0x103   : > { %10630 = vmatpush3.bf16.msra.mxu1 %v17424_v2  ;;  %v11514_v2 = vld [vmem:[%s11755_s18 + $0x84] sm:$0xf]  ;;  %v2172_v60 = vrot.slane %v2170_v13, 4  ;;  %v2198_v20 = vrot.slane %v11516_v12, 5 }
 0x104   : > { %10678 = vmatpush3.bf16.msra.mxu0 %v12832_v48  ;;  %10631 = vmatprep.subr.bf16.mxu1 %v12834_v49  ;;  %v2157_v48 = vsel %vm12342_vm10, %v8891_v11, %v2156_v50  ;;  %v8893_v63 = vrot.slane %v11514_v2, 9  ;;  %v2173_v11 = vrot.slane %v11515_v9, 5  ;;  %v13336_v55 = vcombine.low %v11514_v2, %v11513_v21  ;;  %v17428_v21 = vld [vmem:[#allocation11_spill] sm:$0xff]  ;;  %v17439_v9 = vld [vmem:[#allocation17_spill] sm:$0xff] }
 0x105   : > { %10679 = vmatprep.subr.bf16.mxu0 %v12839_v47  ;;  %v13316_v14 = vcombine.low %v2157_v48, %v2160_v19  ;;  %v11518_v48 = vld [vmem:[%s11755_s18 + $0xbc] sm:$0x1] }
 0x106   : > { %10552 = vmatmul.mubr.bf16.gmra.mxu1 %v13277_v46  ;;  %v2201_v19 = vrot.slane %v11518_v48, 5 }
 0x107   : > { %10600 = vmatmul.mubr.bf16.gmra.mxu0 %v13279_v45  ;;  %10632 = vmatpush3.bf16.msra.mxu1 %v12834_v49  ;;  %v2167_v49 = vsel %vm12342_vm10, %v2165_v7, %v2166_v42  ;;  %v11517_v7 = vld [vmem:[%s11755_s18 + $0xb4] sm:$0xf]  ;;  %v2200_v42 = vrot.slane %v2198_v20, 4 }
 0x108   : > { %10680 = vmatpush3.bf16.msra.mxu0 %v12839_v47  ;;  %10633 = vmatprep.subr.bf16.mxu1 %v12841_v4  ;;  %v13314_v47 = vcombine.low %v11509_v26, %v11507_v8  ;;  %v13322_v50 = vcombine.low %v2164_v27, %v2167_v49  ;;  %v17426_v26 = vld [vmem:[#allocation70_spill] sm:$0xff]  ;;  %v8897_v16 = vrot.slane %v11517_v7, 9  ;;  %v13355_v2 = vcombine.low %v11517_v7, %v11516_v12  ;;  %v17443_v12 = vld [vmem:[#allocation43_spill] sm:$0xff] }
 0x109   : > { %10681 = vmatprep.subr.bf16.mxu0 %v12865_v25  ;;  %10555 = vmatprep.mubr.bf16.mxu1 %v13293_v30  ;;  %v2202_v49 = vsel %vm12342_vm10, %v2200_v42, %v2201_v19  ;;  %v13415_v7 = vld [vmem:[%s11755_s18 + $0xc4] sm:$0xf]  ;;  %v17445_v42 = vld [vmem:[#allocation52_spill] sm:$0xff] }
 0x10a   : > { %10603 = vmatprep.mubr.bf16.mxu0 %v13295_v57  ;;  %v2199_v27 = vsel %vm12342_vm10, %v8897_v16, %v2198_v20  ;;  %v13412_v20 = vld [vmem:[%s11755_s18 + $0xc0] sm:$0xf]  ;;  %v17444_v16 = vld [vmem:[#allocation50_spill] sm:$0xff] }
 0x10b   : > { %10634 = vmatpush3.bf16.msra.mxu1 %v12841_v4  ;;  %v2171_v4 = vsel %vm12342_vm10, %v8893_v63, %v2170_v13  ;;  %v17427_v13 = vld [vmem:[#allocation72_spill] sm:$0xff]  ;;  %v13357_v63 = vcombine.low %v2199_v27, %v2202_v49  ;;  %v2660_v48 = vshrl.u32 %v13412_v20, 16  ;;  %v2663_v19 = vshll.u32 %v13412_v20, 16 }
 0x10c   : > { %10682 = vmatpush3.bf16.msra.mxu0 %v12865_v25  ;;  %10715 = vmatprep.subr.bf16.mxu1 %v12881_v17  ;;  %v2174_v25 = vsel %vm12342_vm10, %v2172_v60, %v2173_v11  ;;  %v17438_v60 = vld [vmem:[#allocation39_spill] sm:$0xff]  ;;  %v17440_v11 = vld [vmem:[#allocation42_spill] sm:$0xff]  ;;  %v2673_v27 = vshrl.u32 %v13415_v7, 16  ;;  %v2669_v49 = vshll.u32 %v13415_v7, 16 }
 0x10d   : > { %10763 = vmatprep.subr.bf16.mxu0 %v12884_v0  ;;  %v13338_v8 = vcombine.low %v2171_v4, %v2174_v25  ;;  %17429 = vst [vmem:[#allocation58_spill] sm:$0xff] %v13357_v63  ;;  %v17441_v4 = vld [vmem:[#allocation45_spill] sm:$0xff]  ;;  %v17442_v25 = vld [vmem:[#allocation48_spill] sm:$0xff] }
 0x10e   : > { %10556 = vmatmul.mubr.bf16.gmra.mxu1 %v13314_v47 }
 0x10f   : > { %10604 = vmatmul.mubr.bf16.gmra.mxu0 %v13316_v14  ;;  %10559 = vmatprep.mubr.bf16.mxu1 %v13318_v15  ;;  %17425 = vst [vmem:[#allocation38_spill] sm:$0xff] %v13338_v8 }
 0x110   : > { %10607 = vmatprep.mubr.bf16.mxu0 %v13322_v50 }
 0x116   : > { %10560 = vmatmul.mubr.bf16.gmra.mxu1 %v13336_v55 }
 0x117   : > { %10608 = vmatmul.mubr.bf16.gmra.mxu0 %v13338_v8  ;;  %10563 = vmatprep.mubr.bf16.mxu1 %v17426_v26 }
 0x118   : > { %10611 = vmatprep.mubr.bf16.mxu0 %v12857_v32 }
 0x11e   : > { %10564 = vmatmul.mubr.bf16.gmra.mxu1 %v17427_v13 }
 0x11f   : > { %10612 = vmatmul.mubr.bf16.gmra.mxu0 %v12886_v5  ;;  %10567 = vmatprep.mubr.bf16.mxu1 %v17428_v21 }
 0x120   : > { %10615 = vmatprep.mubr.bf16.mxu0 %v12900_v3 }
 0x126   : > { %10568 = vmatmul.mubr.bf16.gmra.mxu1 %v13355_v2 }
 0x127   : > { %10616 = vmatmul.mubr.bf16.gmra.mxu0 %v13357_v63  ;;  %10635 = vmatprep.mubr.bf16.mxu1 %v17402_v51  ;;  %v17437_v51 = vld [vmem:[#allocation35_spill] sm:$0xff] }
 0x128   : > { %10683 = vmatprep.mubr.bf16.mxu0 %v17343_v18  ;;  %v17432_v18 = vld [vmem:[#allocation55_spill] sm:$0xff] }
 0x12e   : > { %10636 = vmatmul.mubr.bf16.vlgmr.msra.gmra.mxu1 %v17407_v39 }
 0x12f   : > { %10684 = vmatmul.mubr.bf16.vlgmr.msra.gmra.mxu0 %v17346_v40  ;;  %10716 = vmatpush3.bf16.msra.mxu1 %v12881_v17  ;;  %v17430_v17 = vld [vmem:[#allocation30_spill] sm:$0xff] }
 0x130   : > { %10764 = vmatpush3.bf16.msra.mxu0 %v12884_v0  ;;  %10717 = vmatprep.subr.bf16.mxu1 %v12927_v41  ;;  %v17431_v0 = vld [vmem:[#allocation32_spill] sm:$0xff] }
 0x131   : > { %10765 = vmatprep.subr.bf16.mxu0 %v12936_v59  ;;  %10639 = vmatprep.mubr.bf16.mxu1 %v17415_v44 }
 0x132   : > { %10687 = vmatprep.mubr.bf16.mxu0 %v17351_v34 }
 0x133   : > { %10718 = vmatpush3.bf16.msra.mxu1 %v12927_v41  ;;  %v17433_v41 = vld [vmem:[#allocation33_spill] sm:$0xff] }
 0x134   : > { %10766 = vmatpush3.bf16.msra.mxu0 %v12936_v59  ;;  %10719 = vmatprep.subr.bf16.mxu1 %v12942_v53  ;;  %v17434_v59 = vld [vmem:[#allocation44_spill] sm:$0xff] }
 0x135   : > { %10767 = vmatprep.subr.bf16.mxu0 %v12948_v33 }
 0x136   : > { %10640 = vmatmul.mubr.bf16.gmra.mxu1 %v13204_v1 }
 0x137   : > { %10688 = vmatmul.mubr.bf16.gmra.mxu0 %v17358_v24  ;;  %10720 = vmatpush3.bf16.msra.mxu1 %v12942_v53  ;;  %v17435_v53 = vld [vmem:[#allocation31_spill] sm:$0xff] }
 0x138   : > { %10768 = vmatpush3.bf16.msra.mxu0 %v12948_v33  ;;  %10721 = vmatprep.subr.bf16.mxu1 %v17430_v17  ;;  %v17436_v33 = vld [vmem:[#allocation34_spill] sm:$0xff] }
 0x139   : > { %10769 = vmatprep.subr.bf16.mxu0 %v17431_v0  ;;  %10643 = vmatprep.mubr.bf16.mxu1 %v13241_v31 }
 0x13a   : > { %10691 = vmatprep.mubr.bf16.mxu0 %v17432_v18 }
 0x13b   : > { %10722 = vmatpush3.bf16.msra.mxu1 %v17430_v17  ;;  %v2662_v17 = vrot.slane %v2660_v48, 4 }
 0x13c   : > { %10770 = vmatpush3.bf16.msra.mxu0 %v17431_v0  ;;  %10723 = vmatprep.subr.bf16.mxu1 %v17433_v41  ;;  %v2665_v0 = vrot.slane %v2663_v19, 5 }
 0x13d   : > { %10771 = vmatprep.subr.bf16.mxu0 %v17434_v59 }
 0x13e   : > { %10644 = vmatmul.mubr.bf16.gmra.mxu1 %v13257_v28 }
 0x13f   : > { %10692 = vmatmul.mubr.bf16.gmra.mxu0 %v17374_v61  ;;  %10724 = vmatpush3.bf16.msra.mxu1 %v17433_v41  ;;  %v2671_v41 = vrot.slane %v2669_v49, 5 }
 0x140   : > { %10772 = vmatpush3.bf16.msra.mxu0 %v17434_v59  ;;  %10725 = vmatprep.subr.bf16.mxu1 %v17435_v53  ;;  %v2675_v59 = vrot.slane %v2673_v27, 4 }
 0x141   : > { %10773 = vmatprep.subr.bf16.mxu0 %v17436_v33  ;;  %10647 = vmatprep.mubr.bf16.mxu1 %v13277_v46 }
 0x142   : > { %10695 = vmatprep.mubr.bf16.mxu0 %v17379_v37 }
 0x143   : > { %10726 = vmatpush3.bf16.msra.mxu1 %v17435_v53  ;;  %v13426_v53 = vld [vmem:[%s11755_s18 + $0xc8] sm:$0x1] }
 0x144   : > { %10774 = vmatpush3.bf16.msra.mxu0 %v17436_v33  ;;  %10727 = vmatprep.subr.bf16.mxu1 %v17437_v51  ;;  %v17446_v33 = vld [vmem:[#allocation54_spill] sm:$0xff] }
 0x145   : > { %10775 = vmatprep.subr.bf16.mxu0 %v17438_v60 }
 0x146   : > { %10648 = vmatmul.mubr.bf16.gmra.mxu1 %v13293_v30 }
 0x147   : > { %10696 = vmatmul.mubr.bf16.gmra.mxu0 %v17439_v9  ;;  %10728 = vmatpush3.bf16.msra.mxu1 %v17437_v51  ;;  %v17447_v51 = vld [vmem:[#allocation57_spill] sm:$0xff] }
 0x148   : > { %10776 = vmatpush3.bf16.msra.mxu0 %v17438_v60  ;;  %10729 = vmatprep.subr.bf16.mxu1 %v17440_v11  ;;  %v2666_v60 = vor.u32 %v2665_v0, %v2662_v17  ;;  %v13443_v17 = vcombine.low %v13412_v20, %v13415_v7 }
 0x149   : > { %10777 = vmatprep.subr.bf16.mxu0 %v17441_v4  ;;  %10651 = vmatprep.mubr.bf16.mxu1 %v13314_v47 }
 0x14a   : > { %10699 = vmatprep.mubr.bf16.mxu0 %v17442_v25 }
 0x14b   : > { %10730 = vmatpush3.bf16.msra.mxu1 %v17440_v11  ;;  %v2676_v11 = vor.u32 %v2675_v59, %v2671_v41  ;;  %v17459_v59 = vld [vmem:[#allocation27_spill] sm:$0xff] }
 0x14c   : > { %10778 = vmatpush3.bf16.msra.mxu0 %v17441_v4  ;;  %10811 = vmatprep.subr.bf16.mxu1 %v17443_v12  ;;  %v2679_v4 = vshll.u32 %v13426_v53, 16 }
 0x14d   : > { %10859 = vmatprep.subr.bf16.mxu0 %v13058_v35 }
 0x14e   : > { %10652 = vmatmul.mubr.bf16.gmra.mxu1 %v13318_v15  ;;  %v2681_v48 = vrot.slane %v2679_v4, 5 }
 0x14f   : > { %10700 = vmatmul.mubr.bf16.gmra.mxu0 %v17444_v16  ;;  %10655 = vmatprep.mubr.bf16.mxu1 %v13336_v55  ;;  %v2677_v16 = vrot.slane %v2676_v11, 4 }
 0x150   : > { %10703 = vmatprep.mubr.bf16.mxu0 %v17445_v42  ;;  %v2667_v42 = vrot.slane %v2666_v60, 4 }
 0x151   : > { %v2682_v49 = vsel %vm11786_vm7, %v2677_v16, %v2681_v48  ;;  %v17450_v16 = vld [vmem:[#allocation49_spill] sm:$0xff]  ;;  %v17461_v48 = vld [vmem:[#allocation28_spill] sm:$0xff] }
 0x152   : > { %v2672_v27 = vsel %vm11786_vm7, %v2667_v42, %v2671_v41  ;;  %v17451_v42 = vld [vmem:[#allocation20_spill] sm:$0xff]  ;;  %v13491_v41 = vpop.permute.xlu1 %4828 }
 0x153   : > { %v13445_v0 = vcombine.low %v2672_v27, %v2682_v49  ;;  %17457 = vst [vmem:[#allocation14_spill] sm:$0xff] %v13491_v41 }
 0x155   : > { %17449 = vst [vmem:[#allocation62_spill] sm:$0xff] %v13445_v0 }
 0x156   : > { %10656 = vmatmul.mubr.bf16.gmra.mxu1 %v17426_v26 }
 0x157   : > { %10704 = vmatmul.mubr.bf16.gmra.mxu0 %v17446_v33  ;;  %10659 = vmatprep.mubr.bf16.mxu1 %v17427_v13 }
 0x158   : > { %10707 = vmatprep.mubr.bf16.mxu0 %v17447_v51 }
 0x15e   : > { %10660 = vmatmul.mubr.bf16.gmra.mxu1 %v17428_v21 }
 0x15f   : > { %10708 = vmatmul.mubr.bf16.gmra.mxu0 %v17375_v22  ;;  %10663 = vmatprep.mubr.bf16.mxu1 %v13355_v2 }
 0x160   : > { %10711 = vmatprep.mubr.bf16.mxu0 %v17380_v38 }
 0x166   : > { %10664 = vmatmul.mubr.bf16.gmra.mxu1 %v13443_v17 }
 0x167   : > { %10712 = vmatmul.mubr.bf16.gmra.mxu0 %v13445_v0  ;;  %10731 = vmatprep.mubr.bf16.mxu1 %v17403_v10  ;;  %v17452_v10 = vld [vmem:[#allocation51_spill] sm:$0xff] }
 0x168   : > { %10779 = vmatprep.mubr.bf16.mxu0 %v17407_v39  ;;  %v17453_v39 = vld [vmem:[#allocation36_spill] sm:$0xff] }
 0x16e   : > { %10732 = vmatmul.mubr.bf16.vlgmr.msra.gmra.mxu1 %v17408_v6 }
 0x16f   : > { %10780 = vmatmul.mubr.bf16.vlgmr.msra.gmra.mxu0 %v17415_v44  ;;  %10812 = vmatpush3.bf16.msra.mxu1 %v17443_v12  ;;  %v17455_v44 = vld [vmem:[#allocation53_spill] sm:$0xff] }
 0x170   : > { %10860 = vmatpush3.bf16.msra.mxu0 %v13058_v35  ;;  %10813 = vmatprep.subr.bf16.mxu1 %v17450_v16  ;;  %v17454_v35 = vld [vmem:[#allocation21_spill] sm:$0xff] }
 0x171   : > { %10861 = vmatprep.subr.bf16.mxu0 %v17451_v42  ;;  %10735 = vmatprep.mubr.bf16.mxu1 %v13116_v23 }
 0x172   : > { %10783 = vmatprep.mubr.bf16.mxu0 %v13204_v1  ;;  %v9947_v1 = vld [vmem:[%s16827_s8 + $0x78] sm:$0xff]  }
 0x173   : > { %10814 = vmatpush3.bf16.msra.mxu1 %v17450_v16 }
 0x174   : > { %10862 = vmatpush3.bf16.msra.mxu0 %v17451_v42  ;;  %10815 = vmatprep.subr.bf16.mxu1 %v17452_v10 }
 0x175   : > { %10863 = vmatprep.subr.bf16.mxu0 %v17453_v39 }
 0x176   : > { %10736 = vmatmul.mubr.bf16.gmra.mxu1 %v13210_v36 }
 0x177   : > { %10784 = vmatmul.mubr.bf16.gmra.mxu0 %v13241_v31  ;;  %10816 = vmatpush3.bf16.msra.mxu1 %v17452_v10  ;;  %v9556_v31 = vunpack.c.l.bf16 %v9947_v1 }
 0x178   : > { %10864 = vmatpush3.bf16.msra.mxu0 %v17453_v39  ;;  %10817 = vmatprep.subr.bf16.mxu1 %v17454_v35 }
 0x179   : > { %10865 = vmatprep.subr.bf16.mxu0 %v13138_v58  ;;  %10739 = vmatprep.mubr.bf16.mxu1 %v13243_v62 }
 0x17a   : > { %10787 = vmatprep.mubr.bf16.mxu0 %v13257_v28  ;;  %v13489_v28 = vpop.permute.xlu0 %4823 }
 0x17b   : > { %10818 = vmatpush3.bf16.msra.mxu1 %v17454_v35  ;;  %17456 = vst [vmem:[#allocation15_spill] sm:$0xff] %v13489_v28  ;;  %v4861_v60 = vmul.f32 %v9556_v31, %v13489_v28 }
 0x17c   : > { %10866 = vmatpush3.bf16.msra.mxu0 %v13138_v58  ;;  %10819 = vmatprep.subr.bf16.mxu1 %v13157_v56  ;;  %v9939_v58 = vld [vmem:[%s16827_s8 + $0x38] sm:$0xff]  }
 0x17d   : > { %10867 = vmatprep.subr.bf16.mxu0 %v13169_v54  ;;  %v9524_v12 = vunpack.c.l.bf16 %v9939_v58 }
 0x17e   : > { %10740 = vmatmul.mubr.bf16.gmra.mxu1 %v13259_v52 }
 0x17f   : > { %10788 = vmatmul.mubr.bf16.gmra.mxu0 %v13277_v46  ;;  %10820 = vmatpush3.bf16.msra.mxu1 %v13157_v56  ;;  %v9557_v46 = vunpack.c.h.bf16 %v9947_v1  ;;  %v9525_v56 = vunpack.c.h.bf16 %v9939_v58  ;;  %v4845_v11 = vmul.f32 %v9524_v12, %v13489_v28  ;;  %v13552_v12 = vpop.permute.xlu0 %4813 }
 0x180   : > { %10868 = vmatpush3.bf16.msra.mxu0 %v13169_v54  ;;  %10821 = vmatprep.subr.bf16.mxu1 %v17455_v44  ;;  %v17458_v54 = vld [vmem:[#allocation25_spill] sm:$0xff]  ;;  %17469 = vst [vmem:[#allocation16_spill] sm:$0xff] %v13552_v12 }
 0x181   : > { %10869 = vmatprep.subr.bf16.mxu0 %v13191_v43  ;;  %10743 = vmatprep.mubr.bf16.mxu1 %v13279_v45  ;;  %v4846_v4 = vmul.f32 %v9525_v56, %v13491_v41 }
 0x182   : > { %10791 = vmatprep.mubr.bf16.mxu0 %v13293_v30  ;;  %v4862_v30 = vmul.f32 %v9557_v46, %v13491_v41  ;;  %v13550_v46 = vpop.permute.xlu1 %4818 }
 0x183   : > { %10822 = vmatpush3.bf16.msra.mxu1 %v17455_v44  ;;  %17468 = vst [vmem:[#allocation47_spill] sm:$0xff] %v13550_v46 }
 0x184   : > { %10870 = vmatpush3.bf16.msra.mxu0 %v13191_v43  ;;  %10823 = vmatprep.subr.bf16.mxu1 %v17458_v54  ;;  %v17460_v43 = vld [vmem:[#allocation73_spill] sm:$0xff]  ;;  %v13509_v27 = vpack.c.bf16 %v4862_v30, %v4861_v60 }
 0x185   : > { %10871 = vmatprep.subr.bf16.mxu0 %v17459_v59 }
 0x186   : > { %10744 = vmatmul.mubr.bf16.gmra.mxu1 %v13295_v57  ;;  %v13519_v16 = vpop.f32.mrf.mxu1 }
 0x187   : > { %10792 = vmatmul.mubr.bf16.gmra.mxu0 %v13314_v47  ;;  %10824 = vmatpush3.bf16.msra.mxu1 %v17458_v54  ;;  %v13511_v47 = vpack.c.bf16 %v4846_v4, %v4845_v11  ;;  %17462 = vst [vmem:[#allocation71_spill] sm:$0xff] %v13519_v16  ;;  %v13570_v4 = vpop.permute.xlu1 %4808 }
 0x188   : > { %10872 = vmatpush3.bf16.msra.mxu0 %v17459_v59  ;;  %10825 = vmatprep.subr.bf16.mxu1 %v17460_v43  ;;  %v13517_v49 = vpop.f32.mrf.mxu0  ;;  %v13527_v42 = vpop.f32.mrf.mxu1  ;;  %17473 = vst [vmem:[#allocation12_spill] sm:$0xff] %v13570_v4 }
 0x189   : > { %10873 = vmatprep.subr.bf16.mxu0 %v17461_v48  ;;  %10747 = vmatprep.mubr.bf16.mxu1 %v13316_v14  ;;  %17463 = vst [vmem:[#allocation69_spill] sm:$0xff] %v13527_v42 }
 0x18a   : > { %10795 = vmatprep.mubr.bf16.mxu0 %v13318_v15  ;;  %v13525_v15 = vpop.f32.mrf.mxu0  ;;  %v13531_v39 = vpop.f32.mrf.mxu1 }
 0x18b   : > { %10826 = vmatpush3.bf16.msra.mxu1 %v17460_v43  ;;  %17464 = vst [vmem:[#allocation8_spill] sm:$0xff] %v13531_v39  ;;  %v13572_v43 = vpop.permute.xlu0 %4803 }
 0x18c   : > { %10874 = vmatpush3.bf16.msra.mxu0 %v17461_v48  ;;  %10907 = vmatprep.subr.bf16.mxu1 %v13509_v27  ;;  %v13529_v10 = vpop.f32.mrf.mxu0  ;;  %v13535_v1 = vpop.f32.mrf.mxu1  ;;  %17474 = vst [vmem:[#allocation13_spill] sm:$0xff] %v13572_v43  ;;  %v13581_v48 = vld [vmem:[%s11755_s18 + $0xcc] sm:$0xf] }
 0x18d   : > { %10955 = vmatprep.subr.bf16.mxu0 %v13511_v47  ;;  %17465 = vst [vmem:[#allocation9_spill] sm:$0xff] %v13535_v1 }
 0x18e   : > { %10748 = vmatmul.mubr.bf16.gmra.mxu1 %v13322_v50  ;;  %v13533_v35 = vpop.f32.mrf.mxu0 }
 0x18f   : > { %10796 = vmatmul.mubr.bf16.gmra.mxu0 %v13336_v55  ;;  %10751 = vmatprep.mubr.bf16.mxu1 %v13338_v8  ;;  %v2883_v55 = vrot.slane %v13415_v7, 5 }
 0x190   : > { %10799 = vmatprep.mubr.bf16.mxu0 %v17426_v26 }
 0x191   : > { %v2885_v59 = vrot.slane %v2883_v55, 4 }
 0x194   : > { %v13537_v58 = vpop.f32.mrf.mxu0  ;;  %v13539_v44 = vpop.f32.mrf.mxu1 }
 0x195   : > { %17466 = vst [vmem:[#allocation60_spill] sm:$0xff] %v13539_v44 }
 0x196   : > { %10752 = vmatmul.mubr.bf16.gmra.mxu1 %v12857_v32  ;;  %v13546_v26 = vpop.f32.mrf.mxu0  ;;  %v13548_v31 = vpop.f32.mrf.mxu1 }
 0x197   : > { %10800 = vmatmul.mubr.bf16.gmra.mxu0 %v17427_v13  ;;  %10755 = vmatprep.mubr.bf16.mxu1 %v12886_v5  ;;  %17467 = vst [vmem:[#allocation61_spill] sm:$0xff] %v13548_v31  ;;  %v8916_v13 = vrot.slane %v13412_v20, 9  ;;  %v9945_v31 = vld [vmem:[%s16827_s8 + $0x68] sm:$0xff]  }
 0x198   : > { %10803 = vmatprep.mubr.bf16.mxu0 %v17428_v21  ;;  %v13554_v56 = vpop.f32.mrf.mxu0  ;;  %v13556_v54 = vpop.f32.mrf.mxu1  ;;  %v2886_v21 = vrot.slane %v13426_v53, 5 }
 0x199   : > { %17470 = vst [vmem:[#allocation46_spill] sm:$0xff] %v13556_v54  ;;  %v2884_v20 = vsel %vm12342_vm10, %v8916_v13, %v2883_v55  ;;  %v9946_v55 = vld [vmem:[%s16827_s8 + $0x70] sm:$0xff]  }
 0x19a   : > { %v13560_v7 = vpop.f32.mrf.mxu0  ;;  %v13562_v60 = vpop.f32.mrf.mxu1  ;;  %v2887_v53 = vsel %vm12342_vm10, %v2885_v59, %v2886_v21  ;;  %v9938_v13 = vld [vmem:[%s16827_s8 + $0x30] sm:$0xff]  }
 0x19b   : > { %17471 = vst [vmem:[#allocation63_spill] sm:$0xff] %v13562_v60  ;;  %v13584_v60 = vld [vmem:[%s11755_s18 + $0xd0] sm:$0xf]  ;;  %v9520_v38 = vunpack.c.l.bf16 %v9938_v13  ;;  %v9521_v54 = vunpack.c.h.bf16 %v9938_v13 }
 0x19c   : > { %v13564_v30 = vpop.f32.mrf.mxu0  ;;  %17475 = vst [vmem:[#allocation65_spill] sm:$0xff] %v13584_v60 }
 0x19d   : > { %v4844_v5 = vmul.f32 %v9521_v54, %v13550_v46  ;;  %v9943_v54 = vld [vmem:[%s16827_s8 + $0x58] sm:$0xff]  }
 0x19e   : > { %v13566_v11 = vpop.f32.mrf.mxu1  ;;  %10756 = vmatmul.mubr.bf16.gmra.mxu1 %v12900_v3  ;;  %v13586_v1 = vpop.f32.mrf.mxu0  ;;  %v9548_v3 = vunpack.c.l.bf16 %v9945_v31 }
 0x19f   : > { %17472 = vst [vmem:[#allocation67_spill] sm:$0xff] %v13566_v11  ;;  %10804 = vmatmul.mubr.bf16.gmra.mxu0 %v13355_v2  ;;  %10759 = vmatprep.mubr.bf16.mxu1 %v13357_v63  ;;  %v13594_v11 = vcombine.low %v2884_v20, %v2887_v53  ;;  %v9552_v20 = vunpack.c.l.bf16 %v9946_v55  ;;  %v9553_v53 = vunpack.c.h.bf16 %v9946_v55  ;;  %v9937_v55 = vld [vmem:[%s16827_s8 + $0x28] sm:$0xff]  }
 0x1a0   : > { %10807 = vmatprep.mubr.bf16.mxu0 %v13443_v17  ;;  %v13588_v2 = vpop.f32.mrf.mxu1  ;;  %v13590_v19 = vpop.f32.mrf.mxu0  ;;  %v8918_v17 = vcombine.low %v13581_v48, %v13584_v60  ;;  %v9516_v51 = vunpack.c.l.bf16 %v9937_v55  ;;  %v9517_v39 = vunpack.c.h.bf16 %v9937_v55 }
 0x1a1   : > { %17476 = vst [vmem:[#allocation68_spill] sm:$0xff] %v13588_v2  ;;  %17478 = vst [vmem:[#allocation19_spill] sm:$0xff] %v13594_v11  ;;  %v13608_v2 = vpop.permute.xlu1 %4798  ;;  %v4859_v13 = vmul.f32 %v9552_v20, %v13552_v12 }
 0x1a2   : > { %v13592_v0 = vpop.f32.mrf.mxu1  ;;  %v13604_v59 = vpop.f32.mrf.mxu0  ;;  %17480 = vst [vmem:[#allocation37_spill] sm:$0xff] %v13608_v2 }
 0x1a3   : > { %17477 = vst [vmem:[#allocation18_spill] sm:$0xff] %v13592_v0  ;;  %v13610_v0 = vpop.permute.xlu0 %4793 }
 0x1a4   : > { %v13606_v21 = vpop.f32.mrf.mxu1  ;;  %17481 = vst [vmem:[#allocation22_spill] sm:$0xff] %v13610_v0  ;;  %v13612_v29 = vpop.f32.mrf.mxu0 }
 0x1a5   : > { %17479 = vst [vmem:[#allocation66_spill] sm:$0xff] %v13606_v21  ;;  %v13643_v42 = vpop.permute.xlu1 %4788 }
 0x1a6   : > { %v13614_v63 = vpop.f32.mrf.mxu1  ;;  %10760 = vmatmul.mubr.bf16.gmra.mxu1 %v13594_v11  ;;  %v13625_v21 = vpop.f32.mrf.mxu0  ;;  %v4860_v11 = vmul.f32 %v9553_v53, %v13550_v46  ;;  %17485 = vst [vmem:[#allocation70_spill] sm:$0xff] %v13643_v42 }
 0x1a7   : > { %17482 = vst [vmem:[#allocation26_spill] sm:$0xff] %v13614_v63  ;;  %10808 = vmatmul.mubr.bf16.gmra.mxu0 %v8918_v17  ;;  %10827 = vmatprep.mubr.bf16.mxu1 %v17346_v40  ;;  %v9944_v17 = vld [vmem:[%s16827_s8 + $0x60] sm:$0xff]   ;;  %v9549_v40 = vunpack.c.h.bf16 %v9945_v31  ;;  %v13645_v20 = vpop.permute.xlu0 %4783 }
 0x1a8   : > { %10875 = vmatprep.mubr.bf16.mxu0 %v17408_v6  ;;  %v13627_v63 = vpop.f32.mrf.mxu1  ;;  %v9936_v6 = vld [vmem:[%s16827_s8 + $0x20] sm:$0xff]   ;;  %v13637_v22 = vpop.f32.mrf.mxu0  ;;  %17486 = vst [vmem:[#allocation72_spill] sm:$0xff] %v13645_v20  ;;  %v9544_v53 = vunpack.c.l.bf16 %v9944_v17  ;;  %v9545_v31 = vunpack.c.h.bf16 %v9944_v17  ;;  %v4989_v8 = vpack.c.bf16 %v4860_v11, %v4859_v13 }
 0x1a9   : > { %17483 = vst [vmem:[#allocation23_spill] sm:$0xff] %v13627_v63  ;;  %v4843_v63 = vmul.f32 %v9520_v38, %v13552_v12  ;;  %v9512_v16 = vunpack.c.l.bf16 %v9936_v6  ;;  %v9513_v60 = vunpack.c.h.bf16 %v9936_v6  ;;  %v4858_v38 = vmul.f32 %v9549_v40, %v13570_v4 }
 0x1aa   : > { %v13639_v44 = vpop.f32.mrf.mxu1  ;;  %v13647_v32 = vpop.f32.mrf.mxu0  ;;  %v4842_v6 = vmul.f32 %v9517_v39, %v13570_v4  ;;  %v4855_v13 = vmul.f32 %v9544_v53, %v13610_v0  ;;  %v9540_v39 = vunpack.c.l.bf16 %v9943_v54  ;;  %v9541_v40 = vunpack.c.h.bf16 %v9943_v54 }
 0x1ab   : > { %17484 = vst [vmem:[#allocation29_spill] sm:$0xff] %v13639_v44  ;;  %v4857_v44 = vmul.f32 %v9548_v3, %v13572_v43  ;;  %v4981_v17 = vpack.c.bf16 %v4844_v5, %v4843_v63  ;;  %v9935_v3 = vld [vmem:[%s16827_s8 + $0x18] sm:$0xff]   ;;  %v4839_v63 = vmul.f32 %v9512_v16, %v13610_v0  ;;  %v13670_v4 = vpop.permute.xlu1 %4778  ;;  %v9942_v16 = vld [vmem:[%s16827_s8 + $0x50] sm:$0xff]  }
 0x1ac   : > { %v13649_v33 = vpop.f32.mrf.mxu1  ;;  %17488 = vst [vmem:[#allocation30_spill] sm:$0xff] %v13670_v4  ;;  %v9508_v53 = vunpack.c.l.bf16 %v9935_v3 }
 0x1ad   : > { %17487 = vst [vmem:[#allocation11_spill] sm:$0xff] %v13649_v33  ;;  %v4841_v33 = vmul.f32 %v9516_v51, %v13572_v43  ;;  %v4840_v51 = vmul.f32 %v9513_v60, %v13608_v2 }
 0x1ae   : > { %v10541_v55 = vpop.f32.mrf.mxu1  ;;  %10828 = vmatmul.mubr.bf16.vlgmr.msra.gmra.mxu1 %v17351_v34  ;;  %v4856_v34 = vmul.f32 %v9545_v31, %v13608_v2  ;;  %v9509_v31 = vunpack.c.h.bf16 %v9935_v3 }
 0x1af   : > { %v10589_v46 = vpop.f32.mrf.mxu0  ;;  %10876 = vmatmul.mubr.bf16.vlgmr.msra.gmra.mxu0 %v13116_v23  ;;  %v1954_v11 = vadd.f32 %v10541_v55, %v13517_v49  ;;  %10908 = vmatpush3.bf16.msra.mxu1 %v13509_v27  ;;  %v13672_v49 = vpop.permute.xlu0 %4773  ;;  %v4988_v55 = vpack.c.bf16 %v4858_v38, %v4857_v44  ;;  %v4980_v2 = vpack.c.bf16 %v4842_v6, %v4841_v33 }
 0x1b0   : > { %10956 = vmatpush3.bf16.msra.mxu0 %v13511_v47  ;;  %10909 = vmatprep.subr.bf16.mxu1 %v4989_v8  ;;  %v1945_v5 = vpop.f32.mrf.mxu1  ;;  %17489 = vst [vmem:[#allocation32_spill] sm:$0xff] %v13672_v49  ;;  %v4979_v33 = vpack.c.bf16 %v4840_v51, %v4839_v63  ;;  %v4853_v38 = vmul.f32 %v9540_v39, %v13645_v20  ;;  %v9537_v63 = vunpack.c.h.bf16 %v9942_v16 }
 0x1b1   : > { %10957 = vmatprep.subr.bf16.mxu0 %v4981_v17  ;;  %v2301_v23 = vpop.f32.mrf.mxu0  ;;  %v13674_v27 = vadd.f32 %v10589_v46, %v1954_v11  ;;  %v1946_v47 = vadd.f32 %v1945_v5, %v13525_v15  ;;  %10831 = vmatprep.mubr.bf16.mxu1 %v17358_v24  ;;  %v4987_v15 = vpack.c.bf16 %v4856_v34, %v4855_v13  ;;  %v9934_v24 = vld [vmem:[%s16827_s8 + $0x10] sm:$0xff]   ;;  %v9933_v34 = vld [vmem:[%s16827_s8 + $0x8] sm:$0xff]  }
 0x1b2   : > { %10879 = vmatprep.mubr.bf16.mxu0 %v13210_v36  ;;  %v10542_v60 = vpop.f32.mrf.mxu1  ;;  %v9941_v36 = vld [vmem:[%s16827_s8 + $0x48] sm:$0xff]   ;;  %v4837_v11 = vmul.f32 %v9508_v53, %v13645_v20  ;;  %v4838_v13 = vmul.f32 %v9509_v31, %v13643_v42  ;;  %v9504_v51 = vunpack.c.l.bf16 %v9934_v24  ;;  %v9505_v39 = vunpack.c.h.bf16 %v9934_v24 }
 0x1b3   : > { %v10590_v54 = vpop.f32.mrf.mxu0  ;;  %v13682_v0 = vadd.f32 %v2301_v23, %v1946_v47  ;;  %v1957_v46 = vadd.f32 %v10542_v60, %v13529_v10  ;;  %10910 = vmatpush3.bf16.msra.mxu1 %v4989_v8  ;;  %v4854_v10 = vmul.f32 %v9541_v40, %v13643_v42  ;;  %v9536_v8 = vunpack.c.l.bf16 %v9942_v16  ;;  %v13703_v47 = vpop.permute.xlu1 %4768 }
 0x1b4   : > { %10958 = vmatpush3.bf16.msra.mxu0 %v4981_v17  ;;  %10911 = vmatprep.subr.bf16.mxu1 %v4988_v55  ;;  %v1948_v3 = vpop.f32.mrf.mxu1  ;;  %v9532_v40 = vunpack.c.l.bf16 %v9941_v36  ;;  %17490 = vst [vmem:[#allocation55_spill] sm:$0xff] %v13703_v47  ;;  %v9533_v60 = vunpack.c.h.bf16 %v9941_v36  ;;  %v9501_v24 = vunpack.c.h.bf16 %v9933_v34  ;;  %v4852_v36 = vmul.f32 %v9537_v63, %v13670_v4 }
 0x1b5   : > { %10959 = vmatprep.subr.bf16.mxu0 %v4980_v2  ;;  %v2304_v44 = vpop.f32.mrf.mxu0  ;;  %v13693_v17 = vadd.f32 %v10590_v54, %v1957_v46  ;;  %v1949_v6 = vadd.f32 %v1948_v3, %v13533_v35  ;;  %v13705_v35 = vpop.permute.xlu0 %4763  ;;  %v4851_v16 = vmul.f32 %v9536_v8, %v13672_v49  ;;  %v9500_v46 = vunpack.c.l.bf16 %v9933_v34 }
 0x1b6   : > { %v10545_v5 = vpop.f32.mrf.mxu1  ;;  %10832 = vmatmul.mubr.bf16.gmra.mxu1 %v17432_v18  ;;  %17491 = vst [vmem:[#allocation33_spill] sm:$0xff] %v13705_v35  ;;  %v4849_v8 = vmul.f32 %v9532_v40, %v13705_v35 }
 0x1b7   : > { %v10593_v23 = vpop.f32.mrf.mxu0  ;;  %10880 = vmatmul.mubr.bf16.gmra.mxu0 %v13243_v62  ;;  %v13707_v53 = vadd.f32 %v2304_v44, %v1949_v6  ;;  %v1970_v31 = vadd.f32 %v10545_v5, %v13537_v58  ;;  %10912 = vmatpush3.bf16.msra.mxu1 %v4988_v55  ;;  %v4986_v62 = vpack.c.bf16 %v4854_v10, %v4853_v38  ;;  %v9940_v58 = vld [vmem:[%s16827_s8 + $0x40] sm:$0xff]   ;;  %v13732_v63 = vpop.permute.xlu1 %4758 }
 0x1b8   : > { %10960 = vmatpush3.bf16.msra.mxu0 %v4980_v2  ;;  %10913 = vmatprep.subr.bf16.mxu1 %v4987_v15  ;;  %v1961_v18 = vpop.f32.mrf.mxu1  ;;  %v4978_v44 = vpack.c.bf16 %v4838_v13, %v4837_v11  ;;  %v4835_v38 = vmul.f32 %v9504_v51, %v13672_v49  ;;  %v4836_v10 = vmul.f32 %v9505_v39, %v13670_v4  ;;  %v9495_v6 = vld [vmem:[%s16827_s8] sm:$0xff]  }
 0x1b9   : > { %17492 = vst [vmem:[#allocation44_spill] sm:$0xff] %v13707_v53  ;;  %10961 = vmatprep.subr.bf16.mxu0 %v4979_v33  ;;  %v2317_v54 = vpop.f32.mrf.mxu0  ;;  %v13711_v3 = vadd.f32 %v10593_v23, %v1970_v31  ;;  %v1962_v42 = vadd.f32 %v1961_v18, %v13546_v26  ;;  %10835 = vmatprep.mubr.bf16.mxu1 %v17374_v61  ;;  %v9529_v23 = vunpack.c.h.bf16 %v9940_v58  ;;  %17493 = vst [vmem:[#allocation31_spill] sm:$0xff] %v13732_v63 }
 0x1ba   : > { %10883 = vmatprep.mubr.bf16.mxu0 %v13259_v52  ;;  %v10546_v2 = vpop.f32.mrf.mxu1  ;;  %v4850_v52 = vmul.f32 %v9533_v60, %v13703_v47  ;;  %v4833_v34 = vmul.f32 %v9500_v46, %v13705_v35  ;;  %v4834_v5 = vmul.f32 %v9501_v24, %v13703_v47  ;;  %v4985_v40 = vpack.c.bf16 %v4852_v36, %v4851_v16 }
 0x1bb   : > { %v10594_v55 = vpop.f32.mrf.mxu0  ;;  %v13723_v26 = vadd.f32 %v2317_v54, %v1962_v42  ;;  %v1973_v61 = vadd.f32 %v10546_v2, %v13554_v56  ;;  %10914 = vmatpush3.bf16.msra.mxu1 %v4987_v15  ;;  %v9528_v42 = vunpack.c.l.bf16 %v9940_v58  ;;  %v13734_v56 = vpop.permute.xlu0 %4753  ;;  %v4977_v31 = vpack.c.bf16 %v4836_v10, %v4835_v38  ;;  %v9955_v54 = vld [vmem:[%s16827_s8 + $0xb8] sm:$0xff]  }
 0x1bc   : > { %10962 = vmatpush3.bf16.msra.mxu0 %v4979_v33  ;;  %10915 = vmatprep.subr.bf16.mxu1 %v4986_v62  ;;  %v1964_v11 = vpop.f32.mrf.mxu1  ;;  %17494 = vst [vmem:[#allocation34_spill] sm:$0xff] %v13734_v56  ;;  %v9496_v60 = vunpack.c.l.bf16 %v9495_v6  ;;  %v9497_v18 = vunpack.c.h.bf16 %v9495_v6  ;;  %v4976_v58 = vpack.c.bf16 %v4834_v5, %v4833_v34 }
 0x1bd   : > { %10963 = vmatprep.subr.bf16.mxu0 %v4978_v44  ;;  %v2320_v13 = vpop.f32.mrf.mxu0  ;;  %v13736_v15 = vadd.f32 %v10594_v55, %v1973_v61  ;;  %v1965_v33 = vadd.f32 %v1964_v11, %v13560_v7  ;;  %v4984_v7 = vpack.c.bf16 %v4850_v52, %v4849_v8  ;;  %v4847_v2 = vmul.f32 %v9528_v42, %v13734_v56 }
 0x1be   : > { %v10549_v51 = vpop.f32.mrf.mxu1  ;;  %10836 = vmatmul.mubr.bf16.gmra.mxu1 %v17379_v37  ;;  %v9963_v37 = vld [vmem:[%s16827_s8 + $0xf8] sm:$0xff]   ;;  %v4848_v55 = vmul.f32 %v9529_v23, %v13732_v63  ;;  %v4831_v8 = vmul.f32 %v9496_v60, %v13734_v56  ;;  %v4832_v61 = vmul.f32 %v9497_v18, %v13732_v63 }
 0x1bf   : > { %v10597_v39 = vpop.f32.mrf.mxu0  ;;  %10884 = vmatmul.mubr.bf16.gmra.mxu0 %v13279_v45  ;;  %v13744_v46 = vadd.f32 %v2320_v13, %v1965_v33  ;;  %v1986_v24 = vadd.f32 %v10549_v51, %v13564_v30  ;;  %10916 = vmatpush3.bf16.msra.mxu1 %v4986_v62  ;;  %v9588_v62 = vunpack.c.l.bf16 %v9955_v54  ;;  %v9620_v52 = vunpack.c.l.bf16 %v9963_v37 }
 0x1c0   : > { %10964 = vmatpush3.bf16.msra.mxu0 %v4978_v44  ;;  %10917 = vmatprep.subr.bf16.mxu1 %v4985_v40  ;;  %v1977_v45 = vpop.f32.mrf.mxu1  ;;  %v9589_v44 = vunpack.c.h.bf16 %v9955_v54  ;;  %v9621_v6 = vunpack.c.h.bf16 %v9963_v37 }
 0x1c1   : > { %17495 = vst [vmem:[#allocation35_spill] sm:$0xff] %v13744_v46  ;;  %10965 = vmatprep.subr.bf16.mxu0 %v4977_v31  ;;  %v2333_v16 = vpop.f32.mrf.mxu0  ;;  %v13752_v36 = vadd.f32 %v10597_v39, %v1986_v24  ;;  %v1978_v30 = vadd.f32 %v1977_v45, %v13586_v1  ;;  %10839 = vmatprep.mubr.bf16.mxu1 %v17439_v9 }
 0x1c2   : > { %10887 = vmatprep.mubr.bf16.mxu0 %v13295_v57  ;;  %v10550_v38 = vpop.f32.mrf.mxu1  ;;  %v4983_v1 = vpack.c.bf16 %v4848_v55, %v4847_v2  ;;  %v4877_v42 = vmul.f32 %v9588_v62, %v13489_v28  ;;  %v4878_v23 = vmul.f32 %v9589_v44, %v13491_v41  ;;  %v4893_v39 = vmul.f32 %v9620_v52, %v13489_v28 }
 0x1c3   : > { %v10598_v10 = vpop.f32.mrf.mxu0  ;;  %v13759_v11 = vadd.f32 %v2333_v16, %v1978_v30  ;;  %v1989_v13 = vadd.f32 %v10550_v38, %v13590_v19  ;;  %10918 = vmatpush3.bf16.msra.mxu1 %v4985_v40  ;;  %v4975_v19 = vpack.c.bf16 %v4832_v61, %v4831_v8  ;;  %v4894_v40 = vmul.f32 %v9621_v6, %v13491_v41  ;;  %v17500_v38 = vld [vmem:[#allocation52_spill] sm:$0xff]  ;;  %v17504_v6 = vld [vmem:[#allocation71_spill] sm:$0xff] }
 0x1c4   : > { %10966 = vmatpush3.bf16.msra.mxu0 %v4977_v31  ;;  %10919 = vmatprep.subr.bf16.mxu1 %v4984_v7  ;;  %v1980_v9 = vpop.f32.mrf.mxu1  ;;  %v13779_v45 = vpack.c.bf16 %v4878_v23, %v4877_v42  ;;  %v3285_v55 = vshrl.u32 %v13581_v48, 16  ;;  %v3288_v30 = vshll.u32 %v13581_v48, 16  ;;  %v17507_v42 = vld [vmem:[#allocation69_spill] sm:$0xff] }
 0x1c5   : > { %10967 = vmatprep.subr.bf16.mxu0 %v4976_v58  ;;  %v2336_v57 = vpop.f32.mrf.mxu0  ;;  %v13762_v34 = vadd.f32 %v10598_v10, %v1989_v13  ;;  %v1981_v5 = vadd.f32 %v1980_v9, %v13604_v59  ;;  %v13781_v16 = vpack.c.bf16 %v4894_v40, %v4893_v39  ;;  %v17502_v10 = vld [vmem:[#allocation65_spill] sm:$0xff]  ;;  %v17505_v9 = vld [vmem:[#allocation54_spill] sm:$0xff] }
 0x1c6   : > { %v10553_v33 = vpop.f32.mrf.mxu1  ;;  %10840 = vmatmul.mubr.bf16.gmra.mxu1 %v17442_v25  ;;  %17498 = vst [vmem:[#allocation17_spill] sm:$0xff] %v13779_v45  ;;  %v3294_v8 = vshll.u32 %v17502_v10, 16  ;;  %v3298_v61 = vshrl.u32 %v17502_v10, 16 }
 0x1c7   : > { %v10601_v51 = vpop.f32.mrf.mxu0  ;;  %10888 = vmatmul.mubr.bf16.gmra.mxu0 %v13316_v14  ;;  %v13771_v31 = vadd.f32 %v2336_v57, %v1981_v5  ;;  %v2002_v60 = vadd.f32 %v10553_v33, %v13612_v29  ;;  %10920 = vmatpush3.bf16.msra.mxu1 %v4984_v7  ;;  %v17497_v14 = vld [vmem:[#allocation50_spill] sm:$0xff]  ;;  %17499 = vst [vmem:[#allocation42_spill] sm:$0xff] %v13781_v16  ;;  %v3287_v33 = vrot.slane %v3285_v55, 4  ;;  %v17511_v55 = vld [vmem:[#allocation57_spill] sm:$0xff] }
 0x1c8   : > { %10968 = vmatpush3.bf16.msra.mxu0 %v4976_v58  ;;  %10921 = vmatprep.subr.bf16.mxu1 %v4983_v1  ;;  %v1993_v59 = vpop.f32.mrf.mxu1  ;;  %v3296_v40 = vrot.slane %v3294_v8, 5  ;;  %v17515_v8 = vld [vmem:[#allocation24_spill] sm:$0xff] }
 0x1c9   : > { %17496 = vst [vmem:[#allocation39_spill] sm:$0xff] %v13771_v31  ;;  %10969 = vmatprep.subr.bf16.mxu0 %v4975_v19  ;;  %v2349_v18 = vpop.f32.mrf.mxu0  ;;  %v13774_v54 = vadd.f32 %v10601_v51, %v2002_v60  ;;  %v1994_v25 = vadd.f32 %v1993_v59, %v13625_v21  ;;  %10843 = vmatprep.mubr.bf16.mxu1 %v17497_v14  ;;  %v3290_v51 = vrot.slane %v3288_v30, 5  ;;  %v3300_v60 = vrot.slane %v3298_v61, 4  ;;  %v17512_v30 = vld [vmem:[#allocation41_spill] sm:$0xff] }
 0x1ca   : > { %10891 = vmatprep.mubr.bf16.mxu0 %v13322_v50  ;;  %v10554_v24 = vpop.f32.mrf.mxu1 }
 0x1cb   : > { %v10602_v37 = vpop.f32.mrf.mxu0  ;;  %v13783_v29 = vadd.f32 %v2349_v18, %v1994_v25  ;;  %v2005_v7 = vadd.f32 %v10554_v24, %v13637_v22  ;;  %10922 = vmatpush3.bf16.msra.mxu1 %v4983_v1  ;;  %v17501_v22 = vld [vmem:[#allocation38_spill] sm:$0xff]  ;;  %v17508_v18 = vld [vmem:[#allocation8_spill] sm:$0xff]  ;;  %v3301_v61 = vor.u32 %v3300_v60, %v3296_v40 }
 0x1cc   : > { %10970 = vmatpush3.bf16.msra.mxu0 %v4975_v19  ;;  %11003 = vmatprep.subr.bf16.mxu1 %v13779_v45  ;;  %v1996_v21 = vpop.f32.mrf.mxu1 }
 0x1cd   : > { %11051 = vmatprep.subr.bf16.mxu0 %v13781_v16  ;;  %v2352_v58 = vpop.f32.mrf.mxu0  ;;  %v13788_v2 = vadd.f32 %v10602_v37, %v2005_v7  ;;  %v1997_v50 = vadd.f32 %v1996_v21, %v13647_v32  ;;  %v17506_v32 = vld [vmem:[#allocation40_spill] sm:$0xff]  ;;  %v1202_v37 = vld [vmem:[%s11755_s18 + $0xd4] sm:$0x1]  ;;  %v3508_v21 = vrot.slane %v17502_v10, 5 }
 0x1ce   : > { %v10557_v62 = vpop.f32.mrf.mxu1  ;;  %10844 = vmatmul.mubr.bf16.gmra.mxu1 %v17500_v38  ;;  %v17516_v10 = vld [vmem:[#allocation61_spill] sm:$0xff] }
 0x1cf   : > { %v10605_v44 = vpop.f32.mrf.mxu0  ;;  %10892 = vmatmul.mubr.bf16.gmra.mxu0 %v17501_v22  ;;  %v13797_v52 = vadd.f32 %v2352_v58, %v1997_v50  ;;  %v2018_v13 = vadd.f32 %v10557_v62, %v17504_v6  ;;  %10847 = vmatprep.mubr.bf16.mxu1 %v17505_v9  ;;  %v3291_v62 = vor.u32 %v3290_v51, %v3287_v33  ;;  %v17514_v22 = vld [vmem:[#allocation59_spill] sm:$0xff]  ;;  %v3304_v6 = vshll.u32 %v1202_v37, 16 }
 0x1d0   : > { %10895 = vmatprep.mubr.bf16.mxu0 %v17506_v32  ;;  %v2009_v57 = vpop.f32.mrf.mxu1  ;;  %v3510_v33 = vrot.slane %v3508_v21, 4  ;;  %v3511_v51 = vrot.slane %v1202_v37, 5 }
 0x1d1   : > { %17503 = vst [vmem:[#allocation45_spill] sm:$0xff] %v13797_v52  ;;  %v2365_v1 = vpop.f32.mrf.mxu0  ;;  %v13802_v5 = vadd.f32 %v10605_v44, %v2018_v13  ;;  %v2010_v23 = vadd.f32 %v2009_v57, %v17507_v42  ;;  %v17513_v44 = vld [vmem:[#allocation60_spill] sm:$0xff]  ;;  %v3306_v60 = vrot.slane %v3304_v6, 5 }
 0x1d2   : > { %v10558_v19 = vpop.f32.mrf.mxu1 }
 0x1d3   : > { %v10606_v39 = vpop.f32.mrf.mxu0  ;;  %v13805_v59 = vadd.f32 %v2365_v1, %v2010_v23  ;;  %v2021_v25 = vadd.f32 %v10558_v19, %v17508_v18  ;;  %v8920_v1 = vrot.slane %v13581_v48, 9  ;;  %v3292_v19 = vrot.slane %v3291_v62, 4  ;;  %v17517_v18 = vld [vmem:[#allocation46_spill] sm:$0xff]  ;;  %v17520_v48 = vld [vmem:[#allocation64_spill] sm:$0xff] }
 0x1d4   : > { %v13808_v14 = vpop.f32.mrf.mxu1 }
 0x1d5   : > { %17509 = vst [vmem:[#allocation48_spill] sm:$0xff] %v13808_v14  ;;  %v13810_v24 = vpop.f32.mrf.mxu0  ;;  %v13813_v7 = vadd.f32 %v10606_v39, %v2021_v25  ;;  %v3509_v37 = vsel %vm12342_vm10, %v8920_v1, %v3508_v21  ;;  %v17527_v21 = vld [vmem:[#allocation68_spill] sm:$0xff] }
 0x1d6   : > { %17510 = vst [vmem:[#allocation43_spill] sm:$0xff] %v13810_v24  ;;  %v10561_v58 = vpop.f32.mrf.mxu1  ;;  %10848 = vmatmul.mubr.bf16.gmra.mxu1 %v17511_v55 }
 0x1d7   : > { %v10609_v50 = vpop.f32.mrf.mxu0  ;;  %10896 = vmatmul.mubr.bf16.gmra.mxu0 %v17512_v30  ;;  %v2034_v38 = vadd.f32 %v10561_v58, %v17513_v44  ;;  %10851 = vmatprep.mubr.bf16.mxu1 %v17514_v22  ;;  %v3302_v58 = vrot.slane %v3301_v61, 4  ;;  %v17521_v22 = vld [vmem:[#allocation58_spill] sm:$0xff]  ;;  %v17523_v61 = vld [vmem:[#allocation67_spill] sm:$0xff] }
 0x1d8   : > { %10899 = vmatprep.mubr.bf16.mxu0 %v17515_v8  ;;  %v2025_v13 = vpop.f32.mrf.mxu1  ;;  %v3512_v8 = vsel %vm12342_vm10, %v3510_v33, %v3511_v51 }
 0x1d9   : > { %v2381_v9 = vpop.f32.mrf.mxu0  ;;  %v13821_v32 = vadd.f32 %v10609_v50, %v2034_v38  ;;  %v2026_v57 = vadd.f32 %v2025_v13, %v17516_v10  ;;  %v17524_v13 = vld [vmem:[#allocation62_spill] sm:$0xff] }
 0x1da   : > { %v10562_v42 = vpop.f32.mrf.mxu1 }
 0x1db   : > { %v10610_v23 = vpop.f32.mrf.mxu0  ;;  %v13825_v39 = vadd.f32 %v2381_v9, %v2026_v57  ;;  %v2037_v25 = vadd.f32 %v10562_v42, %v17517_v18  ;;  %v17525_v9 = vld [vmem:[#allocation19_spill] sm:$0xff]  ;;  %v3297_v57 = vsel %vm11786_vm7, %v3292_v19, %v3296_v40  ;;  %v3307_v42 = vsel %vm11786_vm7, %v3302_v58, %v3306_v60 }
 0x1dc   : > { %v13828_v55 = vpop.f32.mrf.mxu1  ;;  %v8919_v51 = vcombine.low %v3297_v57, %v3307_v42 }
 0x1dd   : > { %17518 = vst [vmem:[#allocation49_spill] sm:$0xff] %v13828_v55  ;;  %v13830_v30 = vpop.f32.mrf.mxu0  ;;  %v13832_v50 = vadd.f32 %v10610_v23, %v2037_v25 }
 0x1de   : > { %17519 = vst [vmem:[#allocation20_spill] sm:$0xff] %v13830_v30  ;;  %v10565_v44 = vpop.f32.mrf.mxu1  ;;  %10852 = vmatmul.mubr.bf16.gmra.mxu1 %v17520_v48  ;;  %v17575_v30 = vld [vmem:[#allocation37_spill] sm:$0xff] }
 0x1df   : > { %v10613_v38 = vpop.f32.mrf.mxu0  ;;  %10900 = vmatmul.mubr.bf16.gmra.mxu0 %v17521_v22  ;;  %v2050_v6 = vadd.f32 %v10565_v44, %v17523_v61  ;;  %10855 = vmatprep.mubr.bf16.mxu1 %v17524_v13  ;;  %v8921_v44 = vcombine.low %v3509_v37, %v3512_v8  ;;  %v17528_v61 = vld [vmem:[#allocation18_spill] sm:$0xff]  ;;  %v17532_v37 = vld [vmem:[#allocation23_spill] sm:$0xff] }
 0x1e0   : > { %10903 = vmatprep.mubr.bf16.mxu0 %v17525_v9  ;;  %v2041_v23 = vpop.f32.mrf.mxu1 }
 0x1e1   : > { %v2397_v18 = vpop.f32.mrf.mxu0  ;;  %v13847_v25 = vadd.f32 %v10613_v38, %v2050_v6  ;;  %v2042_v1 = vadd.f32 %v2041_v23, %v17527_v21  ;;  %v17531_v38 = vld [vmem:[#allocation26_spill] sm:$0xff] }
 0x1e2   : > { %v10566_v48 = vpop.f32.mrf.mxu1 }
 0x1e3   : > { %v10614_v33 = vpop.f32.mrf.mxu0  ;;  %v13850_v22 = vadd.f32 %v2397_v18, %v2042_v1  ;;  %v2053_v13 = vadd.f32 %v10566_v48, %v17528_v61  ;;  %v17533_v48 = vld [vmem:[#allocation29_spill] sm:$0xff] }
 0x1e4   : > { %v13853_v9 = vpop.f32.mrf.mxu1 }
 0x1e5   : > { %17529 = vst [vmem:[#allocation51_spill] sm:$0xff] %v13853_v9  ;;  %v13855_v40 = vpop.f32.mrf.mxu0  ;;  %v13857_v19 = vadd.f32 %v10614_v33, %v2053_v13 }
 0x1e6   : > { %17530 = vst [vmem:[#allocation36_spill] sm:$0xff] %v13855_v40  ;;  %v10569_v58 = vpop.f32.mrf.mxu1  ;;  %10856 = vmatmul.mubr.bf16.gmra.mxu1 %v8919_v51 }
 0x1e7   : > { %v10617_v60 = vpop.f32.mrf.mxu0  ;;  %10904 = vmatmul.mubr.bf16.gmra.mxu0 %v8921_v44  ;;  %v2066_v6 = vadd.f32 %v10569_v58, %v17531_v38 }
 0x1e8   : > { %v2057_v23 = vpop.f32.mrf.mxu1 }
 0x1e9   : > { %v2413_v21 = vpop.f32.mrf.mxu0  ;;  %v13860_v57 = vadd.f32 %v10617_v60, %v2066_v6  ;;  %v2058_v8 = vadd.f32 %v2057_v23, %v17532_v37  ;;  %v443_v60 = vld [vmem:[#allocation2 + $0x18] sm:$0x1] }
 0x1ea   : > { %v10570_v42 = vpop.f32.mrf.mxu1  ;;  %v444_v37 = vsel %vm11714_vm3, 0, %v443_v60 }
 0x1eb   : > { %v10618_v18 = vpop.f32.mrf.mxu0  ;;  %v13863_v1 = vadd.f32 %v2413_v21, %v2058_v8  ;;  %v2069_v61 = vadd.f32 %v10570_v42, %v17533_v48  ;;  %445 = vst [vmem:[#allocation2 + $0x18] sm:$0x1] %v444_v37 }
 0x1ec   : > { %v13866_v33 = vpop.f32.mrf.mxu1 }
 0x1ed   : > { %17534 = vst [vmem:[#allocation21_spill] sm:$0xff] %v13866_v33  ;;  %v13868_v13 = vpop.f32.mrf.mxu0  ;;  %v13870_v51 = vadd.f32 %v10618_v18, %v2069_v61 }
 0x1ee   : > { %17535 = vst [vmem:[#allocation53_spill] sm:$0xff] %v13868_v13  ;;  %v10637_v44 = vpop.f32.mrf.mxu1 }
 0x1ef   : > { %v10685_v58 = vpop.f32.mrf.mxu0  ;;  %v2629_v38 = vadd.f32 %v10637_v44, %v13674_v27 }
 0x1f0   : > { %v2500_v6 = vpop.f32.mrf.mxu1 }
 0x1f1   : > { %v2721_v62 = vpop.f32.mrf.mxu0  ;;  %v13875_v21 = vadd.f32 %v10685_v58, %v2629_v38  ;;  %v2627_v8 = vadd.f32 %v2500_v6, %v13682_v0 }
 0x1f2   : > { %v10638_v42 = vpop.f32.mrf.mxu1 }
 0x1f3   : > { %17537 = vst [vmem:[#allocation25_spill] sm:$0xff] %v13875_v21  ;;  %v10686_v48 = vpop.f32.mrf.mxu0  ;;  %v13878_v45 = vadd.f32 %v2721_v62, %v2627_v8  ;;  %v2630_v18 = vadd.f32 %v10638_v42, %v13693_v17 }
 0x1f4   : > { %v13881_v61 = vpop.f32.mrf.mxu1 }
 0x1f5   : > { %17538 = vst [vmem:[#allocation27_spill] sm:$0xff] %v13878_v45  ;;  %17539 = vst [vmem:[#allocation73_spill] sm:$0xff] %v13881_v61  ;;  %v13883_v27 = vpop.f32.mrf.mxu0  ;;  %v13885_v44 = vadd.f32 %v10686_v48, %v2630_v18 }
 0x1f6   : > { %17540 = vst [vmem:[#allocation28_spill] sm:$0xff] %v13883_v27  ;;  %v10641_v16 = vpop.f32.mrf.mxu1 }
 0x1f7   : > { %17541 = vst [vmem:[#allocation50_spill] sm:$0xff] %v13885_v44  ;;  %v10689_v52 = vpop.f32.mrf.mxu0  ;;  %v2633_v58 = vadd.f32 %v10641_v16, %v13711_v3 }
 0x1f8   : > { %v2516_v38 = vpop.f32.mrf.mxu1 }
 0x1f9   : > { %v2737_v60 = vpop.f32.mrf.mxu0  ;;  %v13888_v0 = vadd.f32 %v10689_v52, %v2633_v58  ;;  %v2631_v6 = vadd.f32 %v2516_v38, %v13723_v26 }
 0x1fa   : > { %v10642_v62 = vpop.f32.mrf.mxu1 }
 0x1fb   : > { %17542 = vst [vmem:[#allocation52_spill] sm:$0xff] %v13888_v0  ;;  %v10690_v37 = vpop.f32.mrf.mxu0  ;;  %v13891_v8 = vadd.f32 %v2737_v60, %v2631_v6  ;;  %v2634_v17 = vadd.f32 %v10642_v62, %v13736_v15 }
 0x1fc   : > { %v13894_v42 = vpop.f32.mrf.mxu1 }
 0x1fd   : > { %17543 = vst [vmem:[#allocation38_spill] sm:$0xff] %v13894_v42  ;;  %v13896_v48 = vpop.f32.mrf.mxu0  ;;  %v13898_v18 = vadd.f32 %v10690_v37, %v2634_v17  ;;  %v17574_v42 = vld [vmem:[#allocation22_spill] sm:$0xff] }
 0x1fe   : > { %17544 = vst [vmem:[#allocation65_spill] sm:$0xff] %v13896_v48  ;;  %v10645_v44 = vpop.f32.mrf.mxu1  ;;  %v440_v48 = vld [vmem:[#allocation2 + $0xc] sm:$0x1] }
 0x1ff   : > { %v10693_v3 = vpop.f32.mrf.mxu0  ;;  %v2637_v16 = vadd.f32 %v10645_v44, %v13752_v36 }
 0x200   : > { %v2532_v52 = vpop.f32.mrf.mxu1 }
 0x201   : > { %v2753_v58 = vpop.f32.mrf.mxu0  ;;  %v13901_v0 = vadd.f32 %v10693_v3, %v2637_v16  ;;  %v2635_v26 = vadd.f32 %v2532_v52, %v13759_v11  ;;  %v441_v3 = vsel %vm11714_vm3, 0, %v440_v48  ;;  %v499_v16 = vld [vmem:[#allocation2 + $0x20] sm:$0x1] }
 0x202   : > { %v10646_v38 = vpop.f32.mrf.mxu1  ;;  %442 = vst [vmem:[#allocation2 + $0xc] sm:$0x1] %v441_v3 }
 0x203   : > { %v10694_v60 = vpop.f32.mrf.mxu0  ;;  %v13904_v6 = vadd.f32 %v2753_v58, %v2635_v26  ;;  %v2638_v15 = vadd.f32 %v10646_v38, %v13762_v34  ;;  %v500_v34 = vsel %vm11726_vm4, 0, %v499_v16  ;;  %v449_v16 = vld [vmem:[#allocation2 + $0x30] sm:$0x1] }
 0x204   : > { %v13907_v62 = vpop.f32.mrf.mxu1  ;;  %501 = vst [vmem:[#allocation2 + $0x20] sm:$0x1] %v500_v34  ;;  %v450_v34 = vsel %vm11714_vm3, 0, %v449_v16 }
 0x205   : > { %17545 = vst [vmem:[#allocation71_spill] sm:$0xff] %v13907_v62  ;;  %v13909_v37 = vpop.f32.mrf.mxu0  ;;  %v13911_v17 = vadd.f32 %v10694_v60, %v2638_v15  ;;  %v496_v15 = vld [vmem:[#allocation2 + $0x14] sm:$0x1]  ;;  %451 = vst [vmem:[#allocation2 + $0x30] sm:$0x1] %v450_v34 }
 0x206   : > { %17546 = vst [vmem:[#allocation54_spill] sm:$0xff] %v13909_v37  ;;  %v10649_v36 = vpop.f32.mrf.mxu1  ;;  %v497_v48 = vsel %vm11726_vm4, 0, %v496_v15 }
 0x207   : > { %v10697_v44 = vpop.f32.mrf.mxu0  ;;  %v2641_v11 = vadd.f32 %v10649_v36, %v13774_v54  ;;  %498 = vst [vmem:[#allocation2 + $0x14] sm:$0x1] %v497_v48 }
 0x208   : > { %v2548_v52 = vpop.f32.mrf.mxu1 }
 0x209   : > { %v2769_v58 = vpop.f32.mrf.mxu0  ;;  %v13918_v38 = vadd.f32 %v10697_v44, %v2641_v11  ;;  %v2639_v60 = vadd.f32 %v2548_v52, %v13783_v29 }
 0x20a   : > { %v10650_v37 = vpop.f32.mrf.mxu1 }
 0x20b   : > { %v10698_v45 = vpop.f32.mrf.mxu0  ;;  %v13923_v62 = vadd.f32 %v2769_v58, %v2639_v60  ;;  %v2642_v54 = vadd.f32 %v10650_v37, %v13788_v2  ;;  %v446_v60 = vld [vmem:[#allocation2 + $0x24] sm:$0x1] }
 0x20c   : > { %v13926_v36 = vpop.f32.mrf.mxu1 }
 0x20d   : > { %17548 = vst [vmem:[#allocation40_spill] sm:$0xff] %v13926_v36  ;;  %v13928_v3 = vpop.f32.mrf.mxu0  ;;  %v13930_v44 = vadd.f32 %v10698_v45, %v2642_v54  ;;  %v447_v45 = vsel %vm11714_vm3, 0, %v446_v60 }
 0x20e   : > { %17549 = vst [vmem:[#allocation69_spill] sm:$0xff] %v13928_v3  ;;  %v10653_v11 = vpop.f32.mrf.mxu1  ;;  %448 = vst [vmem:[#allocation2 + $0x24] sm:$0x1] %v447_v45  ;;  %v502_v45 = vld [vmem:[#allocation2 + $0x2c] sm:$0x1] }
 0x20f   : > { %v10701_v29 = vpop.f32.mrf.mxu0  ;;  %v2645_v52 = vadd.f32 %v10653_v11, %v13802_v5  ;;  %v505_v11 = vld [vmem:[#allocation2 + $0x38] sm:$0x1] }
 0x210   : > { %v2564_v15 = vpop.f32.mrf.mxu1 }
 0x211   : > { %v2785_v58 = vpop.f32.mrf.mxu0  ;;  %v13935_v2 = vadd.f32 %v10701_v29, %v2645_v52  ;;  %v2643_v37 = vadd.f32 %v2564_v15, %v13805_v59  ;;  %v506_v29 = vsel %vm11726_vm4, 0, %v505_v11 }
 0x212   : > { %v10654_v48 = vpop.f32.mrf.mxu1  ;;  %507 = vst [vmem:[#allocation2 + $0x38] sm:$0x1] %v506_v29  ;;  %v455_v29 = vld [vmem:[#allocation2 + $0x48] sm:$0x1] }
 0x213   : > { %v10702_v54 = vpop.f32.mrf.mxu0  ;;  %v13940_v3 = vadd.f32 %v2785_v58, %v2643_v37  ;;  %v2646_v5 = vadd.f32 %v10654_v48, %v13813_v7 }
 0x214   : > { %v13943_v16 = vpop.f32.mrf.mxu1 }
 0x215   : > { %17550 = vst [vmem:[#allocation8_spill] sm:$0xff] %v13943_v16  ;;  %v13945_v36 = vpop.f32.mrf.mxu0  ;;  %v13949_v52 = vadd.f32 %v10702_v54, %v2646_v5 }
 0x216   : > { %17551 = vst [vmem:[#allocation57_spill] sm:$0xff] %v13945_v36  ;;  %v10657_v59 = vpop.f32.mrf.mxu1  ;;  %v503_v36 = vsel %vm11726_vm4, 0, %v502_v45 }
 0x217   : > { %v10705_v34 = vpop.f32.mrf.mxu0  ;;  %v2649_v15 = vadd.f32 %v10657_v59, %v13821_v32  ;;  %504 = vst [vmem:[#allocation2 + $0x2c] sm:$0x1] %v503_v36  ;;  %v452_v36 = vld [vmem:[#allocation2 + $0x3c] sm:$0x1] }
 0x218   : > { %v2580_v60 = vpop.f32.mrf.mxu1 }
 0x219   : > { %v2801_v58 = vpop.f32.mrf.mxu0  ;;  %v13952_v37 = vadd.f32 %v10705_v34, %v2649_v15  ;;  %v2647_v7 = vadd.f32 %v2580_v60, %v13825_v39  ;;  %v456_v39 = vsel %vm11714_vm3, 0, %v455_v29 }
 0x21a   : > { %v10658_v48 = vpop.f32.mrf.mxu1  ;;  %457 = vst [vmem:[#allocation2 + $0x48] sm:$0x1] %v456_v39 }
 0x21b   : > { %v10706_v16 = vpop.f32.mrf.mxu0  ;;  %v13957_v11 = vadd.f32 %v2801_v58, %v2647_v7  ;;  %v2650_v54 = vadd.f32 %v10658_v48, %v13832_v50 }
 0x21c   : > { %v13960_v5 = vpop.f32.mrf.mxu1 }
 0x21d   : > { %17552 = vst [vmem:[#allocation41_spill] sm:$0xff] %v13960_v5  ;;  %v13962_v32 = vpop.f32.mrf.mxu0  ;;  %v13964_v59 = vadd.f32 %v10706_v16, %v2650_v54  ;;  %v453_v16 = vsel %vm11714_vm3, 0, %v452_v36  ;;  %v508_v36 = vld [vmem:[#allocation2 + $0x44] sm:$0x1] }
 0x21e   : > { %17553 = vst [vmem:[#allocation60_spill] sm:$0xff] %v13962_v32  ;;  %v10661_v34 = vpop.f32.mrf.mxu1  ;;  %454 = vst [vmem:[#allocation2 + $0x3c] sm:$0x1] %v453_v16 }
 0x21f   : > { %v10709_v15 = vpop.f32.mrf.mxu0  ;;  %v2653_v60 = vadd.f32 %v10661_v34, %v13847_v25 }
 0x220   : > { %v2596_v58 = vpop.f32.mrf.mxu1 }
 0x221   : > { %v2817_v7 = vpop.f32.mrf.mxu0  ;;  %v13969_v45 = vadd.f32 %v10709_v15, %v2653_v60  ;;  %v2651_v50 = vadd.f32 %v2596_v58, %v13850_v22  ;;  %v511_v15 = vld [vmem:[#allocation2 + $0x50] sm:$0x1] }
 0x222   : > { %v10662_v48 = vpop.f32.mrf.mxu1  ;;  %v512_v58 = vsel %vm11726_vm4, 0, %v511_v15 }
 0x223   : > { %v10710_v32 = vpop.f32.mrf.mxu0  ;;  %v13974_v54 = vadd.f32 %v2817_v7, %v2651_v50  ;;  %v2654_v29 = vadd.f32 %v10662_v48, %v13857_v19  ;;  %513 = vst [vmem:[#allocation2 + $0x50] sm:$0x1] %v512_v58 }
 0x224   : > { %v13977_v39 = vpop.f32.mrf.mxu1 }
 0x225   : > { %17554 = vst [vmem:[#allocation59_spill] sm:$0xff] %v13977_v39  ;;  %v13979_v25 = vpop.f32.mrf.mxu0  ;;  %v13981_v34 = vadd.f32 %v10710_v32, %v2654_v29  ;;  %v509_v32 = vsel %vm11726_vm4, 0, %v508_v36  ;;  %v461_v39 = vld [vmem:[#allocation2 + $0x60] sm:$0x1] }
 0x226   : > { %17555 = vst [vmem:[#allocation24_spill] sm:$0xff] %v13979_v25  ;;  %v10665_v60 = vpop.f32.mrf.mxu1  ;;  %510 = vst [vmem:[#allocation2 + $0x44] sm:$0x1] %v509_v32 }
 0x227   : > { %17556 = vst [vmem:[#allocation61_spill] sm:$0xff] %v13981_v34  ;;  %v10713_v22 = vpop.f32.mrf.mxu0  ;;  %v2657_v5 = vadd.f32 %v10665_v60, %v13860_v57 }
 0x228   : > { %v2612_v7 = vpop.f32.mrf.mxu1 }
 0x229   : > { %v2833_v50 = vpop.f32.mrf.mxu0  ;;  %v13986_v19 = vadd.f32 %v10713_v22, %v2657_v5  ;;  %v2655_v48 = vadd.f32 %v2612_v7, %v13863_v1  ;;  %v462_v5 = vsel %vm11714_vm3, 0, %v461_v39  ;;  %v458_v7 = vld [vmem:[#allocation2 + $0x54] sm:$0x1] }
 0x22a   : > { %v10666_v16 = vpop.f32.mrf.mxu1  ;;  %463 = vst [vmem:[#allocation2 + $0x60] sm:$0x1] %v462_v5  ;;  %v9962_v39 = vld [vmem:[%s16827_s8 + $0xf0] sm:$0xff]  }
 0x22b   : > { %17557 = vst [vmem:[#allocation46_spill] sm:$0xff] %v13986_v19  ;;  %v10714_v29 = vpop.f32.mrf.mxu0  ;;  %v13991_v25 = vadd.f32 %v2833_v50, %v2655_v48  ;;  %v2658_v15 = vadd.f32 %v10666_v16, %v13870_v51  ;;  %v459_v51 = vsel %vm11714_vm3, 0, %v458_v7  ;;  %v9961_v48 = vld [vmem:[%s16827_s8 + $0xe8] sm:$0xff]   ;;  %v9616_v7 = vunpack.c.l.bf16 %v9962_v39 }
 0x22c   : > { %v13994_v57 = vpop.f32.mrf.mxu1  ;;  %460 = vst [vmem:[#allocation2 + $0x54] sm:$0x1] %v459_v51  ;;  %v9617_v51 = vunpack.c.h.bf16 %v9962_v39  ;;  %v9959_v39 = vld [vmem:[%s16827_s8 + $0xd8] sm:$0xff]  }
 0x22d   : > { %17558 = vst [vmem:[#allocation64_spill] sm:$0xff] %v13991_v25  ;;  %17559 = vst [vmem:[#allocation58_spill] sm:$0xff] %v13994_v57  ;;  %v13996_v60 = vpop.f32.mrf.mxu0  ;;  %v14000_v22 = vadd.f32 %v10714_v29, %v2658_v15  ;;  %v9960_v29 = vld [vmem:[%s16827_s8 + $0xe0] sm:$0xff]   ;;  %v17573_v25 = vld [vmem:[#allocation12_spill] sm:$0xff] }
 0x22e   : > { %17560 = vst [vmem:[#allocation67_spill] sm:$0xff] %v13996_v60  ;;  %v14002_v1 = vpop.f32.mrf.mxu1  ;;  %v9612_v60 = vunpack.c.l.bf16 %v9961_v48 }
 0x22f   : > { %17561 = vst [vmem:[#allocation62_spill] sm:$0xff] %v14000_v22  ;;  %17562 = vst [vmem:[#allocation19_spill] sm:$0xff] %v14002_v1  ;;  %v14004_v58 = vpop.f32.mrf.mxu0 }
 0x230   : > { %17563 = vst [vmem:[#allocation68_spill] sm:$0xff] %v14004_v58  ;;  %v14006_v50 = vpop.f32.mrf.mxu1  ;;  %v9613_v58 = vunpack.c.h.bf16 %v9961_v48 }
 0x231   : > { %17564 = vst [vmem:[#allocation18_spill] sm:$0xff] %v14006_v50  ;;  %v14008_v36 = vpop.f32.mrf.mxu0  ;;  %v9609_v50 = vunpack.c.h.bf16 %v9960_v29 }
 0x232   : > { %17565 = vst [vmem:[#allocation26_spill] sm:$0xff] %v14008_v36  ;;  %v14018_v32 = vpop.f32.mrf.mxu1  ;;  %v517_v36 = vld [vmem:[#allocation2 + $0x68] sm:$0x1]  ;;  %v4890_v1 = vmul.f32 %v9613_v58, %v17573_v25 }
 0x233   : > { %17566 = vst [vmem:[#allocation23_spill] sm:$0xff] %v14018_v32  ;;  %v14020_v16 = vpop.f32.mrf.mxu0  ;;  %v9608_v32 = vunpack.c.l.bf16 %v9960_v29  ;;  %v4889_v29 = vmul.f32 %v9612_v60, %v13572_v43  ;;  %v4888_v24 = vmul.f32 %v9609_v50, %v17575_v30 }
 0x234   : > { %17567 = vst [vmem:[#allocation29_spill] sm:$0xff] %v14020_v16  ;;  %v14025_v15 = vpop.f32.mrf.mxu1  ;;  %v518_v16 = vsel %vm11726_vm4, 0, %v517_v36  ;;  %v17572_v36 = vld [vmem:[#allocation47_spill] sm:$0xff] }
 0x235   : > { %17568 = vst [vmem:[#allocation6_spill] sm:$0xff] %v14025_v15  ;;  %v14027_v5 = vpop.f32.mrf.mxu0  ;;  %v9954_v15 = vld [vmem:[%s16827_s8 + $0xb0] sm:$0xff]   ;;  %519 = vst [vmem:[#allocation2 + $0x68] sm:$0x1] %v518_v16  ;;  %v4892_v27 = vmul.f32 %v9617_v51, %v17572_v36  ;;  %v9953_v16 = vld [vmem:[%s16827_s8 + $0xa8] sm:$0xff]   ;;  %v4887_v46 = vmul.f32 %v9608_v32, %v17574_v42 }
 0x236   : > { %17569 = vst [vmem:[#allocation7_spill] sm:$0xff] %v14027_v5  ;;  %v14029_v57 = vpop.f32.mrf.mxu1  ;;  %v514_v5 = vld [vmem:[#allocation2 + $0x5c] sm:$0x1]  ;;  %v9584_v21 = vunpack.c.l.bf16 %v9954_v15  ;;  %v9585_v40 = vunpack.c.h.bf16 %v9954_v15  ;;  %v467_v15 = vld [vmem:[#allocation2 + $0x78] sm:$0x1]  ;;  %v9580_v19 = vunpack.c.l.bf16 %v9953_v16  ;;  %v9581_v61 = vunpack.c.h.bf16 %v9953_v16 }
 0x237   : > { %17570 = vst [vmem:[#allocation74_spill] sm:$0xff] %v14029_v57  ;;  %v14031_v22 = vpop.f32.mrf.mxu0  ;;  %v4891_v57 = vmul.f32 %v9616_v7, %v13552_v12  ;;  %v9952_v7 = vld [vmem:[%s16827_s8 + $0xa0] sm:$0xff]   ;;  %v468_v9 = vsel %vm11714_vm3, 0, %v467_v15 }
 0x238   : > { %17571 = vst [vmem:[#allocation75_spill] sm:$0xff] %v14031_v22  ;;  %v2942_v48 = vpop.f32.mrf.mxu1  ;;  %v515_v22 = vsel %vm11726_vm4, 0, %v514_v5  ;;  %v9958_v5 = vld [vmem:[%s16827_s8 + $0xd0] sm:$0xff]   ;;  %v9576_v14 = vunpack.c.l.bf16 %v9952_v7  ;;  %469 = vst [vmem:[#allocation2 + $0x78] sm:$0x1] %v468_v9 }
 0x239   : > { %v3141_v31 = vpop.f32.mrf.mxu0  ;;  %v3057_v13 = vadd.f32 %v2942_v48, %v13891_v8  ;;  %516 = vst [vmem:[#allocation2 + $0x5c] sm:$0x1] %v515_v22  ;;  %v9604_v8 = vunpack.c.l.bf16 %v9959_v39  ;;  %v9605_v22 = vunpack.c.h.bf16 %v9959_v39  ;;  %v9600_v55 = vunpack.c.l.bf16 %v9958_v5  ;;  %v9957_v39 = vld [vmem:[%s16827_s8 + $0xc8] sm:$0xff]  }
 0x23a   : > { %v10738_v60 = vpop.f32.mrf.mxu1  ;;  %v9601_v32 = vunpack.c.h.bf16 %v9958_v5  ;;  %v4876_v5 = vmul.f32 %v9585_v40, %v17572_v36 }
 0x23b   : > { %v10786_v51 = vpop.f32.mrf.mxu0  ;;  %v14059_v48 = vadd.f32 %v3141_v31, %v3057_v13  ;;  %v3060_v58 = vadd.f32 %v10738_v60, %v13898_v18  ;;  %v14070_v31 = vpack.c.bf16 %v4892_v27, %v4891_v57  ;;  %v14072_v13 = vpack.c.bf16 %v4890_v1, %v4889_v29  ;;  %v17583_v27 = vld [vmem:[#allocation70_spill] sm:$0xff] }
 0x23c   : > { %v14062_v53 = vpop.f32.mrf.mxu1  ;;  %v4875_v18 = vmul.f32 %v9584_v21, %v13552_v12  ;;  %v4886_v57 = vmul.f32 %v9605_v22, %v17583_v27  ;;  %v4873_v1 = vmul.f32 %v9580_v19, %v13572_v43  ;;  %v4874_v21 = vmul.f32 %v9581_v61, %v17573_v25  ;;  %v9951_v29 = vld [vmem:[%s16827_s8 + $0x98] sm:$0xff]   ;;  %v9956_v19 = vld [vmem:[%s16827_s8 + $0xc0] sm:$0xff]  }
 0x23d   : > { %17576 = vst [vmem:[#allocation76_spill] sm:$0xff] %v14059_v48  ;;  %17577 = vst [vmem:[#allocation77_spill] sm:$0xff] %v14062_v53  ;;  %v14064_v33 = vpop.f32.mrf.mxu0  ;;  %v14068_v50 = vadd.f32 %v10786_v51, %v3060_v58  ;;  %v14078_v48 = vpack.c.bf16 %v4888_v24, %v4887_v46  ;;  %v4885_v51 = vmul.f32 %v9604_v8, %v13645_v20  ;;  %v9577_v58 = vunpack.c.h.bf16 %v9952_v7  ;;  %v464_v24 = vld [vmem:[#allocation2 + $0x6c] sm:$0x1] }
 0x23e   : > { %17578 = vst [vmem:[#allocation78_spill] sm:$0xff] %v14064_v33  ;;  %17580 = vst [vmem:[#allocation80_spill] sm:$0xff] %v14070_v31  ;;  %v10741_v16 = vpop.f32.mrf.mxu1  ;;  %v4883_v40 = vmul.f32 %v9600_v55, %v13672_v49  ;;  %v4884_v8 = vmul.f32 %v9601_v32, %v13670_v4  ;;  %v4871_v7 = vmul.f32 %v9576_v14, %v17574_v42  ;;  %v9950_v55 = vld [vmem:[%s16827_s8 + $0x90] sm:$0xff]  }
 0x23f   : > { %17579 = vst [vmem:[#allocation79_spill] sm:$0xff] %v14068_v50  ;;  %17581 = vst [vmem:[#allocation81_spill] sm:$0xff] %v14072_v13  ;;  %v10789_v60 = vpop.f32.mrf.mxu0  ;;  %v3063_v9 = vadd.f32 %v10741_v16, %v13901_v0  ;;  %v9596_v0 = vunpack.c.l.bf16 %v9957_v39  ;;  %v465_v16 = vsel %vm11714_vm3, 0, %v464_v24  ;;  %v9597_v13 = vunpack.c.h.bf16 %v9957_v39 }
 0x240   : > { %17582 = vst [vmem:[#allocation82_spill] sm:$0xff] %v14078_v48  ;;  %v2958_v15 = vpop.f32.mrf.mxu1  ;;  %v523_v48 = vld [vmem:[#allocation2 + $0x80] sm:$0x1]  ;;  %466 = vst [vmem:[#allocation2 + $0x6c] sm:$0x1] %v465_v16  ;;  %v9592_v39 = vunpack.c.l.bf16 %v9956_v19  ;;  %v9593_v24 = vunpack.c.h.bf16 %v9956_v19  ;;  %v14113_v53 = vpack.c.bf16 %v4876_v5, %v4875_v18  ;;  %v14115_v16 = vpack.c.bf16 %v4886_v57, %v4885_v51 }
 0x241   : > { %v3157_v46 = vpop.f32.mrf.mxu0  ;;  %v14095_v22 = vadd.f32 %v10789_v60, %v3063_v9  ;;  %v3061_v61 = vadd.f32 %v2958_v15, %v13904_v6  ;;  %v524_v31 = vsel %vm11726_vm4, 0, %v523_v48  ;;  %v4872_v60 = vmul.f32 %v9577_v58, %v17575_v30  ;;  %v520_v18 = vld [vmem:[#allocation2 + $0x74] sm:$0x1] }
 0x242   : > { %v10742_v32 = vpop.f32.mrf.mxu1  ;;  %v9572_v9 = vunpack.c.l.bf16 %v9951_v29  ;;  %525 = vst [vmem:[#allocation2 + $0x80] sm:$0x1] %v524_v31  ;;  %17585 = vst [vmem:[#allocation84_spill] sm:$0xff] %v14113_v53  ;;  %v9568_v48 = vunpack.c.l.bf16 %v9950_v55  ;;  %v9569_v34 = vunpack.c.h.bf16 %v9950_v55  ;;  %v9979_v31 = vld [vmem:[%s16827_s8 + $0x178] sm:$0xff]   ;;  %v14126_v5 = vpack.c.bf16 %v4884_v8, %v4883_v40  ;;  %v9948_v8 = vld [vmem:[%s16827_s8 + $0x80] sm:$0xff]  }
 0x243   : > { %17584 = vst [vmem:[#allocation83_spill] sm:$0xff] %v14095_v22  ;;  %v10790_v14 = vpop.f32.mrf.mxu0  ;;  %v9573_v22 = vunpack.c.h.bf16 %v9951_v29  ;;  %v14106_v6 = vadd.f32 %v3157_v46, %v3061_v61  ;;  %v3064_v15 = vadd.f32 %v10742_v32, %v13911_v17  ;;  %17586 = vst [vmem:[#allocation85_spill] sm:$0xff] %v14115_v16  ;;  %v14119_v29 = vpack.c.bf16 %v4874_v21, %v4873_v1  ;;  %v9949_v21 = vld [vmem:[%s16827_s8 + $0x88] sm:$0xff]  }
 0x244   : > { %v14109_v50 = vpop.f32.mrf.mxu1  ;;  %v4881_v46 = vmul.f32 %v9596_v0, %v13705_v35  ;;  %v4882_v17 = vmul.f32 %v9597_v13, %v13703_v47  ;;  %17588 = vst [vmem:[#allocation87_spill] sm:$0xff] %v14126_v5  ;;  %v14128_v51 = vpack.c.bf16 %v4872_v60, %v4871_v7  ;;  %v4869_v57 = vmul.f32 %v9572_v9, %v13645_v20  ;;  %v9971_v9 = vld [vmem:[%s16827_s8 + $0x138] sm:$0xff]  }
 0x245   : > { %v14111_v33 = vpop.f32.mrf.mxu0  ;;  %v14117_v58 = vadd.f32 %v10790_v14, %v3064_v15  ;;  %17587 = vst [vmem:[#allocation86_spill] sm:$0xff] %v14119_v29  ;;  %v4870_v1 = vmul.f32 %v9573_v22, %v17583_v27  ;;  %v521_v0 = vsel %vm11726_vm4, 0, %v520_v18  ;;  %v4879_v55 = vmul.f32 %v9592_v39, %v13734_v56 }
 0x246   : > { %v10745_v19 = vpop.f32.mrf.mxu1  ;;  %17589 = vst [vmem:[#allocation88_spill] sm:$0xff] %v14128_v51  ;;  %v4880_v40 = vmul.f32 %v9593_v24, %v13732_v63  ;;  %522 = vst [vmem:[#allocation2 + $0x74] sm:$0x1] %v521_v0  ;;  %v4867_v22 = vmul.f32 %v9568_v48, %v13672_v49  ;;  %v4868_v14 = vmul.f32 %v9569_v34, %v13670_v4  ;;  %v9684_v60 = vunpack.c.l.bf16 %v9979_v31 }
 0x247   : > { %v10793_v61 = vpop.f32.mrf.mxu0  ;;  %v3067_v13 = vadd.f32 %v10745_v19, %v13918_v38  ;;  %v9685_v38 = vunpack.c.h.bf16 %v9979_v31  ;;  %v14151_v24 = vpack.c.bf16 %v4882_v17, %v4881_v46  ;;  %v9564_v19 = vunpack.c.l.bf16 %v9949_v21  ;;  %v9978_v31 = vld [vmem:[%s16827_s8 + $0x170] sm:$0xff]   ;;  %v9977_v46 = vld [vmem:[%s16827_s8 + $0x168] sm:$0xff]  }
 0x248   : > { %v2974_v7 = vpop.f32.mrf.mxu1  ;;  %v14153_v0 = vpack.c.bf16 %v4870_v1, %v4869_v57  ;;  %v9565_v48 = vunpack.c.h.bf16 %v9949_v21  ;;  %v9560_v29 = vunpack.c.l.bf16 %v9948_v8  ;;  %v9561_v34 = vunpack.c.h.bf16 %v9948_v8 }
 0x249   : > { %v3173_v32 = vpop.f32.mrf.mxu0  ;;  %v14148_v15 = vadd.f32 %v10793_v61, %v3067_v13  ;;  %v3065_v39 = vadd.f32 %v2974_v7, %v13923_v62  ;;  %17590 = vst [vmem:[#allocation89_spill] sm:$0xff] %v14151_v24  ;;  %v9652_v13 = vunpack.c.l.bf16 %v9971_v9  ;;  %v9653_v62 = vunpack.c.h.bf16 %v9971_v9 }
 0x24a   : > { %v10746_v18 = vpop.f32.mrf.mxu1  ;;  %17591 = vst [vmem:[#allocation90_spill] sm:$0xff] %v14153_v0  ;;  %v14168_v1 = vpack.c.bf16 %v4880_v40, %v4879_v55  ;;  %v14170_v21 = vpack.c.bf16 %v4868_v14, %v4867_v22  ;;  %v4925_v8 = vmul.f32 %v9684_v60, %v13489_v28  ;;  %v4926_v7 = vmul.f32 %v9685_v38, %v13491_v41  ;;  %v14180_v55 = vld [vmem:[#allocation2] sm:$0xf]  ;;  %v14182_v40 = vld [vmem:[#allocation2 + $0x4] sm:$0xf] }
 0x24b   : > { %v10794_v51 = vpop.f32.mrf.mxu0  ;;  %v14158_v53 = vadd.f32 %v3173_v32, %v3065_v39  ;;  %v3068_v61 = vadd.f32 %v10746_v18, %v13930_v44  ;;  %v4865_v44 = vmul.f32 %v9564_v19, %v13705_v35  ;;  %v9680_v9 = vunpack.c.l.bf16 %v9978_v31  ;;  %v9976_v18 = vld [vmem:[%s16827_s8 + $0x160] sm:$0xff]   ;;  %v473_v22 = vld [vmem:[#allocation2 + $0x90] sm:$0x1] }
 0x24c   : > { %v14164_v17 = vpop.f32.mrf.mxu1  ;;  %17592 = vst [vmem:[#allocation91_spill] sm:$0xff] %v14168_v1  ;;  %17593 = vst [vmem:[#allocation92_spill] sm:$0xff] %v14170_v21  ;;  %v9681_v39 = vunpack.c.h.bf16 %v9978_v31  ;;  %v4866_v14 = vmul.f32 %v9565_v48, %v13703_v47  ;;  %v9676_v60 = vunpack.c.l.bf16 %v9977_v46  ;;  %v9677_v38 = vunpack.c.h.bf16 %v9977_v46  ;;  %v9970_v1 = vld [vmem:[%s16827_s8 + $0x130] sm:$0xff]  }
 0x24d   : > { %v14166_v57 = vpop.f32.mrf.mxu0  ;;  %v14174_v32 = vadd.f32 %v10794_v51, %v3068_v61  ;;  %v4863_v51 = vmul.f32 %v9560_v29, %v13734_v56  ;;  %v4864_v31 = vmul.f32 %v9561_v34, %v13732_v63  ;;  %v4909_v61 = vmul.f32 %v9652_v13, %v13489_v28  ;;  %v470_v63 = vld [vmem:[#allocation2 + $0x84] sm:$0x1] }
 0x24e   : > { %v10749_v0 = vpop.f32.mrf.mxu1  ;;  %v4910_v21 = vmul.f32 %v9653_v62, %v13491_v41  ;;  %v8972_v48 = vcombine.low %v14180_v55, %v14182_v40  ;;  %v474_v29 = vsel %vm11714_vm3, 0, %v473_v22  ;;  %v9672_v46 = vunpack.c.l.bf16 %v9976_v18 }
 0x24f   : > { %17594 = vst [vmem:[#allocation93_spill] sm:$0xff] %v14174_v32  ;;  %v10797_v24 = vpop.f32.mrf.mxu0  ;;  %v3071_v19 = vadd.f32 %v10749_v0, %v13935_v2  ;;  %v9673_v2 = vunpack.c.h.bf16 %v9976_v18  ;;  %475 = vst [vmem:[#allocation2 + $0x90] sm:$0x1] %v474_v29  ;;  %v4923_v13 = vmul.f32 %v9680_v9, %v13552_v12  ;;  %v4924_v62 = vmul.f32 %v9681_v39, %v17572_v36  ;;  %v9975_v39 = vld [vmem:[%s16827_s8 + $0x158] sm:$0xff]  }
 0x250   : > { %v2990_v5 = vpop.f32.mrf.mxu1  ;;  %10971 = vmatprep.mubr.bf16.mxu0 %v8972_v48  ;;  %v14202_v56 = vpack.c.bf16 %v4926_v7, %v4925_v8  ;;  %v4921_v32 = vmul.f32 %v9676_v60, %v13572_v43  ;;  %v4922_v22 = vmul.f32 %v9677_v38, %v17573_v25  ;;  %v9648_v18 = vunpack.c.l.bf16 %v9970_v1  ;;  %v9969_v48 = vld [vmem:[%s16827_s8 + $0x128] sm:$0xff]  }
 0x251   : > { %v3189_v16 = vpop.f32.mrf.mxu0  ;;  %v14197_v0 = vadd.f32 %v10797_v24, %v3071_v19  ;;  %v3069_v34 = vadd.f32 %v2990_v5, %v13940_v3  ;;  %v471_v5 = vsel %vm11714_vm3, 0, %v470_v63  ;;  %v9649_v9 = vunpack.c.h.bf16 %v9970_v1 }
 0x252   : > { %v10750_v41 = vpop.f32.mrf.mxu1  ;;  %472 = vst [vmem:[#allocation2 + $0x84] sm:$0x1] %v471_v5  ;;  %v14218_v7 = vpack.c.bf16 %v4866_v14, %v4865_v44  ;;  %v14220_v60 = vpack.c.bf16 %v4864_v31, %v4863_v51  ;;  %v5104_v63 = vshrl.u32 %v14180_v55, 16  ;;  %v14227_v1 = vpack.c.bf16 %v4910_v21, %v4909_v61 }
 0x253   : > { %v10798_v28 = vpop.f32.mrf.mxu0  ;;  %v14206_v24 = vadd.f32 %v3189_v16, %v3069_v34  ;;  %v3072_v3 = vadd.f32 %v10750_v41, %v13949_v52  ;;  %v4919_v16 = vmul.f32 %v9672_v46, %v17574_v42  ;;  %v4920_v41 = vmul.f32 %v9673_v2, %v17575_v30 }
 0x254   : > { %v14214_v19 = vpop.f32.mrf.mxu1  ;;  %17595 = vst [vmem:[#allocation94_spill] sm:$0xff] %v14220_v60  ;;  %17596 = vst [vmem:[#allocation95_spill] sm:$0xff] %v14227_v1  ;;  %v14229_v38 = vpack.c.bf16 %v4924_v62, %v4923_v13  ;;  %v5107_v51 = vshll.u32 %v14180_v55, 16  ;;  %v5117_v31 = vshrl.u32 %v14182_v40, 16  ;;  %v14236_v29 = vpack.c.bf16 %v4922_v22, %v4921_v32  ;;  %v529_v62 = vld [vmem:[#allocation2 + $0x98] sm:$0x1] }
 0x255   : > { %v14216_v8 = vpop.f32.mrf.mxu0  ;;  %v14224_v52 = vadd.f32 %v10798_v28, %v3072_v3  ;;  %v9668_v28 = vunpack.c.l.bf16 %v9975_v39  ;;  %v5113_v21 = vshll.u32 %v14182_v40, 16  ;;  %v4907_v61 = vmul.f32 %v9648_v18, %v13552_v12  ;;  %v9974_v32 = vld [vmem:[%s16827_s8 + $0x150] sm:$0xff]   ;;  %v526_v18 = vld [vmem:[#allocation2 + $0x8c] sm:$0x1] }
 0x256   : > { %17597 = vst [vmem:[#allocation96_spill] sm:$0xff] %v14229_v38  ;;  %v10753_v44 = vpop.f32.mrf.mxu1  ;;  %17598 = vst [vmem:[#allocation97_spill] sm:$0xff] %v14236_v29  ;;  %v4908_v2 = vmul.f32 %v9649_v9, %v17572_v36  ;;  %v14242_v3 = vpack.c.bf16 %v4920_v41, %v4919_v16  ;;  %v9669_v5 = vunpack.c.h.bf16 %v9975_v39  ;;  %v9644_v55 = vunpack.c.l.bf16 %v9969_v48  ;;  %v5051_v9 = vld [vmem:[#allocation2 + $0x8] sm:$0x1]  ;;  %v17655_v60 = vld [vmem:[#allocation57_spill] sm:$0xff] }
 0x257   : > { %v10801_v14 = vpop.f32.mrf.mxu0  ;;  %v3075_v46 = vadd.f32 %v10753_v44, %v13952_v37  ;;  %v9645_v38 = vunpack.c.h.bf16 %v9969_v48  ;;  %v530_v40 = vsel %vm11726_vm4, 0, %v529_v62  ;;  %v5106_v44 = vrot.slane %v5104_v63, 4  ;;  %v9968_v63 = vld [vmem:[%s16827_s8 + $0x120] sm:$0xff]  }
 0x258   : > { %v3006_v34 = vpop.f32.mrf.mxu1  ;;  %17599 = vst [vmem:[#allocation98_spill] sm:$0xff] %v14242_v3  ;;  %531 = vst [vmem:[#allocation2 + $0x98] sm:$0x1] %v530_v40  ;;  %v527_v39 = vsel %vm11726_vm4, 0, %v526_v18  ;;  %v5109_v41 = vrot.slane %v5107_v51, 5  ;;  %v5115_v48 = vrot.slane %v5113_v21, 5  ;;  %v14266_v21 = vpack.c.bf16 %v4908_v2, %v4907_v61 }
 0x259   : > { %v3205_v13 = vpop.f32.mrf.mxu0  ;;  %v14247_v22 = vadd.f32 %v10801_v14, %v3075_v46  ;;  %v3073_v37 = vadd.f32 %v3006_v34, %v13957_v11  ;;  %v5119_v12 = vrot.slane %v5117_v31, 4  ;;  %v479_v3 = vld [vmem:[#allocation2 + $0xa8] sm:$0x1]  ;;  %528 = vst [vmem:[#allocation2 + $0x8c] sm:$0x1] %v527_v39  ;;  %v5123_v46 = vshll.u32 %v5051_v9, 16 }
 0x25a   : > { %v10754_v36 = vpop.f32.mrf.mxu1  ;;  %v480_v34 = vsel %vm11714_vm3, 0, %v479_v3  ;;  %v5110_v51 = vor.u32 %v5109_v41, %v5106_v44  ;;  %17600 = vst [vmem:[#allocation99_spill] sm:$0xff] %v14266_v21  ;;  %v4918_v3 = vmul.f32 %v9669_v5, %v17583_v27  ;;  %v9973_v18 = vld [vmem:[%s16827_s8 + $0x148] sm:$0xff]   ;;  %v9640_v41 = vunpack.c.l.bf16 %v9968_v63 }
 0x25b   : > { %v10802_v16 = vpop.f32.mrf.mxu0  ;;  %v14254_v14 = vadd.f32 %v3205_v13, %v3073_v37  ;;  %v3076_v11 = vadd.f32 %v10754_v36, %v13964_v59  ;;  %v5120_v31 = vor.u32 %v5119_v12, %v5115_v48  ;;  %481 = vst [vmem:[#allocation2 + $0xa8] sm:$0x1] %v480_v34  ;;  %v4917_v59 = vmul.f32 %v9668_v28, %v13645_v20  ;;  %v9967_v28 = vld [vmem:[%s16827_s8 + $0x118] sm:$0xff]  }
 0x25c   : > { %v14262_v62 = vpop.f32.mrf.mxu1  ;;  %v5125_v13 = vrot.slane %v5123_v46, 5  ;;  %v9664_v37 = vunpack.c.l.bf16 %v9974_v32  ;;  %v5111_v29 = vrot.slane %v5110_v51, 4  ;;  %v9665_v12 = vunpack.c.h.bf16 %v9974_v32 }
 0x25d   : > { %v14264_v40 = vpop.f32.mrf.mxu0  ;;  %v14269_v36 = vadd.f32 %v10802_v16, %v3076_v11  ;;  %v5121_v44 = vrot.slane %v5120_v31, 4  ;;  %v4905_v2 = vmul.f32 %v9644_v55, %v13572_v43  ;;  %v4906_v5 = vmul.f32 %v9645_v38, %v17573_v25 }
 0x25e   : > { %v10757_v9 = vpop.f32.mrf.mxu1  ;;  %v9641_v16 = vunpack.c.h.bf16 %v9968_v63  ;;  %v5116_v34 = vsel %vm11786_vm7, %v5111_v29, %v5115_v48  ;;  %v9660_v51 = vunpack.c.l.bf16 %v9973_v18  ;;  %v9661_v31 = vunpack.c.h.bf16 %v9973_v18 }
 0x25f   : > { %v10805_v39 = vpop.f32.mrf.mxu0  ;;  %v3079_v61 = vadd.f32 %v10757_v9, %v13969_v45  ;;  %v5126_v32 = vsel %vm11786_vm7, %v5121_v44, %v5125_v13  ;;  %v9636_v9 = vunpack.c.l.bf16 %v9967_v28  ;;  %v14288_v38 = vpack.c.bf16 %v4918_v3, %v4917_v59  ;;  %v17602_v13 = vld [vmem:[#allocation61_spill] sm:$0xff]  ;;  %v14300_v44 = vld [vmem:[%s16827_s8 + $0x140] sm:$0xff]   ;;  %v17605_v3 = vld [vmem:[#allocation48_spill] sm:$0xff] }
 0x260   : > { %v3022_v11 = vpop.f32.mrf.mxu1  ;;  %v8956_v45 = vcombine.low %v5116_v34, %v5126_v32  ;;  %v4915_v63 = vmul.f32 %v9664_v37, %v13672_v49  ;;  %v4916_v25 = vmul.f32 %v9665_v12, %v13670_v4  ;;  %v4903_v29 = vmul.f32 %v9640_v41, %v17574_v42  ;;  %17603 = vst [vmem:[#allocation61_spill] sm:$0xff] %v14300_v44  ;;  %v17604_v59 = vld [vmem:[#allocation9_spill] sm:$0xff]  ;;  %v17611_v34 = vld [vmem:[#allocation51_spill] sm:$0xff]  ;;  %v476_v42 = vld [vmem:[#allocation2 + $0x9c] sm:$0x1] }
 0x261   : > { %v3221_v46 = vpop.f32.mrf.mxu0  ;;  %v14285_v21 = vadd.f32 %v10805_v39, %v3079_v61  ;;  %v3077_v1 = vadd.f32 %v3022_v11, %v13974_v54  ;;  %17601 = vst [vmem:[#allocation100_spill] sm:$0xff] %v14288_v38  ;;  %v4904_v39 = vmul.f32 %v9641_v16, %v17575_v30  ;;  %v9637_v54 = vunpack.c.h.bf16 %v9967_v28  ;;  %v17606_v61 = vld [vmem:[#allocation63_spill] sm:$0xff]  ;;  %v17607_v12 = vld [vmem:[#allocation49_spill] sm:$0xff]  ;;  %v17610_v28 = vld [vmem:[#allocation66_spill] sm:$0xff] }
 0x262   : > { %v10758_v55 = vpop.f32.mrf.mxu1  ;;  %10923 = vmatprep.mubr.bf16.mxu1 %v8956_v45  ;;  %v2013_v37 = vadd.f32 %v17605_v3, %v17604_v59  ;;  %v2029_v11 = vadd.f32 %v17607_v12, %v17606_v61  ;;  %v14313_v16 = vmul.f32 %v9660_v51, %v13705_v35  ;;  %v2045_v32 = vadd.f32 %v17611_v34, %v17610_v28  ;;  %v17614_v59 = vld [vmem:[#allocation11_spill] sm:$0xff]  ;;  %v17615_v3 = vld [vmem:[#allocation21_spill] sm:$0xff]  ;;  %v17616_v12 = vld [vmem:[#allocation44_spill] sm:$0xff] }
 0x263   : > { %v10806_v43 = vpop.f32.mrf.mxu0  ;;  %v14293_v48 = vadd.f32 %v3221_v46, %v3077_v1  ;;  %v3080_v18 = vadd.f32 %v10758_v55, %v17602_v13  ;;  %v14310_v46 = vpack.c.bf16 %v4906_v5, %v4905_v2  ;;  %v14320_v55 = vmul.f32 %v9661_v31, %v13703_v47  ;;  %v17617_v2 = vld [vmem:[#allocation73_spill] sm:$0xff]  ;;  %v17625_v47 = vld [vmem:[#allocation38_spill] sm:$0xff]  ;;  %v17635_v38 = vld [vmem:[#allocation40_spill] sm:$0xff] }
 0x264   : > { %v14306_v41 = vpop.f32.mrf.mxu1  ;;  %17609 = vst [vmem:[#allocation48_spill] sm:$0xff] %v14313_v16  ;;  %v14323_v13 = vmul.f32 %v9636_v9, %v13645_v20  ;;  %v2061_v61 = vadd.f32 %v17615_v3, %v17614_v59  ;;  %v2628_v5 = vadd.f32 %v17617_v2, %v17616_v12  ;;  %v14329_v35 = vpack.c.bf16 %v4916_v25, %v4915_v63  ;;  %v17622_v59 = vld [vmem:[#allocation43_spill] sm:$0xff]  ;;  %v17623_v12 = vld [vmem:[#allocation20_spill] sm:$0xff]  ;;  %v17661_v44 = vld [vmem:[#allocation29_spill] sm:$0xff] }
 0x265   : > { %v14308_v1 = vpop.f32.mrf.mxu0  ;;  %17608 = vst [vmem:[#allocation9_spill] sm:$0xff] %v14310_v46  ;;  %v14317_v45 = vadd.f32 %v10806_v43, %v3080_v18  ;;  %17612 = vst [vmem:[#allocation63_spill] sm:$0xff] %v14320_v55  ;;  %v17619_v18 = vld [vmem:[#allocation46_spill] sm:$0xff]  ;;  %v477_v31 = vsel %vm11714_vm3, 0, %v476_v42  ;;  %v14335_v9 = vpack.c.bf16 %v4904_v39, %v4903_v29  ;;  %v14338_v34 = vmul.f32 %v9637_v54, %v17583_v27  ;;  %v17624_v20 = vld [vmem:[#allocation35_spill] sm:$0xff] }
 0x266   : > { %17613 = vst [vmem:[#allocation49_spill] sm:$0xff] %v14323_v13  ;;  %v10761_v30 = vpop.f32.mrf.mxu1  ;;  %17618 = vst [vmem:[#allocation66_spill] sm:$0xff] %v14329_v35  ;;  %v2445_v3 = vadd.f32 %v17622_v59, %v2013_v37  ;;  %v2449_v2 = vadd.f32 %v17623_v12, %v2029_v11  ;;  %v2632_v25 = vadd.f32 %v17625_v47, %v17624_v20  ;;  %v17627_v42 = vld [vmem:[#allocation25_spill] sm:$0xff]  ;;  %v17628_v29 = vld [vmem:[#allocation19_spill] sm:$0xff] }
 0x267   : > { %v10809_v51 = vpop.f32.mrf.mxu0  ;;  %v3083_v28 = vadd.f32 %v10761_v30, %v17619_v18  ;;  %17620 = vst [vmem:[#allocation51_spill] sm:$0xff] %v14335_v9  ;;  %17621 = vst [vmem:[#allocation11_spill] sm:$0xff] %v14338_v34  ;;  %v17626_v18 = vld [vmem:[#allocation36_spill] sm:$0xff]  ;;  %v3055_v39 = vadd.f32 %v17628_v29, %v17627_v42  ;;  %v17630_v37 = vld [vmem:[#allocation53_spill] sm:$0xff] }
 0x268   : > { %v3038_v63 = vpop.f32.mrf.mxu1  ;;  %478 = vst [vmem:[#allocation2 + $0x9c] sm:$0x1] %v477_v31  ;;  %v2453_v43 = vadd.f32 %v17626_v18, %v2045_v32  ;;  %v17629_v54 = vld [vmem:[#allocation64_spill] sm:$0xff]  ;;  %v2457_v59 = vadd.f32 %v17630_v37, %v2061_v61  ;;  %v17632_v35 = vld [vmem:[#allocation39_spill] sm:$0xff]  ;;  %v17634_v31 = vld [vmem:[#allocation45_spill] sm:$0xff] }
 0x269   : > { %v3237_v46 = vpop.f32.mrf.mxu0  ;;  %v14348_v9 = vadd.f32 %v10809_v51, %v3083_v28  ;;  %v3081_v27 = vadd.f32 %v3038_v63, %v17629_v54  ;;  %v17631_v11 = vld [vmem:[#allocation28_spill] sm:$0xff]  ;;  %v17633_v20 = vld [vmem:[#allocation71_spill] sm:$0xff]  ;;  %v2640_v30 = vadd.f32 %v17635_v38, %v17634_v31  ;;  %v17638_v51 = vld [vmem:[#allocation18_spill] sm:$0xff] }
 0x26a   : > { %v2849_v12 = vadd.f32 %v17631_v11, %v2628_v5  ;;  %v2636_v47 = vadd.f32 %v17633_v20, %v17632_v35  ;;  %v10762_v34 = vpop.f32.mrf.mxu1  ;;  %v17636_v18 = vld [vmem:[#allocation8_spill] sm:$0xff]  ;;  %v17637_v42 = vld [vmem:[#allocation27_spill] sm:$0xff]  ;;  %v17640_v63 = vld [vmem:[#allocation62_spill] sm:$0xff] }
 0x26b   : > { %v10810_v32 = vpop.f32.mrf.mxu0  ;;  %v2644_v13 = vadd.f32 %v17636_v18, %v2445_v3  ;;  %v3053_v28 = vadd.f32 %v17638_v51, %v17637_v42  ;;  %v14360_v29 = vadd.f32 %v3237_v46, %v3081_v27  ;;  %v3084_v61 = vadd.f32 %v10762_v34, %v17640_v63  ;;  %v14366_v5 = vld [vmem:[%s16827_s8 + $0x110] sm:$0xff]   ;;  %v17644_v11 = vld [vmem:[#allocation59_spill] sm:$0xff]  ;;  %v17645_v31 = vld [vmem:[#allocation58_spill] sm:$0xff] }
 0x26c   : > { %17641 = vst [vmem:[#allocation44_spill] sm:$0xff] %v14366_v5  ;;  %v17642_v35 = vld [vmem:[#allocation65_spill] sm:$0xff]  ;;  %v2652_v20 = vadd.f32 %v17644_v11, %v2453_v43  ;;  %v2656_v3 = vadd.f32 %v17645_v31, %v2457_v59  ;;  %v14372_v18 = vpop.f32.mrf.mxu1  ;;  %v17646_v27 = vld [vmem:[#allocation68_spill] sm:$0xff]  ;;  %v17647_v34 = vld [vmem:[#allocation50_spill] sm:$0xff] }
 0x26d   : > { %17639 = vst [vmem:[#allocation21_spill] sm:$0xff] %v14360_v29  ;;  %v2853_v54 = vadd.f32 %v17642_v35, %v2632_v25  ;;  %v17643_v37 = vld [vmem:[#allocation41_spill] sm:$0xff]  ;;  %v14374_v42 = vpop.f32.mrf.mxu0  ;;  %v3254_v46 = vadd.f32 %v17646_v27, %v3055_v39  ;;  %v17648_v25 = vld [vmem:[#allocation23_spill] sm:$0xff]  ;;  %v14386_v43 = vadd.f32 %v10810_v32, %v3084_v61  ;;  %v17651_v59 = vld [vmem:[#allocation54_spill] sm:$0xff]  ;;  %v2865_v39 = vadd.f32 %v17655_v60, %v2644_v13 }
 0x26e   : > { %v2648_v38 = vadd.f32 %v17643_v37, %v2449_v2  ;;  %v3056_v51 = vadd.f32 %v17648_v25, %v17647_v34  ;;  %v17649_v2 = vld [vmem:[#allocation6_spill] sm:$0xff]  ;;  %v2857_v35 = vadd.f32 %v17651_v59, %v2636_v47  ;;  %v17652_v37 = vld [vmem:[#allocation69_spill] sm:$0xff]  ;;  %v17653_v31 = vld [vmem:[#allocation52_spill] sm:$0xff]  ;;  %v10829_v4 = vpop.f32.mrf.mxu1 }
 0x26f   : > { %v3054_v63 = vadd.f32 %v17649_v2, %v2849_v12  ;;  %17650 = vst [vmem:[#allocation73_spill] sm:$0xff] %v14386_v43  ;;  %v2861_v11 = vadd.f32 %v17652_v37, %v2640_v30  ;;  %v17654_v55 = vld [vmem:[#allocation74_spill] sm:$0xff]  ;;  %v10877_v49 = vpop.f32.mrf.mxu0  ;;  %v17657_v34 = vld [vmem:[#allocation77_spill] sm:$0xff]  ;;  %v3475_v12 = vadd.f32 %v10829_v4, %v3254_v46  ;;  %v14397_v32 = vld [vmem:[%s14380_s29] ss:$0 sm:$0xff] }
 0x270   : > { %v3059_v16 = vadd.f32 %v17654_v55, %v17653_v31  ;;  %v17656_v27 = vld [vmem:[#allocation26_spill] sm:$0xff]  ;;  %v3058_v25 = vadd.f32 %v17657_v34, %v2853_v54  ;;  %v17658_v61 = vld [vmem:[#allocation60_spill] sm:$0xff]  ;;  %v17660_v59 = vld [vmem:[#allocation67_spill] sm:$0xff]  ;;  %v3062_v55 = vadd.f32 %v14109_v50, %v2857_v35  ;;  %v3346_v31 = vpop.f32.mrf.mxu1  ;;  %v3255_v5 = vadd.f32 %v17661_v44, %v3056_v51 }
 0x271   : > { %v3252_v29 = vadd.f32 %v17656_v27, %v3053_v28  ;;  %v2869_v47 = vadd.f32 %v17658_v61, %v2648_v38  ;;  %v17659_v2 = vld [vmem:[#allocation24_spill] sm:$0xff]  ;;  %v2877_v37 = vadd.f32 %v17660_v59, %v2656_v3  ;;  %v3551_v43 = vpop.f32.mrf.mxu0  ;;  %v17662_v60 = vld [vmem:[#allocation7_spill] sm:$0xff]  ;;  %v3680_v28 = vadd.f32 %v10877_v49, %v3475_v12  ;;  %v17664_v44 = vld [vmem:[#allocation78_spill] sm:$0xff] }
 0x272   : > { %v2873_v30 = vadd.f32 %v17659_v2, %v2652_v20  ;;  %v3253_v13 = vadd.f32 %v17662_v60, %v3054_v63  ;;  %v17663_v54 = vld [vmem:[#allocation75_spill] sm:$0xff]  ;;  %v3066_v46 = vadd.f32 %v14164_v17, %v2861_v11  ;;  %v3070_v38 = vadd.f32 %v14214_v19, %v2865_v39  ;;  %v10830_v3 = vpop.f32.mrf.mxu1 }
 0x273   : > { %v3473_v27 = vadd.f32 %v3346_v31, %v3252_v29  ;;  %v3258_v4 = vadd.f32 %v17663_v54, %v3059_v16  ;;  %v3074_v20 = vadd.f32 %v14262_v62, %v2869_v47  ;;  %v14412_v50 = vld [vmem:[%s16822_s3] ss:$0 sm:$0xff]  ;;  %v10878_v35 = vpop.f32.mrf.mxu0  ;;  %v3257_v51 = vadd.f32 %v17664_v44, %v3058_v25  ;;  %v535_v16 = vld [vmem:[#allocation2 + $0xb0] sm:$0x1]  ;;  %v532_v34 = vld [vmem:[#allocation2 + $0xa4] sm:$0x1] }
 0x274   : > { %v3718_v49 = vmul.f32 %v14397_v32, %v3680_v28  ;;  %v3476_v63 = vadd.f32 %v10830_v3, %v3255_v5  ;;  %v14417_v17 = vadd.f32 %v14111_v33, %v3062_v55  ;;  %v3078_v19 = vadd.f32 %v14306_v41, %v2873_v30  ;;  %v3349_v62 = vpop.f32.mrf.mxu1  ;;  %v485_v25 = vld [vmem:[#allocation2 + $0xc0] sm:$0x1] }
 0x275   : > { %v3678_v29 = vadd.f32 %v3551_v43, %v3473_v27  ;;  %v3554_v11 = vpop.f32.mrf.mxu0  ;;  %v536_v39 = vsel %vm11726_vm4, 0, %v535_v16  ;;  %v533_v12 = vsel %vm11726_vm4, 0, %v532_v34  ;;  %v3474_v47 = vadd.f32 %v3349_v62, %v3253_v13 }
 0x276   : > { %v3756_v61 = vadd.f32 %v14412_v50, %v3718_v49  ;;  %v3681_v43 = vadd.f32 %v10878_v35, %v3476_v63  ;;  %537 = vst [vmem:[#allocation2 + $0xb0] sm:$0x1] %v536_v39  ;;  %534 = vst [vmem:[#allocation2 + $0xa4] sm:$0x1] %v533_v12  ;;  %v14427_v33 = vadd.f32 %v14166_v57, %v3066_v46  ;;  %v10833_v30 = vpop.f32.mrf.mxu1  ;;  %v486_v55 = vsel %vm11714_vm3, 0, %v485_v25  ;;  %v17665_v49 = vld [vmem:[#allocation76_spill] sm:$0xff] }
 0x277   : > { %v3716_v5 = vmul.f32 %v14397_v32, %v3678_v29  ;;  %v14430_v41 = vadd.f32 %v14216_v8, %v3070_v38  ;;  %v14433_v2 = vadd.f32 %v14264_v40, %v3074_v20  ;;  %v10881_v59 = vpop.f32.mrf.mxu0  ;;  %487 = vst [vmem:[#allocation2 + $0xc0] sm:$0x1] %v486_v55  ;;  %v14440_v57 = vadd.f32 %v14308_v1, %v3078_v19 }
 0x278   : > { %vm3788_vm12 = vcmp.ge.f32.partialorder %v3756_v61, 0.0  ;;  %v3820_v31 = vmul.f32 0.2, %v3756_v61  ;;  %v3719_v13 = vmul.f32 %v14397_v32, %v3681_v43  ;;  %v14443_v8 = vadd.f32 %v14372_v18, %v2877_v37  ;;  %v3362_v27 = vpop.f32.mrf.mxu1  ;;  %v17666_v37 = vld [vmem:[#allocation79_spill] sm:$0xff] }
 0x279   : > { %v3754_v60 = vadd.f32 %v14412_v50, %v3716_v5  ;;  %v3679_v40 = vadd.f32 %v3554_v11, %v3474_v47  ;;  %v3479_v28 = vadd.f32 %v10833_v30, %v3258_v4  ;;  %v3567_v54 = vpop.f32.mrf.mxu0  ;;  %v3477_v1 = vadd.f32 %v3362_v27, %v17665_v49 }
 0x27a   : > { %v3852_v46 = vsel %vm3788_vm12, %v3756_v61, %v3820_v31  ;;  %v3757_v20 = vadd.f32 %v14412_v50, %v3719_v13  ;;  %v10834_v29 = vpop.f32.mrf.mxu1 }
 0x27b   : > { %vm3786_vm13 = vcmp.ge.f32.partialorder %v3754_v60, 0.0  ;;  %v3818_v38 = vmul.f32 0.2, %v3754_v60  ;;  %v3884_v3 = vmul.f32 1.4142135, %v3852_v46  ;;  %v3717_v35 = vmul.f32 %v14397_v32, %v3679_v40  ;;  %v10882_v11 = vpop.f32.mrf.mxu0 }
 0x27c   : > { %v3684_v44 = vadd.f32 %v10881_v59, %v3479_v28  ;;  %vm3789_vm15 = vcmp.ge.f32.partialorder %v3757_v20, 0.0  ;;  %v3821_v18 = vmul.f32 0.2, %v3757_v20  ;;  %v3480_v4 = vadd.f32 %v10834_v29, %v17666_v37  ;;  %v3365_v39 = vpop.f32.mrf.mxu1  ;;  %v4335_v29 = vld [vmem:[#allocation2 + $0xc] sm:$0xf] }
 0x27d   : > { %v3850_v63 = vsel %vm3786_vm13, %v3754_v60, %v3818_v38  ;;  %v9143_v16 = vpack.c.bf16 %v3884_v3, %v3884_v3  ;;  %v3755_v19 = vadd.f32 %v14412_v50, %v3717_v35  ;;  %v3682_v25 = vadd.f32 %v3567_v54, %v3477_v1 }
 0x27e   : > { %v3882_v34 = vmul.f32 1.4142135, %v3850_v63  ;;  %v3722_v62 = vmul.f32 %v14397_v32, %v3684_v44  ;;  %v3853_v12 = vsel %vm3789_vm15, %v3757_v20, %v3821_v18  ;;  %v3685_v61 = vadd.f32 %v10882_v11, %v3480_v4  ;;  %v10837_v3 = vpop.f32.mrf.mxu1  ;;  %v3570_v4 = vpop.f32.mrf.mxu0 }
 0x27f   : > { %v3478_v5 = vadd.f32 %v3365_v39, %v3257_v51  ;;  %v4030_v43 = vshrl.u32 %v9143_v16, 16  ;;  %v4033_v47 = vshll.u32 %v9143_v16, 16  ;;  %v3885_v59 = vmul.f32 1.4142135, %v3853_v12  ;;  %v4342_v51 = vld [vmem:[#allocation2 + $0x18] sm:$0xf] }
 0x280   : > { %v9141_v30 = vpack.c.bf16 %v3882_v34, %v3882_v34  ;;  %vm3787_vm2 = vcmp.ge.f32.partialorder %v3755_v19, 0.0  ;;  %v3819_v55 = vmul.f32 0.2, %v3755_v19  ;;  %v3760_v31 = vadd.f32 %v14412_v50, %v3722_v62  ;;  %v4346_v39 = vld [vmem:[#allocation2 + $0x20] sm:$0x1] }
 0x281   : > { %v3720_v60 = vmul.f32 %v14397_v32, %v3682_v25  ;;  %v4032_v13 = vrot.slane %v4030_v43, 7  ;;  %v9144_v27 = vpack.c.bf16 %v3885_v59, %v3885_v59 }
 0x282   : > { %v4013_v40 = vshrl.u32 %v9141_v30, 16  ;;  %v4016_v28 = vshll.u32 %v9141_v30, 16  ;;  %v3851_v46 = vsel %vm3787_vm2, %v3755_v19, %v3819_v55  ;;  %vm3792_vm6 = vcmp.ge.f32.partialorder %v3760_v31, 0.0  ;;  %v3378_v30 = vpop.f32.mrf.mxu1 }
 0x283   : > { %v3824_v38 = vmul.f32 0.2, %v3760_v31  ;;  %v3758_v20 = vadd.f32 %v14412_v50, %v3720_v60  ;;  %v4035_v35 = vor.u32 %v4033_v47, %v4032_v13  ;;  %v4036_v44 = vrot.slane %v4032_v13, 4 }
 0x284   : > { %v4015_v49 = vrot.slane %v4013_v40, 7  ;;  %v4038_v1 = vshrl.u32 %v9144_v27, 16  ;;  %v4041_v63 = vshll.u32 %v9144_v27, 16  ;;  %v3883_v18 = vmul.f32 1.4142135, %v3851_v46 }
 0x285   : > { %v3856_v37 = vsel %vm3792_vm6, %v3760_v31, %v3824_v38  ;;  %vm3790_vm8 = vcmp.ge.f32.partialorder %v3758_v20, 0.0  ;;  %v4343_v16 = vsel %vm14455_vm5, %v4035_v35, %v4342_v51  ;;  %v3822_v43 = vmul.f32 0.2, %v3758_v20  ;;  %v10885_v51 = vpop.f32.mrf.mxu0 }
 0x286   : > { %v4018_v34 = vor.u32 %v4016_v28, %v4015_v49  ;;  %v4019_v19 = vrot.slane %v4015_v49, 4  ;;  %v4040_v62 = vrot.slane %v4038_v1, 7  ;;  %4344 = vst [vmem:[#allocation2 + $0x18] sm:$0xf] %v4343_v16  ;;  %v9142_v12 = vpack.c.bf16 %v3883_v18, %v3883_v18  ;;  %v4339_v18 = vld [vmem:[#allocation2 + $0x14] sm:$0x1] }
 0x287   : > { %v3888_v25 = vmul.f32 1.4142135, %v3856_v37  ;;  %v3723_v47 = vmul.f32 %v14397_v32, %v3685_v61  ;;  %v3683_v60 = vadd.f32 %v3570_v4, %v3478_v5  ;;  %v3854_v27 = vsel %vm3790_vm8, %v3758_v20, %v3822_v43  ;;  %v17671_v4 = vld [vmem:[#allocation83_spill] sm:$0xff] }
 0x288   : > { %v4336_v59 = vsel %vm14455_vm5, %v4018_v34, %v4335_v29  ;;  %v4043_v55 = vor.u32 %v4041_v63, %v4040_v62  ;;  %v4045_v31 = vrot.slane %v4040_v62, 4  ;;  %v4021_v13 = vshrl.u32 %v9142_v12, 16  ;;  %v10838_v63 = vpop.f32.mrf.mxu1 }
 0x289   : > { %4337 = vst [vmem:[#allocation2 + $0xc] sm:$0xf] %v4336_v59  ;;  %v4024_v40 = vshll.u32 %v9142_v12, 16  ;;  %v9147_v28 = vpack.c.bf16 %v3888_v25, %v3888_v25  ;;  %v3886_v38 = vmul.f32 1.4142135, %v3854_v27  ;;  %v3761_v35 = vadd.f32 %v14412_v50, %v3723_v47  ;;  %v3583_v12 = vpop.f32.mrf.mxu0 }
 0x28a   : > { %v4044_v46 = vsel %vm14464_vm1, %v4036_v44, %v4043_v55  ;;  %v4347_v61 = vsel %vm11714_vm3, %v4045_v31, %v4346_v39  ;;  %v4023_v49 = vrot.slane %v4021_v13, 7  ;;  %v3721_v29 = vmul.f32 %v14397_v32, %v3683_v60  ;;  %v4356_v25 = vld [vmem:[#allocation2 + $0x30] sm:$0xf] }
 0x28b   : > { %4345 = vst [vmem:[#allocation2 + $0x1c] sm:$0xf] %v4044_v46  ;;  %4348 = vst [vmem:[#allocation2 + $0x20] sm:$0x1] %v4347_v61  ;;  %v4064_v5 = vshrl.u32 %v9147_v28, 16  ;;  %v4067_v1 = vshll.u32 %v9147_v28, 16  ;;  %v9145_v20 = vpack.c.bf16 %v3886_v38, %v3886_v38  ;;  %v3483_v44 = vadd.f32 %v10837_v3, %v17671_v4 }
 0x28c   : > { %vm3793_vm0 = vcmp.ge.f32.partialorder %v3761_v35, 0.0  ;;  %v3825_v37 = vmul.f32 0.2, %v3761_v35  ;;  %v4026_v16 = vor.u32 %v4024_v40, %v4023_v49  ;;  %v4028_v34 = vrot.slane %v4023_v49, 4  ;;  %v3381_v40 = vpop.f32.mrf.mxu1  ;;  %v4349_v61 = vld [vmem:[#allocation2 + $0x24] sm:$0xf]  ;;  %v10886_v49 = vpop.f32.mrf.mxu0 }
 0x28d   : > { %v14479_v62 = vrot.slane %v4064_v5, 7  ;;  %v3759_v39 = vadd.f32 %v14412_v50, %v3721_v29  ;;  %v4047_v43 = vshrl.u32 %v9145_v20, 16  ;;  %v4050_v47 = vshll.u32 %v9145_v20, 16 }
 0x28e   : > { %v3857_v59 = vsel %vm3793_vm0, %v3761_v35, %v3825_v37  ;;  %v3688_v55 = vadd.f32 %v10885_v51, %v3483_v44  ;;  %v4027_v31 = vsel %vm14464_vm1, %v4019_v19, %v4026_v16  ;;  %v4340_v60 = vsel %vm11714_vm3, %v4028_v34, %v4339_v18  ;;  %v10841_v16 = vpop.f32.mrf.mxu1 }
 0x28f   : > { %v4069_v3 = vor.u32 %v4067_v1, %v14479_v62  ;;  %v4070_v13 = vrot.slane %v14479_v62, 4  ;;  %4338 = vst [vmem:[#allocation2 + $0x10] sm:$0xf] %v4027_v31  ;;  %4341 = vst [vmem:[#allocation2 + $0x14] sm:$0x1] %v4340_v60  ;;  %v14488_v28 = vrot.slane %v4047_v43, 7  ;;  %v3481_v38 = vadd.f32 %v3378_v30, %v14106_v6 }
 0x290   : > { %v3889_v27 = vmul.f32 1.4142135, %v3857_v59  ;;  %vm3791_vm9 = vcmp.ge.f32.partialorder %v3759_v39, 0.0  ;;  %v3823_v46 = vmul.f32 0.2, %v3759_v39  ;;  %v3726_v19 = vmul.f32 %v14397_v32, %v3688_v55 }
 0x291   : > { %v4357_v51 = vsel %vm14455_vm5, %v4069_v3, %v4356_v25  ;;  %v3484_v35 = vadd.f32 %v10838_v63, %v14117_v58  ;;  %v4052_v5 = vor.u32 %v4050_v47, %v14488_v28  ;;  %v4053_v1 = vrot.slane %v14488_v28, 4  ;;  %v4360_v55 = vld [vmem:[#allocation2 + $0x38] sm:$0x1] }
 0x292   : > { %4358 = vst [vmem:[#allocation2 + $0x30] sm:$0xf] %v4357_v51  ;;  %v9148_v29 = vpack.c.bf16 %v3889_v27, %v3889_v27  ;;  %v3855_v18 = vsel %vm3791_vm9, %v3759_v39, %v3823_v46  ;;  %v3764_v37 = vadd.f32 %v14412_v50, %v3726_v19  ;;  %v3686_v4 = vadd.f32 %v3583_v12, %v3481_v38  ;;  %v3586_v39 = vpop.f32.mrf.mxu0  ;;  %v3394_v51 = vpop.f32.mrf.mxu1 }
 0x293   : > { %v3887_v20 = vmul.f32 1.4142135, %v3855_v18  ;;  %v3689_v44 = vadd.f32 %v10886_v49, %v3484_v35  ;;  %v4350_v34 = vsel %vm14455_vm5, %v4052_v5, %v4349_v61  ;;  %v3482_v58 = vadd.f32 %v3381_v40, %v14417_v17  ;;  %v4353_v5 = vld [vmem:[#allocation2 + $0x2c] sm:$0x1] }
 0x294   : > { %v4072_v6 = vshrl.u32 %v9148_v29, 16  ;;  %v4075_v30 = vshll.u32 %v9148_v29, 16  ;;  %4351 = vst [vmem:[#allocation2 + $0x24] sm:$0xf] %v4350_v34  ;;  %vm3796_vm11 = vcmp.ge.f32.partialorder %v3764_v37, 0.0  ;;  %v3724_v25 = vmul.f32 %v14397_v32, %v3686_v4  ;;  %v10889_v35 = vpop.f32.mrf.mxu0 }
 0x295   : > { %v9146_v63 = vpack.c.bf16 %v3887_v20, %v3887_v20  ;;  %v3828_v62 = vmul.f32 0.2, %v3764_v37  ;;  %v3727_v47 = vmul.f32 %v14397_v32, %v3689_v44  ;;  %v3687_v12 = vadd.f32 %v3586_v39, %v3482_v58 }
 0x296   : > { %v4074_v43 = vrot.slane %v4072_v6, 7  ;;  %v3487_v59 = vadd.f32 %v10841_v16, %v14148_v15  ;;  %v3762_v28 = vadd.f32 %v14412_v50, %v3724_v25  ;;  %v3599_v25 = vpop.f32.mrf.mxu0 }
 0x297   : > { %v4055_v31 = vshrl.u32 %v9146_v63, 16  ;;  %v4058_v60 = vshll.u32 %v9146_v63, 16  ;;  %v3860_v3 = vsel %vm3796_vm11, %v3764_v37, %v3828_v62  ;;  %v3765_v46 = vadd.f32 %v14412_v50, %v3727_v47 }
 0x298   : > { %v4077_v17 = vor.u32 %v4075_v30, %v4074_v43  ;;  %v4079_v40 = vrot.slane %v4074_v43, 4  ;;  %v3892_v27 = vmul.f32 1.4142135, %v3860_v3  ;;  %vm3794_vm12 = vcmp.ge.f32.partialorder %v3762_v28, 0.0  ;;  %v10842_v30 = vpop.f32.mrf.mxu1  ;;  %v17672_v3 = vld [vmem:[#allocation93_spill] sm:$0xff] }
 0x299   : > { %v4057_v61 = vrot.slane %v4055_v31, 7  ;;  %v3826_v19 = vmul.f32 0.2, %v3762_v28  ;;  %v3725_v38 = vmul.f32 %v14397_v32, %v3687_v12  ;;  %vm3797_vm13 = vcmp.ge.f32.partialorder %v3765_v46, 0.0  ;;  %v4370_v12 = vld [vmem:[#allocation2 + $0x48] sm:$0xf] }
 0x29a   : > { %v4078_v15 = vsel %vm14464_vm1, %v4070_v13, %v4077_v17  ;;  %v4361_v49 = vsel %vm11714_vm3, %v4079_v40, %v4360_v55  ;;  %v9151_v29 = vpack.c.bf16 %v3892_v27, %v3892_v27  ;;  %v3829_v4 = vmul.f32 0.2, %v3765_v46 }
 0x29b   : > { %4359 = vst [vmem:[#allocation2 + $0x34] sm:$0xf] %v4078_v15  ;;  %4362 = vst [vmem:[#allocation2 + $0x38] sm:$0x1] %v4361_v49  ;;  %v4060_v18 = vor.u32 %v4058_v60, %v4057_v61  ;;  %v4062_v20 = vrot.slane %v4057_v61, 4  ;;  %v3858_v37 = vsel %vm3794_vm12, %v3762_v28, %v3826_v19  ;;  %v3763_v6 = vadd.f32 %v14412_v50, %v3725_v38  ;;  %v10890_v38 = vpop.f32.mrf.mxu0 }
 0x29c   : > { %v4098_v44 = vshrl.u32 %v9151_v29, 16  ;;  %v4101_v16 = vshll.u32 %v9151_v29, 16  ;;  %v3890_v34 = vmul.f32 1.4142135, %v3858_v37  ;;  %v3861_v63 = vsel %vm3797_vm13, %v3765_v46, %v3829_v4 }
 0x29d   : > { %v4061_v13 = vsel %vm14464_vm1, %v4053_v1, %v4060_v18  ;;  %v4354_v58 = vsel %vm11714_vm3, %v4062_v20, %v4353_v5  ;;  %v3692_v62 = vadd.f32 %v10889_v35, %v3487_v59  ;;  %v3893_v47 = vmul.f32 1.4142135, %v3861_v63  ;;  %v3397_v35 = vpop.f32.mrf.mxu1  ;;  %v4363_v5 = vld [vmem:[#allocation2 + $0x3c] sm:$0xf] }
 0x29e   : > { %4352 = vst [vmem:[#allocation2 + $0x28] sm:$0xf] %v4061_v13  ;;  %4355 = vst [vmem:[#allocation2 + $0x2c] sm:$0x1] %v4354_v58  ;;  %v4100_v39 = vrot.slane %v4098_v44, 7  ;;  %v9149_v43 = vpack.c.bf16 %v3890_v34, %v3890_v34  ;;  %vm3795_vm14 = vcmp.ge.f32.partialorder %v3763_v6, 0.0  ;;  %v3485_v60 = vadd.f32 %v3394_v51, %v14158_v53  ;;  %v3602_v58 = vpop.f32.mrf.mxu0 }
 0x29f   : > { %v3827_v55 = vmul.f32 0.2, %v3763_v6  ;;  %v3730_v31 = vmul.f32 %v14397_v32, %v3692_v62  ;;  %v3488_v1 = vadd.f32 %v10842_v30, %v17672_v3  ;;  %v9152_v59 = vpack.c.bf16 %v3893_v47, %v3893_v47  ;;  %v10845_v63 = vpop.f32.mrf.mxu1 }
 0x2a0   : > { %v4103_v28 = vor.u32 %v4101_v16, %v4100_v39  ;;  %v4104_v17 = vrot.slane %v4100_v39, 4  ;;  %v4081_v40 = vshrl.u32 %v9149_v43, 16  ;;  %v4084_v27 = vshll.u32 %v9149_v43, 16 }
 0x2a1   : > { %v3859_v46 = vsel %vm3795_vm14, %v3763_v6, %v3827_v55  ;;  %v3768_v61 = vadd.f32 %v14412_v50, %v3730_v31  ;;  %v3690_v19 = vadd.f32 %v3599_v25, %v3485_v60  ;;  %v3693_v53 = vadd.f32 %v10890_v38, %v3488_v1  ;;  %v4374_v25 = vld [vmem:[#allocation2 + $0x50] sm:$0x1] }
 0x2a2   : > { %v4371_v15 = vsel %vm14455_vm5, %v4103_v28, %v4370_v12  ;;  %v4083_v49 = vrot.slane %v4081_v40, 7  ;;  %v3891_v29 = vmul.f32 1.4142135, %v3859_v46  ;;  %v4106_v51 = vshrl.u32 %v9152_v59, 16 }
 0x2a3   : > { %4372 = vst [vmem:[#allocation2 + $0x48] sm:$0xf] %v4371_v15  ;;  %v4109_v18 = vshll.u32 %v9152_v59, 16  ;;  %vm3800_vm15 = vcmp.ge.f32.partialorder %v3768_v61, 0.0  ;;  %v3832_v20 = vmul.f32 0.2, %v3768_v61  ;;  %v3728_v16 = vmul.f32 %v14397_v32, %v3690_v19  ;;  %v3410_v19 = vpop.f32.mrf.mxu1 }
 0x2a4   : > { %v4086_v37 = vor.u32 %v4084_v27, %v4083_v49  ;;  %v4087_v4 = vrot.slane %v4083_v49, 4  ;;  %v9150_v44 = vpack.c.bf16 %v3891_v29, %v3891_v29  ;;  %v4108_v34 = vrot.slane %v4106_v51, 7  ;;  %v4367_v59 = vld [vmem:[#allocation2 + $0x44] sm:$0x1] }
 0x2a5   : > { %v3864_v6 = vsel %vm3800_vm15, %v3768_v61, %v3832_v20  ;;  %v3731_v30 = vmul.f32 %v14397_v32, %v3693_v53  ;;  %v3486_v13 = vadd.f32 %v3397_v35, %v14427_v33  ;;  %v3766_v31 = vadd.f32 %v14412_v50, %v3728_v16  ;;  %v10893_v61 = vpop.f32.mrf.mxu0  ;;  %v4384_v20 = vld [vmem:[#allocation2 + $0x60] sm:$0xf] }
 0x2a6   : > { %v4364_v62 = vsel %vm14455_vm5, %v4086_v37, %v4363_v5  ;;  %v4089_v39 = vshrl.u32 %v9150_v44, 16  ;;  %v4092_v43 = vshll.u32 %v9150_v44, 16  ;;  %v3896_v47 = vmul.f32 1.4142135, %v3864_v6 }
 0x2a7   : > { %4365 = vst [vmem:[#allocation2 + $0x3c] sm:$0xf] %v4364_v62  ;;  %v4111_v12 = vor.u32 %v4109_v18, %v4108_v34  ;;  %v4113_v55 = vrot.slane %v4108_v34, 4  ;;  %v3769_v60 = vadd.f32 %v14412_v50, %v3731_v30  ;;  %v3691_v28 = vadd.f32 %v3602_v58, %v3486_v13  ;;  %v3615_v6 = vpop.f32.mrf.mxu0  ;;  %v10846_v30 = vpop.f32.mrf.mxu1 }
 0x2a8   : > { %v4091_v3 = vrot.slane %v4089_v39, 7  ;;  %v9155_v1 = vpack.c.bf16 %v3896_v47, %v3896_v47  ;;  %v3491_v33 = vadd.f32 %v10845_v63, %v14197_v0  ;;  %vm3798_vm2 = vcmp.ge.f32.partialorder %v3766_v31, 0.0 }
 0x2a9   : > { %v4112_v40 = vsel %vm14464_vm1, %v4104_v17, %v4111_v12  ;;  %v4375_v27 = vsel %vm11714_vm3, %v4113_v55, %v4374_v25  ;;  %v3830_v46 = vmul.f32 0.2, %v3766_v31  ;;  %vm3801_vm6 = vcmp.ge.f32.partialorder %v3769_v60, 0.0 }
 0x2aa   : > { %4373 = vst [vmem:[#allocation2 + $0x4c] sm:$0xf] %v4112_v40  ;;  %4376 = vst [vmem:[#allocation2 + $0x50] sm:$0x1] %v4375_v27  ;;  %v4094_v38 = vor.u32 %v4092_v43, %v4091_v3  ;;  %v4096_v35 = vrot.slane %v4091_v3, 4  ;;  %v4132_v15 = vshrl.u32 %v9155_v1, 16  ;;  %v3729_v29 = vmul.f32 %v14397_v32, %v3691_v28  ;;  %v3413_v3 = vpop.f32.mrf.mxu1 }
 0x2ab   : > { %v4135_v49 = vshll.u32 %v9155_v1, 16  ;;  %v3862_v5 = vsel %vm3798_vm2, %v3766_v31, %v3830_v46  ;;  %v3833_v0 = vmul.f32 0.2, %v3769_v60  ;;  %v3696_v16 = vadd.f32 %v10893_v61, %v3491_v33  ;;  %v4377_v27 = vld [vmem:[#allocation2 + $0x54] sm:$0xf] }
 0x2ac   : > { %v4095_v17 = vsel %vm14464_vm1, %v4087_v4, %v4094_v38  ;;  %v4368_v53 = vsel %vm11714_vm3, %v4096_v35, %v4367_v59  ;;  %v4134_v51 = vrot.slane %v4132_v15, 7  ;;  %v3894_v18 = vmul.f32 1.4142135, %v3862_v5 }
 0x2ad   : > { %4366 = vst [vmem:[#allocation2 + $0x40] sm:$0xf] %v4095_v17  ;;  %4369 = vst [vmem:[#allocation2 + $0x44] sm:$0x1] %v4368_v53  ;;  %v3865_v37 = vsel %vm3801_vm6, %v3769_v60, %v3833_v0  ;;  %v3767_v44 = vadd.f32 %v14412_v50, %v3729_v29  ;;  %v3489_v34 = vadd.f32 %v3410_v19, %v14206_v24  ;;  %v10894_v60 = vpop.f32.mrf.mxu0  ;;  %v10849_v17 = vpop.f32.mrf.mxu1 }
 0x2ae   : > { %v14543_v13 = vadd.f32 %v14374_v42, %v14443_v8  ;;  %v4137_v4 = vor.u32 %v4135_v49, %v4134_v51  ;;  %v9153_v58 = vpack.c.bf16 %v3894_v18, %v3894_v18  ;;  %v3897_v63 = vmul.f32 1.4142135, %v3865_v37  ;;  %v4388_v49 = vld [vmem:[#allocation2 + $0x68] sm:$0x1] }
 0x2af   : > { %vm3799_vm8 = vcmp.ge.f32.partialorder %v3767_v44, 0.0  ;;  %v3831_v62 = vmul.f32 0.2, %v3767_v44  ;;  %v3734_v25 = vmul.f32 %v14397_v32, %v3696_v16  ;;  %v3694_v39 = vadd.f32 %v3615_v6, %v3489_v34  ;;  %v3618_v29 = vpop.f32.mrf.mxu0 }
 0x2b0   : > { %v4138_v43 = vrot.slane %v4134_v51, 4  ;;  %v4385_v47 = vsel %vm14455_vm5, %v4137_v4, %v4384_v20  ;;  %v4115_v12 = vshrl.u32 %v9153_v58, 16  ;;  %v9156_v24 = vpack.c.bf16 %v3897_v63, %v3897_v63  ;;  %v14560_v63 = vld [vmem:[#allocation2 + $0xc] sm:$0xf] }
 0x2b1   : > { %4386 = vst [vmem:[#allocation2 + $0x60] sm:$0xf] %v4385_v47  ;;  %v3863_v55 = vsel %vm3799_vm8, %v3767_v44, %v3831_v62  ;;  %v3772_v31 = vadd.f32 %v14412_v50, %v3734_v25  ;;  %v3732_v42 = vmul.f32 %v14397_v32, %v3694_v39  ;;  %v3492_v8 = vadd.f32 %v10846_v30, %v14224_v52  ;;  %v4381_v62 = vld [vmem:[#allocation2 + $0x5c] sm:$0x1] }
 0x2b2   : > { %v4117_v1 = vrot.slane %v4115_v12, 7  ;;  %v4118_v28 = vshll.u32 %v9153_v58, 16  ;;  %v4140_v33 = vshrl.u32 %v9156_v24, 16  ;;  %v3895_v40 = vmul.f32 1.4142135, %v3863_v55  ;;  %v10897_v12 = vpop.f32.mrf.mxu0 }
 0x2b3   : > { %vm3804_vm0 = vcmp.ge.f32.partialorder %v3772_v31, 0.0  ;;  %v3836_v59 = vmul.f32 0.2, %v3772_v31  ;;  %v3770_v46 = vadd.f32 %v14412_v50, %v3732_v42  ;;  %v3697_v61 = vadd.f32 %v10894_v60, %v3492_v8 }
 0x2b4   : > { %v4120_v19 = vor.u32 %v4118_v28, %v4117_v1  ;;  %v4142_v38 = vrot.slane %v4140_v33, 7  ;;  %v4143_v35 = vshll.u32 %v9156_v24, 16  ;;  %v9154_v15 = vpack.c.bf16 %v3895_v40, %v3895_v40  ;;  %v3426_v24 = vpop.f32.mrf.mxu1  ;;  %v14563_v33 = vld [vmem:[#allocation2 + $0x10] sm:$0xf] }
 0x2b5   : > { %v3868_v5 = vsel %vm3804_vm0, %v3772_v31, %v3836_v59  ;;  %vm3802_vm9 = vcmp.ge.f32.partialorder %v3770_v46, 0.0  ;;  %v3834_v52 = vmul.f32 0.2, %v3770_v46  ;;  %v3735_v0 = vmul.f32 %v14397_v32, %v3697_v61 }
 0x2b6   : > { %v4378_v53 = vsel %vm14455_vm5, %v4120_v19, %v4377_v27  ;;  %v4145_v51 = vor.u32 %v4143_v35, %v4142_v38  ;;  %v4147_v18 = vrot.slane %v4142_v38, 4  ;;  %v4123_v20 = vshrl.u32 %v9154_v15, 16  ;;  %v3631_v38 = vpop.f32.mrf.mxu0  ;;  %v10850_v35 = vpop.f32.mrf.mxu1 }
 0x2b7   : > { %4379 = vst [vmem:[#allocation2 + $0x54] sm:$0xf] %v4378_v53  ;;  %v4126_v37 = vshll.u32 %v9154_v15, 16  ;;  %v3900_v44 = vmul.f32 1.4142135, %v3868_v5  ;;  %v3866_v16 = vsel %vm3802_vm9, %v3770_v46, %v3834_v52  ;;  %v3773_v34 = vadd.f32 %v14412_v50, %v3735_v0 }
 0x2b8   : > { %v4146_v6 = vsel %vm14464_vm1, %v4138_v43, %v4145_v51  ;;  %v4389_v30 = vsel %vm11714_vm3, %v4147_v18, %v4388_v49  ;;  %v4125_v4 = vrot.slane %v4123_v20, 7  ;;  %v3898_v58 = vmul.f32 1.4142135, %v3866_v16  ;;  %v4398_v15 = vld [vmem:[#allocation2 + $0x78] sm:$0xf] }
 0x2b9   : > { %4387 = vst [vmem:[#allocation2 + $0x64] sm:$0xf] %v4146_v6  ;;  %4390 = vst [vmem:[#allocation2 + $0x68] sm:$0x1] %v4389_v30  ;;  %v9159_v25 = vpack.c.bf16 %v3900_v44, %v3900_v44  ;;  %vm3805_vm11 = vcmp.ge.f32.partialorder %v3773_v34, 0.0  ;;  %v3490_v47 = vadd.f32 %v3413_v3, %v14430_v41  ;;  %v4121_v55 = vrot.slane %v4117_v1, 4 }
 0x2ba   : > { %v3837_v39 = vmul.f32 0.2, %v3773_v34  ;;  %v4128_v31 = vor.u32 %v4126_v37, %v4125_v4  ;;  %v4130_v43 = vrot.slane %v4125_v4, 4  ;;  %v9157_v42 = vpack.c.bf16 %v3898_v58, %v3898_v58  ;;  %v4391_v51 = vld [vmem:[#allocation2 + $0x6c] sm:$0xf]  ;;  %v17673_v4 = vld [vmem:[#allocation42_spill] sm:$0xff] }
 0x2bb   : > { %v4166_v8 = vshrl.u32 %v9159_v25, 16  ;;  %v3695_v28 = vadd.f32 %v3618_v29, %v3490_v47  ;;  %v5128_v40 = vshrl.u32 %v14560_v63, 16  ;;  %v4169_v41 = vshll.u32 %v9159_v25, 16  ;;  %v14579_v29 = vld [vmem:[#allocation2 + $0x18] sm:$0xf]  ;;  %v3429_v25 = vpop.f32.mrf.mxu1 }
 0x2bc   : > { %v3869_v60 = vsel %vm3805_vm11, %v3773_v34, %v3837_v39  ;;  %v4129_v27 = vsel %vm14464_vm1, %v4121_v55, %v4128_v31  ;;  %v4382_v59 = vsel %vm11714_vm3, %v4130_v43, %v4381_v62  ;;  %v4149_v3 = vshrl.u32 %v9157_v42, 16  ;;  %v14586_v30 = vld [vmem:[#allocation2 + $0x1c] sm:$0xf]  ;;  %v10898_v62 = vpop.f32.mrf.mxu0  ;;  %v17674_v31 = vld [vmem:[#allocation80_spill] sm:$0xff] }
 0x2bd   : > { %4380 = vst [vmem:[#allocation2 + $0x58] sm:$0xf] %v4129_v27  ;;  %4383 = vst [vmem:[#allocation2 + $0x5c] sm:$0x1] %v4382_v59  ;;  %v4168_v1 = vrot.slane %v4166_v8, 7  ;;  %v4152_v46 = vshll.u32 %v9157_v42, 16  ;;  %v3733_v19 = vmul.f32 %v14397_v32, %v3695_v28  ;;  %v14576_v52 = vcombine.low %v14560_v63, %v14563_v33 }
 0x2be   : > { %v3901_v61 = vmul.f32 1.4142135, %v3869_v60  ;;  %v14571_v49 = vrot.slane %v4149_v3, 7  ;;  %v5131_v5 = vshll.u32 %v14560_v63, 16  ;;  %v3495_v0 = vadd.f32 %v10849_v17, %v14247_v22  ;;  %v4402_v28 = vld [vmem:[#allocation2 + $0x80] sm:$0x1] }
 0x2bf   : > { %v4171_v53 = vor.u32 %v4169_v41, %v4168_v1  ;;  %v3771_v20 = vadd.f32 %v14412_v50, %v3733_v19  ;;  %v5141_v37 = vshrl.u32 %v14563_v33, 16  ;;  %v4172_v44 = vrot.slane %v4168_v1, 4  ;;  %10972 = vmatmul.mubr.bf16.vlgmr.msra.gmra.mxu0 %v14576_v52 }
 0x2c0   : > { %v9160_v18 = vpack.c.bf16 %v3901_v61, %v3901_v61  ;;  %v4154_v16 = vor.u32 %v4152_v46, %v14571_v49  ;;  %v4155_v34 = vrot.slane %v14571_v49, 4  ;;  %v3700_v6 = vadd.f32 %v10897_v12, %v3495_v0  ;;  %11052 = vmatpush3.bf16.msra.mxu0 %v17673_v4  ;;  %v17676_v0 = vld [vmem:[#allocation81_spill] sm:$0xff] }
 0x2c1   : > { %v4399_v22 = vsel %vm14455_vm5, %v4171_v53, %v4398_v15  ;;  %vm3803_vm12 = vcmp.ge.f32.partialorder %v3771_v20, 0.0  ;;  %v5152_v58 = vshrl.u32 %v14579_v29, 16  ;;  %v3835_v55 = vmul.f32 0.2, %v3771_v20  ;;  %11053 = vmatprep.subr.bf16.mxu0 %v17674_v31  ;;  %v3634_v15 = vpop.f32.mrf.mxu0 }
 0x2c2   : > { %v4174_v17 = vshrl.u32 %v9160_v18, 16  ;;  %4400 = vst [vmem:[#allocation2 + $0x78] sm:$0xf] %v4399_v22  ;;  %v4392_v39 = vsel %vm14455_vm5, %v4154_v16, %v4391_v51  ;;  %v4177_v47 = vshll.u32 %v9160_v18, 16  ;;  %v3738_v12 = vmul.f32 %v14397_v32, %v3700_v6  ;;  %v14609_v51 = vld [vmem:[#allocation2 + $0x24] sm:$0xf] }
 0x2c3   : > { %4393 = vst [vmem:[#allocation2 + $0x6c] sm:$0xf] %v4392_v39  ;;  %v5155_v42 = vshll.u32 %v14579_v29, 16  ;;  %v14599_v8 = vcombine.low %v14579_v29, %v14586_v30  ;;  %v3493_v60 = vadd.f32 %v3426_v24, %v14254_v14  ;;  %v3867_v27 = vsel %vm3803_vm12, %v3771_v20, %v3835_v55 }
 0x2c4   : > { %v4176_v43 = vrot.slane %v4174_v17, 7  ;;  %v3776_v59 = vadd.f32 %v14412_v50, %v3738_v12  ;;  %v3496_v41 = vadd.f32 %v10850_v35, %v14269_v36  ;;  %v3494_v3 = vadd.f32 %v3429_v25, %v14433_v2  ;;  %11054 = vmatpush3.bf16.msra.mxu0 %v17674_v31  ;;  %v4395_v25 = vld [vmem:[#allocation2 + $0x74] sm:$0x1]  ;;  %v17677_v12 = vld [vmem:[#allocation82_spill] sm:$0xff] }
 0x2c5   : > { %17675 = vst [vmem:[#allocation46_spill] sm:$0xff] %v14599_v8  ;;  %v3899_v61 = vmul.f32 1.4142135, %v3867_v27  ;;  %10975 = vmatprep.mubr.bf16.mxu0 %v14599_v8  ;;  %v3698_v19 = vadd.f32 %v3631_v38, %v3493_v60  ;;  %11055 = vmatprep.subr.bf16.mxu0 %v17676_v0  ;;  %v5165_v20 = vshrl.u32 %v14586_v30, 16  ;;  %v5179_v55 = vshll.u32 %v14609_v51, 16 }
 0x2c6   : > { %v4179_v1 = vor.u32 %v4177_v47, %v4176_v43  ;;  %v4181_v46 = vrot.slane %v4176_v43, 4  ;;  %vm3808_vm13 = vcmp.ge.f32.partialorder %v3776_v59, 0.0  ;;  %v3840_v14 = vmul.f32 0.2, %v3776_v59  ;;  %v14626_v60 = vld [vmem:[#allocation2 + $0x28] sm:$0xf] }
 0x2c7   : > { %v3701_v24 = vadd.f32 %v10898_v62, %v3496_v41  ;;  %v3699_v53 = vadd.f32 %v3634_v15, %v3494_v3  ;;  %v9158_v35 = vpack.c.bf16 %v3899_v61, %v3899_v61  ;;  %v3736_v38 = vmul.f32 %v14397_v32, %v3698_v19 }
 0x2c8   : > { %v4180_v36 = vsel %vm14464_vm1, %v4172_v44, %v4179_v1  ;;  %v4403_v2 = vsel %vm11714_vm3, %v4181_v46, %v4402_v28  ;;  %v3872_v18 = vsel %vm3808_vm13, %v3776_v59, %v3840_v14  ;;  %v5176_v44 = vshrl.u32 %v14609_v51, 16  ;;  %11056 = vmatpush3.bf16.msra.mxu0 %v17676_v0  ;;  %v10853_v46 = vpop.f32.mrf.mxu1  ;;  %v17679_v14 = vld [vmem:[#allocation85_spill] sm:$0xff] }
 0x2c9   : > { %4401 = vst [vmem:[#allocation2 + $0x7c] sm:$0xf] %v4180_v36  ;;  %4404 = vst [vmem:[#allocation2 + $0x80] sm:$0x1] %v4403_v2  ;;  %v3739_v16 = vmul.f32 %v14397_v32, %v3701_v24  ;;  %v3737_v6 = vmul.f32 %v14397_v32, %v3699_v53  ;;  %v4157_v22 = vshrl.u32 %v9158_v35, 16  ;;  %v3774_v4 = vadd.f32 %v14412_v50, %v3736_v38 }
 0x2ca   : > { %v3904_v17 = vmul.f32 1.4142135, %v3872_v18  ;;  %v4160_v62 = vshll.u32 %v9158_v35, 16  ;;  %11057 = vmatprep.subr.bf16.mxu0 %v17677_v12  ;;  %v14631_v15 = vcombine.low %v14609_v51, %v14626_v60  ;;  %v4412_v36 = vld [vmem:[#allocation2 + $0x90] sm:$0xf]  ;;  %v3499_v18 = vadd.f32 %v10853_v46, %v14285_v21  ;;  %v3442_v46 = vpop.f32.mrf.mxu1 }
 0x2cb   : > { %v3777_v39 = vadd.f32 %v14412_v50, %v3739_v16  ;;  %v3775_v47 = vadd.f32 %v14412_v50, %v3737_v6  ;;  %v4159_v31 = vrot.slane %v4157_v22, 7  ;;  %vm3806_vm14 = vcmp.ge.f32.partialorder %v3774_v4, 0.0  ;;  %v10901_v22 = vpop.f32.mrf.mxu0  ;;  %v14916_v11 = vld [vmem:[#allocation2 + $0x78] sm:$0xf] }
 0x2cc   : > { %v9163_v32 = vpack.c.bf16 %v3904_v17, %v3904_v17  ;;  %v3838_v43 = vmul.f32 0.2, %v3774_v4  ;;  %11058 = vmatpush3.bf16.msra.mxu0 %v17677_v12  ;;  %17678 = vst [vmem:[#allocation43_spill] sm:$0xff] %v14631_v15  ;;  %v5130_v49 = vrot.slane %v5128_v40, 4  ;;  %v5189_v6 = vshrl.u32 %v14626_v60, 16 }
 0x2cd   : > { %vm3809_vm15 = vcmp.ge.f32.partialorder %v3777_v39, 0.0  ;;  %v3841_v28 = vmul.f32 0.2, %v3777_v39  ;;  %vm3807_vm2 = vcmp.ge.f32.partialorder %v3775_v47, 0.0  ;;  %v3839_v27 = vmul.f32 0.2, %v3775_v47  ;;  %11059 = vmatprep.subr.bf16.mxu0 %v17679_v14  ;;  %10976 = vmatmul.mubr.bf16.gmra.mxu0 %v14631_v15 }
 0x2ce   : > { %v4162_v59 = vor.u32 %v4160_v62, %v4159_v31  ;;  %v4164_v41 = vrot.slane %v4159_v31, 4  ;;  %v4200_v3 = vshrl.u32 %v9163_v32, 16  ;;  %v4203_v1 = vshll.u32 %v9163_v32, 16 }
 0x2cf   : > { %v3870_v50 = vsel %vm3806_vm14, %v3774_v4, %v3838_v43  ;;  %v3873_v61 = vsel %vm3809_vm15, %v3777_v39, %v3841_v28  ;;  %v3871_v19 = vsel %vm3807_vm2, %v3775_v47, %v3839_v27  ;;  %v5133_v17 = vrot.slane %v5131_v5, 5  ;;  %v17680_v39 = vld [vmem:[#allocation87_spill] sm:$0xff]  ;;  %v5054_v28 = vld [vmem:[#allocation2 + $0x14] sm:$0x1] }
 0x2d0   : > { %v4163_v24 = vsel %vm14464_vm1, %v4155_v34, %v4162_v59  ;;  %v4396_v0 = vsel %vm11714_vm3, %v4164_v41, %v4395_v25  ;;  %v14640_v53 = vrot.slane %v4200_v3, 7  ;;  %v3902_v2 = vmul.f32 1.4142135, %v3870_v50  ;;  %11060 = vmatpush3.bf16.msra.mxu0 %v17679_v14  ;;  %v14657_v41 = vld [vmem:[%s14380_s29] ss:$0 sm:$0xff]  ;;  %s9205_s29 = sshll.u32 %s11681_s17, 11 }
 0x2d1   : > { %4394 = vst [vmem:[#allocation2 + $0x70] sm:$0xf] %v4163_v24  ;;  %4397 = vst [vmem:[#allocation2 + $0x74] sm:$0x1] %v4396_v0  ;;  %v3905_v35 = vmul.f32 1.4142135, %v3873_v61  ;;  %v3704_v25 = vadd.f32 %v10901_v22, %v3499_v18  ;;  %11061 = vmatprep.subr.bf16.mxu0 %v17680_v39  ;;  %v5134_v31 = vor.u32 %v5133_v17, %v5130_v49  ;;  %s16772_s12 = scalar_lea.hbm %s16829_s10, %s9205_s29 }
 0x2d2   : > { %v3903_v38 = vmul.f32 1.4142135, %v3871_v19  ;;  %v4205_v34 = vor.u32 %v4203_v1, %v14640_v53  ;;  %v9161_v16 = vpack.c.bf16 %v3902_v2, %v3902_v2  ;;  %v5137_v21 = vshll.u32 %v14563_v33, 16  ;;  %v4405_v50 = vld [vmem:[#allocation2 + $0x84] sm:$0xf]  ;;  %v17681_v0 = vld [vmem:[#allocation89_spill] sm:$0xff] }
 0x2d3   : > { %v9164_v4 = vpack.c.bf16 %v3905_v35, %v3905_v35  ;;  %v4206_v40 = vrot.slane %v14640_v53, 4  ;;  %v3742_v3 = vmul.f32 %v14657_v41, %v3704_v25  ;;  %v5135_v14 = vrot.slane %v5134_v31, 4  ;;  %v4416_v2 = vld [vmem:[#allocation2 + $0x98] sm:$0x1]  ;;  %v4409_v35 = vld [vmem:[#allocation2 + $0x8c] sm:$0x1] }
 0x2d4   : > { %v9162_v62 = vpack.c.bf16 %v3903_v38, %v3903_v38  ;;  %v4413_v47 = vsel %vm14455_vm5, %v4205_v34, %v4412_v36  ;;  %v4183_v12 = vshrl.u32 %v9161_v16, 16  ;;  %v4186_v63 = vshll.u32 %v9161_v16, 16  ;;  %11062 = vmatpush3.bf16.msra.mxu0 %v17680_v39  ;;  %v14667_v38 = vld [vmem:[%s16822_s3] ss:$0 sm:$0xff]  ;;  %v14670_v33 = vld [vmem:[#allocation2 + $0x30] sm:$0xf]  ;;  %v10854_v39 = vpop.f32.mrf.mxu1 }
 0x2d5   : > { %4414 = vst [vmem:[#allocation2 + $0x90] sm:$0xf] %v4413_v47  ;;  %v4208_v5 = vshrl.u32 %v9164_v4, 16  ;;  %v4211_v32 = vshll.u32 %v9164_v4, 16  ;;  %v5139_v1 = vrot.slane %v5137_v21, 5  ;;  %v5143_v24 = vrot.slane %v5141_v37, 4  ;;  %11063 = vmatprep.subr.bf16.mxu0 %v17681_v0  ;;  %v3647_v21 = vpop.f32.mrf.mxu0 }
 0x2d6   : > { %v4191_v43 = vshrl.u32 %v9162_v62, 16  ;;  %v4185_v27 = vrot.slane %v4183_v12, 7  ;;  %v4194_v59 = vshll.u32 %v9162_v62, 16  ;;  %v3780_v18 = vadd.f32 %v14667_v38, %v3742_v3  ;;  %v14674_v25 = vld [vmem:[#allocation2 + $0x34] sm:$0xf]  ;;  %s11539_s17 = scalar_lea.vmem %s16774_s30, 2048 }
 0x2d7   : > { %v4210_v61 = vrot.slane %v4208_v5, 7  ;;  %v5147_v49 = vshll.u32 %v5054_v28, 16  ;;  %v5144_v62 = vor.u32 %v5143_v24, %v5139_v1  ;;  %v17682_v5 = vld [vmem:[#allocation91_spill] sm:$0xff]  ;;  %v5200_v3 = vshrl.u32 %v14670_v33, 16  ;;  %p11540_p11 = scmp.ne.s32.totalorder %s16774_s30, %s11539_s17  ;;  %p11547_p1 = scmp.lt.s32.totalorder %s11545_s26, %s11539_s17 }
 0x2d8   : > { %v4193_v19 = vrot.slane %v4191_v43, 7  ;;  %v4188_v53 = vor.u32 %v4186_v63, %v4185_v27  ;;  %v4189_v36 = vrot.slane %v4185_v27, 4  ;;  %vm3812_vm6 = vcmp.ge.f32.partialorder %v3780_v18, 0.0  ;;  %11064 = vmatpush3.bf16.msra.mxu0 %v17681_v0  ;;  %v5057_v27 = vld [vmem:[#allocation2 + $0x20] sm:$0x1]  ;;  %v10902_v0 = vpop.f32.mrf.mxu0 }
 0x2d9   : > { %v4213_v34 = vor.u32 %v4211_v32, %v4210_v61  ;;  %v4215_v16 = vrot.slane %v4210_v61, 4  ;;  %v3844_v4 = vmul.f32 0.2, %v3780_v18  ;;  %11065 = vmatprep.subr.bf16.mxu0 %v17682_v5  ;;  %v5145_v43 = vrot.slane %v5144_v62, 4  ;;  %p11541_p12 = pnand %p11540_p11, %p11698_p5  ;;  %p11548_p2 = por %p11547_p1, %p11546_p0 }
 0x2da   : > { %v4196_v22 = vor.u32 %v4194_v59, %v4193_v19  ;;  %v4198_v17 = vrot.slane %v4193_v19, 4  ;;  %v4406_v37 = vsel %vm14455_vm5, %v4188_v53, %v4405_v50  ;;  %v5149_v28 = vrot.slane %v5147_v49, 5  ;;  %v3445_v53 = vpop.f32.mrf.mxu1 }
 0x2db   : > { %4407 = vst [vmem:[#allocation2 + $0x84] sm:$0xf] %v4406_v37  ;;  %v4214_v47 = vsel %vm14464_vm1, %v4206_v40, %v4213_v34  ;;  %v4417_v12 = vsel %vm11714_vm3, %v4215_v16, %v4416_v2  ;;  %v3876_v32 = vsel %vm3812_vm6, %v3780_v18, %v3844_v4  ;;  %v5140_v40 = vsel %vm11786_vm7, %v5135_v14, %v5139_v1  ;;  %v14711_v34 = vld [vmem:[#allocation2 + $0x3c] sm:$0xf]  ;;  %p11542_p13 = pneg %p11541_p12 }
 0x2dc   : > { %v4197_v31 = vsel %vm14464_vm1, %v4189_v36, %v4196_v22  ;;  %v4410_v63 = vsel %vm11714_vm3, %v4198_v17, %v4409_v35  ;;  %4415 = vst [vmem:[#allocation2 + $0x94] sm:$0xf] %v4214_v47  ;;  %4418 = vst [vmem:[#allocation2 + $0x98] sm:$0x1] %v4417_v12  ;;  %v3908_v59 = vmul.f32 1.4142135, %v3876_v32  ;;  %v14693_v61 = vcombine.low %v14670_v33, %v14674_v25  ;;  %v3650_v12 = vpop.f32.mrf.mxu0 }
 0x2dd   : > { %4408 = vst [vmem:[#allocation2 + $0x88] sm:$0xf] %v4197_v31  ;;  %4411 = vst [vmem:[#allocation2 + $0x8c] sm:$0x1] %v4410_v63  ;;  %v5203_v50 = vshll.u32 %v14670_v33, 16  ;;  %v5150_v19 = vsel %vm11786_vm7, %v5145_v43, %v5149_v28  ;;  %v5154_v24 = vrot.slane %v5152_v58, 4  ;;  %11066 = vmatpush3.bf16.msra.mxu0 %v17682_v5  ;;  %v3500_v49 = vadd.f32 %v10854_v39, %v14317_v45  ;;  %v10857_v43 = vpop.f32.mrf.mxu1  ;;  %p11549_p3 = pnand %p11548_p2, %p11542_p13 }
 0x2de   : > { %17683 = vst [vmem:[#allocation20_spill] sm:$0xff] %v14693_v61  ;;  %v5157_v1 = vrot.slane %v5155_v42, 5  ;;  %v5161_v14 = vshll.u32 %v14586_v30, 16  ;;  %v9167_v36 = vpack.c.bf16 %v3908_v59, %v3908_v59  ;;  %v14703_v2 = vcombine.low %v5140_v40, %v5150_v19  ;;  %10979 = vmatprep.mubr.bf16.mxu0 %v14693_v61  ;;  %11147 = vmatprep.subr.bf16.mxu0 %v14202_v56  ;;  %v14720_v31 = vld [vmem:[#allocation2 + $0x40] sm:$0xf] }
 0x2df   : > { %v5167_v35 = vrot.slane %v5165_v20, 4  ;;  %v5171_v18 = vshll.u32 %v5057_v27, 16  ;;  %v3497_v42 = vadd.f32 %v3442_v46, %v14293_v48  ;;  %v5213_v17 = vshrl.u32 %v14674_v25, 16  ;;  %v17685_v20 = vld [vmem:[#allocation17_spill] sm:$0xff]  ;;  %v17686_v46 = vld [vmem:[#allocation84_spill] sm:$0xff] }
 0x2e0   : > { %17684 = vst [vmem:[#allocation35_spill] sm:$0xff] %v14703_v2  ;;  %v5158_v58 = vor.u32 %v5157_v1, %v5154_v24  ;;  %v5163_v29 = vrot.slane %v5161_v14, 5  ;;  %v4234_v16 = vshrl.u32 %v9167_v36, 16  ;;  %v4237_v22 = vshll.u32 %v9167_v36, 16  ;;  %10924 = vmatmul.mubr.bf16.vlgmr.msra.gmra.mxu1 %v14703_v2  ;;  %v4426_v5 = vld [vmem:[#allocation2 + $0xa8] sm:$0xf] }
 0x2e1   : > { %v3498_v30 = vadd.f32 %v3445_v53, %v14440_v57  ;;  %11004 = vmatpush3.bf16.msra.mxu1 %v17685_v20  ;;  %v3702_v62 = vadd.f32 %v3647_v21, %v3497_v42  ;;  %v3705_v47 = vadd.f32 %v10902_v0, %v3500_v49  ;;  %v5173_v45 = vrot.slane %v5171_v18, 5  ;;  %v10905_v49 = vpop.f32.mrf.mxu0 }
 0x2e2   : > { %v5159_v37 = vrot.slane %v5158_v58, 4  ;;  %v5168_v4 = vor.u32 %v5167_v35, %v5163_v29  ;;  %v14717_v48 = vrot.slane %v4234_v16, 7  ;;  %11005 = vmatprep.subr.bf16.mxu1 %v17686_v46  ;;  %v5224_v63 = vshrl.u32 %v14711_v34, 16  ;;  %v17689_v35 = vld [vmem:[#allocation86_spill] sm:$0xff] }
 0x2e3   : > { %v3703_v39 = vadd.f32 %v3650_v12, %v3498_v30  ;;  %v3740_v57 = vmul.f32 %v14657_v41, %v3702_v62  ;;  %v3743_v40 = vmul.f32 %v14657_v41, %v3705_v47  ;;  %v5227_v21 = vshll.u32 %v14711_v34, 16 }
 0x2e4   : > { %v5169_v32 = vrot.slane %v5168_v4, 4  ;;  %v4239_v28 = vor.u32 %v4237_v22, %v14717_v48  ;;  %v4240_v27 = vrot.slane %v14717_v48, 4  ;;  %v5164_v59 = vsel %vm11786_vm7, %v5159_v37, %v5163_v29 }
 0x2e5   : > { %v3741_v19 = vmul.f32 %v14657_v41, %v3703_v39  ;;  %v3778_v1 = vadd.f32 %v14667_v38, %v3740_v57  ;;  %v3781_v14 = vadd.f32 %v14667_v38, %v3743_v40  ;;  %11006 = vmatpush3.bf16.msra.mxu1 %v17686_v46  ;;  %v14738_v0 = vcombine.low %v14711_v34, %v14720_v31  ;;  %v14756_v46 = vld [vmem:[#allocation2 + $0x2c] sm:$0x1] }
 0x2e6   : > { %v5174_v24 = vsel %vm11786_vm7, %v5169_v32, %v5173_v45  ;;  %v4427_v53 = vsel %vm14455_vm5, %v4239_v28, %v4426_v5  ;;  %11007 = vmatprep.subr.bf16.mxu1 %v17689_v35  ;;  %v3503_v58 = vadd.f32 %v10857_v43, %v14348_v9  ;;  %v5178_v30 = vrot.slane %v5176_v44, 4  ;;  %v17690_v39 = vld [vmem:[#allocation88_spill] sm:$0xff] }
 0x2e7   : > { %17687 = vst [vmem:[#allocation38_spill] sm:$0xff] %v14738_v0  ;;  %v14742_v36 = vcombine.low %v5164_v59, %v5174_v24  ;;  %v3779_v18 = vadd.f32 %v14667_v38, %v3741_v19  ;;  %4428 = vst [vmem:[#allocation2 + $0xa8] sm:$0xf] %v4427_v53  ;;  %vm3810_vm8 = vcmp.ge.f32.partialorder %v3778_v1, 0.0  ;;  %v3842_v29 = vmul.f32 0.2, %v3778_v1  ;;  %10980 = vmatmul.mubr.bf16.gmra.mxu0 %v14738_v0 }
 0x2e8   : > { %vm3813_vm0 = vcmp.ge.f32.partialorder %v3781_v14, 0.0  ;;  %v3845_v42 = vmul.f32 0.2, %v3781_v14  ;;  %v3708_v22 = vadd.f32 %v10905_v49, %v3503_v58  ;;  %v5181_v9 = vrot.slane %v5179_v55, 5  ;;  %v14761_v55 = vld [vmem:[#allocation2 + $0x48] sm:$0xf] }
 0x2e9   : > { %17688 = vst [vmem:[#allocation36_spill] sm:$0xff] %v14742_v36  ;;  %10927 = vmatprep.mubr.bf16.mxu1 %v14742_v36  ;;  %vm3811_vm9 = vcmp.ge.f32.partialorder %v3779_v18, 0.0  ;;  %v3843_v16 = vmul.f32 0.2, %v3779_v18  ;;  %v3874_v20 = vsel %vm3810_vm8, %v3778_v1, %v3842_v29  ;;  %v5185_v4 = vshll.u32 %v14626_v60, 16  ;;  %11008 = vmatpush3.bf16.msra.mxu1 %v17689_v35 }
 0x2ea   : > { %v3877_v37 = vsel %vm3813_vm0, %v3781_v14, %v3845_v42  ;;  %v3906_v62 = vmul.f32 1.4142135, %v3874_v20  ;;  %v3746_v45 = vmul.f32 %v14657_v41, %v3708_v22  ;;  %11009 = vmatprep.subr.bf16.mxu1 %v17690_v39  ;;  %v5182_v44 = vor.u32 %v5181_v9, %v5178_v30  ;;  %v3458_v42 = vpop.f32.mrf.mxu1  ;;  %v4419_v20 = vld [vmem:[#allocation2 + $0x9c] sm:$0xf] }
 0x2eb   : > { %v3909_v47 = vmul.f32 1.4142135, %v3877_v37  ;;  %v3875_v12 = vsel %vm3811_vm9, %v3779_v18, %v3843_v16  ;;  %v5187_v32 = vrot.slane %v5185_v4, 5  ;;  %v5191_v51 = vrot.slane %v5189_v6, 4  ;;  %v17691_v6 = vld [vmem:[#allocation90_spill] sm:$0xff] }
 0x2ec   : > { %v3907_v5 = vmul.f32 1.4142135, %v3875_v12  ;;  %v9165_v57 = vpack.c.bf16 %v3906_v62, %v3906_v62  ;;  %v5237_v43 = vshrl.u32 %v14720_v31, 16  ;;  %v3784_v28 = vadd.f32 %v14667_v38, %v3746_v45  ;;  %v4430_v37 = vld [vmem:[#allocation2 + $0xb0] sm:$0x1] }
 0x2ed   : > { %v9168_v40 = vpack.c.bf16 %v3909_v47, %v3909_v47  ;;  %v5183_v19 = vrot.slane %v5182_v44, 4  ;;  %v5192_v24 = vor.u32 %v5191_v51, %v5187_v32  ;;  %v5195_v1 = vshll.u32 %v14756_v46, 16  ;;  %11010 = vmatpush3.bf16.msra.mxu1 %v17690_v39  ;;  %v4423_v44 = vld [vmem:[#allocation2 + $0xa4] sm:$0x1]  ;;  %v17692_v51 = vld [vmem:[#allocation92_spill] sm:$0xff] }
 0x2ee   : > { %v9166_v59 = vpack.c.bf16 %v3907_v5, %v3907_v5  ;;  %v4217_v14 = vshrl.u32 %v9165_v57, 16  ;;  %v4220_v53 = vshll.u32 %v9165_v57, 16  ;;  %v5248_v60 = vshrl.u32 %v14761_v55, 16  ;;  %11011 = vmatprep.subr.bf16.mxu1 %v17691_v6 }
 0x2ef   : > { %v4242_v35 = vshrl.u32 %v9168_v40, 16  ;;  %v4245_v18 = vshll.u32 %v9168_v40, 16  ;;  %vm3816_vm11 = vcmp.ge.f32.partialorder %v3784_v28, 0.0  ;;  %v3848_v29 = vmul.f32 0.2, %v3784_v28 }
 0x2f0   : > { %v4225_v58 = vshrl.u32 %v9166_v59, 16  ;;  %v4219_v49 = vrot.slane %v4217_v14, 7  ;;  %v4228_v22 = vshll.u32 %v9166_v59, 16  ;;  %v5193_v30 = vrot.slane %v5192_v24, 4  ;;  %v3663_v14 = vpop.f32.mrf.mxu0 }
 0x2f1   : > { %v4244_v16 = vrot.slane %v4242_v35, 7  ;;  %v3880_v4 = vsel %vm3816_vm11, %v3784_v28, %v3848_v29  ;;  %v5188_v62 = vsel %vm11786_vm7, %v5183_v19, %v5187_v32  ;;  %v5197_v47 = vrot.slane %v5195_v1, 5  ;;  %11012 = vmatpush3.bf16.msra.mxu1 %v17691_v6  ;;  %v14775_v28 = vld [vmem:[#allocation2 + $0x4c] sm:$0xf]  ;;  %v10858_v32 = vpop.f32.mrf.mxu1  ;;  %v14787_v6 = vld [vmem:[#allocation2 + $0x38] sm:$0x1] }
 0x2f2   : > { %v4227_v9 = vrot.slane %v4225_v58, 7  ;;  %v4222_v12 = vor.u32 %v4220_v53, %v4219_v49  ;;  %v4223_v45 = vrot.slane %v4219_v49, 4  ;;  %11013 = vmatprep.subr.bf16.mxu1 %v17692_v51  ;;  %v3912_v59 = vmul.f32 1.4142135, %v3880_v4 }
 0x2f3   : > { %v4247_v39 = vor.u32 %v4245_v18, %v4244_v16  ;;  %v4249_v5 = vrot.slane %v4244_v16, 4  ;;  %v5198_v24 = vsel %vm11786_vm7, %v5193_v30, %v5197_v47  ;;  %v5251_v29 = vshll.u32 %v14761_v55, 16  ;;  %v10906_v47 = vpop.f32.mrf.mxu0 }
 0x2f4   : > { %v4230_v57 = vor.u32 %v4228_v22, %v4227_v9  ;;  %v4232_v40 = vrot.slane %v4227_v9, 4  ;;  %v4420_v19 = vsel %vm14455_vm5, %v4222_v12, %v4419_v20  ;;  %v14785_v35 = vcombine.low %v5188_v62, %v5198_v24  ;;  %v541_v20 = vld [vmem:[#allocation2 + $0xc8] sm:$0x1]  ;;  %v3461_v12 = vpop.f32.mrf.mxu1 }
 0x2f5   : > { %v4248_v1 = vsel %vm14464_vm1, %v4240_v27, %v4247_v39  ;;  %v4431_v53 = vsel %vm11714_vm3, %v4249_v5, %v4430_v37  ;;  %4421 = vst [vmem:[#allocation2 + $0x9c] sm:$0xf] %v4420_v19  ;;  %v9171_v48 = vpack.c.bf16 %v3912_v59, %v3912_v59  ;;  %v482_v27 = vld [vmem:[#allocation2 + $0xb4] sm:$0x1]  ;;  %11014 = vmatpush3.bf16.msra.mxu1 %v17692_v51  ;;  %v5202_v16 = vrot.slane %v5200_v3, 4 }
 0x2f6   : > { %17693 = vst [vmem:[#allocation25_spill] sm:$0xff] %v14785_v35  ;;  %4429 = vst [vmem:[#allocation2 + $0xac] sm:$0xf] %v4248_v1  ;;  %v4231_v18 = vsel %vm14464_vm1, %v4223_v45, %v4230_v57  ;;  %v4424_v58 = vsel %vm11714_vm3, %v4232_v40, %v4423_v44  ;;  %10928 = vmatmul.mubr.bf16.gmra.mxu1 %v14785_v35  ;;  %v14798_v49 = vcombine.low %v14761_v55, %v14775_v28  ;;  %v538_v5 = vld [vmem:[#allocation2 + $0xbc] sm:$0x1] }
 0x2f7   : > { %4432 = vst [vmem:[#allocation2 + $0xb0] sm:$0x1] %v4431_v53  ;;  %4422 = vst [vmem:[#allocation2 + $0xa0] sm:$0xf] %v4231_v18  ;;  %v5205_v22 = vrot.slane %v5203_v50, 5  ;;  %v5209_v30 = vshll.u32 %v14674_v25, 16  ;;  %11015 = vmatprep.subr.bf16.mxu1 %v14218_v7 }
 0x2f8   : > { %4425 = vst [vmem:[#allocation2 + $0xa4] sm:$0x1] %v4424_v58  ;;  %v4268_v37 = vshrl.u32 %v9171_v48, 16  ;;  %v5261_v9 = vshrl.u32 %v14775_v28, 16  ;;  %v5215_v4 = vrot.slane %v5213_v17, 4  ;;  %v5219_v62 = vshll.u32 %v14787_v6, 16  ;;  %10983 = vmatprep.mubr.bf16.mxu0 %v14798_v49 }
 0x2f9   : > { %v5206_v3 = vor.u32 %v5205_v22, %v5202_v16  ;;  %v5211_v33 = vrot.slane %v5209_v30, 5  ;;  %v17694_v50 = vld [vmem:[#allocation21_spill] sm:$0xff]  ;;  %v483_v39 = vsel %vm11714_vm3, 0, %v482_v27  ;;  %v4271_v51 = vshll.u32 %v9171_v48, 16  ;;  %11016 = vmatpush3.bf16.msra.mxu1 %v14218_v7  ;;  %v4440_v40 = vld [vmem:[#allocation2 + $0xc0] sm:$0xf]  ;;  %v3666_v27 = vpop.f32.mrf.mxu0 }
 0x2fa   : > { %v3501_v45 = vadd.f32 %v3458_v42, %v17694_v50  ;;  %v14814_v44 = vrot.slane %v4268_v37, 7  ;;  %484 = vst [vmem:[#allocation2 + $0xb4] sm:$0x1] %v483_v39  ;;  %v17695_v25 = vld [vmem:[#allocation73_spill] sm:$0xff]  ;;  %v542_v57 = vsel %vm11726_vm4, 0, %v541_v20  ;;  %v3502_v42 = vadd.f32 %v3461_v12, %v14543_v13  ;;  %v17697_v53 = vld [vmem:[#allocation94_spill] sm:$0xff] }
 0x2fb   : > { %v3504_v17 = vadd.f32 %v10858_v32, %v17695_v25  ;;  %v5207_v59 = vrot.slane %v5206_v3, 4  ;;  %v5216_v24 = vor.u32 %v5215_v4, %v5211_v33  ;;  %543 = vst [vmem:[#allocation2 + $0xc8] sm:$0x1] %v542_v57  ;;  %v14821_v1 = vld [vmem:[#allocation2 + $0x54] sm:$0xf]  ;;  %11017 = vmatprep.subr.bf16.mxu1 %v17697_v53  ;;  %v5221_v58 = vrot.slane %v5219_v62, 5 }
 0x2fc   : > { %v3706_v19 = vadd.f32 %v3663_v14, %v3501_v45  ;;  %17696 = vst [vmem:[#allocation19_spill] sm:$0xff] %v14821_v1  ;;  %v4273_v18 = vor.u32 %v4271_v51, %v14814_v44  ;;  %v539_v48 = vsel %vm11726_vm4, 0, %v538_v5  ;;  %v4274_v7 = vrot.slane %v14814_v44, 4  ;;  %v14829_v13 = vld [vmem:[#allocation2 + $0x58] sm:$0xf]  ;;  %v17699_v50 = vld [vmem:[#allocation95_spill] sm:$0xff] }
 0x2fd   : > { %v3709_v32 = vadd.f32 %v10906_v47, %v3504_v17  ;;  %v5217_v16 = vrot.slane %v5216_v24, 4  ;;  %540 = vst [vmem:[#allocation2 + $0xbc] sm:$0x1] %v539_v48  ;;  %v3707_v22 = vadd.f32 %v3666_v27, %v3502_v42  ;;  %v5212_v20 = vsel %vm11786_vm7, %v5207_v59, %v5211_v33  ;;  %11018 = vmatpush3.bf16.msra.mxu1 %v17697_v53  ;;  %v14843_v3 = vld [vmem:[#allocation2 + $0x64] sm:$0xf] }
 0x2fe   : > { %v3744_v14 = vmul.f32 %v14657_v41, %v3706_v19  ;;  %v4441_v30 = vsel %vm14455_vm5, %v4273_v18, %v4440_v40  ;;  %v5272_v26 = vshrl.u32 %v14821_v1, 16  ;;  %v5275_v12 = vshll.u32 %v14821_v1, 16  ;;  %17698 = vst [vmem:[#allocation64_spill] sm:$0xff] %v14843_v3  ;;  %11099 = vmatprep.subr.bf16.mxu1 %v17699_v50  ;;  %v14858_v17 = vld [vmem:[#allocation2 + $0x60] sm:$0xf] }
 0x2ff   : > { %v3747_v37 = vmul.f32 %v14657_v41, %v3709_v32  ;;  %4442 = vst [vmem:[#allocation2 + $0xc0] sm:$0xf] %v4441_v30  ;;  %v5222_v4 = vsel %vm11786_vm7, %v5217_v16, %v5221_v58  ;;  %v3745_v47 = vmul.f32 %v14657_v41, %v3707_v22  ;;  %v14851_v39 = vcombine.low %v14821_v1, %v14829_v13  ;;  %v14862_v40 = vld [vmem:[#allocation2 + $0x44] sm:$0x1]  ;;  %v14999_v35 = vld [vmem:[#allocation2 + $0xa0] sm:$0xf] }
 0x300   : > { %v3782_v62 = vadd.f32 %v14667_v38, %v3744_v14  ;;  %v14846_v33 = vcombine.low %v5212_v20, %v5222_v4  ;;  %v5226_v5 = vrot.slane %v5224_v63, 4  ;;  %v5229_v25 = vrot.slane %v5227_v21, 5  ;;  %17701 = vst [vmem:[#allocation28_spill] sm:$0xff] %v14858_v17 }
 0x301   : > { %v3785_v45 = vadd.f32 %v14667_v38, %v3747_v37  ;;  %v3783_v41 = vadd.f32 %v14667_v38, %v3745_v47  ;;  %10984 = vmatmul.mubr.bf16.gmra.mxu0 %v14851_v39  ;;  %v5233_v59 = vshll.u32 %v14720_v31, 16  ;;  %v14867_v63 = vcombine.low %v14858_v17, %v14843_v3 }
 0x302   : > { %17700 = vst [vmem:[#allocation53_spill] sm:$0xff] %v14846_v33  ;;  %vm3814_vm4 = vcmp.ge.f32.partialorder %v3782_v62, 0.0  ;;  %v3846_v51 = vmul.f32 0.2, %v3782_v62  ;;  %10931 = vmatprep.mubr.bf16.mxu1 %v14846_v33  ;;  %v5230_v21 = vor.u32 %v5229_v25, %v5226_v5  ;;  %v5239_v53 = vrot.slane %v5237_v43, 4 }
 0x303   : > { %vm3817_vm12 = vcmp.ge.f32.partialorder %v3785_v45, 0.0  ;;  %v3849_v57 = vmul.f32 0.2, %v3785_v45  ;;  %vm3815_vm13 = vcmp.ge.f32.partialorder %v3783_v41, 0.0  ;;  %v3847_v34 = vmul.f32 0.2, %v3783_v41  ;;  %10987 = vmatprep.mubr.bf16.mxu0 %v14867_v63 }
 0x304   : > { %v3878_v38 = vsel %vm3814_vm4, %v3782_v62, %v3846_v51  ;;  %v5235_v42 = vrot.slane %v5233_v59, 5  ;;  %v5231_v32 = vrot.slane %v5230_v21, 4  ;;  %v5243_v48 = vshll.u32 %v14862_v40, 16  ;;  %v14882_v21 = vld [vmem:[#allocation2 + $0x50] sm:$0x1] }
 0x305   : > { %v3910_v24 = vmul.f32 1.4142135, %v3878_v38  ;;  %v3881_v19 = vsel %vm3817_vm12, %v3785_v45, %v3849_v57  ;;  %v3879_v58 = vsel %vm3815_vm13, %v3783_v41, %v3847_v34  ;;  %v5285_v14 = vshrl.u32 %v14829_v13, 16 }
 0x306   : > { %v3913_v18 = vmul.f32 1.4142135, %v3881_v19  ;;  %v3911_v16 = vmul.f32 1.4142135, %v3879_v58  ;;  %v5240_v22 = vor.u32 %v5239_v53, %v5235_v42  ;;  %v5236_v20 = vsel %vm11786_vm7, %v5231_v32, %v5235_v42 }
 0x307   : > { %v9169_v27 = vpack.c.bf16 %v3910_v24, %v3910_v24  ;;  %v5245_v37 = vrot.slane %v5243_v48, 5  ;;  %v5296_v4 = vshrl.u32 %v14858_v17, 16  ;;  %v5299_v45 = vshll.u32 %v14858_v17, 16  ;;  %v4433_v24 = vld [vmem:[#allocation2 + $0xb4] sm:$0xf] }
 0x308   : > { %v9172_v30 = vpack.c.bf16 %v3913_v18, %v3913_v18  ;;  %v9170_v62 = vpack.c.bf16 %v3911_v16, %v3911_v16  ;;  %v5241_v47 = vrot.slane %v5240_v22, 4  ;;  %v5250_v25 = vrot.slane %v5248_v60, 4  ;;  %v4444_v60 = vld [vmem:[#allocation2 + $0xc8] sm:$0x1] }
 0x309   : > { %v4251_v43 = vshrl.u32 %v9169_v27, 16  ;;  %v4254_v5 = vshll.u32 %v9169_v27, 16  ;;  %v5253_v53 = vrot.slane %v5251_v29, 5  ;;  %v5257_v18 = vshll.u32 %v14775_v28, 16 }
 0x30a   : > { %v4276_v51 = vshrl.u32 %v9172_v30, 16  ;;  %v4279_v41 = vshll.u32 %v9172_v30, 16  ;;  %v4259_v59 = vshrl.u32 %v9170_v62, 16  ;;  %v4262_v38 = vshll.u32 %v9170_v62, 16  ;;  %v4437_v30 = vld [vmem:[#allocation2 + $0xbc] sm:$0x1] }
 0x30b   : > { %v4253_v57 = vrot.slane %v4251_v43, 7  ;;  %v5246_v34 = vsel %vm11786_vm7, %v5241_v47, %v5245_v37  ;;  %v5263_v27 = vrot.slane %v5261_v9, 4  ;;  %v5254_v37 = vor.u32 %v5253_v53, %v5250_v25 }
 0x30c   : > { %v4278_v19 = vrot.slane %v4276_v51, 7  ;;  %v14884_v42 = vcombine.low %v5236_v20, %v5246_v34  ;;  %v4261_v48 = vrot.slane %v4259_v59, 7  ;;  %v5259_v20 = vrot.slane %v5257_v18, 5  ;;  %v14910_v34 = vld [vmem:[#allocation2 + $0x5c] sm:$0x1] }
 0x30d   : > { %v4256_v58 = vor.u32 %v4254_v5, %v4253_v57  ;;  %v4257_v32 = vrot.slane %v4253_v57, 4  ;;  %v5267_v47 = vshll.u32 %v14882_v21, 16  ;;  %v14895_v5 = vld [vmem:[#allocation2 + $0x6c] sm:$0xf]  ;;  %v14903_v57 = vld [vmem:[#allocation2 + $0x70] sm:$0xf] }
 0x30e   : > { %17702 = vst [vmem:[#allocation39_spill] sm:$0xff] %v14884_v42  ;;  %v4281_v16 = vor.u32 %v4279_v41, %v4278_v19  ;;  %v4283_v22 = vrot.slane %v4278_v19, 4  ;;  %10932 = vmatmul.mubr.bf16.gmra.mxu1 %v14884_v42  ;;  %v4264_v29 = vor.u32 %v4262_v38, %v4261_v48  ;;  %v4266_v62 = vrot.slane %v4261_v48, 4  ;;  %17703 = vst [vmem:[#allocation71_spill] sm:$0xff] %v14910_v34 }
 0x30f   : > { %v4434_v43 = vsel %vm14455_vm5, %v4256_v58, %v4433_v24  ;;  %v5255_v41 = vrot.slane %v5254_v37, 4  ;;  %v5264_v25 = vor.u32 %v5263_v27, %v5259_v20  ;;  %v5309_v44 = vshrl.u32 %v14843_v3, 16 }
 0x310   : > { %4435 = vst [vmem:[#allocation2 + $0xb4] sm:$0xf] %v4434_v43  ;;  %v4282_v9 = vsel %vm14464_vm1, %v4274_v7, %v4281_v16  ;;  %v4445_v51 = vsel %vm11714_vm3, %v4283_v22, %v4444_v60  ;;  %v4265_v54 = vsel %vm14464_vm1, %v4257_v32, %v4264_v29  ;;  %v4438_v59 = vsel %vm11714_vm3, %v4266_v62, %v4437_v30  ;;  %v14927_v60 = vld [vmem:[#allocation2 + $0x7c] sm:$0xf]  ;;  %v14941_v43 = vld [vmem:[#allocation2 + $0x84] sm:$0xf] }
 0x311   : > { %4443 = vst [vmem:[#allocation2 + $0xc4] sm:$0xf] %v4282_v9  ;;  %4446 = vst [vmem:[#allocation2 + $0xc8] sm:$0x1] %v4445_v51  ;;  %v5269_v38 = vrot.slane %v5267_v47, 5  ;;  %v5260_v7 = vsel %vm11786_vm7, %v5255_v41, %v5259_v20  ;;  %v5265_v24 = vrot.slane %v5264_v25, 4  ;;  %v14920_v23 = vcombine.low %v14895_v5, %v14903_v57 }
 0x312   : > { %4436 = vst [vmem:[#allocation2 + $0xb8] sm:$0xf] %v4265_v54  ;;  %4439 = vst [vmem:[#allocation2 + $0xbc] sm:$0x1] %v4438_v59  ;;  %v5320_v19 = vshrl.u32 %v14895_v5, 16  ;;  %v5323_v53 = vshll.u32 %v14895_v5, 16 }
 0x313   : > { %v5274_v18 = vrot.slane %v5272_v26, 4  ;;  %v5277_v58 = vrot.slane %v5275_v12, 5  ;;  %v5281_v32 = vshll.u32 %v14829_v13, 16  ;;  %v5270_v48 = vsel %vm11786_vm7, %v5265_v24, %v5269_v38  ;;  %10988 = vmatmul.mubr.bf16.gmra.mxu0 %v14920_v23  ;;  %v14939_v20 = vld [vmem:[#allocation2 + $0x68] sm:$0x1] }
 0x314   : > { %v5333_v27 = vshrl.u32 %v14903_v57, 16  ;;  %v5287_v16 = vrot.slane %v5285_v14, 4  ;;  %v5291_v22 = vshll.u32 %v14910_v34, 16  ;;  %v14935_v30 = vcombine.low %v5260_v7, %v5270_v48  ;;  %17705 = vst [vmem:[#allocation40_spill] sm:$0xff] %v14939_v20  ;;  %v14954_v54 = vld [vmem:[#allocation2 + $0x88] sm:$0xf] }
 0x315   : > { %v5278_v26 = vor.u32 %v5277_v58, %v5274_v18  ;;  %v5283_v12 = vrot.slane %v5281_v32, 5  ;;  %v5344_v37 = vshrl.u32 %v14916_v11, 16  ;;  %v5347_v62 = vshll.u32 %v14916_v11, 16  ;;  %v14961_v48 = vld [vmem:[#allocation2 + $0x74] sm:$0x1] }
 0x316   : > { %17704 = vst [vmem:[#allocation45_spill] sm:$0xff] %v14935_v30  ;;  %v5293_v29 = vrot.slane %v5291_v22, 5  ;;  %v14946_v14 = vcombine.low %v14916_v11, %v14927_v60  ;;  %v5298_v47 = vrot.slane %v5296_v4, 4  ;;  %10935 = vmatprep.mubr.bf16.mxu1 %v14935_v30  ;;  %v5301_v41 = vrot.slane %v5299_v45, 5 }
 0x317   : > { %v5279_v9 = vrot.slane %v5278_v26, 4  ;;  %v5288_v51 = vor.u32 %v5287_v16, %v5283_v12  ;;  %v5305_v25 = vshll.u32 %v14843_v3, 16  ;;  %v5357_v59 = vshrl.u32 %v14927_v60, 16 }
 0x318   : > { %17706 = vst [vmem:[#allocation8_spill] sm:$0xff] %v14946_v14  ;;  %10991 = vmatprep.mubr.bf16.mxu0 %v14946_v14  ;;  %v5311_v38 = vrot.slane %v5309_v44, 4  ;;  %v5315_v7 = vshll.u32 %v14939_v20, 16  ;;  %v5368_v4 = vshrl.u32 %v14941_v43, 16  ;;  %v5302_v18 = vor.u32 %v5301_v41, %v5298_v47  ;;  %v14971_v41 = vld [vmem:[#allocation2 + $0x90] sm:$0xf] }
 0x319   : > { %v5289_v24 = vrot.slane %v5288_v51, 4  ;;  %v5307_v58 = vrot.slane %v5305_v25, 5  ;;  %v5371_v32 = vshll.u32 %v14941_v43, 16  ;;  %v5284_v45 = vsel %vm11786_vm7, %v5279_v9, %v5283_v12  ;;  %v14977_v9 = vld [vmem:[#allocation2 + $0x94] sm:$0xf] }
 0x31a   : > { %v5317_v16 = vrot.slane %v5315_v7, 5  ;;  %v14967_v22 = vcombine.low %v14941_v43, %v14954_v54  ;;  %v5322_v44 = vrot.slane %v5320_v19, 4  ;;  %v5303_v30 = vrot.slane %v5302_v18, 4  ;;  %v15024_v20 = vld [vmem:[#allocation2 + $0xac] sm:$0xf] }
 0x31b   : > { %v5294_v26 = vsel %vm11786_vm7, %v5289_v24, %v5293_v29  ;;  %v5312_v51 = vor.u32 %v5311_v38, %v5307_v58  ;;  %v5325_v47 = vrot.slane %v5323_v53, 5  ;;  %v5329_v42 = vshll.u32 %v14903_v57, 16 }
 0x31c   : > { %17707 = vst [vmem:[#allocation27_spill] sm:$0xff] %v14967_v22  ;;  %v14973_v25 = vcombine.low %v5284_v45, %v5294_v26  ;;  %v5335_v33 = vrot.slane %v5333_v27, 4  ;;  %v5339_v12 = vshll.u32 %v14961_v48, 16  ;;  %v5308_v19 = vsel %vm11786_vm7, %v5303_v30, %v5307_v58  ;;  %10992 = vmatmul.mubr.bf16.gmra.mxu0 %v14967_v22  ;;  %v14986_v45 = vld [vmem:[#allocation2 + $0x80] sm:$0x1] }
 0x31d   : > { %v5313_v7 = vrot.slane %v5312_v51, 4  ;;  %v5381_v29 = vshrl.u32 %v14954_v54, 16  ;;  %v5326_v53 = vor.u32 %v5325_v47, %v5322_v44  ;;  %v5331_v38 = vrot.slane %v5329_v42, 5  ;;  %v14994_v44 = vld [vmem:[#allocation2 + $0x9c] sm:$0xf] }
 0x31e   : > { %17708 = vst [vmem:[#allocation18_spill] sm:$0xff] %v14973_v25  ;;  %10936 = vmatmul.mubr.bf16.gmra.mxu1 %v14973_v25  ;;  %v5341_v24 = vrot.slane %v5339_v12, 5  ;;  %v5392_v18 = vshrl.u32 %v14971_v41, 16  ;;  %v5395_v27 = vshll.u32 %v14971_v41, 16  ;;  %v14992_v58 = vcombine.low %v14971_v41, %v14977_v9  ;;  %17710 = vst [vmem:[#allocation65_spill] sm:$0xff] %v14994_v44 }
 0x31f   : > { %v5318_v26 = vsel %vm11786_vm7, %v5313_v7, %v5317_v16  ;;  %v5327_v30 = vrot.slane %v5326_v53, 4  ;;  %v5346_v51 = vrot.slane %v5344_v37, 4  ;;  %v5336_v42 = vor.u32 %v5335_v33, %v5331_v38 }
 0x320   : > { %17709 = vst [vmem:[#allocation62_spill] sm:$0xff] %v14992_v58  ;;  %v14996_v47 = vcombine.low %v5308_v19, %v5318_v26  ;;  %v5349_v12 = vrot.slane %v5347_v62, 5  ;;  %v5353_v25 = vshll.u32 %v14927_v60, 16  ;;  %v5405_v16 = vshrl.u32 %v14977_v9, 16  ;;  %10995 = vmatprep.mubr.bf16.mxu0 %v14992_v58  ;;  %v15008_v26 = vld [vmem:[#allocation2 + $0x8c] sm:$0x1] }
 0x321   : > { %v5332_v36 = vsel %vm11786_vm7, %v5327_v30, %v5331_v38  ;;  %v5359_v7 = vrot.slane %v5357_v59, 4  ;;  %v5363_v37 = vshll.u32 %v14986_v45, 16  ;;  %v5337_v19 = vrot.slane %v5336_v42, 4 }
 0x322   : > { %17711 = vst [vmem:[#allocation41_spill] sm:$0xff] %v14996_v47  ;;  %10939 = vmatprep.mubr.bf16.mxu1 %v14996_v47  ;;  %v5350_v53 = vor.u32 %v5349_v12, %v5346_v51  ;;  %v5355_v33 = vrot.slane %v5353_v25, 5  ;;  %v5416_v62 = vshrl.u32 %v14994_v44, 16  ;;  %v5419_v17 = vshll.u32 %v14994_v44, 16  ;;  %v15017_v51 = vld [vmem:[#allocation2 + $0xa8] sm:$0xf] }
 0x323   : > { %v5365_v2 = vrot.slane %v5363_v37, 5  ;;  %v15013_v38 = vcombine.low %v14994_v44, %v14999_v35  ;;  %v5370_v30 = vrot.slane %v5368_v4, 4  ;;  %v5342_v59 = vsel %vm11786_vm7, %v5337_v19, %v5341_v24  ;;  %17713 = vst [vmem:[#allocation58_spill] sm:$0xff] %v15017_v51 }
 0x324   : > { %v5351_v58 = vrot.slane %v5350_v53, 4  ;;  %v5360_v47 = vor.u32 %v5359_v7, %v5355_v33  ;;  %v5373_v42 = vrot.slane %v5371_v32, 5  ;;  %v15019_v25 = vcombine.low %v5332_v36, %v5342_v59 }
 0x325   : > { %17712 = vst [vmem:[#allocation59_spill] sm:$0xff] %v15013_v38  ;;  %10996 = vmatmul.mubr.bf16.gmra.mxu0 %v15013_v38  ;;  %v5377_v12 = vshll.u32 %v14954_v54, 16  ;;  %v5383_v37 = vrot.slane %v5381_v29, 4  ;;  %v5387_v1 = vshll.u32 %v15008_v26, 16  ;;  %v5429_v7 = vshrl.u32 %v14999_v35, 16 }
 0x326   : > { %17714 = vst [vmem:[#allocation68_spill] sm:$0xff] %v15019_v25  ;;  %v5356_v4 = vsel %vm11786_vm7, %v5351_v58, %v5355_v33  ;;  %v5361_v24 = vrot.slane %v5360_v47, 4  ;;  %v5374_v32 = vor.u32 %v5373_v42, %v5370_v30  ;;  %10940 = vmatmul.mubr.bf16.gmra.mxu1 %v15019_v25  ;;  %v5440_v53 = vshrl.u32 %v15017_v51, 16  ;;  %v15032_v29 = vld [vmem:[#allocation2 + $0x98] sm:$0x1] }
 0x327   : > { %v5379_v36 = vrot.slane %v5377_v12, 5  ;;  %v5389_v19 = vrot.slane %v5387_v1, 5  ;;  %v5443_v59 = vshll.u32 %v15017_v51, 16  ;;  %v15038_v58 = vcombine.low %v15017_v51, %v15024_v20  ;;  %v15040_v33 = vld [vmem:[#allocation2 + $0xb4] sm:$0xf] }
 0x328   : > { %v5366_v38 = vsel %vm11786_vm7, %v5361_v24, %v5365_v2  ;;  %v5375_v34 = vrot.slane %v5374_v32, 4  ;;  %v5394_v47 = vrot.slane %v5392_v18, 4  ;;  %17716 = vst [vmem:[#allocation23_spill] sm:$0xff] %v15040_v33  ;;  %v5397_v42 = vrot.slane %v5395_v27, 5  ;;  %v15045_v25 = vld [vmem:[#allocation2 + $0xb8] sm:$0xf] }
 0x329   : > { %17715 = vst [vmem:[#allocation50_spill] sm:$0xff] %v15038_v58  ;;  %v15042_v30 = vcombine.low %v5356_v4, %v5366_v38  ;;  %v5384_v1 = vor.u32 %v5383_v37, %v5379_v36  ;;  %v5401_v12 = vshll.u32 %v14977_v9, 16  ;;  %v5453_v2 = vshrl.u32 %v15024_v20, 16  ;;  %10999 = vmatprep.mubr.bf16.mxu0 %v15038_v58 }
 0x32a   : > { %v5380_v22 = vsel %vm11786_vm7, %v5375_v34, %v5379_v36  ;;  %v5407_v24 = vrot.slane %v5405_v16, 4  ;;  %v5411_v18 = vshll.u32 %v15032_v29, 16  ;;  %v5398_v4 = vor.u32 %v5397_v42, %v5394_v47  ;;  %v15059_v36 = vld [vmem:[#allocation2 + $0xa4] sm:$0x1] }
 0x32b   : > { %17717 = vst [vmem:[#allocation6_spill] sm:$0xff] %v15042_v30  ;;  %10943 = vmatprep.mubr.bf16.mxu1 %v15042_v30  ;;  %v5385_v38 = vrot.slane %v5384_v1, 4  ;;  %v5403_v37 = vrot.slane %v5401_v12, 5  ;;  %v5464_v27 = vshrl.u32 %v15040_v33, 16  ;;  %v5467_v14 = vshll.u32 %v15040_v33, 16 }
 0x32c   : > { %v5413_v32 = vrot.slane %v5411_v18, 5  ;;  %v15057_v34 = vcombine.low %v15040_v33, %v15045_v25  ;;  %v5418_v58 = vrot.slane %v5416_v62, 4  ;;  %v5399_v3 = vrot.slane %v5398_v4, 4  ;;  %v15068_v33 = vld [vmem:[#allocation2 + $0xb0] sm:$0x1] }
 0x32d   : > { %v5390_v16 = vsel %vm11786_vm7, %v5385_v38, %v5389_v19  ;;  %v5408_v30 = vor.u32 %v5407_v24, %v5403_v37  ;;  %v5421_v1 = vrot.slane %v5419_v17, 5  ;;  %v5477_v42 = vshrl.u32 %v15045_v25, 16 }
 0x32e   : > { %17718 = vst [vmem:[#allocation54_spill] sm:$0xff] %v15057_v34  ;;  %v15063_v47 = vcombine.low %v5380_v22, %v5390_v16  ;;  %11000 = vmatmul.mubr.bf16.gmra.mxu0 %v15057_v34  ;;  %v5425_v12 = vshll.u32 %v14999_v35, 16  ;;  %v5431_v18 = vrot.slane %v5429_v7, 4  ;;  %v5435_v62 = vshll.u32 %v15059_v36, 16  ;;  %v15081_v34 = vld [vmem:[#allocation2 + $0xbc] sm:$0x1] }
 0x32f   : > { %v5409_v51 = vrot.slane %v5408_v30, 4  ;;  %v5422_v44 = vor.u32 %v5421_v1, %v5418_v58  ;;  %11067 = vmatprep.mubr.bf16.mxu0 %v14576_v52  ;;  %v5442_v19 = vrot.slane %v5440_v53, 4  ;;  %v5404_v17 = vsel %vm11786_vm7, %v5399_v3, %v5403_v37 }
 0x330   : > { %17719 = vst [vmem:[#allocation69_spill] sm:$0xff] %v15063_v47  ;;  %10944 = vmatmul.mubr.bf16.gmra.mxu1 %v15063_v47  ;;  %v5427_v22 = vrot.slane %v5425_v12, 5  ;;  %v5445_v24 = vrot.slane %v5443_v59, 5  ;;  %v5449_v38 = vshll.u32 %v15024_v20, 16  ;;  %v5455_v30 = vrot.slane %v5453_v2, 4  ;;  %v11521_v59 = vld [vmem:[%s16827_s8 + $0x110] sm:$0xff]  }
 0x331   : > { %v5414_v7 = vsel %vm11786_vm7, %v5409_v51, %v5413_v32  ;;  %v5423_v4 = vrot.slane %v5422_v44, 4  ;;  %v5459_v58 = vshll.u32 %v15068_v33, 16  ;;  %v5437_v47 = vrot.slane %v5435_v62, 5 }
 0x332   : > { %v15079_v16 = vcombine.low %v5404_v17, %v5414_v7  ;;  %v5432_v52 = vor.u32 %v5431_v18, %v5427_v22  ;;  %v5446_v53 = vor.u32 %v5445_v24, %v5442_v19  ;;  %v5451_v1 = vrot.slane %v5449_v38, 5  ;;  %v9995_v7 = vld [vmem:[%s16827_s8 + $0x1f8] sm:$0xff]  }
 0x333   : > { %v5466_v3 = vrot.slane %v5464_v27, 4  ;;  %v5469_v37 = vrot.slane %v5467_v14, 5  ;;  %v9633_v12 = vunpack.c.h.bf16 %v11521_v59  ;;  %v5473_v32 = vshll.u32 %v15045_v25, 16  ;;  %v11524_v59 = vld [vmem:[#allocation2 + $0x8] sm:$0x1] }
 0x334   : > { %17720 = vst [vmem:[#allocation52_spill] sm:$0xff] %v15079_v16  ;;  %10947 = vmatprep.mubr.bf16.mxu1 %v15079_v16  ;;  %v5433_v44 = vrot.slane %v5432_v52, 4  ;;  %v5447_v51 = vrot.slane %v5446_v53, 4  ;;  %v5456_v2 = vor.u32 %v5455_v30, %v5451_v1  ;;  %v5428_v18 = vsel %vm11786_vm7, %v5423_v4, %v5427_v22  ;;  %v11523_v4 = vld [vmem:[#allocation2 + $0x4] sm:$0xf] }
 0x335   : > { %v5461_v62 = vrot.slane %v5459_v58, 5  ;;  %v5470_v19 = vor.u32 %v5469_v37, %v5466_v3  ;;  %v5479_v17 = vrot.slane %v5477_v42, 4  ;;  %v5475_v24 = vrot.slane %v5473_v32, 5  ;;  %v17722_v37 = vld [vmem:[#allocation96_spill] sm:$0xff] }
 0x336   : > { %v5438_v14 = vsel %vm11786_vm7, %v5433_v44, %v5437_v47  ;;  %v5457_v27 = vrot.slane %v5456_v2, 4  ;;  %11068 = vmatmul.mubr.bf16.vlgmr.msra.gmra.mxu0 %v14599_v8  ;;  %v5483_v38 = vshll.u32 %v15081_v34, 16  ;;  %v5452_v22 = vsel %vm11786_vm7, %v5447_v51, %v5451_v1  ;;  %v11522_v47 = vld [vmem:[#allocation2] sm:$0xf]  ;;  %v17730_v8 = vld [vmem:[#allocation97_spill] sm:$0xff] }
 0x337   : > { %v15097_v30 = vcombine.low %v5428_v18, %v5438_v14  ;;  %11148 = vmatpush3.bf16.msra.mxu0 %v14202_v56  ;;  %11071 = vmatprep.mubr.bf16.mxu0 %v14631_v15  ;;  %v8988_v42 = vrot.slane %v11522_v47, 9  ;;  %v5987_v58 = vrot.slane %v11523_v4, 5  ;;  %v5471_v53 = vrot.slane %v5470_v19, 4  ;;  %v11525_v14 = vld [vmem:[#allocation2 + $0x10] sm:$0xf]  ;;  %v17724_v4 = vld [vmem:[#allocation34_spill] sm:$0xff] }
 0x338   : > { %v5462_v52 = vsel %vm11786_vm7, %v5457_v27, %v5461_v62  ;;  %v5480_v3 = vor.u32 %v5479_v17, %v5475_v24  ;;  %11149 = vmatprep.subr.bf16.mxu0 %v17722_v37  ;;  %v5990_v44 = vrot.slane %v11524_v59, 5  ;;  %v9748_v51 = vunpack.c.l.bf16 %v9995_v7  ;;  %v17725_v15 = vld [vmem:[#allocation61_spill] sm:$0xff]  ;;  %v11486_v17 = vld [vmem:[%s16828_s9 + $0x20] sm:$0xff]  }
 0x339   : > { %17721 = vst [vmem:[#allocation74_spill] sm:$0xff] %v15097_v30  ;;  %10948 = vmatmul.mubr.bf16.gmra.mxu1 %v15097_v30  ;;  %v15107_v1 = vcombine.low %v5452_v22, %v5462_v52  ;;  %v5989_v56 = vrot.slane %v5987_v58, 4  ;;  %v9749_v2 = vunpack.c.h.bf16 %v9995_v7  ;;  %v5485_v18 = vrot.slane %v5483_v38, 5  ;;  %v11526_v52 = vld [vmem:[#allocation2 + $0x1c] sm:$0xf] }
 0x33a   : > { %v5481_v32 = vrot.slane %v5480_v3, 4  ;;  %v5994_v47 = vrot.slane %v11525_v14, 5  ;;  %v17726_v62 = vunpack.c.l.bf16 %v17725_v15  ;;  %v5988_v27 = vsel %vm12342_vm10, %v8988_v42, %v5987_v58  ;;  %v17728_v3 = vld [vmem:[#allocation31_spill] sm:$0xff]  ;;  %v17734_v30 = vld [vmem:[#allocation30_spill] sm:$0xff] }
 0x33b   : > { %17723 = vst [vmem:[#allocation57_spill] sm:$0xff] %v15107_v1  ;;  %10951 = vmatprep.mubr.bf16.mxu1 %v15107_v1  ;;  %11150 = vmatpush3.bf16.msra.mxu0 %v17722_v37  ;;  %v5991_v22 = vsel %vm12342_vm10, %v5989_v56, %v5990_v44  ;;  %v6001_v7 = vrot.slane %v11526_v52, 5  ;;  %v17729_v38 = vunpack.c.h.bf16 %v17725_v15  ;;  %v5476_v14 = vsel %vm11786_vm7, %v5471_v53, %v5475_v24  ;;  %v17731_v37 = vld [vmem:[#allocation32_spill] sm:$0xff]  ;;  %v17736_v53 = vld [vmem:[#allocation15_spill] sm:$0xff] }
 0x33c   : > { %v4911_v19 = vmul.f32 %v17726_v62, %v17724_v4  ;;  %v5486_v62 = vsel %vm11786_vm7, %v5481_v32, %v5485_v18  ;;  %11151 = vmatprep.subr.bf16.mxu0 %v17730_v8  ;;  %v17732_v1 = vld [vmem:[#allocation44_spill] sm:$0xff]  ;;  %v4900_v44 = vmul.f32 %v9633_v12, %v17734_v30  ;;  %v17737_v32 = vld [vmem:[#allocation14_spill] sm:$0xff]  ;;  %v9004_v16 = vcombine.low %v5988_v27, %v5991_v22  ;;  %v17739_v30 = vld [vmem:[#allocation63_spill] sm:$0xff] }
 0x33d   : > { %v4912_v59 = vmul.f32 %v17729_v38, %v17728_v3  ;;  %v17733_v42 = vunpack.c.l.bf16 %v17732_v1  ;;  %v15133_v56 = vld [vmem:[%s16827_s8 + $0x108] sm:$0xff]   ;;  %v15135_v15 = vcombine.low %v5476_v14, %v5486_v62  ;;  %v4957_v38 = vmul.f32 %v9748_v51, %v17736_v53  ;;  %v15147_v14 = vld [vmem:[%s16827_s8 + $0x100] sm:$0xff]  }
 0x33e   : > { %v11527_v52 = vld [vmem:[#allocation2 + $0x28] sm:$0xf]  ;;  %v4958_v18 = vmul.f32 %v9749_v2, %v17737_v32  ;;  %11072 = vmatmul.mubr.bf16.gmra.mxu0 %v14693_v61  ;;  %v5996_v1 = vrot.slane %v5994_v47, 4  ;;  %v6003_v51 = vrot.slane %v6001_v7, 4  ;;  %v17740_v2 = vld [vmem:[#allocation49_spill] sm:$0xff]  ;;  %v17741_v27 = vld [vmem:[#allocation11_spill] sm:$0xff] }
 0x33f   : > { %v4899_v58 = vmul.f32 %v17733_v42, %v17731_v37  ;;  %17735 = vst [vmem:[#allocation26_spill] sm:$0xff] %v15135_v15  ;;  %v6008_v24 = vrot.slane %v11527_v52, 5  ;;  %v11528_v42 = vld [vmem:[#allocation2 + $0x34] sm:$0xf]  ;;  %v17738_v12 = vld [vmem:[#allocation48_spill] sm:$0xff]  ;;  %11152 = vmatpush3.bf16.msra.mxu0 %v17730_v8  ;;  %11075 = vmatprep.mubr.bf16.mxu0 %v14738_v0  ;;  %v15153_v22 = vpack.c.bf16 %v17741_v27, %v17740_v2  ;;  %v9624_v27 = vunpack.c.l.bf16 %v15147_v14 }
 0x340   : > { %v6015_v37 = vrot.slane %v11528_v42, 5  ;;  %v15142_v3 = vpack.c.bf16 %v17739_v30, %v17738_v12  ;;  %v11529_v30 = vld [vmem:[#allocation2 + $0x14] sm:$0x1]  ;;  %v17742_v12 = vld [vmem:[#allocation98_spill] sm:$0xff]  ;;  %v15158_v53 = vpack.c.bf16 %v4912_v59, %v4911_v19  ;;  %v11530_v8 = vld [vmem:[#allocation2 + $0x20] sm:$0x1]  ;;  %v15163_v2 = vpack.c.bf16 %v4958_v18, %v4957_v38 }
 0x341   : > { %v5997_v42 = vrot.slane %v11529_v30, 5  ;;  %11153 = vmatprep.subr.bf16.mxu0 %v17742_v12  ;;  %v6010_v61 = vrot.slane %v6008_v24, 4  ;;  %10952 = vmatmul.mubr.bf16.gmra.mxu1 %v15135_v15  ;;  %v6004_v0 = vrot.slane %v11530_v8, 5  ;;  %v15161_v10 = vpack.c.bf16 %v4900_v44, %v4899_v58  ;;  %v11531_v52 = vld [vmem:[#allocation2 + $0xc] sm:$0xf] }
 0x342   : > { %v6017_v32 = vrot.slane %v6015_v37, 4  ;;  %11019 = vmatprep.mubr.bf16.mxu1 %v9004_v16  ;;  %v8989_v62 = vrot.slane %v11531_v52, 9  ;;  %v6011_v4 = vrot.slane %v14756_v46, 5  ;;  %v6018_v19 = vrot.slane %v14787_v6, 5  ;;  %v11532_v59 = vld [vmem:[#allocation2 + $0x18] sm:$0xf] }
 0x343   : > { %v5998_v30 = vsel %vm12342_vm10, %v5996_v1, %v5997_v42  ;;  %v8990_v15 = vrot.slane %v11532_v59, 9  ;;  %v6005_v58 = vsel %vm12342_vm10, %v6003_v51, %v6004_v0  ;;  %11154 = vmatpush3.bf16.msra.mxu0 %v17742_v12  ;;  %v11533_v44 = vld [vmem:[#allocation2 + $0x24] sm:$0xf]  ;;  %v6022_v16 = vrot.slane %v14720_v31, 5  ;;  %v17743_v52 = vld [vmem:[#allocation100_spill] sm:$0xff] }
 0x344   : > { %v8991_v38 = vrot.slane %v11533_v44, 9  ;;  %v5995_v18 = vsel %vm12342_vm10, %v8989_v62, %v5994_v47  ;;  %11155 = vmatprep.subr.bf16.mxu0 %v17743_v52  ;;  %v6012_v46 = vsel %vm12342_vm10, %v6010_v61, %v6011_v4  ;;  %v11534_v6 = vld [vmem:[#allocation2 + $0x30] sm:$0xf]  ;;  %v6019_v42 = vsel %vm12342_vm10, %v6017_v32, %v6018_v19  ;;  %v11535_v12 = vld [vmem:[#allocation2 + $0x3c] sm:$0xf] }
 0x345   : > { %v8992_v1 = vrot.slane %v11534_v6, 9  ;;  %v15181_v0 = vcombine.low %v5995_v18, %v5998_v30  ;;  %v6002_v51 = vsel %vm12342_vm10, %v8990_v15, %v6001_v7  ;;  %v8993_v31 = vrot.slane %v11535_v12, 9  ;;  %v17748_v18 = vld [vmem:[#allocation99_spill] sm:$0xff] }
 0x346   : > { %v6029_v8 = vrot.slane %v14775_v28, 5  ;;  %v15186_v47 = vcombine.low %v6002_v51, %v6005_v58  ;;  %11076 = vmatmul.mubr.bf16.gmra.mxu0 %v14798_v49  ;;  %v6009_v61 = vsel %vm12342_vm10, %v8991_v38, %v6008_v24  ;;  %v6025_v32 = vrot.slane %v14862_v40, 5  ;;  %v17747_v24 = vld [vmem:[#allocation66_spill] sm:$0xff]  ;;  %v15244_v12 = vld [vmem:[#allocation2 + $0xc4] sm:$0xf] }
 0x347   : > { %v6016_v4 = vsel %vm12342_vm10, %v8992_v1, %v6015_v37  ;;  %11156 = vmatpush3.bf16.msra.mxu0 %v17743_v52  ;;  %v15195_v62 = vcombine.low %v6009_v61, %v6012_v46  ;;  %11079 = vmatprep.mubr.bf16.mxu0 %v14851_v39  ;;  %v15202_v28 = vsel %vm12342_vm10, %v8993_v31, %v6022_v16  ;;  %v8994_v15 = vrot.slane %v14761_v55, 9  ;;  %v15236_v1 = vld [vmem:[#allocation2 + $0xc0] sm:$0xf] }
 0x348   : > { %17744 = vst [vmem:[#allocation77_spill] sm:$0xff] %v15186_v47  ;;  %v15198_v7 = vcombine.low %v6016_v4, %v6019_v42  ;;  %11157 = vmatprep.subr.bf16.mxu0 %v17747_v24  ;;  %v6024_v30 = vrot.slane %v6022_v16, 4  ;;  %v6032_v37 = vrot.slane %v14882_v21, 5  ;;  %v8997_v40 = vrot.slane %v14895_v5, 9 }
 0x349   : > { %17745 = vst [vmem:[#allocation60_spill] sm:$0xff] %v15195_v62  ;;  %v6050_v19 = vrot.slane %v14903_v57, 5  ;;  %11020 = vmatmul.mubr.bf16.vlgmr.msra.gmra.mxu1 %v15181_v0  ;;  %v15212_v59 = vsel %vm12342_vm10, %v8994_v15, %v6029_v8  ;;  %v15214_v58 = vrot.slane %v6029_v8, 4  ;;  %v8998_v44 = vrot.slane %v14916_v11, 9  ;;  %v17751_v8 = vld [vmem:[#allocation9_spill] sm:$0xff] }
 0x34a   : > { %17746 = vst [vmem:[#allocation24_spill] sm:$0xff] %v15198_v7  ;;  %v6057_v55 = vrot.slane %v14927_v60, 5  ;;  %11100 = vmatpush3.bf16.msra.mxu1 %v17699_v50  ;;  %11023 = vmatprep.mubr.bf16.mxu1 %v15186_v47  ;;  %v6053_v38 = vrot.slane %v14961_v48, 5  ;;  %v6060_v16 = vrot.slane %v14986_v45, 5  ;;  %v8999_v50 = vrot.slane %v14941_v43, 9 }
 0x34b   : > { %v6051_v5 = vsel %vm12342_vm10, %v8997_v40, %v6050_v19  ;;  %v6052_v57 = vrot.slane %v6050_v19, 4  ;;  %11101 = vmatprep.subr.bf16.mxu1 %v17748_v18  ;;  %11158 = vmatpush3.bf16.msra.mxu0 %v17747_v24  ;;  %v6064_v52 = vrot.slane %v14954_v54, 5  ;;  %v6067_v48 = vrot.slane %v15008_v26, 5  ;;  %v17754_v19 = vld [vmem:[#allocation65_spill] sm:$0xff] }
 0x34c   : > { %v6058_v11 = vsel %vm12342_vm10, %v8998_v44, %v6057_v55  ;;  %v6059_v60 = vrot.slane %v6057_v55, 4  ;;  %11159 = vmatprep.subr.bf16.mxu0 %v15142_v3  ;;  %v9000_v45 = vrot.slane %v14971_v41, 9  ;;  %v6071_v6 = vrot.slane %v14977_v9, 5 }
 0x34d   : > { %v6054_v46 = vsel %vm12342_vm10, %v6052_v57, %v6053_v38  ;;  %v6065_v54 = vsel %vm12342_vm10, %v8999_v50, %v6064_v52  ;;  %v6066_v51 = vrot.slane %v6064_v52, 4  ;;  %v6074_v31 = vrot.slane %v15032_v29, 5  ;;  %v17755_v57 = vld [vmem:[#allocation58_spill] sm:$0xff]  ;;  %v17757_v50 = vld [vmem:[#allocation51_spill] sm:$0xff] }
 0x34e   : > { %v15238_v42 = vcombine.low %v6051_v5, %v6054_v46  ;;  %v6061_v43 = vsel %vm12342_vm10, %v6059_v60, %v6060_v16  ;;  %11102 = vmatpush3.bf16.msra.mxu1 %v17748_v18  ;;  %11080 = vmatmul.mubr.bf16.gmra.mxu0 %v14867_v63  ;;  %v6072_v9 = vsel %vm12342_vm10, %v9000_v45, %v6071_v6  ;;  %v6073_v26 = vrot.slane %v6071_v6, 4  ;;  %v17756_v18 = vld [vmem:[#allocation23_spill] sm:$0xff]  ;;  %v17758_v6 = vld [vmem:[#allocation64_spill] sm:$0xff] }
 0x34f   : > { %v15248_v41 = vcombine.low %v6058_v11, %v6061_v43  ;;  %11103 = vmatprep.subr.bf16.mxu1 %v17751_v8  ;;  %11160 = vmatpush3.bf16.msra.mxu0 %v15142_v3  ;;  %v6026_v61 = vsel %vm12342_vm10, %v6024_v30, %v6025_v32  ;;  %v6036_v4 = vrot.slane %v14829_v13, 5  ;;  %v6068_v15 = vsel %vm12342_vm10, %v6066_v51, %v6067_v48 }
 0x350   : > { %17749 = vst [vmem:[#allocation67_spill] sm:$0xff] %v15238_v42  ;;  %v6554_v24 = vshrl.u32 %v15236_v1, 16  ;;  %11083 = vmatprep.mubr.bf16.mxu0 %v14920_v23  ;;  %11161 = vmatprep.subr.bf16.mxu0 %v15158_v53  ;;  %v15263_v40 = vcombine.low %v6065_v54, %v6068_v15  ;;  %v6075_v29 = vsel %vm12342_vm10, %v6073_v26, %v6074_v31  ;;  %v6557_v3 = vshll.u32 %v15236_v1, 16  ;;  %v17759_v54 = vld [vmem:[#allocation8_spill] sm:$0xff]  ;;  %v17762_v31 = vld [vmem:[#allocation27_spill] sm:$0xff] }
 0x351   : > { %17750 = vst [vmem:[#allocation29_spill] sm:$0xff] %v15248_v41  ;;  %v6567_v32 = vshrl.u32 %v15244_v12, 16  ;;  %11024 = vmatmul.mubr.bf16.gmra.mxu1 %v15195_v62  ;;  %v15270_v30 = vcombine.low %v6072_v9, %v6075_v29  ;;  %v9001_v44 = vrot.slane %v17754_v19, 9  ;;  %v6078_v55 = vrot.slane %v14999_v35, 5 }
 0x352   : > { %17752 = vst [vmem:[#allocation7_spill] sm:$0xff] %v15263_v40  ;;  %v6081_v5 = vrot.slane %v15059_v36, 5  ;;  %11104 = vmatpush3.bf16.msra.mxu1 %v17751_v8  ;;  %11027 = vmatprep.mubr.bf16.mxu1 %v15198_v7  ;;  %v9002_v38 = vrot.slane %v17755_v57, 9  ;;  %v6085_v16 = vrot.slane %v15024_v20, 5  ;;  %v9003_v11 = vrot.slane %v17756_v18, 9  ;;  %v17768_v57 = vld [vmem:[#allocation55_spill] sm:$0xff] }
 0x353   : > { %17753 = vst [vmem:[#allocation75_spill] sm:$0xff] %v15270_v30  ;;  %v6092_v60 = vrot.slane %v15045_v25, 5  ;;  %11105 = vmatprep.subr.bf16.mxu1 %v17757_v50  ;;  %11162 = vmatpush3.bf16.msra.mxu0 %v15158_v53  ;;  %v6079_v35 = vsel %vm12342_vm10, %v9001_v44, %v6078_v55  ;;  %v6080_v36 = vrot.slane %v6078_v55, 4  ;;  %v6088_v52 = vrot.slane %v15068_v33, 5  ;;  %v17766_v44 = vld [vmem:[#allocation33_spill] sm:$0xff] }
 0x354   : > { %v6095_v46 = vrot.slane %v15081_v34, 5  ;;  %11243 = vmatprep.subr.bf16.mxu0 %v15163_v2  ;;  %v6086_v20 = vsel %vm12342_vm10, %v9002_v38, %v6085_v16  ;;  %v6087_v48 = vrot.slane %v6085_v16, 4  ;;  %v6033_v53 = vsel %vm12342_vm10, %v15214_v58, %v6032_v37 }
 0x355   : > { %v6093_v25 = vsel %vm12342_vm10, %v9003_v11, %v6092_v60  ;;  %v6094_v45 = vrot.slane %v6092_v60, 4  ;;  %v6043_v33 = vrot.slane %v17758_v6, 5  ;;  %v6082_v34 = vsel %vm12342_vm10, %v6080_v36, %v6081_v5  ;;  %v17770_v11 = vld [vmem:[#allocation71_spill] sm:$0xff]  ;;  %v17771_v36 = vld [vmem:[#allocation40_spill] sm:$0xff] }
 0x356   : > { %v6556_v43 = vrot.slane %v6554_v24, 4  ;;  %11106 = vmatpush3.bf16.msra.mxu1 %v17757_v50  ;;  %11084 = vmatmul.mubr.bf16.gmra.mxu0 %v17759_v54  ;;  %v15302_v51 = vcombine.low %v6079_v35, %v6082_v34  ;;  %v6089_v9 = vsel %vm12342_vm10, %v6087_v48, %v6088_v52  ;;  %v6559_v26 = vrot.slane %v6557_v3, 5  ;;  %v15319_v24 = vld [vmem:[#allocation2 + $0xc8] sm:$0x1]  ;;  %v9987_v3 = vld [vmem:[%s16827_s8 + $0x1b8] sm:$0xff]  }
 0x357   : > { %v6096_v21 = vsel %vm12342_vm10, %v6094_v45, %v6095_v46  ;;  %11107 = vmatprep.subr.bf16.mxu1 %v15153_v22  ;;  %v15310_v37 = vcombine.low %v15202_v28, %v6026_v61  ;;  %v6038_v58 = vrot.slane %v6036_v4, 4  ;;  %11087 = vmatprep.mubr.bf16.mxu0 %v17762_v31  ;;  %v15315_v8 = vcombine.low %v6086_v20, %v6089_v9  ;;  %v17772_v46 = vld [vmem:[#allocation34_spill] sm:$0xff]  ;;  %v17775_v9 = vld [vmem:[#allocation28_spill] sm:$0xff] }
 0x358   : > { %17760 = vst [vmem:[#allocation78_spill] sm:$0xff] %v15302_v51  ;;  %v15317_v15 = vcombine.low %v6093_v25, %v6096_v21  ;;  %v15322_v29 = vcombine.low %v15212_v59, %v6033_v53  ;;  %v6560_v28 = vor.u32 %v6559_v26, %v6556_v43  ;;  %v6563_v61 = vshll.u32 %v15244_v12, 16  ;;  %v17773_v25 = vld [vmem:[#allocation19_spill] sm:$0xff] }
 0x359   : > { %17761 = vst [vmem:[#allocation76_spill] sm:$0xff] %v15310_v37  ;;  %17763 = vst [vmem:[#allocation79_spill] sm:$0xff] %v15315_v8  ;;  %v6569_v19 = vrot.slane %v6567_v32, 4  ;;  %11028 = vmatmul.mubr.bf16.gmra.mxu1 %v15310_v37  ;;  %v17767_v55 = vunpack.c.l.bf16 %v15133_v56  ;;  %v17769_v38 = vunpack.c.h.bf16 %v15133_v56  ;;  %v6045_v59 = vrot.slane %v6043_v33, 4 }
 0x35a   : > { %17764 = vst [vmem:[#allocation83_spill] sm:$0xff] %v15317_v15  ;;  %17765 = vst [vmem:[#allocation93_spill] sm:$0xff] %v15322_v29  ;;  %v9625_v18 = vunpack.c.h.bf16 %v15147_v14  ;;  %11108 = vmatpush3.bf16.msra.mxu1 %v15153_v22  ;;  %11031 = vmatprep.mubr.bf16.mxu1 %v15322_v29  ;;  %v6039_v60 = vrot.slane %v17770_v11, 5  ;;  %v6561_v32 = vrot.slane %v6560_v28, 4  ;;  %v6565_v50 = vrot.slane %v6563_v61, 5  ;;  %v17776_v28 = vld [vmem:[#allocation31_spill] sm:$0xff] }
 0x35b   : > { %v4897_v5 = vmul.f32 %v17767_v55, %v17766_v44  ;;  %v4898_v16 = vmul.f32 %v17769_v38, %v17768_v57  ;;  %v6573_v35 = vshll.u32 %v15319_v24, 16  ;;  %11109 = vmatprep.subr.bf16.mxu1 %v15161_v10  ;;  %v6046_v52 = vrot.slane %v17771_v36, 5 }
 0x35c   : > { %v4895_v56 = vmul.f32 %v9624_v27, %v17772_v46  ;;  %v9716_v20 = vunpack.c.l.bf16 %v9987_v3  ;;  %v9717_v48 = vunpack.c.h.bf16 %v9987_v3  ;;  %v8995_v22 = vrot.slane %v17773_v25, 9  ;;  %v17787_v25 = vld [vmem:[#allocation47_spill] sm:$0xff] }
 0x35d   : > { %v6040_v45 = vsel %vm12342_vm10, %v6038_v58, %v6039_v60  ;;  %v6566_v6 = vsel %vm11786_vm7, %v6561_v32, %v6565_v50  ;;  %v6570_v34 = vor.u32 %v6569_v19, %v6565_v50  ;;  %v5008_v43 = vpack.c.bf16 %v4898_v16, %v4897_v5  ;;  %v17777_v58 = vld [vmem:[#allocation62_spill] sm:$0xff]  ;;  %v17779_v5 = vld [vmem:[#allocation59_spill] sm:$0xff]  ;;  %v9994_v50 = vld [vmem:[%s16827_s8 + $0x1f0] sm:$0xff]  }
 0x35e   : > { %v8996_v21 = vrot.slane %v17775_v9, 9  ;;  %v6047_v26 = vsel %vm12342_vm10, %v6045_v59, %v6046_v52  ;;  %v4896_v14 = vmul.f32 %v9625_v18, %v17776_v28  ;;  %11110 = vmatpush3.bf16.msra.mxu1 %v15161_v10  ;;  %v6037_v27 = vsel %vm12342_vm10, %v8995_v22, %v6036_v4  ;;  %11088 = vmatmul.mubr.bf16.gmra.mxu0 %v17777_v58  ;;  %v17781_v4 = vld [vmem:[#allocation15_spill] sm:$0xff]  ;;  %v17782_v59 = vld [vmem:[#allocation14_spill] sm:$0xff]  ;;  %v17788_v9 = vld [vmem:[#allocation13_spill] sm:$0xff] }
 0x35f   : > { %v6571_v3 = vrot.slane %v6570_v34, 4  ;;  %v6575_v61 = vrot.slane %v6573_v35, 5  ;;  %11111 = vmatprep.subr.bf16.mxu1 %v5008_v43  ;;  %v15360_v19 = vcombine.low %v6037_v27, %v6040_v45  ;;  %11091 = vmatprep.mubr.bf16.mxu0 %v17779_v5  ;;  %v4941_v16 = vmul.f32 %v9716_v20, %v17781_v4  ;;  %v17783_v60 = vld [vmem:[#allocation50_spill] sm:$0xff]  ;;  %v17786_v20 = vld [vmem:[#allocation16_spill] sm:$0xff]  ;;  %v9992_v34 = vld [vmem:[%s16827_s8 + $0x1e0] sm:$0xff]  }
 0x360   : > { %v6044_v55 = vsel %vm12342_vm10, %v8996_v21, %v6043_v33  ;;  %v5007_v13 = vpack.c.bf16 %v4896_v14, %v4895_v56  ;;  %v4942_v18 = vmul.f32 %v9717_v48, %v17782_v59  ;;  %v17784_v32 = vld [vmem:[#allocation54_spill] sm:$0xff]  ;;  %v15387_v35 = vcombine.low %v15236_v1, %v15244_v12  ;;  %v9993_v56 = vld [vmem:[%s16827_s8 + $0x1e8] sm:$0xff]  }
 0x361   : > { %17778 = vst [vmem:[#allocation42_spill] sm:$0xff] %v15360_v19  ;;  %v15365_v38 = vcombine.low %v6044_v55, %v6047_v26  ;;  %v6576_v10 = vsel %vm11786_vm7, %v6571_v3, %v6575_v61  ;;  %11032 = vmatmul.mubr.bf16.gmra.mxu1 %v15360_v19  ;;  %v9744_v36 = vunpack.c.l.bf16 %v9994_v50  ;;  %v9745_v52 = vunpack.c.h.bf16 %v9994_v50  ;;  %v17789_v26 = vld [vmem:[#allocation12_spill] sm:$0xff]  ;;  %v9991_v3 = vld [vmem:[%s16827_s8 + $0x1d8] sm:$0xff]  }
 0x362   : > { %v15372_v11 = vcombine.low %v6566_v6, %v6576_v10  ;;  %11112 = vmatpush3.bf16.msra.mxu1 %v5008_v43  ;;  %v15375_v33 = vpack.c.bf16 %v4942_v18, %v4941_v16  ;;  %17785 = vst [vmem:[#allocation81_spill] sm:$0xff] %v15387_v35  ;;  %v9740_v45 = vunpack.c.l.bf16 %v9993_v56  ;;  %v9741_v6 = vunpack.c.h.bf16 %v9993_v56  ;;  %v17790_v61 = vld [vmem:[#allocation22_spill] sm:$0xff] }
 0x363   : > { %17780 = vst [vmem:[#allocation80_spill] sm:$0xff] %v15365_v38  ;;  %11035 = vmatprep.mubr.bf16.mxu1 %v15365_v38  ;;  %11113 = vmatprep.subr.bf16.mxu1 %v5007_v13  ;;  %v4955_v48 = vmul.f32 %v9744_v36, %v17786_v20  ;;  %v4956_v22 = vmul.f32 %v9745_v52, %v17787_v25  ;;  %v9736_v43 = vunpack.c.l.bf16 %v9992_v34  ;;  %v9737_v27 = vunpack.c.h.bf16 %v9992_v34  ;;  %v9986_v36 = vld [vmem:[%s16827_s8 + $0x1b0] sm:$0xff]  }
 0x364   : > { %v4953_v21 = vmul.f32 %v9740_v45, %v17788_v9  ;;  %v4954_v14 = vmul.f32 %v9741_v6, %v17789_v26  ;;  %v9732_v18 = vunpack.c.l.bf16 %v9991_v3  ;;  %v9733_v50 = vunpack.c.h.bf16 %v9991_v3  ;;  %v17793_v6 = vld [vmem:[#allocation70_spill] sm:$0xff] }
 0x365   : > { %v4951_v55 = vmul.f32 %v9736_v43, %v17790_v61  ;;  %v9989_v43 = vld [vmem:[%s16827_s8 + $0x1c8] sm:$0xff]   ;;  %v17795_v3 = vld [vmem:[#allocation30_spill] sm:$0xff] }
 0x366   : > { %11114 = vmatpush3.bf16.msra.mxu1 %v5007_v13  ;;  %11092 = vmatmul.mubr.bf16.gmra.mxu0 %v17783_v60  ;;  %v5036_v10 = vpack.c.bf16 %v4954_v14, %v4953_v21  ;;  %v17791_v13 = vld [vmem:[#allocation37_spill] sm:$0xff]  ;;  %v4950_v34 = vmul.f32 %v9733_v50, %v17793_v6  ;;  %v9713_v21 = vunpack.c.h.bf16 %v9986_v36  ;;  %v17794_v14 = vld [vmem:[#allocation32_spill] sm:$0xff]  ;;  %v9724_v50 = vunpack.c.l.bf16 %v9989_v43 }
 0x367   : > { %11195 = vmatprep.subr.bf16.mxu1 %v15375_v33  ;;  %11095 = vmatprep.mubr.bf16.mxu0 %v17784_v32  ;;  %v4952_v16 = vmul.f32 %v9737_v27, %v17791_v13  ;;  %v17823_v60 = vld [vmem:[#allocation20_spill] sm:$0xff] }
 0x369   : > { %11036 = vmatmul.mubr.bf16.gmra.mxu1 %v15238_v42 }
 0x36a   : > { %11039 = vmatprep.mubr.bf16.mxu1 %v15248_v41 }
 0x36e   : > { %11096 = vmatmul.mubr.bf16.gmra.mxu0 %v15387_v35 }
 0x36f   : > { %11163 = vmatprep.mubr.bf16.mxu0 %v15181_v0  ;;  %v5037_v0 = vpack.c.bf16 %v4956_v22, %v4955_v48  ;;  %v5035_v48 = vpack.c.bf16 %v4952_v16, %v4951_v55  ;;  %v17792_v22 = vld [vmem:[#allocation72_spill] sm:$0xff]  ;;  %v17796_v16 = vld [vmem:[#allocation35_spill] sm:$0xff] }
 0x370   : > { %v4949_v45 = vmul.f32 %v9732_v18, %v17792_v22 }
 0x371   : > { %11040 = vmatmul.mubr.bf16.gmra.mxu1 %v15263_v40 }
 0x372   : > { %11043 = vmatprep.mubr.bf16.mxu1 %v15270_v30  ;;  %v5034_v18 = vpack.c.bf16 %v4950_v34, %v4949_v45  ;;  %v9984_v45 = vld [vmem:[%s16827_s8 + $0x1a0] sm:$0xff]  }
 0x376   : > { %11164 = vmatmul.mubr.bf16.vlgmr.msra.gmra.mxu0 %v15186_v47  ;;  %v9998_v47 = vld [vmem:[%s16827_s8 + $0x210] sm:$0xff]  }
 0x377   : > { %11244 = vmatpush3.bf16.msra.mxu0 %v15163_v2  ;;  %11167 = vmatprep.mubr.bf16.mxu0 %v15195_v62  ;;  %v9990_v2 = vld [vmem:[%s16827_s8 + $0x1d0] sm:$0xff]  }
 0x378   : > { %11245 = vmatprep.subr.bf16.mxu0 %v5037_v0  ;;  %v9728_v52 = vunpack.c.l.bf16 %v9990_v2  ;;  %v9729_v56 = vunpack.c.h.bf16 %v9990_v2  ;;  %v9725_v2 = vunpack.c.h.bf16 %v9989_v43 }
 0x379   : > { %11044 = vmatmul.mubr.bf16.gmra.mxu1 %v15302_v51 }
 0x37a   : > { %11047 = vmatprep.mubr.bf16.mxu1 %v15315_v8  ;;  %v4947_v27 = vmul.f32 %v9728_v52, %v17794_v14  ;;  %v4948_v55 = vmul.f32 %v9729_v56, %v17795_v3  ;;  %v4940_v52 = vmul.f32 %v9713_v21, %v17787_v25  ;;  %v4946_v34 = vmul.f32 %v9725_v2, %v17768_v57  ;;  %v17797_v21 = vld [vmem:[#allocation36_spill] sm:$0xff]  ;;  %v17798_v2 = vld [vmem:[#allocation25_spill] sm:$0xff] }
 0x37b   : > { %11246 = vmatpush3.bf16.msra.mxu0 %v5037_v0  ;;  %v9712_v0 = vunpack.c.l.bf16 %v9986_v36  ;;  %v9988_v36 = vld [vmem:[%s16827_s8 + $0x1c0] sm:$0xff]  }
 0x37c   : > { %11247 = vmatprep.subr.bf16.mxu0 %v5036_v10  ;;  %v9720_v43 = vunpack.c.l.bf16 %v9988_v36  ;;  %v9721_v62 = vunpack.c.h.bf16 %v9988_v36 }
 0x37e   : > { %11168 = vmatmul.mubr.bf16.gmra.mxu0 %v15198_v7  ;;  %v4944_v36 = vmul.f32 %v9721_v62, %v17776_v28 }
 0x37f   : > { %11248 = vmatpush3.bf16.msra.mxu0 %v5036_v10  ;;  %11171 = vmatprep.mubr.bf16.mxu0 %v15310_v37  ;;  %v9985_v10 = vld [vmem:[%s16827_s8 + $0x1a8] sm:$0xff]   ;;  %v4939_v37 = vmul.f32 %v9712_v0, %v17786_v20 }
 0x380   : > { %11249 = vmatprep.subr.bf16.mxu0 %v5035_v48  ;;  %v9708_v56 = vunpack.c.l.bf16 %v9985_v10  ;;  %v9709_v7 = vunpack.c.h.bf16 %v9985_v10  ;;  %v9704_v10 = vunpack.c.l.bf16 %v9984_v45 }
 0x381   : > { %11048 = vmatmul.mubr.bf16.gmra.mxu1 %v15317_v15  ;;  %v5029_v0 = vpack.c.bf16 %v4940_v52, %v4939_v37  ;;  %v4943_v37 = vmul.f32 %v9720_v43, %v17772_v46 }
 0x382   : > { %11115 = vmatprep.mubr.bf16.mxu1 %v17796_v16  ;;  %v5033_v16 = vpack.c.bf16 %v4948_v55, %v4947_v27  ;;  %v4937_v27 = vmul.f32 %v9708_v56, %v17788_v9  ;;  %v4938_v55 = vmul.f32 %v9709_v7, %v17789_v26 }
 0x383   : > { %11250 = vmatpush3.bf16.msra.mxu0 %v5035_v48  ;;  %v4945_v48 = vmul.f32 %v9724_v50, %v17766_v44  ;;  %v9983_v50 = vld [vmem:[%s16827_s8 + $0x198] sm:$0xff]  }
 0x384   : > { %11251 = vmatprep.subr.bf16.mxu0 %v5034_v18  ;;  %v9700_v52 = vunpack.c.l.bf16 %v9983_v50  ;;  %v9701_v7 = vunpack.c.h.bf16 %v9983_v50  ;;  %v5028_v56 = vpack.c.bf16 %v4938_v55, %v4937_v27  ;;  %v17800_v55 = vld [vmem:[#allocation39_spill] sm:$0xff] }
 0x386   : > { %11172 = vmatmul.mubr.bf16.gmra.mxu0 %v15322_v29  ;;  %v9705_v29 = vunpack.c.h.bf16 %v9984_v45  ;;  %v4935_v45 = vmul.f32 %v9704_v10, %v17790_v61  ;;  %v4933_v62 = vmul.f32 %v9700_v52, %v17792_v22  ;;  %v9981_v10 = vld [vmem:[%s16827_s8 + $0x188] sm:$0xff]   ;;  %v9980_v52 = vld [vmem:[%s16827_s8 + $0x180] sm:$0xff]  }
 0x387   : > { %11252 = vmatpush3.bf16.msra.mxu0 %v5034_v18  ;;  %11175 = vmatprep.mubr.bf16.mxu0 %v15360_v19  ;;  %v5032_v18 = vpack.c.bf16 %v4946_v34, %v4945_v48  ;;  %v9982_v48 = vld [vmem:[%s16827_s8 + $0x190] sm:$0xff]  }
 0x388   : > { %11253 = vmatprep.subr.bf16.mxu0 %v5033_v16  ;;  %v4936_v19 = vmul.f32 %v9705_v29, %v17791_v13  ;;  %v15467_v29 = vld [vmem:[%s16828_s9 + $0x38] sm:$0xff]   ;;  %v17799_v34 = vld [vmem:[#allocation53_spill] sm:$0xff]  ;;  %v9697_v27 = vunpack.c.h.bf16 %v9982_v48 }
 0x389   : > { %11116 = vmatmul.mubr.bf16.vlgmr.msra.gmra.mxu1 %v17797_v21 }
 0x38a   : > { %11196 = vmatpush3.bf16.msra.mxu1 %v15375_v33  ;;  %11119 = vmatprep.mubr.bf16.mxu1 %v17798_v2  ;;  %v5031_v33 = vpack.c.bf16 %v4944_v36, %v4943_v37  ;;  %v5027_v43 = vpack.c.bf16 %v4936_v19, %v4935_v45  ;;  %v4932_v37 = vmul.f32 %v9697_v27, %v17795_v3  ;;  %v9692_v36 = vunpack.c.l.bf16 %v9981_v10  ;;  %v17801_v45 = vld [vmem:[#allocation45_spill] sm:$0xff] }
 0x38b   : > { %11197 = vmatprep.subr.bf16.mxu1 %v5029_v0  ;;  %11254 = vmatpush3.bf16.msra.mxu0 %v5033_v16  ;;  %v4934_v16 = vmul.f32 %v9701_v7, %v17793_v6  ;;  %v9693_v19 = vunpack.c.h.bf16 %v9981_v10  ;;  %v10973_v7 = vpop.f32.mrf.mxu0 }
 0x38c   : > { %11255 = vmatprep.subr.bf16.mxu0 %v5032_v18 }
 0x38d   : > { %v5026_v50 = vpack.c.bf16 %v4934_v16, %v4933_v62  ;;  %v4930_v62 = vmul.f32 %v9693_v19, %v17768_v57  ;;  %v9689_v16 = vunpack.c.h.bf16 %v9980_v52  ;;  %v5842_v27 = vpop.f32.mrf.mxu0  ;;  %v17803_v19 = vld [vmem:[#allocation41_spill] sm:$0xff] }
 0x38e   : > { %11198 = vmatpush3.bf16.msra.mxu1 %v5029_v0  ;;  %11176 = vmatmul.mubr.bf16.gmra.mxu0 %v15365_v38  ;;  %v9696_v0 = vunpack.c.l.bf16 %v9982_v48  ;;  %v4929_v48 = vmul.f32 %v9692_v36, %v17766_v44  ;;  %v17821_v38 = vld [vmem:[#allocation46_spill] sm:$0xff] }
 0x38f   : > { %11199 = vmatprep.subr.bf16.mxu1 %v5028_v56  ;;  %11256 = vmatpush3.bf16.msra.mxu0 %v5032_v18  ;;  %v10974_v36 = vpop.f32.mrf.mxu0 }
 0x390   : > { %11179 = vmatprep.mubr.bf16.mxu0 %v15238_v42  ;;  %11257 = vmatprep.subr.bf16.mxu0 %v5031_v33  ;;  %v4931_v18 = vmul.f32 %v9696_v0, %v17794_v14  ;;  %v10003_v0 = vld [vmem:[%s16827_s8 + $0x238] sm:$0xff]  }
 0x391   : > { %11120 = vmatmul.mubr.bf16.gmra.mxu1 %v17799_v34  ;;  %v9780_v10 = vunpack.c.l.bf16 %v10003_v0 }
 0x392   : > { %11200 = vmatpush3.bf16.msra.mxu1 %v5028_v56  ;;  %11123 = vmatprep.mubr.bf16.mxu1 %v17800_v55  ;;  %v9688_v56 = vunpack.c.l.bf16 %v9980_v52 }
 0x393   : > { %11201 = vmatprep.subr.bf16.mxu1 %v5027_v43  ;;  %11258 = vmatpush3.bf16.msra.mxu0 %v5031_v33  ;;  %v5025_v33 = vpack.c.bf16 %v4932_v37, %v4931_v18  ;;  %v4928_v18 = vmul.f32 %v9689_v16, %v17776_v28  ;;  %v9781_v37 = vunpack.c.h.bf16 %v10003_v0  ;;  %v4973_v52 = vmul.f32 %v9780_v10, %v17781_v4  ;;  %v17810_v10 = vld [vmem:[#allocation69_spill] sm:$0xff] }
 0x394   : > { %11339 = vmatprep.subr.bf16.mxu0 %v15467_v29 }
 0x395   : > { %v4974_v42 = vmul.f32 %v9781_v37, %v17782_v59  ;;  %v17809_v59 = vld [vmem:[#allocation6_spill] sm:$0xff] }
 0x396   : > { %11202 = vmatpush3.bf16.msra.mxu1 %v5027_v43  ;;  %11180 = vmatmul.mubr.bf16.gmra.mxu0 %v15248_v41  ;;  %v17802_v43 = vld [vmem:[#allocation18_spill] sm:$0xff]  ;;  %v4927_v41 = vmul.f32 %v9688_v56, %v17772_v46  ;;  %v15497_v56 = vpop.f32.mrf.mxu0 }
 0x397   : > { %11203 = vmatprep.subr.bf16.mxu1 %v5026_v50  ;;  %11183 = vmatprep.mubr.bf16.mxu0 %v15263_v40  ;;  %v5024_v40 = vpack.c.bf16 %v4930_v62, %v4929_v48  ;;  %v6777_v48 = vrot.slane %v15244_v12, 5  ;;  %17804 = vst [vmem:[#allocation82_spill] sm:$0xff] %v15497_v56  ;;  %v17805_v62 = vld [vmem:[#allocation68_spill] sm:$0xff] }
 0x399   : > { %11124 = vmatmul.mubr.bf16.gmra.mxu1 %v17801_v45 }
 0x39a   : > { %11204 = vmatpush3.bf16.msra.mxu1 %v5026_v50  ;;  %11127 = vmatprep.mubr.bf16.mxu1 %v17802_v43  ;;  %v5023_v50 = vpack.c.bf16 %v4928_v18, %v4927_v41  ;;  %v10977_v41 = vpop.f32.mrf.mxu0 }
 0x39b   : > { %11205 = vmatprep.subr.bf16.mxu1 %v5025_v33 }
 0x39e   : > { %11206 = vmatpush3.bf16.msra.mxu1 %v5025_v33  ;;  %11184 = vmatmul.mubr.bf16.gmra.mxu0 %v15270_v30  ;;  %v6779_v30 = vrot.slane %v6777_v48, 4 }
 0x39f   : > { %11207 = vmatprep.subr.bf16.mxu1 %v5024_v40  ;;  %11187 = vmatprep.mubr.bf16.mxu0 %v15302_v51  ;;  %v15502_v51 = vpack.c.bf16 %v4974_v42, %v4973_v52  ;;  %v9022_v42 = vrot.slane %v15236_v1, 9  ;;  %v17813_v1 = vld [vmem:[#allocation74_spill] sm:$0xff] }
 0x3a0   : > { %v10925_v33 = vpop.f32.mrf.mxu1 }
 0x3a1   : > { %11128 = vmatmul.mubr.bf16.gmra.mxu1 %v17803_v19  ;;  %v15500_v16 = vadd.f32 %v10973_v7, %v10925_v33  ;;  %v6778_v37 = vsel %vm12342_vm10, %v9022_v42, %v6777_v48  ;;  %v11485_v48 = vld [vmem:[%s16828_s9 + $0x28] sm:$0xff]  }
 0x3a2   : > { %11208 = vmatpush3.bf16.msra.mxu1 %v5024_v40  ;;  %11131 = vmatprep.mubr.bf16.mxu1 %v17805_v62  ;;  %v5585_v0 = vpop.f32.mrf.mxu1  ;;  %v6780_v40 = vrot.slane %v15319_v24, 5  ;;  %v17812_v24 = vld [vmem:[#allocation52_spill] sm:$0xff] }
 0x3a3   : > { %11209 = vmatprep.subr.bf16.mxu1 %v5023_v50  ;;  %17806 = vst [vmem:[#allocation85_spill] sm:$0xff] %v15500_v16  ;;  %v15504_v18 = vadd.f32 %v5842_v27, %v5585_v0  ;;  %v5858_v27 = vpop.f32.mrf.mxu0 }
 0x3a4   : > { %v10926_v12 = vpop.f32.mrf.mxu1  ;;  %v6781_v7 = vsel %vm12342_vm10, %v6779_v30, %v6780_v40  ;;  %v11484_v30 = vld [vmem:[%s16828_s9 + $0x30] sm:$0xff]  }
 0x3a5   : > { %17807 = vst [vmem:[#allocation87_spill] sm:$0xff] %v15504_v18  ;;  %v15510_v4 = vadd.f32 %v10974_v36, %v10926_v12  ;;  %v10978_v52 = vpop.f32.mrf.mxu0  ;;  %v17815_v12 = vld [vmem:[#allocation57_spill] sm:$0xff] }
 0x3a6   : > { %11210 = vmatpush3.bf16.msra.mxu1 %v5023_v50  ;;  %11188 = vmatmul.mubr.bf16.gmra.mxu0 %v15315_v8  ;;  %v15519_v50 = vcombine.low %v6778_v37, %v6781_v7  ;;  %v15525_v33 = vpop.f32.mrf.mxu1  ;;  %v17817_v7 = vld [vmem:[#allocation26_spill] sm:$0xff] }
 0x3a7   : > { %11291 = vmatprep.subr.bf16.mxu1 %v15502_v51  ;;  %11191 = vmatprep.mubr.bf16.mxu0 %v15317_v15  ;;  %17808 = vst [vmem:[#allocation89_spill] sm:$0xff] %v15510_v4  ;;  %v5861_v36 = vpop.f32.mrf.mxu0  ;;  %17814 = vst [vmem:[#allocation17_spill] sm:$0xff] %v15525_v33  ;;  %v9031_v4 = vld [vmem:[%s11755_s18 + $0x10] sm:$0xf] }
 0x3a8   : > { %17811 = vst [vmem:[#allocation91_spill] sm:$0xff] %v15519_v50 }
 0x3a9   : > { %11132 = vmatmul.mubr.bf16.gmra.mxu1 %v17809_v59  ;;  %v15530_v0 = vpop.f32.mrf.mxu0 }
 0x3aa   : > { %11135 = vmatprep.mubr.bf16.mxu1 %v17810_v10 }
 0x3ab   : > { %v15541_v42 = vpop.f32.mrf.mxu0 }
 0x3ae   : > { %11192 = vmatmul.mubr.bf16.gmra.mxu0 %v15519_v50 }
 0x3af   : > { %11259 = vmatprep.mubr.bf16.mxu0 %v17797_v21 }
 0x3b1   : > { %11136 = vmatmul.mubr.bf16.gmra.mxu1 %v17812_v24 }
 0x3b2   : > { %11139 = vmatprep.mubr.bf16.mxu1 %v17813_v1 }
 0x3b6   : > { %11260 = vmatmul.mubr.bf16.vlgmr.msra.gmra.mxu0 %v17798_v2  ;;  %v10929_v21 = vpop.f32.mrf.mxu1  ;;  %v10002_v2 = vld [vmem:[%s16827_s8 + $0x230] sm:$0xff]  }
 0x3b7   : > { %11263 = vmatprep.mubr.bf16.mxu0 %v17799_v34  ;;  %11340 = vmatpush3.bf16.msra.mxu0 %v15467_v29  ;;  %v15539_v40 = vadd.f32 %v10977_v41, %v10929_v21  ;;  %v15552_v41 = vpop.f32.mrf.mxu0  ;;  %v9776_v50 = vunpack.c.l.bf16 %v10002_v2  ;;  %v9777_v15 = vunpack.c.h.bf16 %v10002_v2 }
 0x3b8   : > { %11341 = vmatprep.subr.bf16.mxu0 %v11484_v30  ;;  %v5601_v37 = vpop.f32.mrf.mxu1 }
 0x3b9   : > { %11140 = vmatmul.mubr.bf16.gmra.mxu1 %v17815_v12  ;;  %17816 = vst [vmem:[#allocation84_spill] sm:$0xff] %v15539_v40  ;;  %v15547_v29 = vadd.f32 %v5858_v27, %v5601_v37  ;;  %v10001_v27 = vld [vmem:[%s16827_s8 + $0x228] sm:$0xff]   ;;  %v15571_v8 = vpop.f32.mrf.mxu0 }
 0x3ba   : > { %11143 = vmatprep.mubr.bf16.mxu1 %v17817_v7  ;;  %v10930_v34 = vpop.f32.mrf.mxu1  ;;  %v9772_v2 = vunpack.c.l.bf16 %v10001_v27 }
 0x3bb   : > { %17818 = vst [vmem:[#allocation86_spill] sm:$0xff] %v15547_v29  ;;  %11342 = vmatpush3.bf16.msra.mxu0 %v11484_v30  ;;  %v15554_v21 = vadd.f32 %v10978_v52, %v10930_v34  ;;  %v11487_v52 = vld [vmem:[%s16828_s9 + $0x18] sm:$0xff]   ;;  %v15566_v34 = vld [vmem:[#allocation2 + $0xcc] sm:$0xf] }
 0x3bc   : > { %11343 = vmatprep.subr.bf16.mxu0 %v11485_v48  ;;  %v5604_v37 = vpop.f32.mrf.mxu1 }
 0x3bd   : > { %17819 = vst [vmem:[#allocation88_spill] sm:$0xff] %v15554_v21  ;;  %v15561_v30 = vadd.f32 %v5861_v36, %v5604_v37  ;;  %v4972_v36 = vmul.f32 %v9777_v15, %v17787_v25  ;;  %v10000_v37 = vld [vmem:[%s16827_s8 + $0x220] sm:$0xff]   ;;  %v7179_v21 = vshrl.u32 %v15566_v34, 16  ;;  %v11488_v15 = vld [vmem:[%s16828_s9 + $0x10] sm:$0xff]   ;;  %v4969_v25 = vmul.f32 %v9772_v2, %v17788_v9 }
 0x3be   : > { %11264 = vmatmul.mubr.bf16.gmra.mxu0 %v17800_v55  ;;  %v15568_v55 = vld [vmem:[#allocation2 + $0xd0] sm:$0xf]  ;;  %v9769_v29 = vunpack.c.h.bf16 %v10000_v37  ;;  %v5102_v9 = vld [vmem:[#allocation2 + $0xd4] sm:$0x1] }
 0x3bf   : > { %11267 = vmatprep.mubr.bf16.mxu0 %v17801_v45  ;;  %17820 = vst [vmem:[#allocation90_spill] sm:$0xff] %v15561_v30  ;;  %11344 = vmatpush3.bf16.msra.mxu0 %v11485_v48  ;;  %v4971_v45 = vmul.f32 %v9776_v50, %v17786_v20  ;;  %v9773_v48 = vunpack.c.h.bf16 %v10001_v27  ;;  %v9999_v30 = vld [vmem:[%s16827_s8 + $0x218] sm:$0xff]   ;;  %v7192_v20 = vshrl.u32 %v15568_v55, 16  ;;  %v7188_v50 = vshll.u32 %v15568_v55, 16 }
 0x3c0   : > { %11345 = vmatprep.subr.bf16.mxu0 %v11486_v17  ;;  %v9768_v27 = vunpack.c.l.bf16 %v10000_v37  ;;  %v9764_v56 = vunpack.c.l.bf16 %v9999_v30  ;;  %v9765_v33 = vunpack.c.h.bf16 %v9999_v30  ;;  %v7181_v2 = vrot.slane %v7179_v21, 4 }
 0x3c1   : > { %11144 = vmatmul.mubr.bf16.gmra.mxu1 %v15372_v11  ;;  %v15590_v40 = vpop.f32.mrf.mxu0  ;;  %v5045_v18 = vpack.c.bf16 %v4972_v36, %v4971_v45  ;;  %v4970_v16 = vmul.f32 %v9773_v48, %v17789_v26  ;;  %v15600_v35 = vrot.slane %v7188_v50, 5  ;;  %v7194_v32 = vrot.slane %v7192_v20, 4  ;;  %v15605_v26 = vld [vmem:[%s16827_s8 + $0x208] sm:$0xff]   ;;  %v17822_v36 = vld [vmem:[#allocation43_spill] sm:$0xff] }
 0x3c2   : > { %11211 = vmatprep.mubr.bf16.mxu1 %v17821_v38  ;;  %v7182_v38 = vshll.u32 %v15566_v34, 16  ;;  %v4967_v21 = vmul.f32 %v9768_v27, %v17790_v61  ;;  %v4968_v48 = vmul.f32 %v9769_v29, %v17791_v13  ;;  %v9760_v20 = vunpack.c.l.bf16 %v9998_v47  ;;  %v9996_v13 = vld [vmem:[%s16827_s8 + $0x200] sm:$0xff]  }
 0x3c3   : > { %11346 = vmatpush3.bf16.msra.mxu0 %v11486_v17  ;;  %v9030_v17 = vld [vmem:[%s11755_s18 + $0xc] sm:$0xf]  ;;  %v9761_v50 = vunpack.c.h.bf16 %v9998_v47  ;;  %v4965_v5 = vmul.f32 %v9764_v56, %v17792_v22  ;;  %v9756_v61 = vunpack.c.l.bf16 %v15605_v26 }
 0x3c4   : > { %11347 = vmatprep.subr.bf16.mxu0 %v11487_v52  ;;  %v7184_v37 = vrot.slane %v7182_v38, 5  ;;  %v7858_v30 = vshrl.u32 %v9030_v17, 16  ;;  %v7861_v45 = vshll.u32 %v9030_v17, 16  ;;  %v15613_v38 = vpop.f32.mrf.mxu0  ;;  %v4966_v17 = vmul.f32 %v9765_v33, %v17793_v6 }
 0x3c5   : > { %v4963_v33 = vmul.f32 %v9760_v20, %v17794_v14 }
 0x3c6   : > { %11268 = vmatmul.mubr.bf16.gmra.mxu0 %v17802_v43  ;;  %v11490_v43 = vld [vmem:[%s16828_s9 + $0x8] sm:$0xff]   ;;  %v7185_v47 = vor.u32 %v7184_v37, %v7181_v2  ;;  %v7860_v29 = vrot.slane %v7858_v30, 4  ;;  %v7863_v22 = vrot.slane %v7861_v45, 5  ;;  %v15629_v27 = vpop.f32.mrf.mxu0  ;;  %v15636_v2 = vpack.c.bf16 %v4966_v17, %v4965_v5 }
 0x3c7   : > { %11271 = vmatprep.mubr.bf16.mxu0 %v17803_v19  ;;  %11348 = vmatpush3.bf16.msra.mxu0 %v11487_v52  ;;  %v7867_v19 = vshll.u32 %v9031_v4, 16  ;;  %v7871_v52 = vshrl.u32 %v9031_v4, 16  ;;  %v7198_v4 = vshll.u32 %v5102_v9, 16  ;;  %v9033_v9 = vld [vmem:[%s11755_s18 + $0x18] sm:$0xf]  ;;  %v9752_v30 = vunpack.c.l.bf16 %v9996_v13 }
 0x3c8   : > { %11349 = vmatprep.subr.bf16.mxu0 %v11488_v15  ;;  %v9753_v45 = vunpack.c.h.bf16 %v9996_v13  ;;  %v4961_v5 = vmul.f32 %v9756_v61, %v17766_v44  ;;  %v7882_v20 = vshrl.u32 %v9033_v9, 16 }
 0x3c9   : > { %11212 = vmatmul.mubr.bf16.vlgmr.msra.gmra.mxu1 %v17822_v36  ;;  %v5044_v36 = vpack.c.bf16 %v4970_v16, %v4969_v25  ;;  %v15625_v56 = vrot.slane %v7867_v19, 5  ;;  %v7873_v6 = vrot.slane %v7871_v52, 4  ;;  %v5043_v16 = vpack.c.bf16 %v4968_v48, %v4967_v21  ;;  %v9034_v19 = vld [vmem:[%s11755_s18 + $0x1c] sm:$0xf] }
 0x3ca   : > { %11292 = vmatpush3.bf16.msra.mxu1 %v15502_v51  ;;  %11215 = vmatprep.mubr.bf16.mxu1 %v17823_v60  ;;  %v7195_v51 = vor.u32 %v7194_v32, %v15600_v35  ;;  %v9032_v60 = vld [vmem:[%s11755_s18 + $0x14] sm:$0x1]  ;;  %v4964_v25 = vmul.f32 %v9761_v50, %v17795_v3  ;;  %v11491_v32 = vld [vmem:[%s16828_s9] sm:$0xff]   ;;  %v7200_v14 = vrot.slane %v7198_v4, 5  ;;  %v17824_v50 = vld [vmem:[#allocation38_spill] sm:$0xff]  ;;  %v7885_v4 = vshll.u32 %v9033_v9, 16 }
 0x3cb   : > { %11293 = vmatprep.subr.bf16.mxu1 %v5045_v18  ;;  %11350 = vmatpush3.bf16.msra.mxu0 %v11488_v15  ;;  %v9757_v15 = vunpack.c.h.bf16 %v15605_v26  ;;  %v7186_v26 = vrot.slane %v7185_v47, 4  ;;  %v7877_v21 = vshll.u32 %v9032_v60, 16  ;;  %v7874_v48 = vor.u32 %v7873_v6, %v15625_v56 }
 0x3cc   : > { %11351 = vmatprep.subr.bf16.mxu0 %v11490_v43  ;;  %v7196_v52 = vrot.slane %v7195_v51, 4  ;;  %v7891_v13 = vshll.u32 %v9034_v19, 16  ;;  %v7895_v47 = vshrl.u32 %v9034_v19, 16  ;;  %v4959_v61 = vmul.f32 %v9752_v30, %v17772_v46 }
 0x3cd   : > { %v4960_v51 = vmul.f32 %v9753_v45, %v17776_v28  ;;  %v7191_v60 = vsel %vm11786_vm7, %v7186_v26, %v15600_v35  ;;  %v7875_v46 = vrot.slane %v7874_v48, 4  ;;  %v5041_v30 = vpack.c.bf16 %v4964_v25, %v4963_v33  ;;  %v9039_v26 = vld [vmem:[%s11755_s18 + $0x30] sm:$0xf] }
 0x3ce   : > { %11294 = vmatpush3.bf16.msra.mxu1 %v5045_v18  ;;  %11272 = vmatmul.mubr.bf16.gmra.mxu0 %v17805_v62  ;;  %v10933_v37 = vpop.f32.mrf.mxu1  ;;  %v7864_v62 = vor.u32 %v7863_v22, %v7860_v29  ;;  %v7884_v22 = vrot.slane %v7882_v20, 4  ;;  %v15670_v35 = vrot.slane %v7891_v13, 5  ;;  %v7897_v9 = vrot.slane %v7895_v47, 4  ;;  %v9043_v20 = vld [vmem:[%s11755_s18 + $0x40] sm:$0xf] }
 0x3cf   : > { %11295 = vmatprep.subr.bf16.mxu1 %v5044_v36  ;;  %v15641_v3 = vadd.f32 %v15530_v0, %v10933_v37  ;;  %11275 = vmatprep.mubr.bf16.mxu0 %v17809_v59  ;;  %v15650_v0 = vpop.f32.mrf.mxu0  ;;  %v9035_v59 = vld [vmem:[%s11755_s18 + $0x20] sm:$0x1]  ;;  %v9036_v37 = vld [vmem:[%s11755_s18 + $0x24] sm:$0xf] }
 0x3d0   : > { %v5617_v18 = vpop.f32.mrf.mxu1  ;;  %11352 = vmatpush3.bf16.msra.mxu0 %v11490_v43  ;;  %v4962_v43 = vmul.f32 %v9757_v15, %v17768_v57  ;;  %v7865_v57 = vrot.slane %v7864_v62, 4  ;;  %v7901_v28 = vshll.u32 %v9035_v59, 16  ;;  %v7887_v15 = vrot.slane %v7885_v4, 5 }
 0x3d1   : > { %11216 = vmatmul.mubr.bf16.gmra.mxu1 %v17824_v50  ;;  %v15648_v17 = vadd.f32 %v15541_v42, %v5617_v18  ;;  %11353 = vmatprep.subr.bf16.mxu0 %v11491_v32  ;;  %v7906_v25 = vshrl.u32 %v9036_v37, 16  ;;  %v7930_v59 = vshrl.u32 %v9039_v26, 16  ;;  %v7933_v4 = vshll.u32 %v9039_v26, 16 }
 0x3d2   : > { %11296 = vmatpush3.bf16.msra.mxu1 %v5044_v36  ;;  %11219 = vmatprep.mubr.bf16.mxu1 %v14798_v49  ;;  %v10934_v44 = vpop.f32.mrf.mxu1  ;;  %v7201_v36 = vsel %vm11786_vm7, %v7196_v52, %v7200_v14  ;;  %v7879_v49 = vrot.slane %v7877_v21, 5  ;;  %v15676_v45 = vpack.c.bf16 %v4962_v43, %v4961_v5  ;;  %v15681_v14 = vpack.c.bf16 %v4960_v51, %v4959_v61 }
 0x3d3   : > { %11297 = vmatprep.subr.bf16.mxu1 %v5043_v16  ;;  %v15658_v42 = vadd.f32 %v15552_v41, %v10934_v44  ;;  %v15668_v41 = vpop.f32.mrf.mxu0  ;;  %v15683_v19 = vcombine.low %v7191_v60, %v7201_v36  ;;  %v7909_v52 = vshll.u32 %v9036_v37, 16  ;;  %v7888_v18 = vor.u32 %v7887_v15, %v7884_v22  ;;  %v9045_v22 = vld [vmem:[%s11755_s18 + $0x48] sm:$0xf] }
 0x3d4   : > { %v5620_v29 = vpop.f32.mrf.mxu1  ;;  %11354 = vmatpush3.bf16.msra.mxu0 %v11491_v32  ;;  %v9037_v32 = vld [vmem:[%s11755_s18 + $0x28] sm:$0xf]  ;;  %v7880_v33 = vsel %vm11786_vm7, %v7875_v46, %v7879_v49  ;;  %v7898_v5 = vor.u32 %v7897_v9, %v15670_v35  ;;  %v15697_v62 = vrot.slane %v7901_v28, 5  ;;  %v7908_v51 = vrot.slane %v7906_v25, 4  ;;  %v9041_v9 = vld [vmem:[%s11755_s18 + $0x38] sm:$0x1] }
 0x3d5   : > { %v15666_v6 = vadd.f32 %v15571_v8, %v5620_v29  ;;  %v15679_v8 = vpop.f32.mrf.mxu0  ;;  %v7915_v48 = vshll.u32 %v9037_v32, 16  ;;  %v7919_v50 = vshrl.u32 %v9037_v32, 16  ;;  %v7963_v60 = vshll.u32 %v9043_v20, 16 }
 0x3d6   : > { %11298 = vmatpush3.bf16.msra.mxu1 %v5043_v16  ;;  %11276 = vmatmul.mubr.bf16.gmra.mxu0 %v17810_v10  ;;  %v9040_v16 = vld [vmem:[%s11755_s18 + $0x34] sm:$0xf]  ;;  %v7870_v10 = vsel %vm11786_vm7, %v7865_v57, %v15625_v56  ;;  %v15703_v56 = vld [vmem:[%s11755_s18 + $0x2c] sm:$0x1]  ;;  %v15711_v49 = vrot.slane %v7888_v18, 4  ;;  %v15713_v29 = vrot.slane %v7898_v5, 4 }
 0x3d7   : > { %11299 = vmatprep.subr.bf16.mxu1 %v15636_v2  ;;  %11279 = vmatprep.mubr.bf16.mxu0 %v17812_v24  ;;  %v9042_v24 = vld [vmem:[%s11755_s18 + $0x3c] sm:$0xf]  ;;  %v15694_v21 = vpop.f32.mrf.mxu0  ;;  %v7939_v13 = vshll.u32 %v9040_v16, 16  ;;  %v15707_v47 = vcombine.low %v7870_v10, %v7880_v33  ;;  %v7943_v44 = vshrl.u32 %v9040_v16, 16  ;;  %v15715_v57 = vrot.slane %v7915_v48, 5 }
 0x3d8   : > { %v7954_v43 = vshrl.u32 %v9042_v24, 16  ;;  %v7957_v61 = vshll.u32 %v9042_v24, 16  ;;  %v7925_v46 = vshll.u32 %v15703_v56, 16  ;;  %v7921_v15 = vrot.slane %v7919_v50, 4  ;;  %v9044_v50 = vld [vmem:[%s11755_s18 + $0x44] sm:$0x1] }
 0x3d9   : > { %11220 = vmatmul.mubr.bf16.gmra.mxu1 %v14851_v39  ;;  %v15705_v39 = vpop.f32.mrf.mxu0  ;;  %v7932_v37 = vrot.slane %v7930_v59, 4  ;;  %v7935_v32 = vrot.slane %v7933_v4, 5  ;;  %v15721_v26 = vrot.slane %v7939_v13, 5  ;;  %v15731_v18 = vrot.slane %v7963_v60, 5 }
 0x3da   : > { %11300 = vmatpush3.bf16.msra.mxu1 %v15636_v2  ;;  %11223 = vmatprep.mubr.bf16.mxu1 %v14867_v63  ;;  %v7911_v2 = vrot.slane %v7909_v52, 5  ;;  %v7967_v63 = vshrl.u32 %v9043_v20, 16  ;;  %v7956_v33 = vrot.slane %v7954_v43, 4  ;;  %v7959_v25 = vrot.slane %v7957_v61, 5  ;;  %v9048_v43 = vld [vmem:[%s11755_s18 + $0x54] sm:$0xf] }
 0x3db   : > { %11301 = vmatprep.subr.bf16.mxu1 %v5041_v30  ;;  %v7978_v48 = vshrl.u32 %v9045_v22, 16  ;;  %v7894_v20 = vsel %vm11786_vm7, %v15711_v49, %v15670_v35  ;;  %v7904_v56 = vsel %vm11786_vm7, %v15713_v29, %v15697_v62  ;;  %v7981_v59 = vshll.u32 %v9045_v22, 16  ;;  %v9053_v49 = vld [vmem:[%s11755_s18 + $0x68] sm:$0x1]  ;;  %v9055_v29 = vld [vmem:[%s11755_s18 + $0x70] sm:$0xf] }
 0x3dc   : > { %v15709_v36 = vpop.f32.mrf.mxu0  ;;  %v7912_v24 = vor.u32 %v7911_v2, %v7908_v51  ;;  %v7969_v5 = vrot.slane %v7967_v63, 4  ;;  %v7949_v4 = vshll.u32 %v9041_v9, 16  ;;  %v7936_v2 = vor.u32 %v7935_v32, %v7932_v37 }
 0x3dd   : > { %v8005_v37 = vshll.u32 %v9048_v43, 16 }
 0x3de   : > { %11302 = vmatpush3.bf16.msra.mxu1 %v5041_v30  ;;  %v10937_v28 = vpop.f32.mrf.mxu1  ;;  %11280 = vmatmul.mubr.bf16.gmra.mxu0 %v17813_v1  ;;  %v15728_v10 = vpop.f32.mrf.mxu0  ;;  %v7945_v30 = vrot.slane %v7943_v44, 4  ;;  %v9046_v1 = vld [vmem:[%s11755_s18 + $0x4c] sm:$0xf]  ;;  %v15759_v63 = vrot.slane %v7912_v24, 4  ;;  %v7970_v22 = vor.u32 %v7969_v5, %v15731_v18 }
 0x3df   : > { %11303 = vmatprep.subr.bf16.mxu1 %v15676_v45  ;;  %v15725_v16 = vadd.f32 %v15590_v40, %v10937_v28  ;;  %11283 = vmatprep.mubr.bf16.mxu0 %v17815_v12  ;;  %v7987_v13 = vshll.u32 %v9046_v1, 16  ;;  %v7991_v44 = vshrl.u32 %v9046_v1, 16  ;;  %v7973_v28 = vshll.u32 %v9044_v50, 16 }
 0x3e0   : > { %v5633_v52 = vpop.f32.mrf.mxu1  ;;  %v15737_v12 = vpop.f32.mrf.mxu0  ;;  %v7946_v60 = vor.u32 %v7945_v30, %v15721_v26  ;;  %v7927_v30 = vrot.slane %v7925_v46, 5  ;;  %v7971_v46 = vrot.slane %v7970_v22, 4 }
 0x3e1   : > { %11224 = vmatmul.mubr.bf16.gmra.mxu1 %v14920_v23  ;;  %v15735_v40 = vadd.f32 %v15613_v38, %v5633_v52  ;;  %v7922_v38 = vor.u32 %v7921_v15, %v15715_v57  ;;  %v7980_v15 = vrot.slane %v7978_v48, 4  ;;  %v8002_v52 = vshrl.u32 %v9048_v43, 16  ;;  %v9049_v43 = vld [vmem:[%s11755_s18 + $0x58] sm:$0xf] }
 0x3e2   : > { %11304 = vmatpush3.bf16.msra.mxu1 %v15676_v45  ;;  %11227 = vmatprep.mubr.bf16.mxu1 %v17759_v54  ;;  %v10938_v23 = vpop.f32.mrf.mxu1  ;;  %v15756_v51 = vpop.f32.mrf.mxu0  ;;  %v7960_v45 = vor.u32 %v7959_v25, %v7956_v33  ;;  %v9047_v33 = vld [vmem:[%s11755_s18 + $0x50] sm:$0x1]  ;;  %v15770_v25 = vrot.slane %v7987_v13, 5  ;;  %v7993_v24 = vrot.slane %v7991_v44, 4  ;;  %v7937_v48 = vrot.slane %v7936_v2, 4 }
 0x3e3   : > { %11305 = vmatprep.subr.bf16.mxu1 %v15681_v14  ;;  %v15754_v61 = vadd.f32 %v15629_v27, %v10938_v23  ;;  %v7983_v27 = vrot.slane %v7981_v59, 5  ;;  %v7923_v32 = vrot.slane %v7922_v38, 4  ;;  %v7947_v50 = vrot.slane %v7946_v60, 4 }
 0x3e4   : > { %v5636_v54 = vpop.f32.mrf.mxu1  ;;  %v7951_v59 = vrot.slane %v7949_v4, 5  ;;  %v7961_v23 = vrot.slane %v7960_v45, 4  ;;  %v7975_v38 = vrot.slane %v7973_v28, 5  ;;  %v7997_v4 = vshll.u32 %v9047_v33, 16  ;;  %v9051_v45 = vld [vmem:[%s11755_s18 + $0x60] sm:$0xf] }
 0x3e5   : > { %v15763_v9 = vadd.f32 %v15650_v0, %v5636_v54  ;;  %v15765_v1 = vpop.f32.mrf.mxu0  ;;  %v7984_v44 = vor.u32 %v7983_v27, %v7980_v15  ;;  %v8004_v2 = vrot.slane %v8002_v52, 4  ;;  %v8007_v60 = vrot.slane %v8005_v37, 5  ;;  %v9050_v54 = vld [vmem:[%s11755_s18 + $0x5c] sm:$0x1]  ;;  %v9052_v33 = vld [vmem:[%s11755_s18 + $0x64] sm:$0xf] }
 0x3e6   : > { %11306 = vmatpush3.bf16.msra.mxu1 %v15681_v14  ;;  %11284 = vmatmul.mubr.bf16.gmra.mxu0 %v17817_v7  ;;  %v10941_v5 = vpop.f32.mrf.mxu1  ;;  %v7918_v14 = vsel %vm11786_vm7, %v15759_v63, %v15715_v57  ;;  %v7994_v57 = vor.u32 %v7993_v24, %v15770_v25  ;;  %v8011_v63 = vshll.u32 %v9049_v43, 16  ;;  %v8015_v22 = vshrl.u32 %v9049_v43, 16 }
 0x3e7   : > { %11287 = vmatprep.mubr.bf16.mxu0 %v15372_v11  ;;  %v15773_v0 = vpop.f32.mrf.mxu0  ;;  %v15777_v7 = vadd.f32 %v15668_v41, %v10941_v5  ;;  %v7928_v15 = vsel %vm11786_vm7, %v7923_v32, %v7927_v30  ;;  %v7942_v27 = vsel %vm11786_vm7, %v7937_v48, %v15721_v26  ;;  %v7976_v37 = vsel %vm11786_vm7, %v7971_v46, %v7975_v38 }
 0x3e8   : > { %v5649_v11 = vpop.f32.mrf.mxu1  ;;  %v8026_v24 = vshrl.u32 %v9051_v45, 16  ;;  %v8029_v32 = vshll.u32 %v9051_v45, 16  ;;  %v7985_v5 = vrot.slane %v7984_v44, 4  ;;  %v7999_v43 = vrot.slane %v7997_v4, 5 }
 0x3e9   : > { %11228 = vmatmul.mubr.bf16.gmra.mxu1 %v17762_v31  ;;  %v15784_v13 = vpop.f32.mrf.mxu0  ;;  %v15789_v41 = vadd.f32 %v15679_v8, %v5649_v11  ;;  %v7966_v8 = vsel %vm11786_vm7, %v7961_v23, %v15731_v18  ;;  %v8008_v26 = vor.u32 %v8007_v60, %v8004_v2  ;;  %v8021_v48 = vshll.u32 %v9050_v54, 16  ;;  %v9054_v60 = vld [vmem:[%s11755_s18 + $0x6c] sm:$0xf] }
 0x3ea   : > { %11231 = vmatprep.mubr.bf16.mxu1 %v17777_v58  ;;  %v10942_v31 = vpop.f32.mrf.mxu1  ;;  %v7952_v58 = vsel %vm11786_vm7, %v7947_v50, %v7951_v59  ;;  %v15817_v18 = vrot.slane %v8011_v63, 5  ;;  %v8017_v23 = vrot.slane %v8015_v22, 4  ;;  %v8035_v38 = vshll.u32 %v9052_v33, 16 }
 0x3eb   : > { %v15793_v28 = vpop.f32.mrf.mxu0  ;;  %v15806_v52 = vadd.f32 %v15694_v21, %v10942_v31  ;;  %v7995_v21 = vrot.slane %v7994_v57, 4  ;;  %v8039_v11 = vshrl.u32 %v9052_v33, 16  ;;  %v9080_v4 = vcombine.low %v7918_v14, %v7928_v15  ;;  %v17825_v57 = vld [vmem:[#allocation59_spill] sm:$0xff]  ;;  %v9057_v15 = vld [vmem:[%s11755_s18 + $0x78] sm:$0xf] }
 0x3ec   : > { %v5652_v30 = vpop.f32.mrf.mxu1  ;;  %v15834_v2 = vrot.slane %v8026_v24, 4  ;;  %v15843_v54 = vcombine.low %v7942_v27, %v7952_v58  ;;  %v15845_v62 = vcombine.low %v7966_v8, %v7976_v37  ;;  %v7990_v35 = vsel %vm11786_vm7, %v7985_v5, %v15770_v25  ;;  %v9058_v37 = vld [vmem:[%s11755_s18 + $0x7c] sm:$0xf] }
 0x3ed   : > { %v15812_v50 = vadd.f32 %v15705_v39, %v5652_v30  ;;  %v15857_v63 = vrot.slane %v8008_v26, 4  ;;  %v8018_v22 = vor.u32 %v8017_v23, %v15817_v18  ;;  %v15860_v31 = vrot.slane %v8021_v48, 5  ;;  %v9060_v23 = vld [vmem:[%s11755_s18 + $0x84] sm:$0xf] }
 0x3ee   : > { %v15814_v59 = vpop.f32.mrf.mxu0  ;;  %11288 = vmatmul.mubr.bf16.gmra.mxu0 %v15683_v19  ;;  %v9079_v19 = vcombine.low %v7894_v20, %v7904_v56  ;;  %v17826_v20 = vld [vmem:[#allocation50_spill] sm:$0xff]  ;;  %v15866_v27 = vrot.slane %v8035_v38, 5  ;;  %v8041_v58 = vrot.slane %v8039_v11, 4  ;;  %v8050_v8 = vshrl.u32 %v9054_v60, 16 }
 0x3ef   : > { %11355 = vmatprep.mubr.bf16.mxu0 %v15707_v47  ;;  %v15836_v47 = vrot.slane %v8029_v32, 5  ;;  %v8045_v30 = vshll.u32 %v9053_v49, 16  ;;  %v8053_v5 = vshll.u32 %v9054_v60, 16  ;;  %v8063_v48 = vshrl.u32 %v9055_v29, 16 }
 0x3f0   : > { %v10945_v39 = vpop.f32.mrf.mxu1  ;;  %v15822_v44 = vpop.f32.mrf.mxu0  ;;  %v8087_v60 = vshrl.u32 %v9058_v37, 16  ;;  %v8042_v49 = vor.u32 %v8041_v58, %v15866_v27  ;;  %v17831_v58 = vld [vmem:[#allocation81_spill] sm:$0xff] }
 0x3f1   : > { %v15840_v45 = vadd.f32 %v15709_v36, %v10945_v39  ;;  %11232 = vmatmul.mubr.bf16.gmra.mxu1 %v17825_v57  ;;  %v8000_v36 = vsel %vm11786_vm7, %v7995_v21, %v7999_v43  ;;  %v8032_v32 = vor.u32 %v15836_v47, %v15834_v2  ;;  %v8059_v43 = vshll.u32 %v9055_v29, 16 }
 0x3f2   : > { %11235 = vmatprep.mubr.bf16.mxu1 %v17826_v20  ;;  %v5665_v56 = vpop.f32.mrf.mxu1  ;;  %v15853_v14 = vpop.f32.mrf.mxu0  ;;  %v8074_v21 = vshrl.u32 %v9057_v15, 16  ;;  %v8014_v39 = vsel %vm11786_vm7, %v15857_v63, %v15817_v18  ;;  %v8077_v2 = vshll.u32 %v9057_v15, 16  ;;  %v8083_v47 = vshll.u32 %v9058_v37, 16  ;;  %v17829_v15 = vld [vmem:[#allocation54_spill] sm:$0xff] }
 0x3f3   : > { %v15864_v25 = vadd.f32 %v15728_v10, %v5665_v56  ;;  %v15876_v10 = vcombine.low %v7990_v35, %v8000_v36  ;;  %v8019_v35 = vrot.slane %v8018_v22, 4  ;;  %v8052_v29 = vrot.slane %v8050_v8, 4 }
 0x3f4   : > { %v10946_v33 = vpop.f32.mrf.mxu1  ;;  %v15869_v24 = vpop.f32.mrf.mxu0  ;;  %v8055_v56 = vrot.slane %v8053_v5, 5  ;;  %v15893_v36 = vrot.slane %v8059_v43, 5  ;;  %v8101_v18 = vshll.u32 %v9060_v23, 16  ;;  %v8065_v37 = vrot.slane %v8063_v48, 4 }
 0x3f5   : > { %v15874_v26 = vadd.f32 %v15737_v12, %v10946_v33  ;;  %v9061_v12 = vld [vmem:[%s11755_s18 + $0x88] sm:$0xf]  ;;  %v8098_v33 = vshrl.u32 %v9060_v23, 16  ;;  %v8079_v5 = vrot.slane %v8077_v2, 5  ;;  %v15902_v43 = vrot.slane %v8083_v47, 5 }
 0x3f6   : > { %v5668_v38 = vpop.f32.mrf.mxu1  ;;  %v15879_v11 = vpop.f32.mrf.mxu0  ;;  %11356 = vmatmul.mubr.bf16.vlgmr.msra.gmra.mxu0 %v9079_v19  ;;  %v9056_v19 = vld [vmem:[%s11755_s18 + $0x74] sm:$0x1]  ;;  %v8089_v23 = vrot.slane %v8087_v60, 4  ;;  %v15906_v48 = vrot.slane %v8042_v49, 4  ;;  %v8024_v2 = vsel %vm11786_vm7, %v8019_v35, %v15860_v31  ;;  %v9062_v47 = vld [vmem:[%s11755_s18 + $0x8c] sm:$0x1]  ;;  %v8056_v49 = vor.u32 %v8055_v56, %v8052_v29 }
 0x3f7   : > { %17827 = vst [vmem:[#allocation92_spill] sm:$0xff] %v15874_v26  ;;  %v15887_v57 = vadd.f32 %v15756_v51, %v5668_v38  ;;  %11359 = vmatprep.mubr.bf16.mxu0 %v9080_v4  ;;  %v8076_v51 = vrot.slane %v8074_v21, 4  ;;  %v8107_v38 = vshll.u32 %v9061_v12, 16  ;;  %v8111_v4 = vshrl.u32 %v9061_v12, 16 }
 0x3f8   : > { %v15890_v20 = vpop.f32.mrf.mxu0  ;;  %v15908_v21 = vrot.slane %v8045_v30, 5  ;;  %v8069_v12 = vshll.u32 %v9056_v19, 16  ;;  %v8100_v60 = vrot.slane %v8098_v33, 4  ;;  %v8066_v30 = vor.u32 %v8065_v37, %v15893_v36 }
 0x3f9   : > { %17828 = vst [vmem:[#allocation21_spill] sm:$0xff] %v15887_v57  ;;  %v10949_v63 = vpop.f32.mrf.mxu1  ;;  %11236 = vmatmul.mubr.bf16.gmra.mxu1 %v17829_v15  ;;  %v15904_v15 = vrot.slane %v8032_v32, 4  ;;  %v9059_v57 = vld [vmem:[%s11755_s18 + $0x80] sm:$0x1]  ;;  %v9063_v32 = vld [vmem:[%s11755_s18 + $0x90] sm:$0xf]  ;;  %v8080_v31 = vor.u32 %v8079_v5, %v8076_v51  ;;  %v8090_v35 = vor.u32 %v8089_v23, %v15902_v43  ;;  %v9084_v29 = vcombine.low %v8014_v39, %v8024_v2 }
 0x3fa   : > { %v15897_v22 = vadd.f32 %v15765_v1, %v10949_v63  ;;  %11239 = vmatprep.mubr.bf16.mxu1 %v17831_v58  ;;  %v15900_v8 = vpop.f32.mrf.mxu0  ;;  %v8103_v58 = vrot.slane %v8101_v18, 5  ;;  %v15922_v26 = vrot.slane %v8107_v38, 5  ;;  %v8113_v19 = vrot.slane %v8111_v4, 4  ;;  %v9064_v4 = vld [vmem:[%s11755_s18 + $0x94] sm:$0xf] }
 0x3fb   : > { %v5681_v46 = vpop.f32.mrf.mxu1  ;;  %v8093_v33 = vshll.u32 %v9059_v57, 16  ;;  %v8117_v56 = vshll.u32 %v9062_v47, 16  ;;  %v8122_v37 = vshrl.u32 %v9063_v32, 16  ;;  %v15941_v51 = vrot.slane %v8069_v12, 5  ;;  %v9066_v12 = vld [vmem:[%s11755_s18 + $0x9c] sm:$0xf] }
 0x3fc   : > { %17830 = vst [vmem:[#allocation73_spill] sm:$0xff] %v15897_v22  ;;  %v15912_v1 = vadd.f32 %v15773_v0, %v5681_v46  ;;  %v15914_v63 = vpop.f32.mrf.mxu0  ;;  %v8104_v57 = vor.u32 %v8103_v58, %v8100_v60  ;;  %v8048_v5 = vsel %vm11786_vm7, %v15906_v48, %v15908_v21  ;;  %v8067_v23 = vrot.slane %v8066_v30, 4  ;;  %v17837_v60 = vld [vmem:[#allocation77_spill] sm:$0xff] }
 0x3fd   : > { %v10950_v22 = vpop.f32.mrf.mxu1  ;;  %v8114_v2 = vor.u32 %v8113_v19, %v15922_v26  ;;  %v8124_v48 = vrot.slane %v8122_v37, 4  ;;  %v8131_v21 = vshll.u32 %v9064_v4, 16 }
 0x3fe   : > { %17832 = vst [vmem:[#allocation94_spill] sm:$0xff] %v15912_v1  ;;  %v15925_v0 = vadd.f32 %v15784_v13, %v10950_v22  ;;  %v15927_v46 = vpop.f32.mrf.mxu0  ;;  %11360 = vmatmul.mubr.bf16.gmra.mxu0 %v15843_v54  ;;  %v17835_v22 = vcombine.low %v15566_v34, %v15568_v55  ;;  %v8081_v34 = vrot.slane %v8080_v31, 4  ;;  %v8091_v55 = vrot.slane %v8090_v35, 4 }
 0x3ff   : > { %v5684_v18 = vpop.f32.mrf.mxu1  ;;  %11363 = vmatprep.mubr.bf16.mxu0 %v15845_v62  ;;  %v8125_v62 = vshll.u32 %v9063_v32, 16  ;;  %v8095_v32 = vrot.slane %v8093_v33, 5  ;;  %v8119_v13 = vrot.slane %v8117_v56, 5  ;;  %v8149_v31 = vshll.u32 %v9066_v12, 16 }
 0x400   : > { %17833 = vst [vmem:[#allocation95_spill] sm:$0xff] %v15925_v0  ;;  %v15937_v38 = vadd.f32 %v15793_v28, %v5684_v18  ;;  %v15939_v54 = vpop.f32.mrf.mxu0  ;;  %v8057_v28 = vrot.slane %v8056_v49, 4  ;;  %v9067_v18 = vld [vmem:[%s11755_s18 + $0xa0] sm:$0xf]  ;;  %v8135_v49 = vshrl.u32 %v9064_v4, 16  ;;  %v8115_v0 = vrot.slane %v8114_v2, 4 }
 0x401   : > { %v10953_v39 = vpop.f32.mrf.mxu1  ;;  %11240 = vmatmul.mubr.bf16.gmra.mxu1 %v17835_v22  ;;  %v8155_v35 = vshll.u32 %v9067_v18, 16  ;;  %v8159_v33 = vshrl.u32 %v9067_v18, 16  ;;  %v8072_v37 = vsel %vm11786_vm7, %v8067_v23, %v15941_v51  ;;  %v17839_v18 = vld [vmem:[#allocation17_spill] sm:$0xff] }
 0x402   : > { %17834 = vst [vmem:[#allocation96_spill] sm:$0xff] %v15937_v38  ;;  %v15954_v47 = vadd.f32 %v15814_v59, %v10953_v39  ;;  %11307 = vmatprep.mubr.bf16.mxu1 %v17837_v60  ;;  %v15957_v58 = vpop.f32.mrf.mxu0  ;;  %v8105_v59 = vrot.slane %v8104_v57, 4  ;;  %v9065_v39 = vld [vmem:[%s11755_s18 + $0x98] sm:$0x1]  ;;  %v8146_v60 = vshrl.u32 %v9066_v12, 16  ;;  %v8086_v57 = vsel %vm11786_vm7, %v8081_v34, %v15902_v43  ;;  %v17838_v12 = vld [vmem:[#allocation60_spill] sm:$0xff] }
 0x403   : > { %v5697_v22 = vpop.f32.mrf.mxu1  ;;  %v8120_v34 = vsel %vm11786_vm7, %v8115_v0, %v8119_v13  ;;  %v17843_v0 = vsel %vm11786_vm7, %v15904_v15, %v15866_v27  ;;  %v9072_v15 = vld [vmem:[%s11755_s18 + $0xb4] sm:$0xf] }
 0x404   : > { %17836 = vst [vmem:[#allocation61_spill] sm:$0xff] %v15954_v47  ;;  %v15961_v30 = vadd.f32 %v15822_v44, %v5697_v22  ;;  %v15963_v19 = vpop.f32.mrf.mxu0  ;;  %v8127_v47 = vrot.slane %v8125_v62, 5  ;;  %v8062_v44 = vsel %vm11786_vm7, %v8057_v28, %v15893_v36  ;;  %v8141_v62 = vshll.u32 %v9065_v39, 16  ;;  %v9068_v28 = vld [vmem:[%s11755_s18 + $0xa4] sm:$0x1]  ;;  %v17840_v22 = vld [vmem:[#allocation82_spill] sm:$0xff] }
 0x405   : > { %v10954_v38 = vpop.f32.mrf.mxu1  ;;  %v8110_v51 = vsel %vm11786_vm7, %v8105_v59, %v15922_v26  ;;  %v17842_v59 = vld [vmem:[#allocation24_spill] sm:$0xff]  ;;  %v9085_v13 = vcombine.low %v17843_v0, %v8048_v5 }
 0x406   : > { %v15967_v1 = vadd.f32 %v15853_v14, %v10954_v38  ;;  %v15969_v56 = vpop.f32.mrf.mxu0  ;;  %11364 = vmatmul.mubr.bf16.gmra.mxu0 %v15876_v10  ;;  %v8096_v14 = vsel %vm11786_vm7, %v8091_v55, %v8095_v32  ;;  %v15983_v38 = vrot.slane %v8131_v21, 5  ;;  %v8137_v10 = vrot.slane %v8135_v49, 4  ;;  %v17841_v49 = vld [vmem:[#allocation85_spill] sm:$0xff]  ;;  %v9069_v39 = vld [vmem:[%s11755_s18 + $0xa8] sm:$0xf] }
 0x407   : > { %v5700_v4 = vpop.f32.mrf.mxu1  ;;  %11367 = vmatprep.mubr.bf16.mxu0 %v9084_v29  ;;  %v8128_v43 = vor.u32 %v8127_v47, %v8124_v48  ;;  %v8148_v29 = vrot.slane %v8146_v60, 4  ;;  %v8151_v55 = vrot.slane %v8149_v31, 5  ;;  %v8161_v32 = vrot.slane %v8159_v33, 4 }
 0x408   : > { %v15986_v2 = vadd.f32 %v15869_v24, %v5700_v4  ;;  %v15988_v36 = vpop.f32.mrf.mxu0  ;;  %v15997_v24 = vrot.slane %v8155_v35, 5  ;;  %v5846_v21 = vadd.f32 %v17840_v22, %v17839_v18  ;;  %v9086_v48 = vcombine.low %v8062_v44, %v8072_v37 }
 0x409   : > { %v11021_v23 = vpop.f32.mrf.mxu1  ;;  %11308 = vmatmul.mubr.bf16.vlgmr.msra.gmra.mxu1 %v17838_v12  ;;  %v16011_v31 = vcombine.low %v8086_v57, %v8096_v14  ;;  %v8138_v35 = vor.u32 %v8137_v10, %v15983_v38  ;;  %v16014_v33 = vrot.slane %v8141_v62, 5  ;;  %v8165_v4 = vshll.u32 %v9068_v28, 16  ;;  %v17844_v12 = vld [vmem:[#allocation87_spill] sm:$0xff]  ;;  %v9073_v62 = vld [vmem:[%s11755_s18 + $0xb8] sm:$0xf]  ;;  %v17846_v28 = vld [vmem:[#allocation89_spill] sm:$0xff] }
 0x40a   : > { %v6324_v26 = vadd.f32 %v11021_v23, %v17841_v49  ;;  %11311 = vmatprep.mubr.bf16.mxu1 %v17842_v59  ;;  %v16003_v47 = vpop.f32.mrf.mxu0  ;;  %v9070_v23 = vld [vmem:[%s11755_s18 + $0xac] sm:$0xf]  ;;  %v16020_v49 = vcombine.low %v8110_v51, %v8120_v34  ;;  %v16022_v27 = vrot.slane %v8128_v43, 4  ;;  %v8152_v37 = vor.u32 %v8151_v55, %v8148_v29 }
 0x40b   : > { %v6195_v60 = vpop.f32.mrf.mxu1  ;;  %v8162_v57 = vor.u32 %v8161_v32, %v15997_v24  ;;  %v8170_v14 = vshrl.u32 %v9069_v39, 16  ;;  %v8173_v10 = vshll.u32 %v9069_v39, 16  ;;  %v8179_v51 = vshll.u32 %v9070_v23, 16 }
 0x40c   : > { %v6322_v18 = vadd.f32 %v6195_v60, %v17844_v12  ;;  %v16018_v22 = vpop.f32.mrf.mxu0  ;;  %v16026_v5 = vadd.f32 %v15879_v11, %v6324_v26  ;;  %v8183_v34 = vshrl.u32 %v9070_v23, 16  ;;  %v8139_v11 = vrot.slane %v8138_v35, 4  ;;  %v17848_v23 = vld [vmem:[#allocation76_spill] sm:$0xff] }
 0x40d   : > { %v11022_v44 = vpop.f32.mrf.mxu1  ;;  %v8167_v26 = vrot.slane %v8165_v4, 5  ;;  %v8194_v29 = vshrl.u32 %v9072_v15, 16  ;;  %v8197_v55 = vshll.u32 %v9072_v15, 16  ;;  %v8203_v12 = vshll.u32 %v9073_v62, 16  ;;  %v17849_v4 = vld [vmem:[#allocation84_spill] sm:$0xff] }
 0x40e   : > { %17845 = vst [vmem:[#allocation97_spill] sm:$0xff] %v16026_v5  ;;  %v6325_v59 = vadd.f32 %v11022_v44, %v17846_v28  ;;  %v16031_v0 = vpop.f32.mrf.mxu0  ;;  %11368 = vmatmul.mubr.bf16.gmra.mxu0 %v9085_v13  ;;  %v16034_v43 = vadd.f32 %v15890_v20, %v6322_v18  ;;  %v8207_v44 = vshrl.u32 %v9073_v62, 16  ;;  %v8153_v20 = vrot.slane %v8152_v37, 4  ;;  %v17850_v5 = vld [vmem:[#allocation93_spill] sm:$0xff] }
 0x40f   : > { %v6198_v60 = vpop.f32.mrf.mxu1  ;;  %11371 = vmatprep.mubr.bf16.mxu0 %v9086_v48  ;;  %v8163_v18 = vrot.slane %v8162_v57, 4  ;;  %v8172_v48 = vrot.slane %v8170_v14, 4  ;;  %v8175_v35 = vrot.slane %v8173_v10, 5  ;;  %v9071_v15 = vld [vmem:[%s11755_s18 + $0xb0] sm:$0x1]  ;;  %v16047_v62 = vrot.slane %v8179_v51, 5 }
 0x410   : > { %17847 = vst [vmem:[#allocation44_spill] sm:$0xff] %v16034_v43  ;;  %v6323_v32 = vadd.f32 %v6198_v60, %v5846_v21  ;;  %v16036_v39 = vpop.f32.mrf.mxu0  ;;  %v16039_v28 = vadd.f32 %v15900_v8, %v6325_v59  ;;  %v8185_v8 = vrot.slane %v8183_v34, 4  ;;  %v8134_v37 = vsel %vm11786_vm7, %v16022_v27, %v15983_v38  ;;  %v9074_v57 = vld [vmem:[%s11755_s18 + $0xbc] sm:$0x1] }
 0x411   : > { %v11025_v13 = vpop.f32.mrf.mxu1  ;;  %11312 = vmatmul.mubr.bf16.gmra.mxu1 %v17848_v23  ;;  %v8196_v14 = vrot.slane %v8194_v29, 4  ;;  %v8199_v10 = vrot.slane %v8197_v55, 5  ;;  %v16063_v34 = vrot.slane %v8203_v12, 5  ;;  %v8168_v27 = vsel %vm11786_vm7, %v8163_v18, %v8167_v26  ;;  %v17853_v55 = vld [vmem:[#allocation88_spill] sm:$0xff] }
 0x412   : > { %v6328_v43 = vadd.f32 %v11025_v13, %v17849_v4  ;;  %11315 = vmatprep.mubr.bf16.mxu1 %v17850_v5  ;;  %v16044_v21 = vpop.f32.mrf.mxu0  ;;  %v16050_v59 = vadd.f32 %v15914_v63, %v6323_v32  ;;  %v8144_v5 = vsel %vm11786_vm7, %v8139_v11, %v16014_v33  ;;  %v17852_v13 = vld [vmem:[#allocation86_spill] sm:$0xff]  ;;  %v8209_v63 = vrot.slane %v8207_v44, 4  ;;  %v9075_v32 = vld [vmem:[%s11755_s18 + $0xc0] sm:$0xf]  ;;  %v9076_v4 = vld [vmem:[%s11755_s18 + $0xc4] sm:$0xf] }
 0x413   : > { %v6211_v60 = vpop.f32.mrf.mxu1  ;;  %v8158_v33 = vsel %vm11786_vm7, %v8153_v20, %v15997_v24  ;;  %v8176_v11 = vor.u32 %v8175_v35, %v8172_v48  ;;  %v8189_v29 = vshll.u32 %v9071_v15, 16  ;;  %v8186_v44 = vor.u32 %v8185_v8, %v16047_v62  ;;  %v17855_v48 = vld [vmem:[#allocation90_spill] sm:$0xff] }
 0x414   : > { %17851 = vst [vmem:[#allocation48_spill] sm:$0xff] %v16050_v59  ;;  %v6326_v51 = vadd.f32 %v6211_v60, %v17852_v13  ;;  %v16061_v23 = vpop.f32.mrf.mxu0  ;;  %v16068_v59 = vadd.f32 %v15927_v46, %v6328_v43  ;;  %v8213_v46 = vshll.u32 %v9074_v57, 16  ;;  %v8218_v24 = vshrl.u32 %v9075_v32, 16 }
 0x415   : > { %v11026_v38 = vpop.f32.mrf.mxu1  ;;  %v8221_v20 = vshll.u32 %v9075_v32, 16  ;;  %v8227_v26 = vshll.u32 %v9076_v4, 16  ;;  %v8231_v18 = vshrl.u32 %v9076_v4, 16  ;;  %v17857_v4 = vld [vmem:[#allocation80_spill] sm:$0xff] }
 0x416   : > { %v6329_v60 = vadd.f32 %v11026_v38, %v17853_v55  ;;  %v16076_v12 = vpop.f32.mrf.mxu0  ;;  %11372 = vmatmul.mubr.bf16.gmra.mxu0 %v16011_v31  ;;  %v16081_v43 = vadd.f32 %v15939_v54, %v6326_v51  ;;  %v8200_v38 = vor.u32 %v8199_v10, %v8196_v14  ;;  %v8210_v31 = vor.u32 %v8209_v63, %v16063_v34  ;;  %v17856_v54 = vld [vmem:[#allocation42_spill] sm:$0xff] }
 0x417   : > { %v6214_v13 = vpop.f32.mrf.mxu1  ;;  %11375 = vmatprep.mubr.bf16.mxu0 %v16020_v49  ;;  %v9089_v51 = vcombine.low %v8134_v37, %v8144_v5  ;;  %v9090_v55 = vcombine.low %v8158_v33, %v8168_v27  ;;  %v8177_v49 = vrot.slane %v8176_v11, 4  ;;  %v8187_v14 = vrot.slane %v8186_v44, 4  ;;  %v9077_v11 = vld [vmem:[%s11755_s18 + $0xc8] sm:$0x1] }
 0x418   : > { %17854 = vst [vmem:[#allocation63_spill] sm:$0xff] %v16081_v43  ;;  %v6327_v35 = vadd.f32 %v6214_v13, %v17855_v48  ;;  %v16085_v15 = vpop.f32.mrf.mxu0  ;;  %v16089_v8 = vadd.f32 %v15957_v58, %v6329_v60  ;;  %v8191_v43 = vrot.slane %v8189_v29, 5  ;;  %v8215_v10 = vrot.slane %v8213_v46, 5 }
 0x419   : > { %v11029_v57 = vpop.f32.mrf.mxu1  ;;  %11316 = vmatmul.mubr.bf16.gmra.mxu1 %v17856_v54  ;;  %v8220_v60 = vrot.slane %v8218_v24, 4  ;;  %v8223_v48 = vrot.slane %v8221_v20, 5  ;;  %v8229_v54 = vrot.slane %v8227_v26, 5  ;;  %v8233_v37 = vrot.slane %v8231_v18, 4 }
 0x41a   : > { %v6332_v32 = vadd.f32 %v11029_v57, %v15641_v3  ;;  %11319 = vmatprep.mubr.bf16.mxu1 %v17857_v4  ;;  %v16094_v13 = vpop.f32.mrf.mxu0  ;;  %v16097_v63 = vadd.f32 %v15963_v19, %v6327_v35  ;;  %v8201_v27 = vrot.slane %v8200_v38, 4  ;;  %v8211_v3 = vrot.slane %v8210_v31, 4 }
 0x41b   : > { %v6227_v58 = vpop.f32.mrf.mxu1  ;;  %v8182_v24 = vsel %vm11786_vm7, %v8177_v49, %v16047_v62  ;;  %v8192_v26 = vsel %vm11786_vm7, %v8187_v14, %v8191_v43  ;;  %v8234_v18 = vor.u32 %v8233_v37, %v8229_v54  ;;  %v8237_v35 = vshll.u32 %v9077_v11, 16 }
 0x41c   : > { %v6330_v5 = vadd.f32 %v6227_v58, %v15648_v17  ;;  %v16100_v33 = vpop.f32.mrf.mxu0  ;;  %v16104_v29 = vadd.f32 %v15969_v56, %v6332_v32  ;;  %v8224_v56 = vor.u32 %v8223_v48, %v8220_v60  ;;  %v8206_v31 = vsel %vm11786_vm7, %v8201_v27, %v16063_v34 }
 0x41d   : > { %v11030_v44 = vpop.f32.mrf.mxu1  ;;  %v9091_v49 = vcombine.low %v8182_v24, %v8192_v26  ;;  %v8239_v58 = vrot.slane %v8237_v35, 5  ;;  %v17861_v24 = vld [vmem:[#allocation75_spill] sm:$0xff] }
 0x41e   : > { %v6333_v46 = vadd.f32 %v11030_v44, %v15658_v42  ;;  %v16107_v19 = vpop.f32.mrf.mxu0  ;;  %11376 = vmatmul.mubr.bf16.gmra.mxu0 %v9089_v51  ;;  %v16113_v17 = vadd.f32 %v15988_v36, %v6330_v5  ;;  %v8216_v36 = vsel %vm11786_vm7, %v8211_v3, %v8215_v10  ;;  %v17858_v51 = vld [vmem:[#allocation67_spill] sm:$0xff]  ;;  %v8225_v14 = vrot.slane %v8224_v56, 4 }
 0x41f   : > { %v6230_v20 = vpop.f32.mrf.mxu1  ;;  %11379 = vmatprep.mubr.bf16.mxu0 %v9090_v55  ;;  %v17859_v55 = vld [vmem:[#allocation29_spill] sm:$0xff]  ;;  %v9092_v4 = vcombine.low %v8206_v31, %v8216_v36  ;;  %v8235_v10 = vrot.slane %v8234_v18, 4 }
 0x420   : > { %v6331_v42 = vadd.f32 %v6230_v20, %v15666_v6  ;;  %v16118_v38 = vpop.f32.mrf.mxu0  ;;  %v16126_v62 = vadd.f32 %v16003_v47, %v6333_v46  ;;  %v8230_v3 = vsel %vm11786_vm7, %v8225_v14, %v8229_v54  ;;  %v17860_v46 = vld [vmem:[#allocation7_spill] sm:$0xff] }
 0x421   : > { %v11033_v57 = vpop.f32.mrf.mxu1  ;;  %11320 = vmatmul.mubr.bf16.gmra.mxu1 %v17858_v51  ;;  %v17862_v51 = vld [vmem:[#allocation78_spill] sm:$0xff] }
 0x422   : > { %v6336_v43 = vadd.f32 %v11033_v57, %v15725_v16  ;;  %11323 = vmatprep.mubr.bf16.mxu1 %v17859_v55  ;;  %v16131_v6 = vpop.f32.mrf.mxu0  ;;  %v16134_v32 = vadd.f32 %v16018_v22, %v6331_v42  ;;  %v11536_v55 = vld [vmem:[#allocation2 + $0xd0] sm:$0xf] }
 0x423   : > { %v6243_v34 = vpop.f32.mrf.mxu1 }
 0x424   : > { %v6334_v47 = vadd.f32 %v6243_v34, %v15735_v40  ;;  %v16137_v60 = vpop.f32.mrf.mxu0  ;;  %v16140_v48 = vadd.f32 %v16031_v0, %v6336_v43  ;;  %v8240_v40 = vsel %vm11786_vm7, %v8235_v10, %v8239_v58  ;;  %v17863_v43 = vld [vmem:[#allocation79_spill] sm:$0xff]  ;;  %v11537_v10 = vld [vmem:[#allocation2 + $0xcc] sm:$0xf] }
 0x425   : > { %v11034_v16 = vpop.f32.mrf.mxu1  ;;  %v9093_v26 = vcombine.low %v8230_v3, %v8240_v40  ;;  %v9026_v58 = vrot.slane %v11537_v10, 9 }
 0x426   : > { %v6337_v37 = vadd.f32 %v11034_v16, %v15754_v61  ;;  %v16143_v5 = vpop.f32.mrf.mxu0  ;;  %11380 = vmatmul.mubr.bf16.gmra.mxu0 %v9091_v49  ;;  %v16146_v22 = vadd.f32 %v16036_v39, %v6334_v47  ;;  %v7402_v49 = vrot.slane %v11536_v55, 5  ;;  %v17864_v47 = vld [vmem:[#allocation92_spill] sm:$0xff] }
 0x427   : > { %v6246_v27 = vpop.f32.mrf.mxu1  ;;  %11383 = vmatprep.mubr.bf16.mxu0 %v9092_v4 }
 0x428   : > { %v6335_v0 = vadd.f32 %v6246_v27, %v15763_v9  ;;  %v16153_v11 = vpop.f32.mrf.mxu0  ;;  %v16156_v61 = vadd.f32 %v16044_v21, %v6337_v37  ;;  %v7404_v37 = vrot.slane %v7402_v49, 4  ;;  %v11538_v27 = vld [vmem:[#allocation2 + $0xd4] sm:$0x1] }
 0x429   : > { %v11037_v44 = vpop.f32.mrf.mxu1  ;;  %11324 = vmatmul.mubr.bf16.gmra.mxu1 %v17860_v46  ;;  %v7405_v3 = vrot.slane %v11538_v27, 5  ;;  %v17873_v27 = vld [vmem:[#allocation61_spill] sm:$0xff] }
 0x42a   : > { %v6340_v39 = vadd.f32 %v11037_v44, %v15777_v7  ;;  %11327 = vmatprep.mubr.bf16.mxu1 %v17861_v24  ;;  %v11094_v20 = vpop.f32.mrf.mxu0  ;;  %v16162_v54 = vadd.f32 %v16061_v23, %v6335_v0  ;;  %v17865_v0 = vld [vmem:[#allocation21_spill] sm:$0xff] }
 0x42b   : > { %v6259_v53 = vpop.f32.mrf.mxu1  ;;  %v17867_v24 = vld [vmem:[#allocation73_spill] sm:$0xff] }
 0x42c   : > { %v6338_v9 = vadd.f32 %v6259_v53, %v15789_v41  ;;  %v6493_v56 = vpop.f32.mrf.mxu0  ;;  %v16166_v18 = vadd.f32 %v16076_v12, %v6340_v39  ;;  %v17866_v39 = vld [vmem:[#allocation83_spill] sm:$0xff] }
 0x42d   : > { %v11038_v21 = vpop.f32.mrf.mxu1  ;;  %v17868_v53 = vld [vmem:[#allocation91_spill] sm:$0xff] }
 0x42e   : > { %v6341_v35 = vadd.f32 %v11038_v21, %v15806_v52  ;;  %v11097_v42 = vpop.f32.mrf.mxu0  ;;  %11384 = vmatmul.mubr.bf16.gmra.mxu0 %v9093_v26  ;;  %v16170_v7 = vadd.f32 %v16085_v15, %v6338_v9  ;;  %v7403_v21 = vsel %vm12342_vm10, %v9026_v58, %v7402_v49  ;;  %v17872_v58 = vld [vmem:[#allocation96_spill] sm:$0xff] }
 0x42f   : > { %v6262_v31 = vpop.f32.mrf.mxu1 }
 0x430   : > { %v6339_v36 = vadd.f32 %v6262_v31, %v15812_v50  ;;  %v6506_v23 = vpop.f32.mrf.mxu0  ;;  %v16174_v57 = vadd.f32 %v16094_v13, %v6341_v35 }
 0x431   : > { %v11041_v41 = vpop.f32.mrf.mxu1  ;;  %11328 = vmatmul.mubr.bf16.gmra.mxu1 %v17862_v51 }
 0x432   : > { %v6344_v12 = vadd.f32 %v11041_v41, %v15840_v45  ;;  %11331 = vmatprep.mubr.bf16.mxu1 %v17863_v43  ;;  %v11098_v52 = vpop.f32.mrf.mxu0  ;;  %v16180_v15 = vadd.f32 %v16100_v33, %v6339_v36 }
 0x433   : > { %v6275_v34 = vpop.f32.mrf.mxu1 }
 0x434   : > { %v6342_v50 = vadd.f32 %v6275_v34, %v15864_v25  ;;  %v6509_v4 = vpop.f32.mrf.mxu0  ;;  %v16184_v13 = vadd.f32 %v16107_v19, %v6344_v12  ;;  %v17871_v34 = vld [vmem:[#allocation95_spill] sm:$0xff] }
 0x435   : > { %v11042_v14 = vpop.f32.mrf.mxu1 }
 0x436   : > { %v6345_v45 = vadd.f32 %v11042_v14, %v17864_v47  ;;  %v11165_v16 = vpop.f32.mrf.mxu0  ;;  %v16188_v40 = vadd.f32 %v16118_v38, %v6342_v50  ;;  %v7406_v38 = vsel %vm12342_vm10, %v7404_v37, %v7405_v3 }
 0x437   : > { %v6278_v33 = vpop.f32.mrf.mxu1  ;;  %v9027_v55 = vcombine.low %v7403_v21, %v7406_v38 }
 0x438   : > { %v6343_v44 = vadd.f32 %v6278_v33, %v17865_v0  ;;  %v6820_v25 = vpop.f32.mrf.mxu0  ;;  %v16192_v46 = vadd.f32 %v16131_v6, %v6345_v45  ;;  %v17870_v6 = vld [vmem:[#allocation94_spill] sm:$0xff] }
 0x439   : > { %v11045_v19 = vpop.f32.mrf.mxu1  ;;  %11332 = vmatmul.mubr.bf16.gmra.mxu1 %v17866_v39 }
 0x43a   : > { %v6348_v26 = vadd.f32 %v11045_v19, %v17867_v24  ;;  %11335 = vmatprep.mubr.bf16.mxu1 %v17868_v53  ;;  %v11166_v35 = vpop.f32.mrf.mxu0  ;;  %v16202_v31 = vadd.f32 %v16137_v60, %v6343_v44 }
 0x43b   : > { %v6291_v36 = vpop.f32.mrf.mxu1 }
 0x43c   : > { %v6346_v41 = vadd.f32 %v6291_v36, %v17870_v6  ;;  %v6823_v51 = vpop.f32.mrf.mxu0  ;;  %v16206_v12 = vadd.f32 %v16143_v5, %v6348_v26  ;;  %v17874_v36 = vld [vmem:[#allocation97_spill] sm:$0xff] }
 0x43d   : > { %v11046_v43 = vpop.f32.mrf.mxu1 }
 0x43e   : > { %v6349_v50 = vadd.f32 %v11046_v43, %v17871_v34  ;;  %v11169_v14 = vpop.f32.mrf.mxu0  ;;  %v16210_v49 = vadd.f32 %v16153_v11, %v6346_v41  ;;  %v17875_v43 = vld [vmem:[#allocation44_spill] sm:$0xff] }
 0x43f   : > { %v6294_v10 = vpop.f32.mrf.mxu1 }
 0x440   : > { %v6347_v47 = vadd.f32 %v6294_v10, %v17872_v58  ;;  %v6836_v60 = vpop.f32.mrf.mxu0  ;;  %v16213_v45 = vadd.f32 %v11094_v20, %v6349_v50  ;;  %v17876_v58 = vld [vmem:[#allocation48_spill] sm:$0xff] }
 0x441   : > { %v11049_v37 = vpop.f32.mrf.mxu1  ;;  %11336 = vmatmul.mubr.bf16.gmra.mxu1 %v9027_v55 }
 0x442   : > { %v6352_v3 = vadd.f32 %v11049_v37, %v17873_v27  ;;  %v11170_v5 = vpop.f32.mrf.mxu0  ;;  %v16216_v33 = vadd.f32 %v6493_v56, %v6347_v47 }
 0x443   : > { %v6307_v0 = vpop.f32.mrf.mxu1 }
 0x444   : > { %v6350_v44 = vadd.f32 %v6307_v0, %v15961_v30  ;;  %v6839_v19 = vpop.f32.mrf.mxu0  ;;  %v16219_v39 = vadd.f32 %v11097_v42, %v6352_v3 }
 0x445   : > { %v11050_v11 = vpop.f32.mrf.mxu1 }
 0x446   : > { %v6353_v24 = vadd.f32 %v11050_v11, %v15967_v1  ;;  %v11173_v26 = vpop.f32.mrf.mxu0  ;;  %v16222_v53 = vadd.f32 %v6506_v23, %v6350_v44  ;;  %v17877_v11 = vld [vmem:[#allocation63_spill] sm:$0xff] }
 0x447   : > { %v6310_v20 = vpop.f32.mrf.mxu1 }
 0x448   : > { %v6351_v9 = vadd.f32 %v6310_v20, %v15986_v2  ;;  %v6852_v21 = vpop.f32.mrf.mxu0  ;;  %v16225_v38 = vadd.f32 %v11098_v52, %v6353_v24 }
 0x449   : > { %v11117_v56 = vpop.f32.mrf.mxu1 }
 0x44a   : > { %v6744_v6 = vadd.f32 %v11117_v56, %v17874_v36  ;;  %v11174_v41 = vpop.f32.mrf.mxu0  ;;  %v16228_v30 = vadd.f32 %v6509_v4, %v6351_v9 }
 0x44b   : > { %v6615_v42 = vpop.f32.mrf.mxu1 }
 0x44c   : > { %v6742_v55 = vadd.f32 %v6615_v42, %v17875_v43  ;;  %v6855_v34 = vpop.f32.mrf.mxu0  ;;  %v16231_v1 = vadd.f32 %v11165_v16, %v6744_v6 }
 0x44d   : > { %v11118_v23 = vpop.f32.mrf.mxu1 }
 0x44e   : > { %v6745_v50 = vadd.f32 %v11118_v23, %v16039_v28  ;;  %v11177_v10 = vpop.f32.mrf.mxu0  ;;  %v16234_v2 = vadd.f32 %v6820_v25, %v6742_v55 }
 0x44f   : > { %v6618_v52 = vpop.f32.mrf.mxu1 }
 0x450   : > { %v6743_v47 = vadd.f32 %v6618_v52, %v17876_v58  ;;  %v6868_v37 = vpop.f32.mrf.mxu0  ;;  %v16237_v27 = vadd.f32 %v11166_v35, %v6745_v50 }
 0x451   : > { %v11121_v4 = vpop.f32.mrf.mxu1 }
 0x452   : > { %v6748_v3 = vadd.f32 %v11121_v4, %v16068_v59  ;;  %v11178_v0 = vpop.f32.mrf.mxu0  ;;  %v16240_v44 = vadd.f32 %v6823_v51, %v6743_v47 }
 0x453   : > { %v6631_v16 = vpop.f32.mrf.mxu1 }
 0x454   : > { %v6746_v24 = vadd.f32 %v6631_v16, %v17877_v11  ;;  %v6871_v20 = vpop.f32.mrf.mxu0  ;;  %v16243_v28 = vadd.f32 %v11169_v14, %v6748_v3 }
 0x455   : > { %v11122_v25 = vpop.f32.mrf.mxu1 }
 0x456   : > { %v6749_v9 = vadd.f32 %v11122_v25, %v16089_v8  ;;  %v11181_v56 = vpop.f32.mrf.mxu0  ;;  %v16246_v36 = vadd.f32 %v6836_v60, %v6746_v24 }
 0x457   : > { %v6634_v35 = vpop.f32.mrf.mxu1 }
 0x458   : > { %v6747_v6 = vadd.f32 %v6634_v35, %v16097_v63  ;;  %v6884_v42 = vpop.f32.mrf.mxu0  ;;  %v16249_v59 = vadd.f32 %v11170_v5, %v6749_v9 }
 0x459   : > { %v11125_v51 = vpop.f32.mrf.mxu1 }
 0x45a   : > { %v6752_v43 = vadd.f32 %v11125_v51, %v16104_v29  ;;  %v11182_v55 = vpop.f32.mrf.mxu0  ;;  %v16252_v23 = vadd.f32 %v6839_v19, %v6747_v6 }
 0x45b   : > { %v6647_v14 = vpop.f32.mrf.mxu1 }
 0x45c   : > { %v6750_v50 = vadd.f32 %v6647_v14, %v16113_v17  ;;  %v6887_v52 = vpop.f32.mrf.mxu0  ;;  %v16255_v8 = vadd.f32 %v11173_v26, %v6752_v43 }
 0x45d   : > { %v11126_v60 = vpop.f32.mrf.mxu1 }
 0x45e   : > { %v6753_v58 = vadd.f32 %v11126_v60, %v16126_v62  ;;  %v11185_v47 = vpop.f32.mrf.mxu0  ;;  %v16258_v63 = vadd.f32 %v6852_v21, %v6750_v50 }
 0x45f   : > { %v6650_v5 = vpop.f32.mrf.mxu1 }
 0x460   : > { %v6751_v4 = vadd.f32 %v6650_v5, %v16134_v32  ;;  %v6900_v3 = vpop.f32.mrf.mxu0  ;;  %v16261_v29 = vadd.f32 %v11174_v41, %v6753_v58 }
 0x461   : > { %v11129_v19 = vpop.f32.mrf.mxu1 }
 0x462   : > { %v6756_v16 = vadd.f32 %v11129_v19, %v16140_v48  ;;  %v11186_v11 = vpop.f32.mrf.mxu0  ;;  %v16264_v17 = vadd.f32 %v6855_v34, %v6751_v4 }
 0x463   : > { %v6663_v26 = vpop.f32.mrf.mxu1 }
 0x464   : > { %v6754_v24 = vadd.f32 %v6663_v26, %v16146_v22  ;;  %v6903_v25 = vpop.f32.mrf.mxu0  ;;  %v16267_v62 = vadd.f32 %v11177_v10, %v6756_v16 }
 0x465   : > { %v11130_v21 = vpop.f32.mrf.mxu1 }
 0x466   : > { %v6757_v9 = vadd.f32 %v11130_v21, %v16156_v61  ;;  %v11189_v35 = vpop.f32.mrf.mxu0  ;;  %v16270_v32 = vadd.f32 %v6868_v37, %v6754_v24 }
 0x467   : > { %v6666_v41 = vpop.f32.mrf.mxu1 }
 0x468   : > { %v6755_v6 = vadd.f32 %v6666_v41, %v16162_v54  ;;  %v6916_v51 = vpop.f32.mrf.mxu0  ;;  %v16273_v48 = vadd.f32 %v11178_v0, %v6757_v9 }
 0x469   : > { %v11133_v34 = vpop.f32.mrf.mxu1 }
 0x46a   : > { %v6760_v43 = vadd.f32 %v11133_v34, %v16166_v18  ;;  %v11190_v14 = vpop.f32.mrf.mxu0  ;;  %v16276_v22 = vadd.f32 %v6871_v20, %v6755_v6 }
 0x46b   : > { %v6679_v10 = vpop.f32.mrf.mxu1 }
 0x46c   : > { %v6758_v50 = vadd.f32 %v6679_v10, %v16170_v7  ;;  %v6919_v60 = vpop.f32.mrf.mxu0  ;;  %v16279_v61 = vadd.f32 %v11181_v56, %v6760_v43 }
 0x46d   : > { %v11134_v37 = vpop.f32.mrf.mxu1 }
 0x46e   : > { %v6761_v58 = vadd.f32 %v11134_v37, %v16174_v57  ;;  %v11193_v5 = vpop.f32.mrf.mxu0  ;;  %v16282_v54 = vadd.f32 %v6884_v42, %v6758_v50 }
 0x46f   : > { %v6682_v0 = vpop.f32.mrf.mxu1 }
 0x470   : > { %v6759_v4 = vadd.f32 %v6682_v0, %v16180_v15  ;;  %v6932_v19 = vpop.f32.mrf.mxu0  ;;  %v16285_v18 = vadd.f32 %v11182_v55, %v6761_v58 }
 0x471   : > { %v11137_v20 = vpop.f32.mrf.mxu1 }
 0x472   : > { %v6764_v16 = vadd.f32 %v11137_v20, %v16184_v13  ;;  %v11194_v26 = vpop.f32.mrf.mxu0  ;;  %v16288_v7 = vadd.f32 %v6887_v52, %v6759_v4 }
 0x473   : > { %v6695_v56 = vpop.f32.mrf.mxu1 }
 0x474   : > { %v6762_v24 = vadd.f32 %v6695_v56, %v16188_v40  ;;  %v6935_v21 = vpop.f32.mrf.mxu0  ;;  %v16291_v57 = vadd.f32 %v11185_v47, %v6764_v16 }
 0x475   : > { %v11138_v42 = vpop.f32.mrf.mxu1 }
 0x476   : > { %v6765_v9 = vadd.f32 %v11138_v42, %v16192_v46  ;;  %v16294_v41 = vpop.f32.mrf.mxu0  ;;  %v16296_v15 = vadd.f32 %v6900_v3, %v6762_v24 }
 0x477   : > { %v6698_v55 = vpop.f32.mrf.mxu1 }
 0x478   : > { %v6763_v6 = vadd.f32 %v6698_v55, %v16202_v31  ;;  %v16299_v13 = vpop.f32.mrf.mxu0  ;;  %v16301_v52 = vadd.f32 %v11186_v11, %v6765_v9 }
 0x479   : > { %v11141_v34 = vpop.f32.mrf.mxu1 }
 0x47a   : > { %v6768_v40 = vadd.f32 %v11141_v34, %v16206_v12  ;;  %v16304_v43 = vpop.f32.mrf.mxu0  ;;  %v16306_v47 = vadd.f32 %v6903_v25, %v6763_v6 }
 0x47b   : > { %v6711_v10 = vpop.f32.mrf.mxu1 }
 0x47c   : > { %v6766_v46 = vadd.f32 %v6711_v10, %v16210_v49  ;;  %v16309_v50 = vpop.f32.mrf.mxu0  ;;  %v16311_v3 = vadd.f32 %v11189_v35, %v6768_v40 }
 0x47d   : > { %v11142_v37 = vpop.f32.mrf.mxu1 }
 0x47e   : > { %v6769_v31 = vadd.f32 %v11142_v37, %v16213_v45  ;;  %v16314_v58 = vpop.f32.mrf.mxu0  ;;  %v16316_v11 = vadd.f32 %v6916_v51, %v6766_v46 }
 0x47f   : > { %v6714_v0 = vpop.f32.mrf.mxu1 }
 0x480   : > { %v6767_v12 = vadd.f32 %v6714_v0, %v16216_v33  ;;  %v16319_v4 = vpop.f32.mrf.mxu0  ;;  %v16321_v25 = vadd.f32 %v11190_v14, %v6769_v31 }
 0x481   : > { %v11145_v20 = vpop.f32.mrf.mxu1 }
 0x482   : > { %v6772_v49 = vadd.f32 %v11145_v20, %v16219_v39  ;;  %v16324_v16 = vpop.f32.mrf.mxu0  ;;  %v16326_v35 = vadd.f32 %v6919_v60, %v6767_v12 }
 0x483   : > { %v6727_v56 = vpop.f32.mrf.mxu1 }
 0x484   : > { %v6770_v45 = vadd.f32 %v6727_v56, %v16222_v53  ;;  %v16329_v24 = vpop.f32.mrf.mxu0  ;;  %v16331_v51 = vadd.f32 %v11193_v5, %v6772_v49 }
 0x485   : > { %v11146_v42 = vpop.f32.mrf.mxu1 }
 0x486   : > { %v6773_v33 = vadd.f32 %v11146_v42, %v16225_v38  ;;  %v16334_v9 = vpop.f32.mrf.mxu0  ;;  %v16336_v14 = vadd.f32 %v6932_v19, %v6770_v45 }
 0x487   : > { %v6730_v55 = vpop.f32.mrf.mxu1 }
 0x488   : > { %v6771_v39 = vadd.f32 %v6730_v55, %v16228_v30  ;;  %v16339_v6 = vpop.f32.mrf.mxu0  ;;  %v16341_v60 = vadd.f32 %v11194_v26, %v6773_v33 }
 0x489   : > { %v11213_v34 = vpop.f32.mrf.mxu1 }
 0x48a   : > { %v16344_v53 = vadd.f32 %v11213_v34, %v16231_v1  ;;  %v16346_v5 = vpop.f32.mrf.mxu0  ;;  %v16348_v40 = vadd.f32 %v6935_v21, %v6771_v39 }
 0x48b   : > { %v7019_v38 = vpop.f32.mrf.mxu1 }
 0x48c   : > { %v16351_v10 = vadd.f32 %v7019_v38, %v16234_v2  ;;  %v16353_v19 = vpop.f32.mrf.mxu0 }
 0x48d   : > { %v16355_v46 = vpop.f32.mrf.mxu1 }
 0x48e   : > { %v16357_v30 = vpop.f32.mrf.mxu0 }
 0x48f   : > { %v16359_v26 = vpop.f32.mrf.mxu1 }
 0x490   : > { %v16361_v37 = vpop.f32.mrf.mxu0 }
 0x491   : > { %v11217_v1 = vpop.f32.mrf.mxu1 }
 0x492   : > { %v16364_v31 = vadd.f32 %v11217_v1, %v16243_v28  ;;  %v16366_v21 = vpop.f32.mrf.mxu0 }
 0x493   : > { %17878 = vst [vmem:[#allocation49_spill] sm:$0xff] %v16366_v21  ;;  %v7035_v0 = vpop.f32.mrf.mxu1 }
 0x494   : > { %v16369_v2 = vadd.f32 %v7035_v0, %v16246_v36  ;;  %v16371_v12 = vpop.f32.mrf.mxu0 }
 0x495   : > { %17879 = vst [vmem:[#allocation11_spill] sm:$0xff] %v16371_v12  ;;  %v16373_v20 = vpop.f32.mrf.mxu1 }
 0x496   : > { %v16375_v49 = vpop.f32.mrf.mxu0 }
 0x497   : > { %17880 = vst [vmem:[#allocation98_spill] sm:$0xff] %v16375_v49  ;;  %v16377_v56 = vpop.f32.mrf.mxu1 }
 0x498   : > { %v16379_v45 = vpop.f32.mrf.mxu0 }
 0x499   : > { %17881 = vst [vmem:[#allocation100_spill] sm:$0xff] %v16379_v45  ;;  %v11221_v42 = vpop.f32.mrf.mxu1 }
 0x49a   : > { %v16382_v28 = vadd.f32 %v11221_v42, %v16255_v8  ;;  %v16384_v33 = vpop.f32.mrf.mxu0 }
 0x49b   : > { %17882 = vst [vmem:[#allocation66_spill] sm:$0xff] %v16384_v33  ;;  %v7051_v55 = vpop.f32.mrf.mxu1 }
 0x49c   : > { %v16387_v36 = vadd.f32 %v7051_v55, %v16258_v63  ;;  %v16389_v39 = vpop.f32.mrf.mxu0 }
 0x49d   : > { %17883 = vst [vmem:[#allocation99_spill] sm:$0xff] %v16389_v39  ;;  %v11222_v34 = vpop.f32.mrf.mxu1 }
 0x49e   : > { %v16392_v38 = vadd.f32 %v11222_v34, %v16261_v29  ;;  %v11281_v1 = vpop.f32.mrf.mxu0 }
 0x49f   : > { %v7054_v0 = vpop.f32.mrf.mxu1 }
 0x4a0   : > { %v16395_v45 = vadd.f32 %v7054_v0, %v16264_v17  ;;  %v16397_v49 = vpop.f32.mrf.mxu0 }
 0x4a1   : > { %17884 = vst [vmem:[#allocation9_spill] sm:$0xff] %v16397_v49  ;;  %v11225_v8 = vpop.f32.mrf.mxu1 }
 0x4a2   : > { %v16400_v42 = vadd.f32 %v11225_v8, %v16267_v62  ;;  %v16402_v33 = vpop.f32.mrf.mxu0 }
 0x4a3   : > { %17885 = vst [vmem:[#allocation65_spill] sm:$0xff] %v16402_v33  ;;  %v7067_v63 = vpop.f32.mrf.mxu1 }
 0x4a4   : > { %v16405_v55 = vadd.f32 %v7067_v63, %v16270_v32  ;;  %v16407_v39 = vpop.f32.mrf.mxu0 }
 0x4a5   : > { %17886 = vst [vmem:[#allocation58_spill] sm:$0xff] %v16407_v39  ;;  %v11226_v29 = vpop.f32.mrf.mxu1 }
 0x4a6   : > { %v16410_v34 = vadd.f32 %v11226_v29, %v16273_v48  ;;  %v11285_v17 = vpop.f32.mrf.mxu0 }
 0x4a7   : > { %v7070_v0 = vpop.f32.mrf.mxu1 }
 0x4a8   : > { %v16413_v49 = vadd.f32 %v7070_v0, %v16276_v22  ;;  %v7336_v12 = vpop.f32.mrf.mxu0 }
 0x4a9   : > { %v11229_v62 = vpop.f32.mrf.mxu1 }
 0x4aa   : > { %17887 = vst [vmem:[#allocation23_spill] sm:$0xff] %v16413_v49  ;;  %v16416_v8 = vadd.f32 %v11229_v62, %v16279_v61  ;;  %v16418_v33 = vpop.f32.mrf.mxu0 }
 0x4ab   : > { %17889 = vst [vmem:[#allocation64_spill] sm:$0xff] %v16418_v33  ;;  %v7083_v32 = vpop.f32.mrf.mxu1 }
 0x4ac   : > { %17888 = vst [vmem:[#allocation51_spill] sm:$0xff] %v16416_v8  ;;  %v16421_v63 = vadd.f32 %v7083_v32, %v16282_v54  ;;  %v16423_v39 = vpop.f32.mrf.mxu0 }
 0x4ad   : > { %17890 = vst [vmem:[#allocation8_spill] sm:$0xff] %v16423_v39  ;;  %v11230_v48 = vpop.f32.mrf.mxu1 }
 0x4ae   : > { %v16426_v29 = vadd.f32 %v11230_v48, %v16285_v18  ;;  %v11289_v21 = vpop.f32.mrf.mxu0 }
 0x4af   : > { %v7086_v22 = vpop.f32.mrf.mxu1 }
 0x4b0   : > { %v16429_v0 = vadd.f32 %v7086_v22, %v16288_v7  ;;  %v7352_v49 = vpop.f32.mrf.mxu0 }
 0x4b1   : > { %v11233_v61 = vpop.f32.mrf.mxu1 }
 0x4b2   : > { %17891 = vst [vmem:[#allocation27_spill] sm:$0xff] %v16429_v0  ;;  %v7168_v62 = vadd.f32 %v11233_v61, %v16291_v57  ;;  %v16432_v33 = vpop.f32.mrf.mxu0 }
 0x4b3   : > { %17892 = vst [vmem:[#allocation33_spill] sm:$0xff] %v16432_v33  ;;  %v7099_v8 = vpop.f32.mrf.mxu1 }
 0x4b4   : > { %v16435_v54 = vadd.f32 %v7099_v8, %v16296_v15  ;;  %v16437_v32 = vpop.f32.mrf.mxu0  ;;  %v16439_v39 = vadd.f32 %v11281_v1, %v7168_v62 }
 0x4b5   : > { %17893 = vst [vmem:[#allocation55_spill] sm:$0xff] %v16437_v32  ;;  %v11234_v18 = vpop.f32.mrf.mxu1 }
 0x4b6   : > { %17894 = vst [vmem:[#allocation71_spill] sm:$0xff] %v16439_v39  ;;  %v16442_v48 = vadd.f32 %v11234_v18, %v16301_v52  ;;  %v16444_v7 = vpop.f32.mrf.mxu0 }
 0x4b7   : > { %v7102_v22 = vpop.f32.mrf.mxu1 }
 0x4b8   : > { %v16447_v0 = vadd.f32 %v7102_v22, %v16306_v47  ;;  %v16449_v57 = vpop.f32.mrf.mxu0 }
 0x4b9   : > { %v11237_v61 = vpop.f32.mrf.mxu1 }
 0x4ba   : > { %v7172_v15 = vadd.f32 %v11237_v61, %v16311_v3  ;;  %v16452_v8 = vpop.f32.mrf.mxu0 }
 0x4bb   : > { %v7115_v32 = vpop.f32.mrf.mxu1 }
 0x4bc   : > { %v7170_v1 = vadd.f32 %v7115_v32, %v16316_v11  ;;  %v16455_v62 = vpop.f32.mrf.mxu0  ;;  %v16457_v52 = vadd.f32 %v11285_v17, %v7172_v15 }
 0x4bd   : > { %v11238_v18 = vpop.f32.mrf.mxu1 }
 0x4be   : > { %17895 = vst [vmem:[#allocation40_spill] sm:$0xff] %v16457_v52  ;;  %v16460_v33 = vadd.f32 %v11238_v18, %v16321_v25  ;;  %v16462_v47 = vpop.f32.mrf.mxu0  ;;  %v16464_v22 = vadd.f32 %v7336_v12, %v7170_v1 }
 0x4bf   : > { %v7118_v39 = vpop.f32.mrf.mxu1 }
 0x4c0   : > { %v16467_v3 = vadd.f32 %v7118_v39, %v16326_v35  ;;  %v16469_v61 = vpop.f32.mrf.mxu0  ;;  %v7149_v35 = vadd.f32 %v16355_v46, %v16237_v27  ;;  %v7369_v27 = vadd.f32 %v16294_v41, %v16344_v53  ;;  %v7373_v53 = vadd.f32 %v16314_v58, %v16364_v31 }
 0x4c1   : > { %v11241_v11 = vpop.f32.mrf.mxu1 }
 0x4c2   : > { %v7176_v32 = vadd.f32 %v11241_v11, %v16331_v51  ;;  %v16472_v17 = vpop.f32.mrf.mxu0  ;;  %v7147_v51 = vadd.f32 %v16359_v26, %v16240_v44  ;;  %v7151_v11 = vadd.f32 %v16377_v56, %v16252_v23  ;;  %v7371_v56 = vadd.f32 %v16319_v4, %v16369_v2 }
 0x4c3   : > { %v7131_v15 = vpop.f32.mrf.mxu1  ;;  %v16537_v4 = vadd.f32 %v16346_v5, %v16392_v38  ;;  %v17898_v38 = vld [vmem:[#allocation11_spill] sm:$0xff] }
 0x4c4   : > { %v7174_v52 = vadd.f32 %v7131_v15, %v16336_v14  ;;  %v16475_v25 = vadd.f32 %v11289_v21, %v7176_v32  ;;  %v16477_v18 = vpop.f32.mrf.mxu0  ;;  %v7153_v21 = vadd.f32 %v16373_v20, %v16249_v59  ;;  %v7370_v59 = vadd.f32 %v16304_v43, %v7149_v35  ;;  %v17900_v35 = vld [vmem:[#allocation98_spill] sm:$0xff] }
 0x4c5   : > { %v11242_v12 = vpop.f32.mrf.mxu1  ;;  %v7368_v23 = vadd.f32 %v16309_v50, %v7147_v51  ;;  %v16524_v43 = vadd.f32 %v16329_v24, %v7151_v11  ;;  %v16545_v24 = vadd.f32 %v16357_v30, %v16400_v42  ;;  %v17899_v42 = vld [vmem:[#allocation51_spill] sm:$0xff] }
 0x4c6   : > { %v16488_v39 = vadd.f32 %v11242_v12, %v16341_v60  ;;  %v16490_v1 = vadd.f32 %v7352_v49, %v7174_v52  ;;  %v16492_v14 = vpop.f32.mrf.mxu0  ;;  %v16505_v60 = vld [vmem:[%s425_s20] ss:$0 sm:$0xff]  ;;  %v7367_v49 = vadd.f32 %v16299_v13, %v16351_v10  ;;  %v7374_v13 = vadd.f32 %v16324_v16, %v7153_v21  ;;  %v17902_v21 = vld [vmem:[#allocation66_spill] sm:$0xff]  ;;  %s16779_s20 = scalar_lea.sflag [#allocation4], %s402_s27 }
 0x4c7   : > { %v7134_v32 = vpop.f32.mrf.mxu1  ;;  %v16529_v52 = vadd.f32 %v16334_v9, %v16382_v28  ;;  %v16533_v12 = vadd.f32 %v16339_v6, %v16387_v36  ;;  %v16541_v16 = vadd.f32 %v16353_v19, %v16395_v45  ;;  %v16549_v9 = vadd.f32 %v16361_v37, %v16405_v55  ;;  %v17896_v28 = vld [vmem:[#allocation49_spill] sm:$0xff]  ;;  %v17897_v45 = vld [vmem:[#allocation23_spill] sm:$0xff]  ;;  %v17901_v55 = vld [vmem:[#allocation100_spill] sm:$0xff] }
 0x4c8   : > { %v16499_v15 = vadd.f32 %v7134_v32, %v16348_v40  ;;  %v16503_v44 = vpop.f32.mrf.mxu0  ;;  %v16516_v40 = vld [vmem:[%s16825_s6] ss:$0 sm:$0xff]  ;;  %v16557_v36 = vadd.f32 %v17896_v28, %v16410_v34  ;;  %v16561_v30 = vadd.f32 %v17898_v38, %v17897_v45  ;;  %v16565_v37 = vadd.f32 %v17900_v35, %v17899_v42  ;;  %v17907_v38 = vld [vmem:[#allocation58_spill] sm:$0xff] }
 0x4c9   : > { %v11309_v46 = vpop.f32.mrf.mxu1  ;;  %v16569_v51 = vadd.f32 %v17901_v55, %v16421_v63  ;;  %v16573_v11 = vadd.f32 %v17902_v21, %v16426_v29  ;;  %v17905_v63 = vld [vmem:[#allocation9_spill] sm:$0xff]  ;;  %v16595_v42 = vadd.f32 %v17907_v38, %v16447_v0  ;;  %v17909_v0 = vld [vmem:[#allocation8_spill] sm:$0xff] }
 0x4ca   : > { %v7574_v26 = vadd.f32 %v11309_v46, %v7369_v27  ;;  %v16511_v20 = vpop.f32.mrf.mxu0  ;;  %v17906_v29 = vld [vmem:[#allocation65_spill] sm:$0xff] }
 0x4cb   : > { %v7445_v41 = vpop.f32.mrf.mxu1 }
 0x4cc   : > { %v7612_v50 = vmul.f32 %v16505_v60, %v7574_v26  ;;  %v7572_v10 = vadd.f32 %v7445_v41, %v7367_v49  ;;  %v16551_v31 = vpop.f32.mrf.mxu0  ;;  %v17904_v41 = vld [vmem:[#allocation99_spill] sm:$0xff] }
 0x4cd   : > { %v11310_v58 = vpop.f32.mrf.mxu1 }
 0x4ce   : > { %v7650_v6 = vadd.f32 %v16516_v40, %v7612_v50  ;;  %v7610_v2 = vmul.f32 %v16505_v60, %v7572_v10  ;;  %v7575_v5 = vadd.f32 %v11310_v58, %v7370_v59  ;;  %v16577_v49 = vpop.f32.mrf.mxu0  ;;  %v17903_v59 = vld [vmem:[#allocation27_spill] sm:$0xff]  ;;  %v16585_v10 = vadd.f32 %v17905_v63, %v16435_v54  ;;  %v17908_v54 = vld [vmem:[#allocation64_spill] sm:$0xff] }
 0x4cf   : > { %v7448_v19 = vpop.f32.mrf.mxu1  ;;  %v16581_v50 = vadd.f32 %v17904_v41, %v17903_v59  ;;  %v16589_v58 = vadd.f32 %v17906_v29, %v16442_v48  ;;  %v16599_v35 = vadd.f32 %v17908_v54, %v16460_v33 }
 0x4d0   : > { %v7648_v34 = vadd.f32 %v16516_v40, %v7610_v2  ;;  %v7613_v32 = vmul.f32 %v16505_v60, %v7575_v5  ;;  %v7573_v27 = vadd.f32 %v7448_v19, %v7368_v23  ;;  %vm7682_vm3 = vcmp.ge.f32.partialorder %v7650_v6, 0.0 }
 0x4d1   : > { %v7714_v46 = vmul.f32 0.2, %v7650_v6  ;;  %v11313_v26 = vpop.f32.mrf.mxu1 }
 0x4d2   : > { %v7651_v2 = vadd.f32 %v16516_v40, %v7613_v32  ;;  %v7611_v23 = vmul.f32 %v16505_v60, %v7573_v27  ;;  %v7578_v5 = vadd.f32 %v11313_v26, %v7373_v53  ;;  %vm7680_vm7 = vcmp.ge.f32.partialorder %v7648_v34, 0.0 }
 0x4d3   : > { %v7746_v28 = vsel %vm7682_vm3, %v7650_v6, %v7714_v46  ;;  %v7712_v19 = vmul.f32 0.2, %v7648_v34  ;;  %v7461_v45 = vpop.f32.mrf.mxu1  ;;  %v16603_v46 = vpop.f32.mrf.mxu0  ;;  %v16607_v26 = vadd.f32 %v17909_v0, %v16467_v3 }
 0x4d4   : > { %v7649_v48 = vadd.f32 %v16516_v40, %v7611_v23  ;;  %v7778_v55 = vmul.f32 1.4142135, %v7746_v28  ;;  %v7616_v21 = vmul.f32 %v16505_v60, %v7578_v5  ;;  %v7576_v32 = vadd.f32 %v7461_v45, %v7371_v56 }
 0x4d5   : > { %v7744_v53 = vsel %vm7680_vm7, %v7648_v34, %v7712_v19  ;;  %vm7683_vm10 = vcmp.ge.f32.partialorder %v7651_v2, 0.0  ;;  %v7715_v6 = vmul.f32 0.2, %v7651_v2  ;;  %v11314_v27 = vpop.f32.mrf.mxu1 }
 0x4d6   : > { %v8412_v33 = vadd.f32 %v16444_v7, %v7778_v55  ;;  %v7654_v59 = vadd.f32 %v16516_v40, %v7616_v21  ;;  %v7776_v41 = vmul.f32 1.4142135, %v7744_v53  ;;  %v7614_v63 = vmul.f32 %v16505_v60, %v7576_v32 }
 0x4d7   : > { %v7747_v56 = vsel %vm7683_vm10, %v7651_v2, %v7715_v6  ;;  %v7579_v34 = vadd.f32 %v11314_v27, %v7374_v13  ;;  %vm7681_vm5 = vcmp.ge.f32.partialorder %v7649_v48, 0.0  ;;  %v7713_v29 = vmul.f32 0.2, %v7649_v48  ;;  %v7464_v23 = vpop.f32.mrf.mxu1  ;;  %v16621_v13 = vpop.f32.mrf.mxu0 }
 0x4d8   : > { %v8532_v5 = vmul.f32 0.70710677, %v8412_v33  ;;  %v8404_v28 = vadd.f32 %v16449_v57, %v7776_v41  ;;  %v7652_v19 = vadd.f32 %v16516_v40, %v7614_v63  ;;  %v7779_v3 = vmul.f32 1.4142135, %v7747_v56 }
 0x4d9   : > { %v7617_v7 = vmul.f32 %v16505_v60, %v7579_v34  ;;  %v7745_v45 = vsel %vm7681_vm5, %v7649_v48, %v7713_v29  ;;  %v7577_v38 = vadd.f32 %v7464_v23, %v16524_v43  ;;  %vm7686_vm1 = vcmp.ge.f32.partialorder %v7654_v59, 0.0  ;;  %v11317_v2 = vpop.f32.mrf.mxu1  ;;  %v16631_v29 = vpop.f32.mrf.mxu0 }
 0x4da   : > { %v8530_v54 = vmul.f32 0.70710677, %v8404_v28  ;;  %v8415_v55 = vadd.f32 %v16452_v8, %v7779_v3  ;;  %v7777_v21 = vmul.f32 1.4142135, %v7745_v45  ;;  %v7718_v57 = vmul.f32 0.2, %v7654_v59 }
 0x4db   : > { %v7655_v32 = vadd.f32 %v16516_v40, %v7617_v7  ;;  %v7615_v53 = vmul.f32 %v16505_v60, %v7577_v38  ;;  %v7582_v6 = vadd.f32 %v11317_v2, %v16529_v52  ;;  %vm7684_vm14 = vcmp.ge.f32.partialorder %v7652_v19, 0.0  ;;  %v7477_v27 = vpop.f32.mrf.mxu1 }
 0x4dc   : > { %v8533_v48 = vmul.f32 0.70710677, %v8415_v55  ;;  %v8407_v43 = vadd.f32 %v16455_v62, %v7777_v21  ;;  %v7750_v0 = vsel %vm7686_vm1, %v7654_v59, %v7718_v57  ;;  %v7716_v33 = vmul.f32 0.2, %v7652_v19  ;;  %v16643_v57 = vpop.f32.mrf.mxu0 }
 0x4dd   : > { %v7653_v41 = vadd.f32 %v16516_v40, %v7615_v53  ;;  %v7782_v63 = vmul.f32 1.4142135, %v7750_v0  ;;  %v7620_v8 = vmul.f32 %v16505_v60, %v7582_v6  ;;  %v7580_v56 = vadd.f32 %v7477_v27, %v16533_v12  ;;  %v11318_v34 = vpop.f32.mrf.mxu1 }
 0x4de   : > { %v9790_v23 = vpack.c.bf16 %v8533_v48, %v8532_v5  ;;  %v8531_v52 = vmul.f32 0.70710677, %v8407_v43  ;;  %v7748_v28 = vsel %vm7684_vm14, %v7652_v19, %v7716_v33  ;;  %vm7687_vm15 = vcmp.ge.f32.partialorder %v7655_v32, 0.0 }
 0x4df   : > { %v8428_v3 = vadd.f32 %v16462_v47, %v7782_v63  ;;  %v7658_v62 = vadd.f32 %v16516_v40, %v7620_v8  ;;  %v7780_v59 = vmul.f32 1.4142135, %v7748_v28  ;;  %v7618_v7 = vmul.f32 %v16505_v60, %v7580_v56  ;;  %v7480_v45 = vpop.f32.mrf.mxu1 }
 0x4e0   : > { %10004 = vst [vmem:[%s16637_s28 + $0x8] sm:$0xff] %v9790_v23   ;;  %v9785_v12 = vpack.c.bf16 %v8531_v52, %v8530_v54  ;;  %v7719_v38 = vmul.f32 0.2, %v7655_v32  ;;  %v7583_v5 = vadd.f32 %v11318_v34, %v16537_v4  ;;  %vm7685_vm2 = vcmp.ge.f32.partialorder %v7653_v41, 0.0 }
 0x4e1   : > { %v8536_v19 = vmul.f32 0.70710677, %v8428_v3  ;;  %v8420_v2 = vadd.f32 %v16469_v61, %v7780_v59  ;;  %v7656_v47 = vadd.f32 %v16516_v40, %v7618_v7  ;;  %v7717_v55 = vmul.f32 0.2, %v7653_v41  ;;  %v11321_v21 = vpop.f32.mrf.mxu1 }
 0x4e2   : > { %9786 = vst [vmem:[%s16637_s28] sm:$0xff] %v9785_v12   ;;  %v7751_v53 = vsel %vm7687_vm15, %v7655_v32, %v7719_v38  ;;  %v7621_v6 = vmul.f32 %v16505_v60, %v7583_v5  ;;  %v7581_v54 = vadd.f32 %v7480_v45, %v16541_v16  ;;  %vm7690_vm6 = vcmp.ge.f32.partialorder %v7658_v62, 0.0  ;;  %v16653_v16 = vpop.f32.mrf.mxu0 }
 0x4e3   : > { %v8534_v27 = vmul.f32 0.70710677, %v8420_v2  ;;  %v7783_v4 = vmul.f32 1.4142135, %v7751_v53  ;;  %v7749_v48 = vsel %vm7685_vm2, %v7653_v41, %v7717_v55  ;;  %v7722_v43 = vmul.f32 0.2, %v7658_v62  ;;  %v7493_v0 = vpop.f32.mrf.mxu1 }
 0x4e4   : > { %v7659_v61 = vadd.f32 %v16516_v40, %v7621_v6  ;;  %v7781_v33 = vmul.f32 1.4142135, %v7749_v48  ;;  %v7619_v63 = vmul.f32 %v16505_v60, %v7581_v54  ;;  %v7586_v8 = vadd.f32 %v11321_v21, %v16545_v24 }
 0x4e5   : > { %v8431_v56 = vadd.f32 %v16472_v17, %v7783_v4  ;;  %v7754_v32 = vsel %vm7690_vm6, %v7658_v62, %v7722_v43  ;;  %vm7688_vm8 = vcmp.ge.f32.partialorder %v7656_v47, 0.0  ;;  %v7720_v34 = vmul.f32 0.2, %v7656_v47  ;;  %v11322_v23 = vpop.f32.mrf.mxu1 }
 0x4e6   : > { %v8423_v52 = vadd.f32 %v16477_v18, %v7781_v33  ;;  %v7657_v41 = vadd.f32 %v16516_v40, %v7619_v63  ;;  %v7786_v28 = vmul.f32 1.4142135, %v7754_v32  ;;  %v7624_v3 = vmul.f32 %v16505_v60, %v7586_v8 }
 0x4e7   : > { %v8537_v59 = vmul.f32 0.70710677, %v8431_v56  ;;  %v7752_v7 = vsel %vm7688_vm8, %v7656_v47, %v7720_v34  ;;  %v7584_v45 = vadd.f32 %v7493_v0, %v16549_v9  ;;  %vm7691_vm0 = vcmp.ge.f32.partialorder %v7659_v61, 0.0  ;;  %v7496_v17 = vpop.f32.mrf.mxu1  ;;  %v16663_v47 = vpop.f32.mrf.mxu0 }
 0x4e8   : > { %v8535_v24 = vmul.f32 0.70710677, %v8423_v52  ;;  %v8444_v62 = vadd.f32 %v16492_v14, %v7786_v28  ;;  %v7662_v12 = vadd.f32 %v16516_v40, %v7624_v3  ;;  %v7784_v38 = vmul.f32 1.4142135, %v7752_v7 }
 0x4e9   : > { %v9800_v5 = vpack.c.bf16 %v8537_v59, %v8536_v19  ;;  %v7622_v18 = vmul.f32 %v16505_v60, %v7584_v45  ;;  %v7723_v2 = vmul.f32 0.2, %v7659_v61  ;;  %v7587_v55 = vadd.f32 %v11322_v23, %v16557_v36  ;;  %v11325_v21 = vpop.f32.mrf.mxu1  ;;  %v16674_v56 = vpop.f32.mrf.mxu0 }
 0x4ea   : > { %v9795_v9 = vpack.c.bf16 %v8535_v24, %v8534_v27  ;;  %v8540_v53 = vmul.f32 0.70710677, %v8444_v62  ;;  %v8436_v6 = vadd.f32 %v16503_v44, %v7784_v38  ;;  %vm7689_vm9 = vcmp.ge.f32.partialorder %v7657_v41, 0.0 }
 0x4eb   : > { %10006 = vst [vmem:[%s16637_s28 + $0x18] sm:$0xff] %v9800_v5   ;;  %v7660_v14 = vadd.f32 %v16516_v40, %v7622_v18  ;;  %v7755_v54 = vsel %vm7691_vm0, %v7659_v61, %v7723_v2  ;;  %v7625_v19 = vmul.f32 %v16505_v60, %v7587_v55  ;;  %v7721_v4 = vmul.f32 0.2, %v7657_v41  ;;  %v7509_v48 = vpop.f32.mrf.mxu1  ;;  %v16684_v62 = vpop.f32.mrf.mxu0 }
 0x4ec   : > { %10005 = vst [vmem:[%s16637_s28 + $0x10] sm:$0xff] %v9795_v9   ;;  %v8538_v43 = vmul.f32 0.70710677, %v8436_v6  ;;  %v7787_v36 = vmul.f32 1.4142135, %v7755_v54  ;;  %v7585_v0 = vadd.f32 %v7496_v17, %v16561_v30  ;;  %vm7694_vm11 = vcmp.ge.f32.partialorder %v7662_v12, 0.0 }
 0x4ed   : > { %v7663_v27 = vadd.f32 %v16516_v40, %v7625_v19  ;;  %v7753_v33 = vsel %vm7689_vm9, %v7657_v41, %v7721_v4  ;;  %v7726_v44 = vmul.f32 0.2, %v7662_v12  ;;  %v7590_v63 = vadd.f32 %v11325_v21, %v16565_v37  ;;  %v11326_v8 = vpop.f32.mrf.mxu1  ;;  %v16694_v4 = vpop.f32.mrf.mxu0 }
 0x4ee   : > { %v8447_v61 = vadd.f32 %v16511_v20, %v7787_v36  ;;  %v7785_v32 = vmul.f32 1.4142135, %v7753_v33  ;;  %v7623_v34 = vmul.f32 %v16505_v60, %v7585_v0  ;;  %vm7692_vm4 = vcmp.ge.f32.partialorder %v7660_v14, 0.0 }
 0x4ef   : > { %v7758_v23 = vsel %vm7694_vm11, %v7662_v12, %v7726_v44  ;;  %v7628_v52 = vmul.f32 %v16505_v60, %v7590_v63  ;;  %v7724_v30 = vmul.f32 0.2, %v7660_v14  ;;  %v7588_v28 = vadd.f32 %v7509_v48, %v16569_v51  ;;  %v7512_v3 = vpop.f32.mrf.mxu1 }
 0x4f0   : > { %v8541_v41 = vmul.f32 0.70710677, %v8447_v61  ;;  %v8439_v59 = vadd.f32 %v16551_v31, %v7785_v32  ;;  %v7661_v37 = vadd.f32 %v16516_v40, %v7623_v34  ;;  %v7790_v7 = vmul.f32 1.4142135, %v7758_v23 }
 0x4f1   : > { %v7666_v20 = vadd.f32 %v16516_v40, %v7628_v52  ;;  %v7756_v45 = vsel %vm7692_vm4, %v7660_v14, %v7724_v30  ;;  %v7626_v17 = vmul.f32 %v16505_v60, %v7588_v28  ;;  %vm7695_vm12 = vcmp.ge.f32.partialorder %v7663_v27, 0.0  ;;  %v11329_v24 = vpop.f32.mrf.mxu1  ;;  %v16705_v28 = vpop.f32.mrf.mxu0 }
 0x4f2   : > { %v9810_v12 = vpack.c.bf16 %v8541_v41, %v8540_v53  ;;  %v8539_v38 = vmul.f32 0.70710677, %v8439_v59  ;;  %v8460_v51 = vadd.f32 %v16577_v49, %v7790_v7  ;;  %v7788_v5 = vmul.f32 1.4142135, %v7756_v45 }
 0x4f3   : > { %v7664_v31 = vadd.f32 %v16516_v40, %v7626_v17  ;;  %v7727_v18 = vmul.f32 0.2, %v7663_v27  ;;  %v7591_v2 = vadd.f32 %v11326_v8, %v16573_v11  ;;  %vm7693_vm13 = vcmp.ge.f32.partialorder %v7661_v37, 0.0  ;;  %v7525_v55 = vpop.f32.mrf.mxu1 }
 0x4f4   : > { %10008 = vst [vmem:[%s16637_s28 + $0x28] sm:$0xff] %v9810_v12   ;;  %v9805_v21 = vpack.c.bf16 %v8539_v38, %v8538_v43  ;;  %v8544_v9 = vmul.f32 0.70710677, %v8460_v51  ;;  %v8452_v6 = vadd.f32 %v16603_v46, %v7788_v5  ;;  %v7725_v14 = vmul.f32 0.2, %v7661_v37 }
 0x4f5   : > { %v7759_v53 = vsel %vm7695_vm12, %v7663_v27, %v7727_v18  ;;  %v7629_v54 = vmul.f32 %v16505_v60, %v7591_v2  ;;  %v7589_v49 = vadd.f32 %v7512_v3, %v16581_v50  ;;  %vm7698_vm3 = vcmp.ge.f32.partialorder %v7666_v20, 0.0  ;;  %v11330_v19 = vpop.f32.mrf.mxu1  ;;  %v17910_v27 = vld [vmem:[#allocation71_spill] sm:$0xff] }
 0x4f6   : > { %10007 = vst [vmem:[%s16637_s28 + $0x20] sm:$0xff] %v9805_v21   ;;  %v8542_v11 = vmul.f32 0.70710677, %v8452_v6  ;;  %v7791_v48 = vmul.f32 1.4142135, %v7759_v53  ;;  %v7757_v36 = vsel %vm7693_vm13, %v7661_v37, %v7725_v14  ;;  %v7594_v44 = vadd.f32 %v11329_v24, %v17910_v27 }
 0x4f7   : > { %v7730_v43 = vmul.f32 0.2, %v7666_v20  ;;  %v7667_v0 = vadd.f32 %v16516_v40, %v7629_v54  ;;  %v7789_v46 = vmul.f32 1.4142135, %v7757_v36  ;;  %v7627_v33 = vmul.f32 %v16505_v60, %v7589_v49  ;;  %v7528_v63 = vpop.f32.mrf.mxu1  ;;  %v17911_v54 = vld [vmem:[#allocation40_spill] sm:$0xff] }
 0x4f8   : > { %v8463_v50 = vadd.f32 %v16621_v13, %v7791_v48  ;;  %vm7696_vm7 = vcmp.ge.f32.partialorder %v7664_v31, 0.0  ;;  %v7728_v61 = vmul.f32 0.2, %v7664_v31  ;;  %v7632_v52 = vmul.f32 %v16505_v60, %v7594_v44 }
 0x4f9   : > { %v7762_v8 = vsel %vm7698_vm3, %v7666_v20, %v7730_v43  ;;  %v8455_v32 = vadd.f32 %v16631_v29, %v7789_v46  ;;  %v7665_v34 = vadd.f32 %v16516_v40, %v7627_v33  ;;  %v11333_v30 = vpop.f32.mrf.mxu1  ;;  %v7592_v59 = vadd.f32 %v7525_v55, %v16585_v10 }
 0x4fa   : > { %v7794_v23 = vmul.f32 1.4142135, %v7762_v8  ;;  %v8545_v3 = vmul.f32 0.70710677, %v8463_v50  ;;  %v7760_v41 = vsel %vm7696_vm7, %v7664_v31, %v7728_v61  ;;  %vm7699_vm10 = vcmp.ge.f32.partialorder %v7667_v0, 0.0  ;;  %v16713_v31 = vpop.f32.mrf.mxu0 }
 0x4fb   : > { %v8543_v13 = vmul.f32 0.70710677, %v8455_v32  ;;  %v7670_v7 = vadd.f32 %v16516_v40, %v7632_v52  ;;  %v7792_v29 = vmul.f32 1.4142135, %v7760_v41  ;;  %v7541_v20 = vpop.f32.mrf.mxu1  ;;  %v7630_v17 = vmul.f32 %v16505_v60, %v7592_v59 }
 0x4fc   : > { %v8476_v37 = vadd.f32 %v16643_v57, %v7794_v23  ;;  %v9820_v45 = vpack.c.bf16 %v8545_v3, %v8544_v9  ;;  %v7731_v24 = vmul.f32 0.2, %v7667_v0  ;;  %v7595_v12 = vadd.f32 %v11330_v19, %v16589_v58  ;;  %v16725_v36 = vpop.f32.mrf.mxu0 }
 0x4fd   : > { %v9815_v38 = vpack.c.bf16 %v8543_v13, %v8542_v11  ;;  %v8468_v10 = vadd.f32 %v16653_v16, %v7792_v29  ;;  %vm7697_vm5 = vcmp.ge.f32.partialorder %v7665_v34, 0.0  ;;  %v11334_v5 = vpop.f32.mrf.mxu1  ;;  %v7668_v57 = vadd.f32 %v16516_v40, %v7630_v17 }
 0x4fe   : > { %v8548_v51 = vmul.f32 0.70710677, %v8476_v37  ;;  %10010 = vst [vmem:[%s16637_s28 + $0x38] sm:$0xff] %v9820_v45   ;;  %v7763_v18 = vsel %vm7699_vm10, %v7667_v0, %v7731_v24  ;;  %v7633_v2 = vmul.f32 %v16505_v60, %v7595_v12  ;;  %v7729_v55 = vmul.f32 0.2, %v7665_v34 }
 0x4ff   : > { %10009 = vst [vmem:[%s16637_s28 + $0x30] sm:$0xff] %v9815_v38   ;;  %v8546_v21 = vmul.f32 0.70710677, %v8468_v10  ;;  %v7795_v9 = vmul.f32 1.4142135, %v7763_v18  ;;  %v7593_v58 = vadd.f32 %v7528_v63, %v16595_v42  ;;  %vm7702_vm1 = vcmp.ge.f32.partialorder %v7670_v7, 0.0  ;;  %v7544_v6 = vpop.f32.mrf.mxu1 }
 0x500   : > { %v7671_v16 = vadd.f32 %v16516_v40, %v7633_v2  ;;  %v7761_v14 = vsel %vm7697_vm5, %v7665_v34, %v7729_v55  ;;  %v7734_v53 = vmul.f32 0.2, %v7670_v7  ;;  %v7598_v49 = vadd.f32 %v11333_v30, %v17911_v54 }
 0x501   : > { %v8479_v19 = vadd.f32 %v16663_v47, %v7795_v9  ;;  %v7793_v11 = vmul.f32 1.4142135, %v7761_v14  ;;  %v7631_v48 = vmul.f32 %v16505_v60, %v7593_v58  ;;  %vm7700_vm14 = vcmp.ge.f32.partialorder %v7668_v57, 0.0  ;;  %v11337_v47 = vpop.f32.mrf.mxu1 }
 0x502   : > { %v7766_v43 = vsel %vm7702_vm1, %v7670_v7, %v7734_v53  ;;  %v7636_v0 = vmul.f32 %v16505_v60, %v7598_v49  ;;  %v7732_v42 = vmul.f32 0.2, %v7668_v57  ;;  %v7596_v46 = vadd.f32 %v7541_v20, %v16464_v22  ;;  %v8499_v22 = vpop.f32.mrf.mxu0 }
 0x503   : > { %v8549_v33 = vmul.f32 0.70710677, %v8479_v19  ;;  %v8471_v27 = vadd.f32 %v16674_v56, %v7793_v11  ;;  %v7669_v44 = vadd.f32 %v16516_v40, %v7631_v48  ;;  %v7798_v63 = vmul.f32 1.4142135, %v7766_v43  ;;  %v17912_v56 = vld [vmem:[#allocation33_spill] sm:$0xff]  ;;  %v7557_v29 = vpop.f32.mrf.mxu1  ;;  %v17913_v43 = vld [vmem:[#allocation55_spill] sm:$0xff] }
 0x504   : > { %v7674_v50 = vadd.f32 %v16516_v40, %v7636_v0  ;;  %v7764_v8 = vsel %vm7700_vm14, %v7668_v57, %v7732_v42  ;;  %v7634_v61 = vmul.f32 %v16505_v60, %v7596_v46  ;;  %vm7703_vm15 = vcmp.ge.f32.partialorder %v7671_v16, 0.0  ;;  %v11382_v12 = vpop.f32.mrf.mxu0 }
 0x505   : > { %v9830_v32 = vpack.c.bf16 %v8549_v33, %v8548_v51  ;;  %v8547_v34 = vmul.f32 0.70710677, %v8471_v27  ;;  %v8492_v23 = vadd.f32 %v16684_v62, %v7798_v63  ;;  %v7796_v52 = vmul.f32 1.4142135, %v7764_v8  ;;  %v11338_v2 = vpop.f32.mrf.mxu1 }
 0x506   : > { %v7398_v30 = vadd.f32 %v17912_v56, %v16488_v39  ;;  %v7735_v3 = vmul.f32 0.2, %v7671_v16  ;;  %v7599_v41 = vadd.f32 %v11334_v5, %v16599_v35  ;;  %vm7701_vm2 = vcmp.ge.f32.partialorder %v7669_v44, 0.0 }
 0x507   : > { %10012 = vst [vmem:[%s16637_s28 + $0x48] sm:$0xff] %v9830_v32   ;;  %v9825_v59 = vpack.c.bf16 %v8547_v34, %v8546_v21  ;;  %v8552_v13 = vmul.f32 0.70710677, %v8492_v23  ;;  %v7672_v37 = vadd.f32 %v16516_v40, %v7634_v61  ;;  %v7733_v7 = vmul.f32 0.2, %v7669_v44  ;;  %v7560_v48 = vpop.f32.mrf.mxu1 }
 0x508   : > { %v7767_v20 = vsel %vm7703_vm15, %v7671_v16, %v7735_v3  ;;  %v7637_v62 = vmul.f32 %v16505_v60, %v7599_v41  ;;  %v7597_v45 = vadd.f32 %v7544_v6, %v16607_v26  ;;  %vm7706_vm6 = vcmp.ge.f32.partialorder %v7674_v50, 0.0 }
 0x509   : > { %10011 = vst [vmem:[%s16637_s28 + $0x40] sm:$0xff] %v9825_v59   ;;  %v8484_v39 = vadd.f32 %v16694_v4, %v7796_v52  ;;  %v7799_v17 = vmul.f32 1.4142135, %v7767_v20  ;;  %v7765_v35 = vsel %vm7701_vm2, %v7669_v44, %v7733_v7  ;;  %v7738_v24 = vmul.f32 0.2, %v7674_v50 }
 0x50a   : > { %v7675_v38 = vadd.f32 %v16516_v40, %v7637_v62  ;;  %v7797_v51 = vmul.f32 1.4142135, %v7765_v35  ;;  %v7635_v10 = vmul.f32 %v16505_v60, %v7597_v45  ;;  %v7602_v5 = vadd.f32 %v11337_v47, %v16475_v25  ;;  %v8502_v25 = vpop.f32.mrf.mxu0 }
 0x50b   : > { %v8495_v57 = vadd.f32 %v16705_v28, %v7799_v17  ;;  %v7770_v18 = vsel %vm7706_vm6, %v7674_v50, %v7738_v24  ;;  %vm7704_vm8 = vcmp.ge.f32.partialorder %v7672_v37, 0.0  ;;  %v7736_v26 = vmul.f32 0.2, %v7672_v37 }
 0x50c   : > { %v8487_v55 = vadd.f32 %v16713_v31, %v7797_v51  ;;  %v7673_v4 = vadd.f32 %v16516_v40, %v7635_v10  ;;  %v7802_v21 = vmul.f32 1.4142135, %v7770_v18  ;;  %v7640_v9 = vmul.f32 %v16505_v60, %v7602_v5  ;;  %v11385_v63 = vpop.f32.mrf.mxu0 }
 0x50d   : > { %v8550_v58 = vmul.f32 0.70710677, %v8484_v39  ;;  %v8553_v6 = vmul.f32 0.70710677, %v8495_v57  ;;  %v7768_v16 = vsel %vm7704_vm8, %v7672_v37, %v7736_v26  ;;  %v7600_v14 = vadd.f32 %v7557_v29, %v16490_v1 }
 0x50e   : > { %v8551_v53 = vmul.f32 0.70710677, %v8487_v55  ;;  %v7678_v28 = vadd.f32 %v16516_v40, %v7640_v9  ;;  %v7800_v54 = vmul.f32 1.4142135, %v7768_v16  ;;  %vm7707_vm0 = vcmp.ge.f32.partialorder %v7675_v38, 0.0  ;;  %v8515_v3 = vpop.f32.mrf.mxu0 }
 0x50f   : > { %v9840_v49 = vpack.c.bf16 %v8553_v6, %v8552_v13  ;;  %v7638_v31 = vmul.f32 %v16505_v60, %v7600_v14  ;;  %v7739_v19 = vmul.f32 0.2, %v7675_v38  ;;  %v7603_v11 = vadd.f32 %v11338_v2, %v7398_v30 }
 0x510   : > { %v7396_v0 = vadd.f32 %v17913_v43, %v16499_v15  ;;  %v9835_v42 = vpack.c.bf16 %v8551_v53, %v8550_v58  ;;  %v8508_v46 = vadd.f32 %v16725_v36, %v7802_v21  ;;  %vm7705_vm9 = vcmp.ge.f32.partialorder %v7673_v4, 0.0  ;;  %v11386_v35 = vpop.f32.mrf.mxu0 }
 0x511   : > { %10014 = vst [vmem:[%s16637_s28 + $0x58] sm:$0xff] %v9840_v49   ;;  %v7676_v1 = vadd.f32 %v16516_v40, %v7638_v31  ;;  %v7771_v33 = vsel %vm7707_vm0, %v7675_v38, %v7739_v19  ;;  %v7641_v27 = vmul.f32 %v16505_v60, %v7603_v11  ;;  %v7737_v44 = vmul.f32 0.2, %v7673_v4 }
 0x512   : > { %10013 = vst [vmem:[%s16637_s28 + $0x50] sm:$0xff] %v9835_v42   ;;  %v8500_v47 = vadd.f32 %v8499_v22, %v7800_v54  ;;  %v7803_v50 = vmul.f32 1.4142135, %v7771_v33  ;;  %v7601_v8 = vadd.f32 %v7560_v48, %v7396_v0  ;;  %vm7710_vm11 = vcmp.ge.f32.partialorder %v7678_v28, 0.0  ;;  %v8518_v18 = vpop.f32.mrf.mxu0 }
 0x513   : > { %v7679_v61 = vadd.f32 %v16516_v40, %v7641_v27  ;;  %v7769_v15 = vsel %vm7705_vm9, %v7673_v4, %v7737_v44  ;;  %v7742_v32 = vmul.f32 0.2, %v7678_v28  ;;  %vm7708_vm4 = vcmp.ge.f32.partialorder %v7676_v1, 0.0 }
 0x514   : > { %v8511_v36 = vadd.f32 %v11382_v12, %v7803_v50  ;;  %v7801_v34 = vmul.f32 1.4142135, %v7769_v15  ;;  %v7639_v23 = vmul.f32 %v16505_v60, %v7601_v8  ;;  %v7740_v52 = vmul.f32 0.2, %v7676_v1 }
 0x515   : > { %v8556_v56 = vmul.f32 0.70710677, %v8508_v46  ;;  %v7774_v30 = vsel %vm7710_vm11, %v7678_v28, %v7742_v32  ;;  %vm7711_vm12 = vcmp.ge.f32.partialorder %v7679_v61, 0.0  ;;  %v7743_v41 = vmul.f32 0.2, %v7679_v61 }
 0x516   : > { %v8557_v22 = vmul.f32 0.70710677, %v8511_v36  ;;  %v8503_v59 = vadd.f32 %v8502_v25, %v7801_v34  ;;  %v7677_v13 = vadd.f32 %v16516_v40, %v7639_v23  ;;  %v7806_v37 = vmul.f32 1.4142135, %v7774_v30 }
 0x517   : > { %v7772_v7 = vsel %vm7708_vm4, %v7676_v1, %v7740_v52  ;;  %v7775_v29 = vsel %vm7711_vm12, %v7679_v61, %v7743_v41  ;;  %v8554_v20 = vmul.f32 0.70710677, %v8500_v47 }
 0x518   : > { %v9850_v62 = vpack.c.bf16 %v8557_v22, %v8556_v56  ;;  %v8555_v45 = vmul.f32 0.70710677, %v8503_v59  ;;  %v7804_v39 = vmul.f32 1.4142135, %v7772_v7  ;;  %v8524_v60 = vadd.f32 %v11385_v63, %v7806_v37 }
 0x519   : > { %v7807_v17 = vmul.f32 1.4142135, %v7775_v29  ;;  %vm7709_vm13 = vcmp.ge.f32.partialorder %v7677_v13, 0.0  ;;  %v7741_v24 = vmul.f32 0.2, %v7677_v13 }
 0x51a   : > { %10016 = vst [vmem:[%s16637_s28 + $0x68] sm:$0xff] %v9850_v62   ;;  %v9845_v12 = vpack.c.bf16 %v8555_v45, %v8554_v20  ;;  %v8516_v51 = vadd.f32 %v8515_v3, %v7804_v39  ;;  %v8560_v5 = vmul.f32 0.70710677, %v8524_v60 }
 0x51b   : > { %v8527_v38 = vadd.f32 %v11386_v35, %v7807_v17  ;;  %v7773_v40 = vsel %vm7709_vm13, %v7677_v13, %v7741_v24 }
 0x51c   : > { %10015 = vst [vmem:[%s16637_s28 + $0x60] sm:$0xff] %v9845_v12   ;;  %v7805_v10 = vmul.f32 1.4142135, %v7773_v40  ;;  %v8558_v55 = vmul.f32 0.70710677, %v8516_v51 }
 0x51d   : > { %v8561_v57 = vmul.f32 0.70710677, %v8527_v38 }
 0x51e   : > { %v8519_v26 = vadd.f32 %v8518_v18, %v7805_v10 }
 0x51f   : > { %v9860_v2 = vpack.c.bf16 %v8561_v57, %v8560_v5 }
 0x520   : > { %v8559_v4 = vmul.f32 0.70710677, %v8519_v26 }
 0x521   : > { %10018 = vst [vmem:[%s16637_s28 + $0x78] sm:$0xff] %v9860_v2  }
 0x522   : > { %v9855_v21 = vpack.c.bf16 %v8559_v4, %v8558_v55 }
 0x524   : > { %10017 = vst [vmem:[%s16637_s28 + $0x70] sm:$0xff] %v9855_v21  }
 0x525   : > { %11552 = shalt.err (!%p11549_p3)
}
 0x526   : > { %s11553_s27 = scalar_lea.hbm %s16772_s12, 2048  ;;  %s11557_s11 = scalar_lea.hbm %s16829_s10, 4096 }
 0x527   : > { %p11554_p4 = scmp.ne.s32.totalorder %s16772_s12, %s11553_s27  ;;  %p11558_p9 = scmp.lt.s32.totalorder %s16772_s12, %s16829_s10 }
 0x528   : > { %p11559_p10 = scmp.lt.s32.totalorder %s11557_s11, %s11553_s27 }
 0x529   : > { %p11555_p7 = pnand %p11554_p4, %p11698_p5 }
 0x52a   : > { %p11560_p11 = por %p11559_p10, %p11558_p9 }
 0x52b   : > { %p11556_p8 = pneg %p11555_p7 }
 0x52d   : > { %p11561_p12 = pnand %p11560_p11, %p11556_p8 }
 0x52f   : > { %11564 = shalt.err (!%p11561_p12)
}
 0x530   : > { %s11603_s17 = smov 64   ;;  %s11604_s21 = smov 4  }
 0x531   : > { %11404 = dma.vmem_to_hbm [thread:$0]  (%p11698_p5), %s16774_s30, 2048, %s16772_s12, %s16779_s20, %s11603_s17, %s11603_s17, %s11604_s21  }
 0x532 PF: > { %p11410_p13 = scmp.ge.s32.totalorder %s11599_s16, 2  ;;  %s8751_s26 = sand.u32 1, %s11587_s13  }
 0x533   : > { %s8752_s27 = scalar_lea.sflag [#allocation4], %s8751_s26 }
 0x534   : > { %p11407_p0 = pnand %p11410_p13, %p11702_p6 }
 0x536   : > { %p11408_p1 = pneg %p11407_p0 }
 0x538   : > { %11582 = dma.done.wait (%p11408_p1), %s8752_s27, 2048  }
 0x539   : > { %11584 = vsyncadd (%p11408_p1), %s8752_s27, 4294965248  ;;  %p20_p2 = scmp.ge.s32.totalorder %s11685_s19, 4   ;;  %s17914_s13 = smov %s11591_s14 }
 0x53a   : > { %s17915_s14 = smov %s11595_s15  ;;  %s17916_s15 = smov %s11696_s22 }
 0x53b   : > { %s17917_s16 = smov %s11685_s19  ;;  %22 = sbr.rel (!%p20_p2) target bundleno = 3 (0x3), region = 110 }
 0x540   :  { %8757 = vsyncpa [#allocation4], 1 }
 0x541   :  { %8759 = vsyncpa [#allocation4 + $0x1], 1 }

</bundles_post_ra>
